<compile_context>
chip_gen: v7x
topology: tpu7x:2x2x1
jax: 0.10.0
libtpu: 0.0.40
codegen_flags: <defaults>
</compile_context>

<pallas_src>
import jax
import jax.numpy as jnp
from jax.experimental import pallas as pl
from jax.experimental.pallas import tpu as pltpu

BN_EPS = 1e-5


# ----------------------------------------------------------------------------
# Kernel
# ----------------------------------------------------------------------------
def _gcn_spa_kernel(x_ref, g_ref, w_ref, w1_ref, b_ref, o_ref):
    """One grid step: one batch sample n, one T-block.  T is the lane axis.

    x_ref : (Cin, V, TT)   VMEM  features (slice of the original NCHW tensor)
    g_ref : (V, V, TT)     VMEM  adjacency, g_ref[v, u, t]
    w_ref : (Cout, Cin)    SMEM  BN-folded weight of self.w
    w1_ref: (Cout, Cin)    SMEM  BN-folded weight of self.w1
    b_ref : (Cout,)        SMEM  BN-folded bias
    o_ref : (Cout, V, TT)  VMEM  output (slice of the NCHW output tensor)
    """
    cin, v, tt = x_ref.shape
    cout = o_ref.shape[0]

    # In-kernel upcast (free VPU work, keeps all math f32 — v5e has no bf16 VALU).
    x = x_ref[...].astype(jnp.float32)            # (Cin, V, TT)
    g = g_ref[...].astype(jnp.float32)            # (V, V, TT)

    # Graph aggregation with the batch (T) on lanes:
    #   y[c, v, t] = sum_u g[v, u, t] * x[c, u, t]
    # One full-lane elementwise (V, V, TT) multiply + sublane reduction per
    # input channel; only leading-dim slices (no relayouts, no tiny matmuls).
    ys = [jnp.sum(g * x[c][None, :, :], axis=1) for c in range(cin)]  # (V, TT)

    # Fused 1x1 convs (BN + bias folded) + ReLU.  Scalar weights from SMEM
    # broadcast over lane-dense (V, TT) slabs on the VPU.
    for o in range(cout):
        acc = jnp.full((v, tt), b_ref[o], dtype=jnp.float32)
        for c in range(cin):
            acc = acc + w_ref[o, c] * ys[c] + w1_ref[o, c] * x[c]
        o_ref[o] = jnp.maximum(acc, 0.0).astype(o_ref.dtype)


# ----------------------------------------------------------------------------
# Parameter folding (eval-mode BN + w1 bias -> conv weights)
# ----------------------------------------------------------------------------
def fold_gcn_spa_params(w, w1, b1, gamma, beta, mean, var):
    cout, cin = w.shape[0], w.shape[1]
    s = gamma * jax.lax.rsqrt(var + BN_EPS)                    # (Cout,)
    w_s = (w.reshape(cout, cin) * s[:, None]).astype(jnp.float32)
    w1_s = (w1.reshape(cout, cin) * s[:, None]).astype(jnp.float32)
    bias = (beta + s * (b1 - mean)).astype(jnp.float32)        # (Cout,)
    return w_s, w1_s, bias


# ----------------------------------------------------------------------------
# Generation-aware block sizing
# ----------------------------------------------------------------------------
def _tpu_params():
    """(per-step block budget bytes, vmem_limit_bytes or None, # TensorCores)."""
    kind = ""
    try:
        kind = jax.devices()[0].device_kind.lower()
    except Exception:
        pass

    if "v6" in kind:                                   # v6e: 128 MiB VMEM, 1 TC
        budget, limit, cores = 24 << 20, 64 << 20, 1
    elif "v5 lite" in kind or "v5e" in kind or "v5lite" in kind:
        budget, limit, cores = 12 << 20, 32 << 20, 1   # v5e: 128 MiB VMEM, 1 TC
    elif "v5" in kind or "v4" in kind:                 # v5p / v4: 2 TCs, big VMEM
        budget, limit, cores = 24 << 20, 64 << 20, 2
    elif "7" in kind:                                  # v7x: 64 MiB VMEM/TC, 2 TCs
        budget, limit, cores = 16 << 20, 40 << 20, 2
    else:                                              # unknown: stay conservative
        budget, limit, cores = 8 << 20, None, 1

    # Clamp against the actual chip if the query is available.
    try:
        cap = int(getattr(pltpu.get_tpu_info(), "vmem_capacity_bytes", 0))
        if cap > 0:
            budget = min(budget, (cap * 3) // 8)
            if limit is not None:
                limit = min(limit, (cap * 3) // 4)
    except Exception:
        pass
    return budget, limit, cores


def _pick_t_block(cin, cout, v, t, n, x_esz, g_esz, o_esz, budget, num_cores):
    """Largest T-block fitting the per-generation VMEM budget (dtype-aware)."""
    # bytes of (x + g + out) blocks per T column, single buffer; the budget
    # already leaves room for BlockSpec double-buffering.
    per_t = v * (cin * x_esz + v * g_esz + cout * o_esz)
    cap = max(1, budget // max(per_t, 1))
    tt = t if t <= cap else max(128, (cap // 128) * 128)

    # Target >= 2 grid steps per TensorCore so the pipeline has work to
    # overlap; only shrink on a lane-aligned (128) granularity.
    min_steps = 2 * num_cores
    while tt > 128 and n * pl.cdiv(t, tt) < min_steps:
        new_tt = max(128, (((tt + 1) // 2) // 128) * 128)
        if new_tt == tt:
            break
        tt = new_tt
    return tt


# ----------------------------------------------------------------------------
# Forward wrapper (PyTorch layouts in and out — no activation transposes)
# ----------------------------------------------------------------------------
def gcn_spa_forward(x1, g, w, w1, b1, gamma, beta, mean, var):
    """x1: (N, Cin, V, T), g: (N, T, V, V), w/w1: (Cout, Cin, 1, 1).

    Returns (N, Cout, V, T) — same layout as the PyTorch module.
    """
    n, cin, v, t = x1.shape
    cout = w.shape[0]
    w_s, w1_s, bias = fold_gcn_spa_params(w, w1, b1, gamma, beta, mean, var)

    # The only HBM relayout: g (N,T,V,V) -> (N,V,V,T).  g is small and this
    # happens exactly once; x1 and the output keep their NCHW layout.
    g_t = jnp.transpose(g, (0, 2, 3, 1))

    budget, vmem_limit, num_cores = _tpu_params()
    tt = _pick_t_block(cin, cout, v, t, n,
                       jnp.dtype(x1.dtype).itemsize,
                       jnp.dtype(g.dtype).itemsize,
                       jnp.dtype(x1.dtype).itemsize,
                       budget, num_cores)
    n_tb = pl.cdiv(t, tt)
    tp = n_tb * tt
    if tp != t:  # pad T rather than searching for a divisor
        x1 = jnp.pad(x1, ((0, 0), (0, 0), (0, 0), (0, tp - t)))
        g_t = jnp.pad(g_t, ((0, 0), (0, 0), (0, 0), (0, tp - t)))

    cp = dict(dimension_semantics=("parallel", "parallel"))
    if vmem_limit is not None:
        cp["vmem_limit_bytes"] = int(vmem_limit)

    out = pl.pallas_call(
        _gcn_spa_kernel,
        out_shape=jax.ShapeDtypeStruct((n, cout, v, tp), x1.dtype),
        grid_spec=pltpu.PrefetchScalarGridSpec(
            num_scalar_prefetch=0,
            grid=(n, n_tb),
            in_specs=[
                pl.BlockSpec((None, cin, v, tt), lambda i, j: (i, 0, 0, j)),
                pl.BlockSpec((None, v, v, tt), lambda i, j: (i, 0, 0, j)),
                pl.BlockSpec(memory_space=pltpu.MemorySpace.SMEM),   # w  (folded)
                pl.BlockSpec(memory_space=pltpu.MemorySpace.SMEM),   # w1 (folded)
                pl.BlockSpec(memory_space=pltpu.MemorySpace.SMEM),   # bias
            ],
            out_specs=pl.BlockSpec((None, cout, v, tt), lambda i, j: (i, 0, 0, j)),
        ),
        compiler_params=pltpu.CompilerParams(**cp),
    )(x1, g_t, w_s, w1_s, bias)

    return out[..., :t] if tp != t else out


# ----------------------------------------------------------------------------
# Pure-JAX reference (mirrors the PyTorch forward, eval-mode BN)
# ----------------------------------------------------------------------------
def gcn_spa_reference(x1, g, w, w1, b1, gamma, beta, mean, var):
    cout, cin = w.shape[0], w.shape[1]
    wf = w.reshape(cout, cin)
    w1f = w1.reshape(cout, cin)
    x = jnp.transpose(x1, (0, 3, 2, 1))                 # (N, T, V, Cin)
    x = jnp.einsum('ntvu,ntuc->ntvc', g, x)             # g.matmul(x)
    x = jnp.transpose(x, (0, 3, 2, 1))                  # (N, Cin, V, T)
    y = (jnp.einsum('oc,ncvt->novt', wf, x)
         + jnp.einsum('oc,ncvt->novt', w1f, x1)
         + b1[None, :, None, None])
    y = (gamma[None, :, None, None] * (y - mean[None, :, None, None])
         / jnp.sqrt(var[None, :, None, None] + BN_EPS)
         + beta[None, :, None, None])
    return jnp.maximum(y, 0.0)


if __name__ == "__main__":
    # Small shapes: batch N=2, in_feature=4, out_feature=8, V=16 joints, T=8.
    N, Cin, Cout, V, T = 2, 4, 8, 16, 8

    key = jax.random.PRNGKey(0)
    k = jax.random.split(key, 8)

    x1 = jax.random.normal(k[0], (N, Cin, V, T), dtype=jnp.float32)
    g = jax.nn.softmax(
        jax.random.normal(k[1], (N, T, V, V), dtype=jnp.float32), axis=-1)

    w = 0.3 * jax.random.normal(k[2], (Cout, Cin, 1, 1), dtype=jnp.float32)
    w1 = 0.3 * jax.random.normal(k[3], (Cout, Cin, 1, 1), dtype=jnp.float32)
    b1 = jnp.zeros((Cout,), dtype=jnp.float32)          # bias=False default
    gamma = 1.0 + 0.1 * jax.random.normal(k[4], (Cout,), dtype=jnp.float32)
    beta = 0.1 * jax.random.normal(k[5], (Cout,), dtype=jnp.float32)
    mean = 0.1 * jax.random.normal(k[6], (Cout,), dtype=jnp.float32)
    var = jnp.abs(jax.random.normal(k[7], (Cout,), dtype=jnp.float32)) + 0.5

    ref = gcn_spa_reference(x1, g, w, w1, b1, gamma, beta, mean, var)

    # f32 inputs: strict check against the reference.
    out = gcn_spa_forward(x1, g, w, w1, b1, gamma, beta, mean, var)
    out = jax.block_until_ready(out)
    assert out.shape == (N, Cout, V, T), out.shape
    assert jnp.allclose(out, ref, atol=1e-5, rtol=1e-5), \
        float(jnp.max(jnp.abs(out - ref)))

    # bf16 activations (cast by the upstream producer, not the wrapper): the
    # kernel upcasts in VMEM, accumulates in f32, stores bf16 — loose check.
    out_bf16 = gcn_spa_forward(x1.astype(jnp.bfloat16), g.astype(jnp.bfloat16),
                               w, w1, b1, gamma, beta, mean, var)
    out_bf16 = jax.block_until_ready(out_bf16)
    assert out_bf16.shape == (N, Cout, V, T), out_bf16.shape
    assert jnp.allclose(out_bf16.astype(jnp.float32), ref, atol=1e-1, rtol=1e-1), \
        float(jnp.max(jnp.abs(out_bf16.astype(jnp.float32) - ref)))

    print("KERNEL_OK")
</pallas_src>

<mosaic_0001>
module attributes {stable_mosaic.version = 11 : i64} {
  func.func @_gcn_spa_kernel(%arg0: i32, %arg1: i32, %arg2: memref<1x4x16x8xf32, #tpu.memory_space<vmem>>, %arg3: memref<1x16x16x8xf32, #tpu.memory_space<vmem>>, %arg4: memref<8x4xf32, #tpu.memory_space<smem>>, %arg5: memref<8x4xf32, #tpu.memory_space<smem>>, %arg6: memref<8xf32, #tpu.memory_space<smem>>, %arg7: memref<1x8x16x8xf32, #tpu.memory_space<vmem>>) attributes {dimension_semantics = [#tpu.dimension_semantics<parallel>, #tpu.dimension_semantics<parallel>], iteration_bounds = array<i64: 2, 1>, scalar_prefetch = 0 : i64, scratch_operands = 0 : i64, tpu.core_type = #tpu.core_type<tc>, window_params = [{transform_indices = @transform_0, window_bounds = array<i64: 1, 4, 16, 8>}, {transform_indices = @transform_1, window_bounds = array<i64: 1, 16, 16, 8>}, {transform_indices = @transform_2, window_bounds = array<i64: 8, 4>}, {transform_indices = @transform_3, window_bounds = array<i64: 8, 4>}, {transform_indices = @transform_4, window_bounds = array<i64: 8>}, {transform_indices = @transform_5, window_bounds = array<i64: 1, 8, 16, 8>}]} {
    %c0 = arith.constant 0 : index
    %c0_0 = arith.constant 0 : index
    %c0_1 = arith.constant 0 : index
    %c0_2 = arith.constant 0 : index
    %0 = vector.load %arg2[%c0, %c0_0, %c0_1, %c0_2] : memref<1x4x16x8xf32, #tpu.memory_space<vmem>>, vector<1x4x16x8xf32>
    %1 = vector.shape_cast %0 : vector<1x4x16x8xf32> to vector<4x16x8xf32>
    %c0_3 = arith.constant 0 : index
    %c0_4 = arith.constant 0 : index
    %c0_5 = arith.constant 0 : index
    %c0_6 = arith.constant 0 : index
    %2 = vector.load %arg3[%c0_3, %c0_4, %c0_5, %c0_6] : memref<1x16x16x8xf32, #tpu.memory_space<vmem>>, vector<1x16x16x8xf32>
    %3 = vector.shape_cast %2 : vector<1x16x16x8xf32> to vector<16x16x8xf32>
    %4 = vector.extract_strided_slice %1 {offsets = [0, 0, 0], sizes = [1, 16, 8], strides = [1, 1, 1]} : vector<4x16x8xf32> to vector<1x16x8xf32>
    %5 = vector.shape_cast %4 : vector<1x16x8xf32> to vector<16x8xf32>
    %6 = vector.shape_cast %5 : vector<16x8xf32> to vector<1x16x8xf32>
    %7 = vector.broadcast %6 : vector<1x16x8xf32> to vector<16x16x8xf32>
    %8 = arith.mulf %3, %7 : vector<16x16x8xf32>
    %cst = arith.constant dense<0.000000e+00> : vector<16x8xf32>
    %9 = vector.multi_reduction <add>, %8, %cst [1] : vector<16x16x8xf32> to vector<16x8xf32>
    %10 = vector.extract_strided_slice %1 {offsets = [1, 0, 0], sizes = [1, 16, 8], strides = [1, 1, 1]} : vector<4x16x8xf32> to vector<1x16x8xf32>
    %11 = vector.shape_cast %10 : vector<1x16x8xf32> to vector<16x8xf32>
    %12 = vector.shape_cast %11 : vector<16x8xf32> to vector<1x16x8xf32>
    %13 = vector.broadcast %12 : vector<1x16x8xf32> to vector<16x16x8xf32>
    %14 = arith.mulf %3, %13 : vector<16x16x8xf32>
    %cst_7 = arith.constant dense<0.000000e+00> : vector<16x8xf32>
    %15 = vector.multi_reduction <add>, %14, %cst_7 [1] : vector<16x16x8xf32> to vector<16x8xf32>
    %16 = vector.extract_strided_slice %1 {offsets = [2, 0, 0], sizes = [1, 16, 8], strides = [1, 1, 1]} : vector<4x16x8xf32> to vector<1x16x8xf32>
    %17 = vector.shape_cast %16 : vector<1x16x8xf32> to vector<16x8xf32>
    %18 = vector.shape_cast %17 : vector<16x8xf32> to vector<1x16x8xf32>
    %19 = vector.broadcast %18 : vector<1x16x8xf32> to vector<16x16x8xf32>
    %20 = arith.mulf %3, %19 : vector<16x16x8xf32>
    %cst_8 = arith.constant dense<0.000000e+00> : vector<16x8xf32>
    %21 = vector.multi_reduction <add>, %20, %cst_8 [1] : vector<16x16x8xf32> to vector<16x8xf32>
    %22 = vector.extract_strided_slice %1 {offsets = [3, 0, 0], sizes = [1, 16, 8], strides = [1, 1, 1]} : vector<4x16x8xf32> to vector<1x16x8xf32>
    %23 = vector.shape_cast %22 : vector<1x16x8xf32> to vector<16x8xf32>
    %24 = vector.shape_cast %23 : vector<16x8xf32> to vector<1x16x8xf32>
    %25 = vector.broadcast %24 : vector<1x16x8xf32> to vector<16x16x8xf32>
    %26 = arith.mulf %3, %25 : vector<16x16x8xf32>
    %cst_9 = arith.constant dense<0.000000e+00> : vector<16x8xf32>
    %27 = vector.multi_reduction <add>, %26, %cst_9 [1] : vector<16x16x8xf32> to vector<16x8xf32>
    %c0_10 = arith.constant 0 : index
    %28 = memref.load %arg6[%c0_10] : memref<8xf32, #tpu.memory_space<smem>>
    %29 = vector.broadcast %28 : f32 to vector<16x8xf32>
    %c0_11 = arith.constant 0 : index
    %c0_12 = arith.constant 0 : index
    %30 = memref.load %arg4[%c0_11, %c0_12] : memref<8x4xf32, #tpu.memory_space<smem>>
    %31 = vector.broadcast %30 : f32 to vector<16x8xf32>
    %32 = arith.mulf %31, %9 : vector<16x8xf32>
    %33 = arith.addf %29, %32 : vector<16x8xf32>
    %c0_13 = arith.constant 0 : index
    %c0_14 = arith.constant 0 : index
    %34 = memref.load %arg5[%c0_13, %c0_14] : memref<8x4xf32, #tpu.memory_space<smem>>
    %35 = vector.extract_strided_slice %1 {offsets = [0, 0, 0], sizes = [1, 16, 8], strides = [1, 1, 1]} : vector<4x16x8xf32> to vector<1x16x8xf32>
    %36 = vector.shape_cast %35 : vector<1x16x8xf32> to vector<16x8xf32>
    %37 = vector.broadcast %34 : f32 to vector<16x8xf32>
    %38 = arith.mulf %37, %36 : vector<16x8xf32>
    %39 = arith.addf %33, %38 : vector<16x8xf32>
    %c0_15 = arith.constant 0 : index
    %c1 = arith.constant 1 : index
    %40 = memref.load %arg4[%c0_15, %c1] : memref<8x4xf32, #tpu.memory_space<smem>>
    %41 = vector.broadcast %40 : f32 to vector<16x8xf32>
    %42 = arith.mulf %41, %15 : vector<16x8xf32>
    %43 = arith.addf %39, %42 : vector<16x8xf32>
    %c0_16 = arith.constant 0 : index
    %c1_17 = arith.constant 1 : index
    %44 = memref.load %arg5[%c0_16, %c1_17] : memref<8x4xf32, #tpu.memory_space<smem>>
    %45 = vector.extract_strided_slice %1 {offsets = [1, 0, 0], sizes = [1, 16, 8], strides = [1, 1, 1]} : vector<4x16x8xf32> to vector<1x16x8xf32>
    %46 = vector.shape_cast %45 : vector<1x16x8xf32> to vector<16x8xf32>
    %47 = vector.broadcast %44 : f32 to vector<16x8xf32>
    %48 = arith.mulf %47, %46 : vector<16x8xf32>
    %49 = arith.addf %43, %48 : vector<16x8xf32>
    %c0_18 = arith.constant 0 : index
    %c2 = arith.constant 2 : index
    %50 = memref.load %arg4[%c0_18, %c2] : memref<8x4xf32, #tpu.memory_space<smem>>
    %51 = vector.broadcast %50 : f32 to vector<16x8xf32>
    %52 = arith.mulf %51, %21 : vector<16x8xf32>
    %53 = arith.addf %49, %52 : vector<16x8xf32>
    %c0_19 = arith.constant 0 : index
    %c2_20 = arith.constant 2 : index
    %54 = memref.load %arg5[%c0_19, %c2_20] : memref<8x4xf32, #tpu.memory_space<smem>>
    %55 = vector.extract_strided_slice %1 {offsets = [2, 0, 0], sizes = [1, 16, 8], strides = [1, 1, 1]} : vector<4x16x8xf32> to vector<1x16x8xf32>
    %56 = vector.shape_cast %55 : vector<1x16x8xf32> to vector<16x8xf32>
    %57 = vector.broadcast %54 : f32 to vector<16x8xf32>
    %58 = arith.mulf %57, %56 : vector<16x8xf32>
    %59 = arith.addf %53, %58 : vector<16x8xf32>
    %c0_21 = arith.constant 0 : index
    %c3 = arith.constant 3 : index
    %60 = memref.load %arg4[%c0_21, %c3] : memref<8x4xf32, #tpu.memory_space<smem>>
    %61 = vector.broadcast %60 : f32 to vector<16x8xf32>
    %62 = arith.mulf %61, %27 : vector<16x8xf32>
    %63 = arith.addf %59, %62 : vector<16x8xf32>
    %c0_22 = arith.constant 0 : index
    %c3_23 = arith.constant 3 : index
    %64 = memref.load %arg5[%c0_22, %c3_23] : memref<8x4xf32, #tpu.memory_space<smem>>
    %65 = vector.extract_strided_slice %1 {offsets = [3, 0, 0], sizes = [1, 16, 8], strides = [1, 1, 1]} : vector<4x16x8xf32> to vector<1x16x8xf32>
    %66 = vector.shape_cast %65 : vector<1x16x8xf32> to vector<16x8xf32>
    %67 = vector.broadcast %64 : f32 to vector<16x8xf32>
    %68 = arith.mulf %67, %66 : vector<16x8xf32>
    %69 = arith.addf %63, %68 : vector<16x8xf32>
    %cst_24 = arith.constant 0.000000e+00 : f32
    %70 = vector.broadcast %cst_24 : f32 to vector<16x8xf32>
    %71 = arith.maximumf %69, %70 : vector<16x8xf32>
    %c0_25 = arith.constant 0 : index
    %c0_26 = arith.constant 0 : index
    %c0_27 = arith.constant 0 : index
    %c0_28 = arith.constant 0 : index
    %72 = vector.load %arg7[%c0_25, %c0_26, %c0_27, %c0_28] : memref<1x8x16x8xf32, #tpu.memory_space<vmem>>, vector<1x1x16x8xf32>
    %73 = vector.shape_cast %72 : vector<1x1x16x8xf32> to vector<16x8xf32>
    %74 = vector.shape_cast %71 : vector<16x8xf32> to vector<1x1x16x8xf32>
    tpu.vector_store %arg7[%c0_25, %c0_26, %c0_27, %c0_28], %74 {strides = array<i32>} : memref<1x8x16x8xf32, #tpu.memory_space<vmem>>, vector<1x1x16x8xf32>,
    %c1_29 = arith.constant 1 : index
    %75 = memref.load %arg6[%c1_29] : memref<8xf32, #tpu.memory_space<smem>>
    %76 = vector.broadcast %75 : f32 to vector<16x8xf32>
    %c1_30 = arith.constant 1 : index
    %c0_31 = arith.constant 0 : index
    %77 = memref.load %arg4[%c1_30, %c0_31] : memref<8x4xf32, #tpu.memory_space<smem>>
    %78 = vector.broadcast %77 : f32 to vector<16x8xf32>
    %79 = arith.mulf %78, %9 : vector<16x8xf32>
    %80 = arith.addf %76, %79 : vector<16x8xf32>
    %c1_32 = arith.constant 1 : index
    %c0_33 = arith.constant 0 : index
    %81 = memref.load %arg5[%c1_32, %c0_33] : memref<8x4xf32, #tpu.memory_space<smem>>
    %82 = vector.extract_strided_slice %1 {offsets = [0, 0, 0], sizes = [1, 16, 8], strides = [1, 1, 1]} : vector<4x16x8xf32> to vector<1x16x8xf32>
    %83 = vector.shape_cast %82 : vector<1x16x8xf32> to vector<16x8xf32>
    %84 = vector.broadcast %81 : f32 to vector<16x8xf32>
    %85 = arith.mulf %84, %83 : vector<16x8xf32>
    %86 = arith.addf %80, %85 : vector<16x8xf32>
    %c1_34 = arith.constant 1 : index
    %c1_35 = arith.constant 1 : index
    %87 = memref.load %arg4[%c1_34, %c1_35] : memref<8x4xf32, #tpu.memory_space<smem>>
    %88 = vector.broadcast %87 : f32 to vector<16x8xf32>
    %89 = arith.mulf %88, %15 : vector<16x8xf32>
    %90 = arith.addf %86, %89 : vector<16x8xf32>
    %c1_36 = arith.constant 1 : index
    %c1_37 = arith.constant 1 : index
    %91 = memref.load %arg5[%c1_36, %c1_37] : memref<8x4xf32, #tpu.memory_space<smem>>
    %92 = vector.extract_strided_slice %1 {offsets = [1, 0, 0], sizes = [1, 16, 8], strides = [1, 1, 1]} : vector<4x16x8xf32> to vector<1x16x8xf32>
    %93 = vector.shape_cast %92 : vector<1x16x8xf32> to vector<16x8xf32>
    %94 = vector.broadcast %91 : f32 to vector<16x8xf32>
    %95 = arith.mulf %94, %93 : vector<16x8xf32>
    %96 = arith.addf %90, %95 : vector<16x8xf32>
    %c1_38 = arith.constant 1 : index
    %c2_39 = arith.constant 2 : index
    %97 = memref.load %arg4[%c1_38, %c2_39] : memref<8x4xf32, #tpu.memory_space<smem>>
    %98 = vector.broadcast %97 : f32 to vector<16x8xf32>
    %99 = arith.mulf %98, %21 : vector<16x8xf32>
    %100 = arith.addf %96, %99 : vector<16x8xf32>
    %c1_40 = arith.constant 1 : index
    %c2_41 = arith.constant 2 : index
    %101 = memref.load %arg5[%c1_40, %c2_41] : memref<8x4xf32, #tpu.memory_space<smem>>
    %102 = vector.extract_strided_slice %1 {offsets = [2, 0, 0], sizes = [1, 16, 8], strides = [1, 1, 1]} : vector<4x16x8xf32> to vector<1x16x8xf32>
    %103 = vector.shape_cast %102 : vector<1x16x8xf32> to vector<16x8xf32>
    %104 = vector.broadcast %101 : f32 to vector<16x8xf32>
    %105 = arith.mulf %104, %103 : vector<16x8xf32>
    %106 = arith.addf %100, %105 : vector<16x8xf32>
    %c1_42 = arith.constant 1 : index
    %c3_43 = arith.constant 3 : index
    %107 = memref.load %arg4[%c1_42, %c3_43] : memref<8x4xf32, #tpu.memory_space<smem>>
    %108 = vector.broadcast %107 : f32 to vector<16x8xf32>
    %109 = arith.mulf %108, %27 : vector<16x8xf32>
    %110 = arith.addf %106, %109 : vector<16x8xf32>
    %c1_44 = arith.constant 1 : index
    %c3_45 = arith.constant 3 : index
    %111 = memref.load %arg5[%c1_44, %c3_45] : memref<8x4xf32, #tpu.memory_space<smem>>
    %112 = vector.extract_strided_slice %1 {offsets = [3, 0, 0], sizes = [1, 16, 8], strides = [1, 1, 1]} : vector<4x16x8xf32> to vector<1x16x8xf32>
    %113 = vector.shape_cast %112 : vector<1x16x8xf32> to vector<16x8xf32>
    %114 = vector.broadcast %111 : f32 to vector<16x8xf32>
    %115 = arith.mulf %114, %113 : vector<16x8xf32>
    %116 = arith.addf %110, %115 : vector<16x8xf32>
    %cst_46 = arith.constant 0.000000e+00 : f32
    %117 = vector.broadcast %cst_46 : f32 to vector<16x8xf32>
    %118 = arith.maximumf %116, %117 : vector<16x8xf32>
    %c0_47 = arith.constant 0 : index
    %c1_48 = arith.constant 1 : index
    %c0_49 = arith.constant 0 : index
    %c0_50 = arith.constant 0 : index
    %119 = vector.load %arg7[%c0_47, %c1_48, %c0_49, %c0_50] : memref<1x8x16x8xf32, #tpu.memory_space<vmem>>, vector<1x1x16x8xf32>
    %120 = vector.shape_cast %119 : vector<1x1x16x8xf32> to vector<16x8xf32>
    %121 = vector.shape_cast %118 : vector<16x8xf32> to vector<1x1x16x8xf32>
    tpu.vector_store %arg7[%c0_47, %c1_48, %c0_49, %c0_50], %121 {strides = array<i32>} : memref<1x8x16x8xf32, #tpu.memory_space<vmem>>, vector<1x1x16x8xf32>,
    %c2_51 = arith.constant 2 : index
    %122 = memref.load %arg6[%c2_51] : memref<8xf32, #tpu.memory_space<smem>>
    %123 = vector.broadcast %122 : f32 to vector<16x8xf32>
    %c2_52 = arith.constant 2 : index
    %c0_53 = arith.constant 0 : index
    %124 = memref.load %arg4[%c2_52, %c0_53] : memref<8x4xf32, #tpu.memory_space<smem>>
    %125 = vector.broadcast %124 : f32 to vector<16x8xf32>
    %126 = arith.mulf %125, %9 : vector<16x8xf32>
    %127 = arith.addf %123, %126 : vector<16x8xf32>
    %c2_54 = arith.constant 2 : index
    %c0_55 = arith.constant 0 : index
    %128 = memref.load %arg5[%c2_54, %c0_55] : memref<8x4xf32, #tpu.memory_space<smem>>
    %129 = vector.extract_strided_slice %1 {offsets = [0, 0, 0], sizes = [1, 16, 8], strides = [1, 1, 1]} : vector<4x16x8xf32> to vector<1x16x8xf32>
    %130 = vector.shape_cast %129 : vector<1x16x8xf32> to vector<16x8xf32>
    %131 = vector.broadcast %128 : f32 to vector<16x8xf32>
    %132 = arith.mulf %131, %130 : vector<16x8xf32>
    %133 = arith.addf %127, %132 : vector<16x8xf32>
    %c2_56 = arith.constant 2 : index
    %c1_57 = arith.constant 1 : index
    %134 = memref.load %arg4[%c2_56, %c1_57] : memref<8x4xf32, #tpu.memory_space<smem>>
    %135 = vector.broadcast %134 : f32 to vector<16x8xf32>
    %136 = arith.mulf %135, %15 : vector<16x8xf32>
    %137 = arith.addf %133, %136 : vector<16x8xf32>
    %c2_58 = arith.constant 2 : index
    %c1_59 = arith.constant 1 : index
    %138 = memref.load %arg5[%c2_58, %c1_59] : memref<8x4xf32, #tpu.memory_space<smem>>
    %139 = vector.extract_strided_slice %1 {offsets = [1, 0, 0], sizes = [1, 16, 8], strides = [1, 1, 1]} : vector<4x16x8xf32> to vector<1x16x8xf32>
    %140 = vector.shape_cast %139 : vector<1x16x8xf32> to vector<16x8xf32>
    %141 = vector.broadcast %138 : f32 to vector<16x8xf32>
    %142 = arith.mulf %141, %140 : vector<16x8xf32>
    %143 = arith.addf %137, %142 : vector<16x8xf32>
    %c2_60 = arith.constant 2 : index
    %c2_61 = arith.constant 2 : index
    %144 = memref.load %arg4[%c2_60, %c2_61] : memref<8x4xf32, #tpu.memory_space<smem>>
    %145 = vector.broadcast %144 : f32 to vector<16x8xf32>
    %146 = arith.mulf %145, %21 : vector<16x8xf32>
    %147 = arith.addf %143, %146 : vector<16x8xf32>
    %c2_62 = arith.constant 2 : index
    %c2_63 = arith.constant 2 : index
    %148 = memref.load %arg5[%c2_62, %c2_63] : memref<8x4xf32, #tpu.memory_space<smem>>
    %149 = vector.extract_strided_slice %1 {offsets = [2, 0, 0], sizes = [1, 16, 8], strides = [1, 1, 1]} : vector<4x16x8xf32> to vector<1x16x8xf32>
    %150 = vector.shape_cast %149 : vector<1x16x8xf32> to vector<16x8xf32>
    %151 = vector.broadcast %148 : f32 to vector<16x8xf32>
    %152 = arith.mulf %151, %150 : vector<16x8xf32>
    %153 = arith.addf %147, %152 : vector<16x8xf32>
    %c2_64 = arith.constant 2 : index
    %c3_65 = arith.constant 3 : index
    %154 = memref.load %arg4[%c2_64, %c3_65] : memref<8x4xf32, #tpu.memory_space<smem>>
    %155 = vector.broadcast %154 : f32 to vector<16x8xf32>
    %156 = arith.mulf %155, %27 : vector<16x8xf32>
    %157 = arith.addf %153, %156 : vector<16x8xf32>
    %c2_66 = arith.constant 2 : index
    %c3_67 = arith.constant 3 : index
    %158 = memref.load %arg5[%c2_66, %c3_67] : memref<8x4xf32, #tpu.memory_space<smem>>
    %159 = vector.extract_strided_slice %1 {offsets = [3, 0, 0], sizes = [1, 16, 8], strides = [1, 1, 1]} : vector<4x16x8xf32> to vector<1x16x8xf32>
    %160 = vector.shape_cast %159 : vector<1x16x8xf32> to vector<16x8xf32>
    %161 = vector.broadcast %158 : f32 to vector<16x8xf32>
    %162 = arith.mulf %161, %160 : vector<16x8xf32>
    %163 = arith.addf %157, %162 : vector<16x8xf32>
    %cst_68 = arith.constant 0.000000e+00 : f32
    %164 = vector.broadcast %cst_68 : f32 to vector<16x8xf32>
    %165 = arith.maximumf %163, %164 : vector<16x8xf32>
    %c0_69 = arith.constant 0 : index
    %c2_70 = arith.constant 2 : index
    %c0_71 = arith.constant 0 : index
    %c0_72 = arith.constant 0 : index
    %166 = vector.load %arg7[%c0_69, %c2_70, %c0_71, %c0_72] : memref<1x8x16x8xf32, #tpu.memory_space<vmem>>, vector<1x1x16x8xf32>
    %167 = vector.shape_cast %166 : vector<1x1x16x8xf32> to vector<16x8xf32>
    %168 = vector.shape_cast %165 : vector<16x8xf32> to vector<1x1x16x8xf32>
    tpu.vector_store %arg7[%c0_69, %c2_70, %c0_71, %c0_72], %168 {strides = array<i32>} : memref<1x8x16x8xf32, #tpu.memory_space<vmem>>, vector<1x1x16x8xf32>,
    %c3_73 = arith.constant 3 : index
    %169 = memref.load %arg6[%c3_73] : memref<8xf32, #tpu.memory_space<smem>>
    %170 = vector.broadcast %169 : f32 to vector<16x8xf32>
    %c3_74 = arith.constant 3 : index
    %c0_75 = arith.constant 0 : index
    %171 = memref.load %arg4[%c3_74, %c0_75] : memref<8x4xf32, #tpu.memory_space<smem>>
    %172 = vector.broadcast %171 : f32 to vector<16x8xf32>
    %173 = arith.mulf %172, %9 : vector<16x8xf32>
    %174 = arith.addf %170, %173 : vector<16x8xf32>
    %c3_76 = arith.constant 3 : index
    %c0_77 = arith.constant 0 : index
    %175 = memref.load %arg5[%c3_76, %c0_77] : memref<8x4xf32, #tpu.memory_space<smem>>
    %176 = vector.extract_strided_slice %1 {offsets = [0, 0, 0], sizes = [1, 16, 8], strides = [1, 1, 1]} : vector<4x16x8xf32> to vector<1x16x8xf32>
    %177 = vector.shape_cast %176 : vector<1x16x8xf32> to vector<16x8xf32>
    %178 = vector.broadcast %175 : f32 to vector<16x8xf32>
    %179 = arith.mulf %178, %177 : vector<16x8xf32>
    %180 = arith.addf %174, %179 : vector<16x8xf32>
    %c3_78 = arith.constant 3 : index
    %c1_79 = arith.constant 1 : index
    %181 = memref.load %arg4[%c3_78, %c1_79] : memref<8x4xf32, #tpu.memory_space<smem>>
    %182 = vector.broadcast %181 : f32 to vector<16x8xf32>
    %183 = arith.mulf %182, %15 : vector<16x8xf32>
    %184 = arith.addf %180, %183 : vector<16x8xf32>
    %c3_80 = arith.constant 3 : index
    %c1_81 = arith.constant 1 : index
    %185 = memref.load %arg5[%c3_80, %c1_81] : memref<8x4xf32, #tpu.memory_space<smem>>
    %186 = vector.extract_strided_slice %1 {offsets = [1, 0, 0], sizes = [1, 16, 8], strides = [1, 1, 1]} : vector<4x16x8xf32> to vector<1x16x8xf32>
    %187 = vector.shape_cast %186 : vector<1x16x8xf32> to vector<16x8xf32>
    %188 = vector.broadcast %185 : f32 to vector<16x8xf32>
    %189 = arith.mulf %188, %187 : vector<16x8xf32>
    %190 = arith.addf %184, %189 : vector<16x8xf32>
    %c3_82 = arith.constant 3 : index
    %c2_83 = arith.constant 2 : index
    %191 = memref.load %arg4[%c3_82, %c2_83] : memref<8x4xf32, #tpu.memory_space<smem>>
    %192 = vector.broadcast %191 : f32 to vector<16x8xf32>
    %193 = arith.mulf %192, %21 : vector<16x8xf32>
    %194 = arith.addf %190, %193 : vector<16x8xf32>
    %c3_84 = arith.constant 3 : index
    %c2_85 = arith.constant 2 : index
    %195 = memref.load %arg5[%c3_84, %c2_85] : memref<8x4xf32, #tpu.memory_space<smem>>
    %196 = vector.extract_strided_slice %1 {offsets = [2, 0, 0], sizes = [1, 16, 8], strides = [1, 1, 1]} : vector<4x16x8xf32> to vector<1x16x8xf32>
    %197 = vector.shape_cast %196 : vector<1x16x8xf32> to vector<16x8xf32>
    %198 = vector.broadcast %195 : f32 to vector<16x8xf32>
    %199 = arith.mulf %198, %197 : vector<16x8xf32>
    %200 = arith.addf %194, %199 : vector<16x8xf32>
    %c3_86 = arith.constant 3 : index
    %c3_87 = arith.constant 3 : index
    %201 = memref.load %arg4[%c3_86, %c3_87] : memref<8x4xf32, #tpu.memory_space<smem>>
    %202 = vector.broadcast %201 : f32 to vector<16x8xf32>
    %203 = arith.mulf %202, %27 : vector<16x8xf32>
    %204 = arith.addf %200, %203 : vector<16x8xf32>
    %c3_88 = arith.constant 3 : index
    %c3_89 = arith.constant 3 : index
    %205 = memref.load %arg5[%c3_88, %c3_89] : memref<8x4xf32, #tpu.memory_space<smem>>
    %206 = vector.extract_strided_slice %1 {offsets = [3, 0, 0], sizes = [1, 16, 8], strides = [1, 1, 1]} : vector<4x16x8xf32> to vector<1x16x8xf32>
    %207 = vector.shape_cast %206 : vector<1x16x8xf32> to vector<16x8xf32>
    %208 = vector.broadcast %205 : f32 to vector<16x8xf32>
    %209 = arith.mulf %208, %207 : vector<16x8xf32>
    %210 = arith.addf %204, %209 : vector<16x8xf32>
    %cst_90 = arith.constant 0.000000e+00 : f32
    %211 = vector.broadcast %cst_90 : f32 to vector<16x8xf32>
    %212 = arith.maximumf %210, %211 : vector<16x8xf32>
    %c0_91 = arith.constant 0 : index
    %c3_92 = arith.constant 3 : index
    %c0_93 = arith.constant 0 : index
    %c0_94 = arith.constant 0 : index
    %213 = vector.load %arg7[%c0_91, %c3_92, %c0_93, %c0_94] : memref<1x8x16x8xf32, #tpu.memory_space<vmem>>, vector<1x1x16x8xf32>
    %214 = vector.shape_cast %213 : vector<1x1x16x8xf32> to vector<16x8xf32>
    %215 = vector.shape_cast %212 : vector<16x8xf32> to vector<1x1x16x8xf32>
    tpu.vector_store %arg7[%c0_91, %c3_92, %c0_93, %c0_94], %215 {strides = array<i32>} : memref<1x8x16x8xf32, #tpu.memory_space<vmem>>, vector<1x1x16x8xf32>,
    %c4 = arith.constant 4 : index
    %216 = memref.load %arg6[%c4] : memref<8xf32, #tpu.memory_space<smem>>
    %217 = vector.broadcast %216 : f32 to vector<16x8xf32>
    %c4_95 = arith.constant 4 : index
    %c0_96 = arith.constant 0 : index
    %218 = memref.load %arg4[%c4_95, %c0_96] : memref<8x4xf32, #tpu.memory_space<smem>>
    %219 = vector.broadcast %218 : f32 to vector<16x8xf32>
    %220 = arith.mulf %219, %9 : vector<16x8xf32>
    %221 = arith.addf %217, %220 : vector<16x8xf32>
    %c4_97 = arith.constant 4 : index
    %c0_98 = arith.constant 0 : index
    %222 = memref.load %arg5[%c4_97, %c0_98] : memref<8x4xf32, #tpu.memory_space<smem>>
    %223 = vector.extract_strided_slice %1 {offsets = [0, 0, 0], sizes = [1, 16, 8], strides = [1, 1, 1]} : vector<4x16x8xf32> to vector<1x16x8xf32>
    %224 = vector.shape_cast %223 : vector<1x16x8xf32> to vector<16x8xf32>
    %225 = vector.broadcast %222 : f32 to vector<16x8xf32>
    %226 = arith.mulf %225, %224 : vector<16x8xf32>
    %227 = arith.addf %221, %226 : vector<16x8xf32>
    %c4_99 = arith.constant 4 : index
    %c1_100 = arith.constant 1 : index
    %228 = memref.load %arg4[%c4_99, %c1_100] : memref<8x4xf32, #tpu.memory_space<smem>>
    %229 = vector.broadcast %228 : f32 to vector<16x8xf32>
    %230 = arith.mulf %229, %15 : vector<16x8xf32>
    %231 = arith.addf %227, %230 : vector<16x8xf32>
    %c4_101 = arith.constant 4 : index
    %c1_102 = arith.constant 1 : index
    %232 = memref.load %arg5[%c4_101, %c1_102] : memref<8x4xf32, #tpu.memory_space<smem>>
    %233 = vector.extract_strided_slice %1 {offsets = [1, 0, 0], sizes = [1, 16, 8], strides = [1, 1, 1]} : vector<4x16x8xf32> to vector<1x16x8xf32>
    %234 = vector.shape_cast %233 : vector<1x16x8xf32> to vector<16x8xf32>
    %235 = vector.broadcast %232 : f32 to vector<16x8xf32>
    %236 = arith.mulf %235, %234 : vector<16x8xf32>
    %237 = arith.addf %231, %236 : vector<16x8xf32>
    %c4_103 = arith.constant 4 : index
    %c2_104 = arith.constant 2 : index
    %238 = memref.load %arg4[%c4_103, %c2_104] : memref<8x4xf32, #tpu.memory_space<smem>>
    %239 = vector.broadcast %238 : f32 to vector<16x8xf32>
    %240 = arith.mulf %239, %21 : vector<16x8xf32>
    %241 = arith.addf %237, %240 : vector<16x8xf32>
    %c4_105 = arith.constant 4 : index
    %c2_106 = arith.constant 2 : index
    %242 = memref.load %arg5[%c4_105, %c2_106] : memref<8x4xf32, #tpu.memory_space<smem>>
    %243 = vector.extract_strided_slice %1 {offsets = [2, 0, 0], sizes = [1, 16, 8], strides = [1, 1, 1]} : vector<4x16x8xf32> to vector<1x16x8xf32>
    %244 = vector.shape_cast %243 : vector<1x16x8xf32> to vector<16x8xf32>
    %245 = vector.broadcast %242 : f32 to vector<16x8xf32>
    %246 = arith.mulf %245, %244 : vector<16x8xf32>
    %247 = arith.addf %241, %246 : vector<16x8xf32>
    %c4_107 = arith.constant 4 : index
    %c3_108 = arith.constant 3 : index
    %248 = memref.load %arg4[%c4_107, %c3_108] : memref<8x4xf32, #tpu.memory_space<smem>>
    %249 = vector.broadcast %248 : f32 to vector<16x8xf32>
    %250 = arith.mulf %249, %27 : vector<16x8xf32>
    %251 = arith.addf %247, %250 : vector<16x8xf32>
    %c4_109 = arith.constant 4 : index
    %c3_110 = arith.constant 3 : index
    %252 = memref.load %arg5[%c4_109, %c3_110] : memref<8x4xf32, #tpu.memory_space<smem>>
    %253 = vector.extract_strided_slice %1 {offsets = [3, 0, 0], sizes = [1, 16, 8], strides = [1, 1, 1]} : vector<4x16x8xf32> to vector<1x16x8xf32>
    %254 = vector.shape_cast %253 : vector<1x16x8xf32> to vector<16x8xf32>
    %255 = vector.broadcast %252 : f32 to vector<16x8xf32>
    %256 = arith.mulf %255, %254 : vector<16x8xf32>
    %257 = arith.addf %251, %256 : vector<16x8xf32>
    %cst_111 = arith.constant 0.000000e+00 : f32
    %258 = vector.broadcast %cst_111 : f32 to vector<16x8xf32>
    %259 = arith.maximumf %257, %258 : vector<16x8xf32>
    %c0_112 = arith.constant 0 : index
    %c4_113 = arith.constant 4 : index
    %c0_114 = arith.constant 0 : index
    %c0_115 = arith.constant 0 : index
    %260 = vector.load %arg7[%c0_112, %c4_113, %c0_114, %c0_115] : memref<1x8x16x8xf32, #tpu.memory_space<vmem>>, vector<1x1x16x8xf32>
    %261 = vector.shape_cast %260 : vector<1x1x16x8xf32> to vector<16x8xf32>
    %262 = vector.shape_cast %259 : vector<16x8xf32> to vector<1x1x16x8xf32>
    tpu.vector_store %arg7[%c0_112, %c4_113, %c0_114, %c0_115], %262 {strides = array<i32>} : memref<1x8x16x8xf32, #tpu.memory_space<vmem>>, vector<1x1x16x8xf32>,
    %c5 = arith.constant 5 : index
    %263 = memref.load %arg6[%c5] : memref<8xf32, #tpu.memory_space<smem>>
    %264 = vector.broadcast %263 : f32 to vector<16x8xf32>
    %c5_116 = arith.constant 5 : index
    %c0_117 = arith.constant 0 : index
    %265 = memref.load %arg4[%c5_116, %c0_117] : memref<8x4xf32, #tpu.memory_space<smem>>
    %266 = vector.broadcast %265 : f32 to vector<16x8xf32>
    %267 = arith.mulf %266, %9 : vector<16x8xf32>
    %268 = arith.addf %264, %267 : vector<16x8xf32>
    %c5_118 = arith.constant 5 : index
    %c0_119 = arith.constant 0 : index
    %269 = memref.load %arg5[%c5_118, %c0_119] : memref<8x4xf32, #tpu.memory_space<smem>>
    %270 = vector.extract_strided_slice %1 {offsets = [0, 0, 0], sizes = [1, 16, 8], strides = [1, 1, 1]} : vector<4x16x8xf32> to vector<1x16x8xf32>
    %271 = vector.shape_cast %270 : vector<1x16x8xf32> to vector<16x8xf32>
    %272 = vector.broadcast %269 : f32 to vector<16x8xf32>
    %273 = arith.mulf %272, %271 : vector<16x8xf32>
    %274 = arith.addf %268, %273 : vector<16x8xf32>
    %c5_120 = arith.constant 5 : index
    %c1_121 = arith.constant 1 : index
    %275 = memref.load %arg4[%c5_120, %c1_121] : memref<8x4xf32, #tpu.memory_space<smem>>
    %276 = vector.broadcast %275 : f32 to vector<16x8xf32>
    %277 = arith.mulf %276, %15 : vector<16x8xf32>
    %278 = arith.addf %274, %277 : vector<16x8xf32>
    %c5_122 = arith.constant 5 : index
    %c1_123 = arith.constant 1 : index
    %279 = memref.load %arg5[%c5_122, %c1_123] : memref<8x4xf32, #tpu.memory_space<smem>>
    %280 = vector.extract_strided_slice %1 {offsets = [1, 0, 0], sizes = [1, 16, 8], strides = [1, 1, 1]} : vector<4x16x8xf32> to vector<1x16x8xf32>
    %281 = vector.shape_cast %280 : vector<1x16x8xf32> to vector<16x8xf32>
    %282 = vector.broadcast %279 : f32 to vector<16x8xf32>
    %283 = arith.mulf %282, %281 : vector<16x8xf32>
    %284 = arith.addf %278, %283 : vector<16x8xf32>
    %c5_124 = arith.constant 5 : index
    %c2_125 = arith.constant 2 : index
    %285 = memref.load %arg4[%c5_124, %c2_125] : memref<8x4xf32, #tpu.memory_space<smem>>
    %286 = vector.broadcast %285 : f32 to vector<16x8xf32>
    %287 = arith.mulf %286, %21 : vector<16x8xf32>
    %288 = arith.addf %284, %287 : vector<16x8xf32>
    %c5_126 = arith.constant 5 : index
    %c2_127 = arith.constant 2 : index
    %289 = memref.load %arg5[%c5_126, %c2_127] : memref<8x4xf32, #tpu.memory_space<smem>>
    %290 = vector.extract_strided_slice %1 {offsets = [2, 0, 0], sizes = [1, 16, 8], strides = [1, 1, 1]} : vector<4x16x8xf32> to vector<1x16x8xf32>
    %291 = vector.shape_cast %290 : vector<1x16x8xf32> to vector<16x8xf32>
    %292 = vector.broadcast %289 : f32 to vector<16x8xf32>
    %293 = arith.mulf %292, %291 : vector<16x8xf32>
    %294 = arith.addf %288, %293 : vector<16x8xf32>
    %c5_128 = arith.constant 5 : index
    %c3_129 = arith.constant 3 : index
    %295 = memref.load %arg4[%c5_128, %c3_129] : memref<8x4xf32, #tpu.memory_space<smem>>
    %296 = vector.broadcast %295 : f32 to vector<16x8xf32>
    %297 = arith.mulf %296, %27 : vector<16x8xf32>
    %298 = arith.addf %294, %297 : vector<16x8xf32>
    %c5_130 = arith.constant 5 : index
    %c3_131 = arith.constant 3 : index
    %299 = memref.load %arg5[%c5_130, %c3_131] : memref<8x4xf32, #tpu.memory_space<smem>>
    %300 = vector.extract_strided_slice %1 {offsets = [3, 0, 0], sizes = [1, 16, 8], strides = [1, 1, 1]} : vector<4x16x8xf32> to vector<1x16x8xf32>
    %301 = vector.shape_cast %300 : vector<1x16x8xf32> to vector<16x8xf32>
    %302 = vector.broadcast %299 : f32 to vector<16x8xf32>
    %303 = arith.mulf %302, %301 : vector<16x8xf32>
    %304 = arith.addf %298, %303 : vector<16x8xf32>
    %cst_132 = arith.constant 0.000000e+00 : f32
    %305 = vector.broadcast %cst_132 : f32 to vector<16x8xf32>
    %306 = arith.maximumf %304, %305 : vector<16x8xf32>
    %c0_133 = arith.constant 0 : index
    %c5_134 = arith.constant 5 : index
    %c0_135 = arith.constant 0 : index
    %c0_136 = arith.constant 0 : index
    %307 = vector.load %arg7[%c0_133, %c5_134, %c0_135, %c0_136] : memref<1x8x16x8xf32, #tpu.memory_space<vmem>>, vector<1x1x16x8xf32>
    %308 = vector.shape_cast %307 : vector<1x1x16x8xf32> to vector<16x8xf32>
    %309 = vector.shape_cast %306 : vector<16x8xf32> to vector<1x1x16x8xf32>
    tpu.vector_store %arg7[%c0_133, %c5_134, %c0_135, %c0_136], %309 {strides = array<i32>} : memref<1x8x16x8xf32, #tpu.memory_space<vmem>>, vector<1x1x16x8xf32>,
    %c6 = arith.constant 6 : index
    %310 = memref.load %arg6[%c6] : memref<8xf32, #tpu.memory_space<smem>>
    %311 = vector.broadcast %310 : f32 to vector<16x8xf32>
    %c6_137 = arith.constant 6 : index
    %c0_138 = arith.constant 0 : index
    %312 = memref.load %arg4[%c6_137, %c0_138] : memref<8x4xf32, #tpu.memory_space<smem>>
    %313 = vector.broadcast %312 : f32 to vector<16x8xf32>
    %314 = arith.mulf %313, %9 : vector<16x8xf32>
    %315 = arith.addf %311, %314 : vector<16x8xf32>
    %c6_139 = arith.constant 6 : index
    %c0_140 = arith.constant 0 : index
    %316 = memref.load %arg5[%c6_139, %c0_140] : memref<8x4xf32, #tpu.memory_space<smem>>
    %317 = vector.extract_strided_slice %1 {offsets = [0, 0, 0], sizes = [1, 16, 8], strides = [1, 1, 1]} : vector<4x16x8xf32> to vector<1x16x8xf32>
    %318 = vector.shape_cast %317 : vector<1x16x8xf32> to vector<16x8xf32>
    %319 = vector.broadcast %316 : f32 to vector<16x8xf32>
    %320 = arith.mulf %319, %318 : vector<16x8xf32>
    %321 = arith.addf %315, %320 : vector<16x8xf32>
    %c6_141 = arith.constant 6 : index
    %c1_142 = arith.constant 1 : index
    %322 = memref.load %arg4[%c6_141, %c1_142] : memref<8x4xf32, #tpu.memory_space<smem>>
    %323 = vector.broadcast %322 : f32 to vector<16x8xf32>
    %324 = arith.mulf %323, %15 : vector<16x8xf32>
    %325 = arith.addf %321, %324 : vector<16x8xf32>
    %c6_143 = arith.constant 6 : index
    %c1_144 = arith.constant 1 : index
    %326 = memref.load %arg5[%c6_143, %c1_144] : memref<8x4xf32, #tpu.memory_space<smem>>
    %327 = vector.extract_strided_slice %1 {offsets = [1, 0, 0], sizes = [1, 16, 8], strides = [1, 1, 1]} : vector<4x16x8xf32> to vector<1x16x8xf32>
    %328 = vector.shape_cast %327 : vector<1x16x8xf32> to vector<16x8xf32>
    %329 = vector.broadcast %326 : f32 to vector<16x8xf32>
    %330 = arith.mulf %329, %328 : vector<16x8xf32>
    %331 = arith.addf %325, %330 : vector<16x8xf32>
    %c6_145 = arith.constant 6 : index
    %c2_146 = arith.constant 2 : index
    %332 = memref.load %arg4[%c6_145, %c2_146] : memref<8x4xf32, #tpu.memory_space<smem>>
    %333 = vector.broadcast %332 : f32 to vector<16x8xf32>
    %334 = arith.mulf %333, %21 : vector<16x8xf32>
    %335 = arith.addf %331, %334 : vector<16x8xf32>
    %c6_147 = arith.constant 6 : index
    %c2_148 = arith.constant 2 : index
    %336 = memref.load %arg5[%c6_147, %c2_148] : memref<8x4xf32, #tpu.memory_space<smem>>
    %337 = vector.extract_strided_slice %1 {offsets = [2, 0, 0], sizes = [1, 16, 8], strides = [1, 1, 1]} : vector<4x16x8xf32> to vector<1x16x8xf32>
    %338 = vector.shape_cast %337 : vector<1x16x8xf32> to vector<16x8xf32>
    %339 = vector.broadcast %336 : f32 to vector<16x8xf32>
    %340 = arith.mulf %339, %338 : vector<16x8xf32>
    %341 = arith.addf %335, %340 : vector<16x8xf32>
    %c6_149 = arith.constant 6 : index
    %c3_150 = arith.constant 3 : index
    %342 = memref.load %arg4[%c6_149, %c3_150] : memref<8x4xf32, #tpu.memory_space<smem>>
    %343 = vector.broadcast %342 : f32 to vector<16x8xf32>
    %344 = arith.mulf %343, %27 : vector<16x8xf32>
    %345 = arith.addf %341, %344 : vector<16x8xf32>
    %c6_151 = arith.constant 6 : index
    %c3_152 = arith.constant 3 : index
    %346 = memref.load %arg5[%c6_151, %c3_152] : memref<8x4xf32, #tpu.memory_space<smem>>
    %347 = vector.extract_strided_slice %1 {offsets = [3, 0, 0], sizes = [1, 16, 8], strides = [1, 1, 1]} : vector<4x16x8xf32> to vector<1x16x8xf32>
    %348 = vector.shape_cast %347 : vector<1x16x8xf32> to vector<16x8xf32>
    %349 = vector.broadcast %346 : f32 to vector<16x8xf32>
    %350 = arith.mulf %349, %348 : vector<16x8xf32>
    %351 = arith.addf %345, %350 : vector<16x8xf32>
    %cst_153 = arith.constant 0.000000e+00 : f32
    %352 = vector.broadcast %cst_153 : f32 to vector<16x8xf32>
    %353 = arith.maximumf %351, %352 : vector<16x8xf32>
    %c0_154 = arith.constant 0 : index
    %c6_155 = arith.constant 6 : index
    %c0_156 = arith.constant 0 : index
    %c0_157 = arith.constant 0 : index
    %354 = vector.load %arg7[%c0_154, %c6_155, %c0_156, %c0_157] : memref<1x8x16x8xf32, #tpu.memory_space<vmem>>, vector<1x1x16x8xf32>
    %355 = vector.shape_cast %354 : vector<1x1x16x8xf32> to vector<16x8xf32>
    %356 = vector.shape_cast %353 : vector<16x8xf32> to vector<1x1x16x8xf32>
    tpu.vector_store %arg7[%c0_154, %c6_155, %c0_156, %c0_157], %356 {strides = array<i32>} : memref<1x8x16x8xf32, #tpu.memory_space<vmem>>, vector<1x1x16x8xf32>,
    %c7 = arith.constant 7 : index
    %357 = memref.load %arg6[%c7] : memref<8xf32, #tpu.memory_space<smem>>
    %358 = vector.broadcast %357 : f32 to vector<16x8xf32>
    %c7_158 = arith.constant 7 : index
    %c0_159 = arith.constant 0 : index
    %359 = memref.load %arg4[%c7_158, %c0_159] : memref<8x4xf32, #tpu.memory_space<smem>>
    %360 = vector.broadcast %359 : f32 to vector<16x8xf32>
    %361 = arith.mulf %360, %9 : vector<16x8xf32>
    %362 = arith.addf %358, %361 : vector<16x8xf32>
    %c7_160 = arith.constant 7 : index
    %c0_161 = arith.constant 0 : index
    %363 = memref.load %arg5[%c7_160, %c0_161] : memref<8x4xf32, #tpu.memory_space<smem>>
    %364 = vector.extract_strided_slice %1 {offsets = [0, 0, 0], sizes = [1, 16, 8], strides = [1, 1, 1]} : vector<4x16x8xf32> to vector<1x16x8xf32>
    %365 = vector.shape_cast %364 : vector<1x16x8xf32> to vector<16x8xf32>
    %366 = vector.broadcast %363 : f32 to vector<16x8xf32>
    %367 = arith.mulf %366, %365 : vector<16x8xf32>
    %368 = arith.addf %362, %367 : vector<16x8xf32>
    %c7_162 = arith.constant 7 : index
    %c1_163 = arith.constant 1 : index
    %369 = memref.load %arg4[%c7_162, %c1_163] : memref<8x4xf32, #tpu.memory_space<smem>>
    %370 = vector.broadcast %369 : f32 to vector<16x8xf32>
    %371 = arith.mulf %370, %15 : vector<16x8xf32>
    %372 = arith.addf %368, %371 : vector<16x8xf32>
    %c7_164 = arith.constant 7 : index
    %c1_165 = arith.constant 1 : index
    %373 = memref.load %arg5[%c7_164, %c1_165] : memref<8x4xf32, #tpu.memory_space<smem>>
    %374 = vector.extract_strided_slice %1 {offsets = [1, 0, 0], sizes = [1, 16, 8], strides = [1, 1, 1]} : vector<4x16x8xf32> to vector<1x16x8xf32>
    %375 = vector.shape_cast %374 : vector<1x16x8xf32> to vector<16x8xf32>
    %376 = vector.broadcast %373 : f32 to vector<16x8xf32>
    %377 = arith.mulf %376, %375 : vector<16x8xf32>
    %378 = arith.addf %372, %377 : vector<16x8xf32>
    %c7_166 = arith.constant 7 : index
    %c2_167 = arith.constant 2 : index
    %379 = memref.load %arg4[%c7_166, %c2_167] : memref<8x4xf32, #tpu.memory_space<smem>>
    %380 = vector.broadcast %379 : f32 to vector<16x8xf32>
    %381 = arith.mulf %380, %21 : vector<16x8xf32>
    %382 = arith.addf %378, %381 : vector<16x8xf32>
    %c7_168 = arith.constant 7 : index
    %c2_169 = arith.constant 2 : index
    %383 = memref.load %arg5[%c7_168, %c2_169] : memref<8x4xf32, #tpu.memory_space<smem>>
    %384 = vector.extract_strided_slice %1 {offsets = [2, 0, 0], sizes = [1, 16, 8], strides = [1, 1, 1]} : vector<4x16x8xf32> to vector<1x16x8xf32>
    %385 = vector.shape_cast %384 : vector<1x16x8xf32> to vector<16x8xf32>
    %386 = vector.broadcast %383 : f32 to vector<16x8xf32>
    %387 = arith.mulf %386, %385 : vector<16x8xf32>
    %388 = arith.addf %382, %387 : vector<16x8xf32>
    %c7_170 = arith.constant 7 : index
    %c3_171 = arith.constant 3 : index
    %389 = memref.load %arg4[%c7_170, %c3_171] : memref<8x4xf32, #tpu.memory_space<smem>>
    %390 = vector.broadcast %389 : f32 to vector<16x8xf32>
    %391 = arith.mulf %390, %27 : vector<16x8xf32>
    %392 = arith.addf %388, %391 : vector<16x8xf32>
    %c7_172 = arith.constant 7 : index
    %c3_173 = arith.constant 3 : index
    %393 = memref.load %arg5[%c7_172, %c3_173] : memref<8x4xf32, #tpu.memory_space<smem>>
    %394 = vector.extract_strided_slice %1 {offsets = [3, 0, 0], sizes = [1, 16, 8], strides = [1, 1, 1]} : vector<4x16x8xf32> to vector<1x16x8xf32>
    %395 = vector.shape_cast %394 : vector<1x16x8xf32> to vector<16x8xf32>
    %396 = vector.broadcast %393 : f32 to vector<16x8xf32>
    %397 = arith.mulf %396, %395 : vector<16x8xf32>
    %398 = arith.addf %392, %397 : vector<16x8xf32>
    %cst_174 = arith.constant 0.000000e+00 : f32
    %399 = vector.broadcast %cst_174 : f32 to vector<16x8xf32>
    %400 = arith.maximumf %398, %399 : vector<16x8xf32>
    %c0_175 = arith.constant 0 : index
    %c7_176 = arith.constant 7 : index
    %c0_177 = arith.constant 0 : index
    %c0_178 = arith.constant 0 : index
    %401 = vector.load %arg7[%c0_175, %c7_176, %c0_177, %c0_178] : memref<1x8x16x8xf32, #tpu.memory_space<vmem>>, vector<1x1x16x8xf32>
    %402 = vector.shape_cast %401 : vector<1x1x16x8xf32> to vector<16x8xf32>
    %403 = vector.shape_cast %400 : vector<16x8xf32> to vector<1x1x16x8xf32>
    tpu.vector_store %arg7[%c0_175, %c7_176, %c0_177, %c0_178], %403 {strides = array<i32>} : memref<1x8x16x8xf32, #tpu.memory_space<vmem>>, vector<1x1x16x8xf32>,
    return
  }
  func.func @transform_0(%arg0: i32, %arg1: i32) -> (i32, i32, i32, i32) {
    %c0_i32 = arith.constant 0 : i32
    %c0_i32_0 = arith.constant 0 : i32
    %c0_i32_1 = arith.constant 0 : i32
    return %arg0, %c0_i32, %c0_i32_0, %arg1 : i32, i32, i32, i32
  }
  func.func @transform_1(%arg0: i32, %arg1: i32) -> (i32, i32, i32, i32) {
    %c0_i32 = arith.constant 0 : i32
    %c0_i32_0 = arith.constant 0 : i32
    %c0_i32_1 = arith.constant 0 : i32
    return %arg0, %c0_i32, %c0_i32_0, %arg1 : i32, i32, i32, i32
  }
  func.func @transform_2(%arg0: i32, %arg1: i32) -> (i32, i32) {
    %c0_i32 = arith.constant 0 : i32
    %c0_i32_0 = arith.constant 0 : i32
    %c0_i32_1 = arith.constant 0 : i32
    return %c0_i32, %c0_i32_0 : i32, i32
  }
  func.func @transform_3(%arg0: i32, %arg1: i32) -> (i32, i32) {
    %c0_i32 = arith.constant 0 : i32
    %c0_i32_0 = arith.constant 0 : i32
    %c0_i32_1 = arith.constant 0 : i32
    return %c0_i32, %c0_i32_0 : i32, i32
  }
  func.func @transform_4(%arg0: i32, %arg1: i32) -> i32 {
    %c0_i32 = arith.constant 0 : i32
    %c0_i32_0 = arith.constant 0 : i32
    return %c0_i32 : i32
  }
  func.func @transform_5(%arg0: i32, %arg1: i32) -> (i32, i32, i32, i32) {
    %c0_i32 = arith.constant 0 : i32
    %c0_i32_0 = arith.constant 0 : i32
    %c0_i32_1 = arith.constant 0 : i32
    return %arg0, %c0_i32, %c0_i32_0, %arg1 : i32, i32, i32, i32
  }
}

</mosaic_0001>

<bundles_post_ra>
// kernel: tpu_custom_call.1
= control target key start
LH: loop header
LB: loop body
LE: loop exit
PB: predicated region body
PF: predicated region fallthrough
CT: control target
= control target key end

     0   :  { %10 = vsyncpa [#allocation3], 0  ;;  %s7106_s0 = inlined_call_operand.vmem [shape: f32[2,4,16,8], index: 0, kind: input, shape index: {}]   ;;  %s7107_s1 = inlined_call_operand.vmem [shape: f32[2,16,16,8], index: 1, kind: input, shape index: {}]   ;;  %s7108_s2 = inlined_call_operand.vmem [shape: f32[8,4], index: 2, kind: input, shape index: {}]   ;;  %s7109_s3 = inlined_call_operand.vmem [shape: f32[8,4], index: 3, kind: input, shape index: {}]   ;;  %s7110_s4 = inlined_call_operand.vmem [shape: f32[8], index: 4, kind: input, shape index: {}]   ;;  %s7111_s5 = inlined_call_operand.vmem [shape: f32[2,8,16,8], index: 5, kind: output, shape index: {}]  }
   0x1   :  { %11 = vsyncpa [#allocation5], 0  ;;  %s4832_s18 = smov 0   ;;  %s4834_s19 = smov 0  }
   0x2   :  { %s4836_s20 = smov 0  }
   0x3 LB: > { %s205_s23 = sshll.u32 %s7109_s3, 4  ;;  %s4498_s24 = sadd.s32 4294967295, %s4797_s20   ;;  %s4797_s20 = sphi %s4836_s20, %s17_s20   ;;  %s4793_s19 = sphi %s4834_s19, %s7929_s19   ;;  %s4789_s18 = sphi %s4832_s18, %s7928_s18   ;;  %s206_s23 = int_to_ptr.vmem [resolvable:$true] %s205_s23 }
   0x4   : > { %p4500_p0 = scmp.ge.s32.totalorder %s4797_s20, 1  ;;  %p181_p1 = scmp.lt.s32.totalorder %s4797_s20, 3 }
   0x5   : > { %p4853_p2 = scmp.eq.s32.totalorder %s4498_s24, 0  ;;  %s29_s27 = sadd.s32 1, %s4793_s19 }
   0x6   : > { %p4857_p3 = pnand %p4500_p0, %p181_p1  ;;  %s194_s30 = sshll.u32 %s7108_s2, 4  ;;  %s195_s30 = int_to_ptr.vmem [resolvable:$true] %s194_s30 }
   0x7   : > { %s7288_s25 = scalar_select %p4853_p2, 1, 0 }
   0x8   : > { %s7289_s26 = scalar_select %p4857_p3, 1, 0 }
   0x9   : > { %p4615_p4 = pneg %p4857_p3  ;;  %p4873_p6 = scmp.ge.s32.totalorder %s29_s27, 2 }
   0xa   : > { %s216_s10 = sshll.u32 %s7110_s4, 4  ;;  %s4722_s11 = scalar_lea.vmem %s206_s23, 128  ;;  %s217_s10 = int_to_ptr.vmem [resolvable:$true] %s216_s10 }
   0xb   : > { %p4869_p5 = pnand %p4853_p2, %p4615_p4  ;;  %p4723_p7 = scmp.ne.s32.totalorder %s206_s23, %s4722_s11 }
   0xc   : > { %p4730_p11 = scmp.lt.s32.totalorder %s206_s23, %s206_s23  ;;  %p4731_p12 = scmp.lt.s32.totalorder %s4722_s11, %s4722_s11 }
   0xd   : > { %p4724_p8 = pneg %p4869_p5 }
   0xe   : > { %p4732_p13 = por %p4731_p12, %p4730_p11 }
   0xf   : > { %p4725_p9 = pnand %p4724_p8, %p4723_p7 }
  0x11   : > { %p4726_p10 = pneg %p4725_p9 }
  0x13   : > { %p4733_p0 = pnand %p4732_p13, %p4726_p10 }
  0x15   : > { %4736 = shalt.err (!%p4733_p0)
}
  0x16   : > { %s4799_s12 = smov [#allocation4]   ;;  %s7931_s27 = smov (%p4873_p6, %s29_s27), 0 }
  0x17   : > { %4621 = dma.vmem_to_smem (!%p4869_p5), %s206_s23, 128, %s4799_s12, [#allocation5]  }
  0x18   : > { %s4737_s13 = scalar_lea.vmem %s195_s30, 128  ;;  %p4745_p9 = scmp.lt.s32.totalorder %s195_s30, %s195_s30 }
  0x19   : > { %p4738_p1 = scmp.ne.s32.totalorder %s195_s30, %s4737_s13  ;;  %p4746_p2 = scmp.lt.s32.totalorder %s4737_s13, %s4737_s13 }
  0x1b   : > { %p4740_p4 = pnand %p4738_p1, %p4724_p8  ;;  %p4747_p11 = por %p4746_p2, %p4745_p9 }
  0x1d   : > { %p4741_p7 = pneg %p4740_p4 }
  0x1f   : > { %p4748_p10 = pnand %p4747_p11, %p4741_p7 }
  0x21   : > { %4751 = shalt.err (!%p4748_p10)
}
  0x22   : > { %s4800_s14 = smov [#allocation2]   ;;  %s4752_s15 = scalar_lea.vmem %s217_s10, 16 }
  0x23   : > { %4618 = dma.vmem_to_smem (!%p4869_p5), %s195_s30, 128, %s4800_s14, [#allocation3]  }
  0x24   : > { %p4753_p6 = scmp.ne.s32.totalorder %s217_s10, %s4752_s15  ;;  %p4760_p0 = scmp.lt.s32.totalorder %s217_s10, %s217_s10 }
  0x25   : > { %p4761_p1 = scmp.lt.s32.totalorder %s4752_s15, %s4752_s15 }
  0x26   : > { %p4755_p12 = pnand %p4753_p6, %p4724_p8 }
  0x27   : > { %p4762_p4 = por %p4761_p1, %p4760_p0 }
  0x28   : > { %p4756_p13 = pneg %p4755_p12 }
  0x2a   : > { %p4763_p3 = pnand %p4762_p4, %p4756_p13 }
  0x2c   : > { %4766 = shalt.err (!%p4763_p3)
}
  0x2d   : > { %s4801_s16 = smov [#allocation6]   ;;  %p7292_p2 = scmp.ne.s32.totalorder %s7289_s26, 0 }
  0x2e   : > { %4624 = dma.vmem_to_smem (!%p4869_p5), %s217_s10, 16, %s4801_s16, [#allocation5]  }
  0x2f   : > { %251 = sbr.rel (%p7292_p2) target bundleno = 873 (0x369), region = 40 }
  0x36   : > { %p7293_p7 = scmp.ne.s32.totalorder %s7288_s25, 0 }
  0x38   : > { %4780 = dma.done.wait (%p7293_p7), [#allocation3], 128  }
  0x39   : > { %4782 = vsyncadd (%p7293_p7), [#allocation3], 4294967168 }
  0x3a   : > { %4784 = dma.done.wait (%p7293_p7), [#allocation5], 144  }
  0x3b   : > { %4786 = vsyncadd (%p7293_p7), [#allocation5], 4294967152 }
  0x3c   : > { %265 = sfence }
  0x3d   : > { %p302_p3 = scmp.lt.s32.totalorder %s4789_s18, 1  ;;  %vm398_vm0 = vcmask 64512   ;;  %s5676_s29 = sld [smem:[#allocation2]]  ;;  %vm1450_vm1 = vcmask 1041409   ;;  %vm1453_vm2 = vcmask 1042434   ;;  %vm1456_vm3 = vcmask 1043459  }
  0x3e   : > { %s5679_s30 = sld [smem:[#allocation6]]  ;;  %s5711_s7 = sld [smem:[#allocation2 + $0x1]]  ;;  %vm1459_vm4 = vcmask 1044484   ;;  %vm1462_vm5 = vcmask 1045509   ;;  %vm1465_vm6 = vcmask 1046534   ;;  %vm1468_vm7 = vcmask 1047559  }
  0x3f   : > { %s7933_s18 = smov (!%p302_p3, %s4789_s18), 1  ;;  %s5704_s6 = sld [smem:[#allocation4]] }
  0x40   : > { %s4600_s17 = sshll.u32 %s7933_s18, 6  ;;  %s4601_s21 = sshll.u32 %s7933_s18, 8 }
  0x41   : > { %s4920_s24 = scalar_lea.vmem %s7106_s0, %s4600_s17  ;;  %s4925_s25 = scalar_lea.vmem %s7107_s1, %s4601_s21 }
  0x42   : > { %v4928_v0 = vld [vmem:[%s4920_s24] sm:$0xff]  ;;  %v4931_v1 = vld [vmem:[%s4920_s24 + $0x8] sm:$0xff]  ;;  %v4938_v4 = vld [vmem:[%s4925_s25 + $0x10] sm:$0xff]  ;;  %s5750_s8 = sld [smem:[#allocation4 + $0x1]]  ;;  %s5752_s9 = sld [smem:[#allocation2 + $0x2]] }
  0x43   : > { %v334_v2 = vld [vmem:[%s4925_s25] sm:$0xff]  ;;  %v4935_v3 = vld [vmem:[%s4925_s25 + $0x8] sm:$0xff]  ;;  %v4941_v5 = vld [vmem:[%s4925_s25 + $0x18] sm:$0xff]  ;;  %v368_v15 = vmul.f32 %v4938_v4, %v4928_v0  ;;  %s5754_s10 = sld [smem:[#allocation4 + $0x2]]  ;;  %s5756_s11 = sld [smem:[#allocation2 + $0x3]] }
  0x44   : > { %7294 = vst [vmem:[#allocation9_spill] sm:$0xff] %v4935_v3  ;;  %v366_v6 = vmul.f32 %v334_v2, %v4928_v0  ;;  %v4945_v7 = vld [vmem:[%s4920_s24 + $0x10] sm:$0xff]  ;;  %v4948_v8 = vld [vmem:[%s4920_s24 + $0x20] sm:$0xff]  ;;  %v367_v10 = vmul.f32 %v4935_v3, %v4931_v1  ;;  %v4954_v11 = vld [vmem:[%s4920_s24 + $0x18] sm:$0xff]  ;;  %v369_v20 = vmul.f32 %v4941_v5, %v4931_v1  ;;  %s5822_s12 = sld [smem:[#allocation4 + $0x3]]  ;;  %s5847_s13 = sld [smem:[#allocation2 + $0x80]] }
  0x45   : > { %7295 = vst [vmem:[#allocation10_spill] sm:$0xff] %v4948_v8  ;;  %v332_v9 = vld [vmem:[%s4920_s24 + $0x30] sm:$0xff]  ;;  %v4957_v12 = vld [vmem:[%s4925_s25 + $0x20] sm:$0xff]  ;;  %v4960_v13 = vld [vmem:[%s4925_s25 + $0x28] sm:$0xff]  ;;  %v4990_v26 = vmul.f32 %v334_v2, %v4945_v7  ;;  %v4993_v27 = vmul.f32 %v334_v2, %v4948_v8  ;;  %v5014_v35 = vmul.f32 %v4935_v3, %v4954_v11  ;;  %v408_v42 = vsel %vm398_vm0, %v368_v15, 0.0  ;;  %s5849_s14 = sld [smem:[#allocation6 + $0x1]] }
  0x46   : > { %v4963_v14 = vld [vmem:[%s4925_s25 + $0x30] sm:$0xff]  ;;  %v399_v16 = vsel %vm398_vm0, %v366_v6, 0.0  ;;  %v4969_v17 = vld [vmem:[%s4925_s25 + $0x38] sm:$0xff]  ;;  %v4972_v18 = vld [vmem:[%s4925_s25 + $0x40] sm:$0xff]  ;;  %v400_v21 = vsel %vm398_vm0, %v367_v10, 0.0  ;;  %v4995_v28 = vmul.f32 %v334_v2, %v332_v9  ;;  %v370_v32 = vmul.f32 %v4957_v12, %v4928_v0  ;;  %s4602_s15 = sshll.u32 %s7933_s18, 7 }
  0x47   : > { %v4975_v19 = vld [vmem:[%s4925_s25 + $0x48] sm:$0xff]  ;;  %v4981_v22 = vld [vmem:[%s4925_s25 + $0x50] sm:$0xff]  ;;  %v4984_v23 = vld [vmem:[%s4925_s25 + $0x58] sm:$0xff]  ;;  %v401_v25 = vadd.f32 %v400_v21, %v399_v16  ;;  %7296 = vst [vmem:[#allocation11_spill] sm:$0xff] %v4990_v26  ;;  %v371_v33 = vmul.f32 %v4960_v13, %v4931_v1  ;;  %v372_v34 = vmul.f32 %v4963_v14, %v4928_v0  ;;  %v373_v39 = vmul.f32 %v4969_v17, %v4931_v1  ;;  %s5862_s17 = scalar_lea.vmem %s7111_s5, %s4602_s15  ;;  %s5869_s21 = sld [smem:[#allocation4 + $0x80]] }
  0x48   : > { %v4987_v24 = vld [vmem:[%s4925_s25 + $0x60] sm:$0xff]  ;;  %7297 = vst [vmem:[#allocation12_spill] sm:$0xff] %v4993_v27  ;;  %7298 = vst [vmem:[#allocation13_spill] sm:$0xff] %v4995_v28  ;;  %v4998_v29 = vld [vmem:[%s4925_s25 + $0x68] sm:$0xff]  ;;  %v374_v40 = vmul.f32 %v4972_v18, %v4928_v0  ;;  %v375_v46 = vmul.f32 %v4975_v19, %v4931_v1  ;;  %v376_v47 = vmul.f32 %v4981_v22, %v4928_v0  ;;  %v409_v49 = vsel %vm398_vm0, %v369_v20, 0.0  ;;  %s5871_s22 = sld [smem:[#allocation2 + $0x81]] }
  0x49   : > { %v5001_v30 = vld [vmem:[%s4925_s25 + $0x70] sm:$0xff]  ;;  %v5004_v31 = vld [vmem:[%s4925_s25 + $0x78] sm:$0xff]  ;;  %7299 = vst [vmem:[#allocation14_spill] sm:$0xff] %v5014_v35  ;;  %v5017_v36 = vld [vmem:[%s4925_s25 + $0x80] sm:$0xff]  ;;  %v402_v41 = vrot.slane %v401_v25, 4  ;;  %v377_v48 = vmul.f32 %v4984_v23, %v4931_v1  ;;  %v378_v51 = vmul.f32 %v4987_v24, %v4928_v0  ;;  %v379_v52 = vmul.f32 %v4998_v29, %v4931_v1  ;;  %s5907_s23 = sld [smem:[#allocation4 + $0x81]] }
  0x4a   : > { %v5020_v37 = vld [vmem:[%s4925_s25 + $0x88] sm:$0xff]  ;;  %v5023_v38 = vld [vmem:[%s4925_s25 + $0x90] sm:$0xff]  ;;  %v5031_v43 = vld [vmem:[%s4925_s25 + $0x98] sm:$0xff]  ;;  %v380_v53 = vmul.f32 %v5001_v30, %v4928_v0  ;;  %v381_v55 = vmul.f32 %v5004_v31, %v4931_v1  ;;  %v382_v56 = vmul.f32 %v5017_v36, %v4928_v0  ;;  %v410_v58 = vadd.f32 %v409_v49, %v408_v42  ;;  %s5909_s26 = sld [smem:[#allocation2 + $0x82]]  ;;  %s6211_s15 = sld [smem:[#allocation2 + $0x180]] }
  0x4b   : > { %7300 = vst [vmem:[#allocation15_spill] sm:$0xff] %v5031_v43  ;;  %v5034_v44 = vld [vmem:[%s4925_s25 + $0xa0] sm:$0xff]  ;;  %v5037_v45 = vld [vmem:[%s4925_s25 + $0xa8] sm:$0xff]  ;;  %v5047_v50 = vld [vmem:[%s4925_s25 + $0xb0] sm:$0xff]  ;;  %v403_v54 = vadd.f32 %v402_v41, %v401_v25  ;;  %v383_v57 = vmul.f32 %v5020_v37, %v4931_v1  ;;  %v5063_v59 = vmul.f32 %v5023_v38, %v4928_v0  ;;  %v5067_v60 = vmul.f32 %v5031_v43, %v4931_v1  ;;  %s5911_s28 = sld [smem:[#allocation4 + $0x82]]  ;;  %s6213_s16 = sld [smem:[#allocation4 + $0x180]] }
  0x4c   : > { %7301 = vst [vmem:[#allocation16_spill] sm:$0xff] %v5034_v44  ;;  %7302 = vst [vmem:[#allocation17_spill] sm:$0xff] %v5037_v45  ;;  %v5071_v61 = vmul.f32 %v5034_v44, %v4928_v0  ;;  %v5075_v62 = vmul.f32 %v5037_v45, %v4931_v1  ;;  %v5078_v63 = vld [vmem:[%s4925_s25 + $0xb8] sm:$0xff]  ;;  %v5082_v2 = vmul.f32 %v5047_v50, %v4928_v0  ;;  %v411_v6 = vrot.slane %v410_v58, 4  ;;  %v5089_v25 = vld [vmem:[%s4925_s25 + $0xc0] sm:$0xff]  ;;  %s6215_s18 = sld [smem:[#allocation2 + $0x181]] }
  0x4d   : > { %7303 = vst [vmem:[#allocation18_spill] sm:$0xff] %v5047_v50  ;;  %7304 = vst [vmem:[#allocation19_spill] sm:$0xff] %v5078_v63  ;;  %v417_v9 = vsel %vm398_vm0, %v370_v32, 0.0  ;;  %v418_v10 = vsel %vm398_vm0, %v371_v33, 0.0  ;;  %v404_v15 = vrot.slane %v403_v54, 2  ;;  %v426_v20 = vsel %vm398_vm0, %v372_v34, 0.0 }
  0x4e   : > { %v419_v16 = vadd.f32 %v418_v10, %v417_v9  ;;  %v427_v21 = vsel %vm398_vm0, %v373_v39, 0.0  ;;  %7305 = vst [vmem:[#allocation20_spill] sm:$0xff] %v5089_v25  ;;  %v412_v41 = vadd.f32 %v411_v6, %v410_v58  ;;  %v435_v49 = vsel %vm398_vm0, %v374_v40, 0.0  ;;  %v5101_v6 = vld [vmem:[%s4925_s25 + $0xc8] sm:$0xff]  ;;  %v5104_v40 = vld [vmem:[%s4925_s25 + $0xd0] sm:$0xff]  ;;  %v5116_v50 = vld [vmem:[%s4925_s25 + $0xe0] sm:$0xff] }
  0x4f   : > { %v428_v42 = vadd.f32 %v427_v21, %v426_v20  ;;  %v436_v28 = vsel %vm398_vm0, %v375_v46, 0.0  ;;  %v5095_v32 = vmul.f32 %v5078_v63, %v4931_v1  ;;  %v444_v34 = vsel %vm398_vm0, %v376_v47, 0.0  ;;  %7306 = vst [vmem:[#allocation21_spill] sm:$0xff] %v5101_v6  ;;  %7307 = vst [vmem:[#allocation22_spill] sm:$0xff] %v5104_v40  ;;  %v5111_v47 = vld [vmem:[%s4925_s25 + $0xd8] sm:$0xff] }
  0x50   : > { %v420_v33 = vrot.slane %v419_v16, 4  ;;  %v437_v9 = vadd.f32 %v436_v28, %v435_v49  ;;  %v413_v10 = vrot.slane %v412_v41, 2  ;;  %v445_v39 = vsel %vm398_vm0, %v377_v48, 0.0  ;;  %7308 = vst [vmem:[#allocation23_spill] sm:$0xff] %v5111_v47  ;;  %7309 = vst [vmem:[#allocation24_spill] sm:$0xff] %v5116_v50 }
  0x51   : > { %v429_v27 = vrot.slane %v428_v42, 4  ;;  %v453_v58 = vsel %vm398_vm0, %v378_v51, 0.0  ;;  %v5108_v46 = vmul.f32 %v5089_v25, %v4928_v0  ;;  %v446_v21 = vadd.f32 %v445_v39, %v444_v34  ;;  %v5119_v25 = vld [vmem:[%s4925_s25 + $0xe8] sm:$0xff]  ;;  %v5133_v34 = vld [vmem:[%s4925_s25 + $0xf8] sm:$0xff] }
  0x52   : > { %v421_v20 = vadd.f32 %v420_v33, %v419_v16  ;;  %v438_v28 = vrot.slane %v437_v9, 4  ;;  %v405_v49 = vadd.f32 %v404_v15, %v403_v54  ;;  %v414_v8 = vadd.f32 %v413_v10, %v412_v41  ;;  %7310 = vst [vmem:[#allocation25_spill] sm:$0xff] %v5119_v25  ;;  %v5130_v33 = vld [vmem:[%s4925_s25 + $0xf0] sm:$0xff]  ;;  %7311 = vst [vmem:[#allocation26_spill] sm:$0xff] %v5133_v34 }
  0x53   : > { %v430_v48 = vadd.f32 %v429_v27, %v428_v42  ;;  %v454_v51 = vsel %vm398_vm0, %v379_v52, 0.0  ;;  %v447_v63 = vrot.slane %v446_v21, 4  ;;  %v462_v26 = vsel %vm398_vm0, %v380_v53, 0.0 }
  0x54   : > { %v422_v3 = vrot.slane %v421_v20, 2  ;;  %v455_v35 = vadd.f32 %v454_v51, %v453_v58  ;;  %v391_v16 = vmul.f32 %v5101_v6, %v4931_v1  ;;  %v392_v54 = vmul.f32 %v5104_v40, %v4928_v0 }
  0x55   : > { %v439_v27 = vadd.f32 %v438_v28, %v437_v9  ;;  %v463_v15 = vsel %vm398_vm0, %v381_v55, 0.0  ;;  %v393_v52 = vmul.f32 %v5111_v47, %v4931_v1  ;;  %v431_v42 = vrot.slane %v430_v48, 2 }
  0x56   : > { %v423_v41 = vadd.f32 %v422_v3, %v421_v20  ;;  %v471_v53 = vsel %vm398_vm0, %v382_v56, 0.0  ;;  %v448_v10 = vadd.f32 %v447_v63, %v446_v21  ;;  %v456_v39 = vrot.slane %v455_v35, 4 }
  0x57   : > { %v464_v58 = vadd.f32 %v463_v15, %v462_v26  ;;  %v472_v51 = vsel %vm398_vm0, %v383_v57, 0.0  ;;  %v394_v9 = vmul.f32 %v5116_v50, %v4928_v0  ;;  %v395_v55 = vmul.f32 %v5119_v25, %v4931_v1 }
  0x58   : > { %v406_v28 = vrot.slane %v405_v49, 1  ;;  %v415_v3 = vrot.slane %v414_v8, 1  ;;  %v440_v20 = vrot.slane %v439_v27, 2  ;;  %v473_v56 = vadd.f32 %v472_v51, %v471_v53 }
  0x59   : > { %v465_v47 = vrot.slane %v464_v58, 4  ;;  %v480_v40 = vsel %vm398_vm0, %v5063_v59, 0.0  ;;  %v396_v63 = vmul.f32 %v5130_v33, %v4928_v0  ;;  %v397_v26 = vmul.f32 %v5133_v34, %v4931_v1 }
  0x5a   : > { %v424_v57 = vrot.slane %v423_v41, 1  ;;  %v432_v21 = vadd.f32 %v431_v42, %v430_v48  ;;  %v449_v15 = vrot.slane %v448_v10, 2  ;;  %v457_v50 = vadd.f32 %v456_v39, %v455_v35 }
  0x5b   : > { %v474_v6 = vrot.slane %v473_v56, 4  ;;  %v481_v25 = vsel %vm398_vm0, %v5067_v60, 0.0  ;;  %v5148_v45 = vadd.f32 %v406_v28, %v405_v49  ;;  %v5150_v53 = vadd.f32 %v415_v3, %v414_v8 }
  0x5c   : > { %v466_v51 = vadd.f32 %v465_v47, %v464_v58  ;;  %v482_v59 = vadd.f32 %v481_v25, %v480_v40  ;;  %v441_v44 = vadd.f32 %v440_v20, %v439_v27  ;;  %v489_v0 = vsel %vm398_vm0, %v5071_v61, 0.0 }
  0x5d   : > { %7312 = vst [vmem:[#allocation27_spill] sm:$0xff] %v5148_v45  ;;  %7313 = vst [vmem:[#allocation28_spill] sm:$0xff] %v5150_v53  ;;  %v475_v43 = vadd.f32 %v474_v6, %v473_v56  ;;  %v490_v1 = vsel %vm398_vm0, %v5075_v62, 0.0  ;;  %v5156_v48 = vadd.f32 %v424_v57, %v423_v41  ;;  %v433_v35 = vrot.slane %v432_v21, 1 }
  0x5e   : > { %v483_v42 = vrot.slane %v482_v59, 4  ;;  %v491_v39 = vadd.f32 %v490_v1, %v489_v0  ;;  %v450_v60 = vadd.f32 %v449_v15, %v448_v10  ;;  %v458_v49 = vrot.slane %v457_v50, 2 }
  0x5f   : > { %7314 = vst [vmem:[#allocation29_spill] sm:$0xff] %v5156_v48  ;;  %v498_v8 = vsel %vm398_vm0, %v5082_v2, 0.0  ;;  %v499_v25 = vsel %vm398_vm0, %v5095_v32, 0.0  ;;  %v467_v6 = vrot.slane %v466_v51, 2  ;;  %v442_v27 = vrot.slane %v441_v44, 1 }
  0x60   : > { %v484_v40 = vadd.f32 %v483_v42, %v482_v59  ;;  %v492_v47 = vrot.slane %v491_v39, 4  ;;  %v500_v61 = vadd.f32 %v499_v25, %v498_v8  ;;  %v476_v58 = vrot.slane %v475_v43, 2 }
  0x61   : > { %v507_v62 = vsel %vm398_vm0, %v5108_v46, 0.0  ;;  %v508_v41 = vsel %vm398_vm0, %v391_v16, 0.0  ;;  %v451_v56 = vrot.slane %v450_v60, 1  ;;  %v459_v2 = vadd.f32 %v458_v49, %v457_v50 }
  0x62   : > { %v485_v28 = vrot.slane %v484_v40, 2  ;;  %v493_v10 = vadd.f32 %v492_v47, %v491_v39  ;;  %v501_v3 = vrot.slane %v500_v61, 4  ;;  %v509_v20 = vadd.f32 %v508_v41, %v507_v62 }
  0x63   : > { %v516_v57 = vsel %vm398_vm0, %v392_v54, 0.0  ;;  %v517_v32 = vsel %vm398_vm0, %v393_v52, 0.0  ;;  %v468_v15 = vadd.f32 %v467_v6, %v466_v51  ;;  %v477_v42 = vadd.f32 %v476_v58, %v475_v43 }
  0x64   : > { %v494_v59 = vrot.slane %v493_v10, 2  ;;  %v502_v0 = vadd.f32 %v501_v3, %v500_v61  ;;  %v510_v1 = vrot.slane %v509_v20, 4  ;;  %v518_v8 = vadd.f32 %v517_v32, %v516_v57 }
  0x65   : > { %v525_v46 = vsel %vm398_vm0, %v394_v9, 0.0  ;;  %v526_v16 = vsel %vm398_vm0, %v395_v55, 0.0  ;;  %v486_v25 = vadd.f32 %v485_v28, %v484_v40  ;;  %v534_v54 = vsel %vm398_vm0, %v396_v63, 0.0 }
  0x66   : > { %v495_v39 = vadd.f32 %v494_v59, %v493_v10  ;;  %v503_v47 = vrot.slane %v502_v0, 2  ;;  %v511_v62 = vadd.f32 %v510_v1, %v509_v20  ;;  %v519_v41 = vrot.slane %v518_v8, 4 }
  0x67   : > { %v527_v50 = vadd.f32 %v526_v16, %v525_v46  ;;  %v535_v52 = vsel %vm398_vm0, %v397_v26, 0.0  ;;  %v460_v51 = vrot.slane %v459_v2, 1  ;;  %v469_v49 = vrot.slane %v468_v15, 1 }
  0x68   : > { %v504_v6 = vadd.f32 %v503_v47, %v502_v0  ;;  %v512_v61 = vrot.slane %v511_v62, 2  ;;  %v5171_v43 = vadd.f32 %v433_v35, %v432_v21  ;;  %v520_v58 = vadd.f32 %v519_v41, %v518_v8 }
  0x69   : > { %v528_v9 = vrot.slane %v527_v50, 4  ;;  %v536_v3 = vadd.f32 %v535_v52, %v534_v54  ;;  %v478_v55 = vrot.slane %v477_v42, 1  ;;  %v487_v40 = vrot.slane %v486_v25, 1 }
  0x6a   : > { %7315 = vst [vmem:[#allocation30_spill] sm:$0xff] %v5171_v43  ;;  %v496_v28 = vrot.slane %v495_v39, 1  ;;  %v513_v10 = vadd.f32 %v512_v61, %v511_v62  ;;  %v5173_v20 = vadd.f32 %v442_v27, %v441_v44  ;;  %v521_v57 = vrot.slane %v520_v58, 2 }
  0x6b   : > { %v529_v32 = vadd.f32 %v528_v9, %v527_v50  ;;  %v537_v63 = vrot.slane %v536_v3, 4  ;;  %v5175_v59 = vadd.f32 %v451_v56, %v450_v60  ;;  %v5177_v26 = vadd.f32 %v460_v51, %v459_v2 }
  0x6c   : > { %7316 = vst [vmem:[#allocation31_spill] sm:$0xff] %v5173_v20  ;;  %v5179_v0 = vadd.f32 %v469_v49, %v468_v15  ;;  %v505_v21 = vrot.slane %v504_v6, 1  ;;  %v514_v35 = vrot.slane %v513_v10, 1  ;;  %v522_v1 = vadd.f32 %v521_v57, %v520_v58 }
  0x6d   : > { %7317 = vst [vmem:[#allocation32_spill] sm:$0xff] %v5175_v59  ;;  %7318 = vst [vmem:[#allocation33_spill] sm:$0xff] %v5177_v26  ;;  %v530_v8 = vrot.slane %v529_v32, 2  ;;  %v538_v46 = vadd.f32 %v537_v63, %v536_v3  ;;  %v5181_v16 = vadd.f32 %v478_v55, %v477_v42  ;;  %v5183_v47 = vadd.f32 %v487_v40, %v486_v25 }
  0x6e   : > { %7319 = vst [vmem:[#allocation34_spill] sm:$0xff] %v5179_v0  ;;  %v5185_v44 = vadd.f32 %v496_v28, %v495_v39  ;;  %v545_v27 = vmul.f32 %v4938_v4, %v4945_v7  ;;  %v546_v2 = vmul.f32 %v4941_v5, %v4954_v11  ;;  %v547_v15 = vmul.f32 %v4957_v12, %v4945_v7 }
  0x6f   : > { %7320 = vst [vmem:[#allocation35_spill] sm:$0xff] %v5181_v16  ;;  %7321 = vst [vmem:[#allocation36_spill] sm:$0xff] %v5183_v47  ;;  %v531_v60 = vadd.f32 %v530_v8, %v529_v32  ;;  %v539_v56 = vrot.slane %v538_v46, 2  ;;  %v5193_v62 = vadd.f32 %v505_v21, %v504_v6  ;;  %v523_v41 = vrot.slane %v522_v1, 1  ;;  %v7327_v21 = vld [vmem:[#allocation15_spill] sm:$0xff] }
  0x70   : > { %7322 = vst [vmem:[#allocation37_spill] sm:$0xff] %v5185_v44  ;;  %v548_v42 = vmul.f32 %v4960_v13, %v4954_v11  ;;  %v549_v25 = vmul.f32 %v4963_v14, %v4945_v7  ;;  %v5199_v39 = vadd.f32 %v514_v35, %v513_v10  ;;  %v550_v52 = vmul.f32 %v4969_v17, %v4954_v11 }
  0x71   : > { %7323 = vst [vmem:[#allocation38_spill] sm:$0xff] %v5193_v62  ;;  %v532_v50 = vrot.slane %v531_v60, 1  ;;  %v5201_v54 = vadd.f32 %v539_v56, %v538_v46  ;;  %v551_v51 = vmul.f32 %v4972_v18, %v4945_v7  ;;  %v552_v49 = vmul.f32 %v4975_v19, %v4954_v11  ;;  %v7329_v46 = vld [vmem:[#allocation17_spill] sm:$0xff] }
  0x72   : > { %7324 = vst [vmem:[#allocation39_spill] sm:$0xff] %v5199_v39  ;;  %v553_v6 = vmul.f32 %v4981_v22, %v4945_v7  ;;  %v554_v61 = vmul.f32 %v4984_v23, %v4954_v11  ;;  %v555_v58 = vmul.f32 %v4987_v24, %v4945_v7  ;;  %v556_v9 = vmul.f32 %v4998_v29, %v4954_v11 }
  0x73   : > { %v557_v3 = vmul.f32 %v5001_v30, %v4945_v7  ;;  %v558_v55 = vmul.f32 %v5004_v31, %v4954_v11  ;;  %v5221_v40 = vadd.f32 %v523_v41, %v522_v1  ;;  %v5225_v28 = vmul.f32 %v5017_v36, %v4945_v7  ;;  %v7328_v1 = vld [vmem:[#allocation16_spill] sm:$0xff]  ;;  %v7330_v41 = vld [vmem:[#allocation18_spill] sm:$0xff] }
  0x74   : > { %v5229_v10 = vmul.f32 %v5020_v37, %v4954_v11  ;;  %v5233_v57 = vmul.f32 %v5023_v38, %v4945_v7  ;;  %v5235_v32 = vadd.f32 %v532_v50, %v531_v60  ;;  %v541_v63 = vrot.slane %v5201_v54, 1  ;;  %v7331_v60 = vld [vmem:[#allocation11_spill] sm:$0xff] }
  0x75   : > { %7325 = vst [vmem:[#allocation40_spill] sm:$0xff] %v5221_v40  ;;  %v5240_v35 = vmul.f32 %v7327_v21, %v4954_v11  ;;  %v5244_v8 = vmul.f32 %v7328_v1, %v4945_v7  ;;  %v5248_v56 = vmul.f32 %v7329_v46, %v4954_v11  ;;  %v5252_v40 = vmul.f32 %v7330_v41, %v4945_v7 }
  0x76   : > { %7326 = vst [vmem:[#allocation41_spill] sm:$0xff] %v5235_v32  ;;  %v575_v50 = vsel %vm398_vm0, %v7331_v60, 0.0  ;;  %v7332_v32 = vld [vmem:[#allocation14_spill] sm:$0xff]  ;;  %v584_v44 = vsel %vm398_vm0, %v545_v27, 0.0  ;;  %v585_v47 = vsel %vm398_vm0, %v546_v2, 0.0  ;;  %v593_v16 = vsel %vm398_vm0, %v547_v15, 0.0 }
  0x77   : > { %v576_v39 = vsel %vm398_vm0, %v7332_v32, 0.0  ;;  %v586_v0 = vadd.f32 %v585_v47, %v584_v44  ;;  %v594_v26 = vsel %vm398_vm0, %v548_v42, 0.0  ;;  %v602_v59 = vsel %vm398_vm0, %v549_v25, 0.0 }
  0x78   : > { %v577_v62 = vadd.f32 %v576_v39, %v575_v50  ;;  %v603_v20 = vsel %vm398_vm0, %v550_v52, 0.0  ;;  %v595_v48 = vadd.f32 %v594_v26, %v593_v16  ;;  %v611_v53 = vsel %vm398_vm0, %v551_v51, 0.0 }
  0x79   : > { %v604_v60 = vadd.f32 %v603_v20, %v602_v59  ;;  %v587_v32 = vrot.slane %v586_v0, 4  ;;  %v612_v39 = vsel %vm398_vm0, %v552_v49, 0.0  ;;  %v620_v27 = vsel %vm398_vm0, %v553_v6, 0.0  ;;  %v7333_v49 = vld [vmem:[#allocation19_spill] sm:$0xff] }
  0x7a   : > { %v578_v43 = vrot.slane %v577_v62, 4  ;;  %v621_v2 = vsel %vm398_vm0, %v554_v61, 0.0  ;;  %v596_v47 = vrot.slane %v595_v48, 4  ;;  %v613_v42 = vadd.f32 %v612_v39, %v611_v53  ;;  %v7335_v39 = vld [vmem:[#allocation21_spill] sm:$0xff] }
  0x7b   : > { %v605_v44 = vrot.slane %v604_v60, 4  ;;  %v588_v50 = vadd.f32 %v587_v32, %v586_v0  ;;  %v622_v25 = vadd.f32 %v621_v2, %v620_v27  ;;  %v629_v52 = vsel %vm398_vm0, %v555_v58, 0.0  ;;  %v7336_v2 = vld [vmem:[#allocation22_spill] sm:$0xff] }
  0x7c   : > { %v579_v15 = vadd.f32 %v578_v43, %v577_v62  ;;  %v630_v26 = vsel %vm398_vm0, %v556_v9, 0.0  ;;  %v597_v59 = vadd.f32 %v596_v47, %v595_v48  ;;  %v614_v51 = vrot.slane %v613_v42, 4  ;;  %v7334_v48 = vld [vmem:[#allocation20_spill] sm:$0xff] }
  0x7d   : > { %v606_v16 = vadd.f32 %v605_v44, %v604_v60  ;;  %v566_v45 = vmul.f32 %v7333_v49, %v4954_v11  ;;  %v589_v6 = vrot.slane %v588_v50, 2  ;;  %v623_v41 = vrot.slane %v622_v25, 4 }
  0x7e   : > { %v580_v20 = vrot.slane %v579_v15, 2  ;;  %v631_v61 = vadd.f32 %v630_v26, %v629_v52  ;;  %v598_v62 = vrot.slane %v597_v59, 2  ;;  %v638_v53 = vsel %vm398_vm0, %v557_v3, 0.0  ;;  %v7340_v26 = vld [vmem:[#allocation25_spill] sm:$0xff] }
  0x7f   : > { %v607_v46 = vrot.slane %v606_v16, 2  ;;  %v590_v0 = vadd.f32 %v589_v6, %v588_v50  ;;  %v615_v32 = vadd.f32 %v614_v51, %v613_v42  ;;  %v624_v58 = vadd.f32 %v623_v41, %v622_v25  ;;  %v7338_v41 = vld [vmem:[#allocation23_spill] sm:$0xff]  ;;  %v7339_v50 = vld [vmem:[#allocation24_spill] sm:$0xff] }
  0x80   : > { %v581_v43 = vadd.f32 %v580_v20, %v579_v15  ;;  %v639_v9 = vsel %vm398_vm0, %v558_v55, 0.0  ;;  %v567_v60 = vmul.f32 %v7334_v48, %v4945_v7  ;;  %v568_v27 = vmul.f32 %v7335_v39, %v4954_v11 }
  0x81   : > { %v569_v47 = vmul.f32 %v7336_v2, %v4945_v7  ;;  %v632_v44 = vrot.slane %v631_v61, 4  ;;  %v5281_v15 = vadd.f32 %v541_v63, %v5201_v54  ;;  %v5283_v3 = vadd.f32 %v598_v62, %v597_v59 }
  0x82   : > { %v582_v52 = vrot.slane %v581_v43, 1  ;;  %v640_v42 = vadd.f32 %v639_v9, %v638_v53  ;;  %v570_v55 = vmul.f32 %v7338_v41, %v4954_v11  ;;  %v571_v25 = vmul.f32 %v7339_v50, %v4945_v7 }
  0x83   : > { %7337 = vst [vmem:[#allocation15_spill] sm:$0xff] %v5281_v15  ;;  %v572_v20 = vmul.f32 %v7340_v26, %v4954_v11  ;;  %v5291_v51 = vadd.f32 %v607_v46, %v606_v16  ;;  %v591_v6 = vrot.slane %v590_v0, 1  ;;  %v616_v2 = vrot.slane %v615_v32, 2 }
  0x84   : > { %v625_v39 = vrot.slane %v624_v58, 2  ;;  %v641_v54 = vrot.slane %v640_v42, 4  ;;  %v573_v63 = vmul.f32 %v5130_v33, %v4945_v7  ;;  %v574_v59 = vmul.f32 %v5133_v34, %v4954_v11 }
  0x85   : > { %v633_v62 = vadd.f32 %v632_v44, %v631_v61  ;;  %v647_v53 = vsel %vm398_vm0, %v5225_v28, 0.0  ;;  %v5299_v9 = vadd.f32 %v582_v52, %v581_v43  ;;  %v648_v16 = vsel %vm398_vm0, %v5229_v10, 0.0 }
  0x86   : > { %v642_v46 = vadd.f32 %v641_v54, %v640_v42  ;;  %v609_v26 = vrot.slane %v5291_v51, 1  ;;  %v649_v50 = vadd.f32 %v648_v16, %v647_v53  ;;  %v656_v7 = vsel %vm398_vm0, %v5233_v57, 0.0 }
  0x87   : > { %7341 = vst [vmem:[#allocation16_spill] sm:$0xff] %v5299_v9  ;;  %v657_v11 = vsel %vm398_vm0, %v5240_v35, 0.0  ;;  %v5309_v61 = vadd.f32 %v591_v6, %v590_v0  ;;  %v5311_v28 = vadd.f32 %v616_v2, %v615_v32  ;;  %v5313_v43 = vadd.f32 %v625_v39, %v624_v58 }
  0x88   : > { %v658_v44 = vadd.f32 %v657_v11, %v656_v7  ;;  %v650_v52 = vrot.slane %v649_v50, 4  ;;  %v665_v10 = vsel %vm398_vm0, %v5244_v8, 0.0  ;;  %v666_v42 = vsel %vm398_vm0, %v5248_v56, 0.0 }
  0x89   : > { %7342 = vst [vmem:[#allocation11_spill] sm:$0xff] %v5309_v61  ;;  %v674_v57 = vsel %vm398_vm0, %v5252_v40, 0.0  ;;  %v634_v54 = vrot.slane %v633_v62, 2  ;;  %v643_v53 = vrot.slane %v642_v46, 2  ;;  %v667_v0 = vadd.f32 %v666_v42, %v665_v10 }
  0x8a   : > { %v659_v35 = vrot.slane %v658_v44, 4  ;;  %v651_v6 = vadd.f32 %v650_v52, %v649_v50  ;;  %v675_v32 = vsel %vm398_vm0, %v566_v45, 0.0  ;;  %v683_v58 = vsel %vm398_vm0, %v567_v60, 0.0 }
  0x8b   : > { %v684_v39 = vsel %vm398_vm0, %v568_v27, 0.0  ;;  %v618_v2 = vrot.slane %v5311_v28, 1  ;;  %v668_v16 = vrot.slane %v667_v0, 4  ;;  %v676_v7 = vadd.f32 %v675_v32, %v674_v57 }
  0x8c   : > { %v660_v8 = vadd.f32 %v659_v35, %v658_v44  ;;  %v652_v56 = vrot.slane %v651_v6, 2  ;;  %v685_v11 = vadd.f32 %v684_v39, %v683_v58  ;;  %v692_v40 = vsel %vm398_vm0, %v569_v47, 0.0 }
  0x8d   : > { %v693_v15 = vsel %vm398_vm0, %v570_v55, 0.0  ;;  %v635_v61 = vadd.f32 %v634_v54, %v633_v62  ;;  %v669_v50 = vadd.f32 %v668_v16, %v667_v0  ;;  %v677_v52 = vrot.slane %v676_v7, 4 }
  0x8e   : > { %v661_v10 = vrot.slane %v660_v8, 2  ;;  %v644_v45 = vadd.f32 %v643_v53, %v642_v46  ;;  %v686_v42 = vrot.slane %v685_v11, 4  ;;  %v694_v60 = vadd.f32 %v693_v15, %v692_v40 }
  0x8f   : > { %v701_v27 = vsel %vm398_vm0, %v571_v25, 0.0  ;;  %v653_v9 = vadd.f32 %v652_v56, %v651_v6  ;;  %v670_v34 = vrot.slane %v669_v50, 2  ;;  %v678_v44 = vadd.f32 %v677_v52, %v676_v7 }
  0x90   : > { %v702_v57 = vsel %vm398_vm0, %v572_v20, 0.0  ;;  %v627_v35 = vrot.slane %v5313_v43, 1  ;;  %v687_v32 = vadd.f32 %v686_v42, %v685_v11  ;;  %v695_v47 = vrot.slane %v694_v60, 4 }
  0x91   : > { %v703_v58 = vadd.f32 %v702_v57, %v701_v27  ;;  %v662_v55 = vadd.f32 %v661_v10, %v660_v8  ;;  %v671_v62 = vadd.f32 %v670_v34, %v669_v50  ;;  %v679_v54 = vrot.slane %v678_v44, 2 }
  0x92   : > { %v710_v0 = vsel %vm398_vm0, %v573_v63, 0.0  ;;  %v636_v46 = vrot.slane %v635_v61, 1  ;;  %v688_v53 = vrot.slane %v687_v32, 2  ;;  %v696_v15 = vadd.f32 %v695_v47, %v694_v60 }
  0x93   : > { %v704_v39 = vrot.slane %v703_v58, 4  ;;  %v645_v25 = vrot.slane %v644_v45, 1  ;;  %v654_v6 = vrot.slane %v653_v9, 1  ;;  %v680_v16 = vadd.f32 %v679_v54, %v678_v44 }
  0x94   : > { %v711_v7 = vsel %vm398_vm0, %v574_v59, 0.0  ;;  %v689_v20 = vadd.f32 %v688_v53, %v687_v32  ;;  %v697_v56 = vrot.slane %v696_v15, 2  ;;  %v7343_v34 = vrot.slane %v5283_v3, 1  ;;  %v7355_v53 = vld [vmem:[#allocation10_spill] sm:$0xff] }
  0x95   : > { %v705_v11 = vadd.f32 %v704_v39, %v703_v58  ;;  %v712_v40 = vadd.f32 %v711_v7, %v710_v0  ;;  %v5338_v63 = vadd.f32 %v609_v26, %v5291_v51  ;;  %v663_v10 = vrot.slane %v662_v55, 1 }
  0x96   : > { %v5335_v8 = vadd.f32 %v7343_v34, %v5283_v3  ;;  %v672_v50 = vrot.slane %v671_v62, 1  ;;  %v681_v52 = vrot.slane %v680_v16, 1  ;;  %v698_v42 = vadd.f32 %v697_v56, %v696_v15  ;;  %v5349_v3 = vld [vmem:[%s4920_s24 + $0x28] sm:$0xff] }
  0x97   : > { %7345 = vst [vmem:[#allocation19_spill] sm:$0xff] %v5338_v63  ;;  %v706_v60 = vrot.slane %v705_v11, 2  ;;  %v713_v27 = vrot.slane %v712_v40, 4  ;;  %v5341_v59 = vadd.f32 %v618_v2, %v5311_v28  ;;  %v5344_v44 = vadd.f32 %v627_v35, %v5313_v43  ;;  %v7353_v2 = vld [vmem:[#allocation9_spill] sm:$0xff] }
  0x98   : > { %7344 = vst [vmem:[#allocation14_spill] sm:$0xff] %v5335_v8  ;;  %v5346_v57 = vadd.f32 %v636_v46, %v635_v61  ;;  %v690_v32 = vrot.slane %v689_v20, 1  ;;  %v5351_v47 = vadd.f32 %v645_v25, %v644_v45  ;;  %v5353_v26 = vadd.f32 %v654_v6, %v653_v9 }
  0x99   : > { %7346 = vst [vmem:[#allocation20_spill] sm:$0xff] %v5341_v59  ;;  %7347 = vst [vmem:[#allocation23_spill] sm:$0xff] %v5344_v44  ;;  %v707_v51 = vadd.f32 %v706_v60, %v705_v11  ;;  %v714_v58 = vadd.f32 %v713_v27, %v712_v40  ;;  %v5355_v54 = vadd.f32 %v663_v10, %v662_v55  ;;  %v699_v28 = vrot.slane %v698_v42, 1 }
  0x9a   : > { %7348 = vst [vmem:[#allocation42_spill] sm:$0xff] %v5346_v57  ;;  %7349 = vst [vmem:[#allocation43_spill] sm:$0xff] %v5351_v47  ;;  %v5357_v0 = vadd.f32 %v672_v50, %v671_v62  ;;  %v720_v43 = vmul.f32 %v7353_v2, %v5349_v3  ;;  %v5361_v35 = vadd.f32 %v681_v52, %v680_v16 }
  0x9b   : > { %7350 = vst [vmem:[#allocation44_spill] sm:$0xff] %v5353_v26  ;;  %7351 = vst [vmem:[#allocation45_spill] sm:$0xff] %v5355_v54  ;;  %v708_v61 = vrot.slane %v707_v51, 1  ;;  %v715_v46 = vrot.slane %v714_v58, 2  ;;  %v721_v45 = vmul.f32 %v4938_v4, %v7355_v53  ;;  %v5365_v15 = vadd.f32 %v690_v32, %v689_v20 }
  0x9c   : > { %7352 = vst [vmem:[#allocation46_spill] sm:$0xff] %v5357_v0  ;;  %7354 = vst [vmem:[#allocation9_spill] sm:$0xff] %v5361_v35  ;;  %v722_v9 = vmul.f32 %v4941_v5, %v5349_v3  ;;  %v723_v55 = vmul.f32 %v4957_v12, %v7355_v53  ;;  %v724_v62 = vmul.f32 %v4960_v13, %v5349_v3  ;;  %v752_v40 = vsel %vm398_vm0, %v720_v43, 0.0 }
  0x9d   : > { %7356 = vst [vmem:[#allocation10_spill] sm:$0xff] %v5365_v15  ;;  %v5373_v39 = vadd.f32 %v715_v46, %v714_v58  ;;  %v725_v25 = vmul.f32 %v4963_v14, %v7355_v53  ;;  %v726_v6 = vmul.f32 %v4969_v17, %v5349_v3  ;;  %v727_v4 = vmul.f32 %v4972_v18, %v7355_v53 }
  0x9e   : > { %v5381_v16 = vadd.f32 %v699_v28, %v698_v42  ;;  %v728_v5 = vmul.f32 %v4975_v19, %v5349_v3  ;;  %v729_v12 = vmul.f32 %v4981_v22, %v7355_v53  ;;  %v730_v13 = vmul.f32 %v4984_v23, %v5349_v3 }
  0x9f   : > { %v5389_v7 = vadd.f32 %v708_v61, %v707_v51  ;;  %v731_v14 = vmul.f32 %v4987_v24, %v7355_v53  ;;  %v732_v17 = vmul.f32 %v4998_v29, %v5349_v3  ;;  %v733_v18 = vmul.f32 %v5001_v30, %v7355_v53 }
  0xa0   : > { %7357 = vst [vmem:[#allocation47_spill] sm:$0xff] %v5381_v16  ;;  %v734_v19 = vmul.f32 %v5004_v31, %v5349_v3  ;;  %v5401_v22 = vmul.f32 %v5017_v36, %v7355_v53  ;;  %v5405_v23 = vmul.f32 %v5020_v37, %v5349_v3  ;;  %v5409_v24 = vmul.f32 %v5023_v38, %v7355_v53  ;;  %v7359_v36 = vld [vmem:[#allocation17_spill] sm:$0xff]  ;;  %v7360_v37 = vld [vmem:[#allocation18_spill] sm:$0xff]  ;;  %v7361_v38 = vld [vmem:[#allocation12_spill] sm:$0xff] }
  0xa1   : > { %7358 = vst [vmem:[#allocation48_spill] sm:$0xff] %v5389_v7  ;;  %v717_v29 = vrot.slane %v5373_v39, 1  ;;  %v5414_v30 = vmul.f32 %v7327_v21, %v5349_v3  ;;  %v5418_v31 = vmul.f32 %v7328_v1, %v7355_v53  ;;  %v5422_v20 = vmul.f32 %v7359_v36, %v5349_v3 }
  0xa2   : > { %v5426_v56 = vmul.f32 %v7360_v37, %v7355_v53  ;;  %v751_v11 = vsel %vm398_vm0, %v7361_v38, 0.0  ;;  %v760_v21 = vsel %vm398_vm0, %v721_v45, 0.0  ;;  %v761_v10 = vsel %vm398_vm0, %v722_v9, 0.0 }
  0xa3   : > { %v753_v34 = vadd.f32 %v752_v40, %v751_v11  ;;  %v769_v1 = vsel %vm398_vm0, %v723_v55, 0.0  ;;  %v770_v50 = vsel %vm398_vm0, %v724_v62, 0.0  ;;  %v762_v52 = vadd.f32 %v761_v10, %v760_v21 }
  0xa4   : > { %v771_v42 = vadd.f32 %v770_v50, %v769_v1  ;;  %v778_v60 = vsel %vm398_vm0, %v725_v25, 0.0  ;;  %v779_v27 = vsel %vm398_vm0, %v726_v6, 0.0  ;;  %v787_v58 = vsel %vm398_vm0, %v727_v4, 0.0 }
  0xa5   : > { %v754_v32 = vrot.slane %v753_v34, 4  ;;  %v780_v51 = vadd.f32 %v779_v27, %v778_v60  ;;  %v788_v28 = vsel %vm398_vm0, %v728_v5, 0.0  ;;  %v763_v2 = vrot.slane %v762_v52, 4 }
  0xa6   : > { %v772_v43 = vrot.slane %v771_v42, 4  ;;  %v789_v61 = vadd.f32 %v788_v28, %v787_v58  ;;  %v796_v46 = vsel %vm398_vm0, %v729_v12, 0.0  ;;  %v797_v55 = vsel %vm398_vm0, %v730_v13, 0.0 }
  0xa7   : > { %v755_v45 = vadd.f32 %v754_v32, %v753_v34  ;;  %v781_v9 = vrot.slane %v780_v51, 4  ;;  %v805_v62 = vsel %vm398_vm0, %v731_v14, 0.0  ;;  %v764_v25 = vadd.f32 %v763_v2, %v762_v52 }
  0xa8   : > { %v773_v36 = vadd.f32 %v772_v43, %v771_v42  ;;  %v790_v6 = vrot.slane %v789_v61, 4  ;;  %v798_v37 = vadd.f32 %v797_v55, %v796_v46  ;;  %v806_v4 = vsel %vm398_vm0, %v732_v17, 0.0  ;;  %v7362_v42 = vld [vmem:[#allocation21_spill] sm:$0xff] }
  0xa9   : > { %v756_v38 = vrot.slane %v755_v45, 2  ;;  %v782_v11 = vadd.f32 %v781_v9, %v780_v51  ;;  %v814_v5 = vsel %vm398_vm0, %v733_v18, 0.0  ;;  %v765_v40 = vrot.slane %v764_v25, 2  ;;  %v7363_v18 = vld [vmem:[#allocation22_spill] sm:$0xff]  ;;  %v7366_v9 = vld [vmem:[#allocation25_spill] sm:$0xff] }
  0xaa   : > { %v774_v21 = vrot.slane %v773_v36, 2  ;;  %v791_v10 = vadd.f32 %v790_v6, %v789_v61  ;;  %v799_v12 = vrot.slane %v798_v37, 4  ;;  %v807_v50 = vadd.f32 %v806_v4, %v805_v62 }
  0xab   : > { %v757_v34 = vadd.f32 %v756_v38, %v755_v45  ;;  %v783_v1 = vrot.slane %v782_v11, 2  ;;  %v815_v13 = vsel %vm398_vm0, %v734_v19, 0.0  ;;  %v742_v14 = vmul.f32 %v7333_v49, %v5349_v3 }
  0xac   : > { %v743_v52 = vmul.f32 %v7334_v48, %v7355_v53  ;;  %v744_v17 = vmul.f32 %v7362_v42, %v5349_v3  ;;  %v766_v60 = vadd.f32 %v765_v40, %v764_v25  ;;  %v745_v27 = vmul.f32 %v7363_v18, %v7355_v53  ;;  %v7365_v48 = vld [vmem:[#allocation24_spill] sm:$0xff] }
  0xad   : > { %v5453_v32 = vadd.f32 %v774_v21, %v773_v36  ;;  %v808_v51 = vrot.slane %v807_v50, 4  ;;  %v816_v58 = vadd.f32 %v815_v13, %v814_v5  ;;  %v5456_v28 = vadd.f32 %v717_v29, %v5373_v39  ;;  %v7367_v39 = vld [vmem:[#allocation26_spill] sm:$0xff] }
  0xae   : > { %v746_v49 = vmul.f32 %v7338_v41, %v5349_v3  ;;  %v792_v19 = vrot.slane %v791_v10, 2  ;;  %v800_v2 = vadd.f32 %v799_v12, %v798_v37  ;;  %v747_v43 = vmul.f32 %v7365_v48, %v7355_v53 }
  0xaf   : > { %7364 = vst [vmem:[#allocation17_spill] sm:$0xff] %v5456_v28  ;;  %v758_v61 = vrot.slane %v757_v34, 1  ;;  %v5462_v46 = vadd.f32 %v783_v1, %v782_v11  ;;  %v817_v45 = vrot.slane %v816_v58, 4  ;;  %v748_v55 = vmul.f32 %v7366_v9, %v5349_v3 }
  0xb0   : > { %v749_v62 = vmul.f32 %v5130_v33, %v7355_v53  ;;  %v750_v29 = vmul.f32 %v7367_v39, %v5349_v3  ;;  %v767_v25 = vrot.slane %v766_v60, 1  ;;  %v776_v41 = vrot.slane %v5453_v32, 1 }
  0xb1   : > { %v809_v36 = vadd.f32 %v808_v51, %v807_v50  ;;  %v818_v6 = vadd.f32 %v817_v45, %v816_v58  ;;  %v823_v37 = vsel %vm398_vm0, %v5401_v22, 0.0  ;;  %v5473_v38 = vadd.f32 %v792_v19, %v791_v10 }
  0xb2   : > { %v801_v11 = vrot.slane %v800_v2, 2  ;;  %v824_v4 = vsel %vm398_vm0, %v5405_v23, 0.0  ;;  %v832_v33 = vsel %vm398_vm0, %v5409_v24, 0.0  ;;  %v5479_v53 = vadd.f32 %v758_v61, %v757_v34 }
  0xb3   : > { %v785_v3 = vrot.slane %v5462_v46, 1  ;;  %v825_v5 = vadd.f32 %v824_v4, %v823_v37  ;;  %v833_v40 = vsel %vm398_vm0, %v5414_v30, 0.0  ;;  %v5484_v21 = vadd.f32 %v767_v25, %v766_v60 }
  0xb4   : > { %7368 = vst [vmem:[#allocation18_spill] sm:$0xff] %v5479_v53  ;;  %v834_v22 = vadd.f32 %v833_v40, %v832_v33  ;;  %v841_v10 = vsel %vm398_vm0, %v5418_v31, 0.0  ;;  %v842_v23 = vsel %vm398_vm0, %v5422_v20, 0.0  ;;  %v810_v12 = vrot.slane %v809_v36, 2 }
  0xb5   : > { %7369 = vst [vmem:[#allocation12_spill] sm:$0xff] %v5484_v21  ;;  %v819_v1 = vrot.slane %v818_v6, 2  ;;  %v826_v24 = vrot.slane %v825_v5, 4  ;;  %v843_v34 = vadd.f32 %v842_v23, %v841_v10  ;;  %v850_v13 = vsel %vm398_vm0, %v5426_v56, 0.0 }
  0xb6   : > { %v835_v50 = vrot.slane %v834_v22, 4  ;;  %v851_v42 = vsel %vm398_vm0, %v742_v14, 0.0  ;;  %v859_v30 = vsel %vm398_vm0, %v743_v52, 0.0  ;;  %v794_v60 = vrot.slane %v5473_v38, 1 }
  0xb7   : > { %v802_v18 = vadd.f32 %v801_v11, %v800_v2  ;;  %v827_v51 = vadd.f32 %v826_v24, %v825_v5  ;;  %v844_v31 = vrot.slane %v843_v34, 4  ;;  %v852_v19 = vadd.f32 %v851_v42, %v850_v13 }
  0xb8   : > { %v836_v58 = vadd.f32 %v835_v50, %v834_v22  ;;  %v860_v20 = vsel %vm398_vm0, %v744_v17, 0.0  ;;  %v868_v48 = vsel %vm398_vm0, %v745_v27, 0.0  ;;  %v811_v61 = vadd.f32 %v810_v12, %v809_v36 }
  0xb9   : > { %v828_v45 = vrot.slane %v827_v51, 2  ;;  %v845_v9 = vadd.f32 %v844_v31, %v843_v34  ;;  %v861_v39 = vadd.f32 %v860_v20, %v859_v30  ;;  %v820_v56 = vadd.f32 %v819_v1, %v818_v6 }
  0xba   : > { %v837_v25 = vrot.slane %v836_v58, 2  ;;  %v853_v14 = vrot.slane %v852_v19, 4  ;;  %v869_v52 = vsel %vm398_vm0, %v746_v49, 0.0  ;;  %v877_v11 = vsel %vm398_vm0, %v747_v43, 0.0 }
  0xbb   : > { %v846_v37 = vrot.slane %v845_v9, 2  ;;  %v862_v4 = vrot.slane %v861_v39, 4  ;;  %v870_v2 = vadd.f32 %v869_v52, %v868_v48  ;;  %v829_v33 = vadd.f32 %v828_v45, %v827_v51 }
  0xbc   : > { %v838_v5 = vadd.f32 %v837_v25, %v836_v58  ;;  %v854_v40 = vadd.f32 %v853_v14, %v852_v19  ;;  %v878_v17 = vsel %vm398_vm0, %v748_v55, 0.0  ;;  %v886_v10 = vsel %vm398_vm0, %v749_v62, 0.0  ;;  %v5516_v25 = vld [vmem:[%s4920_s24 + $0x38] sm:$0xff] }
  0xbd   : > { %v847_v27 = vadd.f32 %v846_v37, %v845_v9  ;;  %v863_v36 = vadd.f32 %v862_v4, %v861_v39  ;;  %v871_v22 = vrot.slane %v870_v2, 4  ;;  %v803_v6 = vrot.slane %v802_v18, 1  ;;  %7374 = vst [vmem:[#allocation26_spill] sm:$0xff] %v5516_v25 }
  0xbe   : > { %v855_v23 = vrot.slane %v854_v40, 2  ;;  %v879_v12 = vadd.f32 %v878_v17, %v877_v11  ;;  %v887_v49 = vsel %vm398_vm0, %v750_v29, 0.0  ;;  %v812_v1 = vrot.slane %v811_v61, 1 }
  0xbf   : > { %v821_v24 = vrot.slane %v820_v56, 1  ;;  %v864_v34 = vrot.slane %v863_v36, 2  ;;  %v872_v50 = vadd.f32 %v871_v22, %v870_v2  ;;  %v830_v43 = vrot.slane %v829_v33, 1 }
  0xc0   : > { %v856_v13 = vadd.f32 %v855_v23, %v854_v40  ;;  %v880_v42 = vrot.slane %v879_v12, 4  ;;  %v888_v30 = vadd.f32 %v887_v49, %v886_v10  ;;  %v839_v55 = vrot.slane %v838_v5, 1  ;;  %v4659_v40 = vld [vmem:[%s4925_s25 + $0x10] sm:$0xff]  ;;  %v4663_v23 = vld [vmem:[%s4925_s25 + $0x28] sm:$0xff] }
  0xc1   : > { %v848_v51 = vrot.slane %v847_v27, 1  ;;  %v865_v31 = vadd.f32 %v864_v34, %v863_v36  ;;  %v873_v58 = vrot.slane %v872_v50, 2  ;;  %v5505_v62 = vadd.f32 %v776_v41, %v5453_v32  ;;  %v4664_v49 = vld [vmem:[%s4925_s25 + $0x30] sm:$0xff] }
  0xc2   : > { %v5508_v29 = vadd.f32 %v785_v3, %v5462_v46  ;;  %v881_v19 = vadd.f32 %v880_v42, %v879_v12  ;;  %v889_v20 = vrot.slane %v888_v30, 4  ;;  %v5511_v48 = vadd.f32 %v794_v60, %v5473_v38 }
  0xc3   : > { %7370 = vst [vmem:[#allocation21_spill] sm:$0xff] %v5505_v62  ;;  %v5513_v45 = vadd.f32 %v803_v6, %v802_v18  ;;  %v857_v9 = vrot.slane %v856_v13, 1  ;;  %v874_v39 = vadd.f32 %v873_v58, %v872_v50  ;;  %v5518_v14 = vadd.f32 %v812_v1, %v811_v61  ;;  %v4658_v61 = vld [vmem:[%s4925_s25 + $0x8] sm:$0xff]  ;;  %v4666_v50 = vld [vmem:[%s4925_s25 + $0x40] sm:$0xff] }
  0xc4   : > { %7371 = vst [vmem:[#allocation22_spill] sm:$0xff] %v5508_v29  ;;  %7372 = vst [vmem:[#allocation24_spill] sm:$0xff] %v5511_v48  ;;  %v866_v32 = vrot.slane %v865_v31, 1  ;;  %v882_v46 = vrot.slane %v881_v19, 2  ;;  %v890_v41 = vadd.f32 %v889_v20, %v888_v30  ;;  %v5520_v3 = vadd.f32 %v821_v24, %v820_v56  ;;  %v5534_v56 = vld [vmem:[%s4920_s24 + $0x30] sm:$0xff]  ;;  %v4665_v24 = vld [vmem:[%s4925_s25 + $0x38] sm:$0xff] }
  0xc5   : > { %7373 = vst [vmem:[#allocation25_spill] sm:$0xff] %v5513_v45  ;;  %7375 = vst [vmem:[#allocation49_spill] sm:$0xff] %v5518_v14  ;;  %v5522_v38 = vadd.f32 %v830_v43, %v829_v33  ;;  %v5524_v60 = vadd.f32 %v839_v55, %v838_v5  ;;  %v5526_v18 = vadd.f32 %v848_v51, %v847_v27  ;;  %v875_v52 = vrot.slane %v874_v39, 1  ;;  %v4661_v5 = vld [vmem:[%s4925_s25 + $0x18] sm:$0xff]  ;;  %v4662_v27 = vld [vmem:[%s4925_s25 + $0x20] sm:$0xff] }
  0xc6   : > { %7376 = vst [vmem:[#allocation50_spill] sm:$0xff] %v5520_v3  ;;  %v883_v37 = vadd.f32 %v882_v46, %v881_v19  ;;  %v891_v4 = vrot.slane %v890_v41, 2  ;;  %v896_v2 = vmul.f32 %v4658_v61, %v5516_v25  ;;  %v5530_v11 = vadd.f32 %v857_v9, %v856_v13  ;;  %7381 = vst [vmem:[#allocation55_spill] sm:$0xff] %v5534_v56  ;;  %v4667_v13 = vld [vmem:[%s4925_s25 + $0x48] sm:$0xff]  ;;  %v4668_v55 = vld [vmem:[%s4925_s25 + $0x50] sm:$0xff] }
  0xc7   : > { %7377 = vst [vmem:[#allocation51_spill] sm:$0xff] %v5522_v38  ;;  %7378 = vst [vmem:[#allocation52_spill] sm:$0xff] %v5524_v60  ;;  %v897_v33 = vmul.f32 %v5534_v56, %v4659_v40  ;;  %v898_v17 = vmul.f32 %v4661_v5, %v5516_v25  ;;  %v899_v36 = vmul.f32 %v4662_v27, %v5534_v56  ;;  %v4670_v19 = vld [vmem:[%s4925_s25 + $0x60] sm:$0xff]  ;;  %v4671_v9 = vld [vmem:[%s4925_s25 + $0x68] sm:$0xff] }
  0xc8   : > { %7379 = vst [vmem:[#allocation53_spill] sm:$0xff] %v5526_v18  ;;  %7380 = vst [vmem:[#allocation54_spill] sm:$0xff] %v5530_v11  ;;  %v5541_v22 = vadd.f32 %v866_v32, %v865_v31  ;;  %v884_v10 = vrot.slane %v883_v37, 1  ;;  %v5543_v6 = vadd.f32 %v891_v4, %v890_v41  ;;  %v900_v12 = vmul.f32 %v4663_v23, %v5516_v25  ;;  %v4669_v31 = vld [vmem:[%s4925_s25 + $0x58] sm:$0xff]  ;;  %v4672_v46 = vld [vmem:[%s4925_s25 + $0x70] sm:$0xff] }
  0xc9   : > { %v901_v1 = vmul.f32 %v4664_v49, %v5534_v56  ;;  %v902_v34 = vmul.f32 %v4665_v24, %v5516_v25  ;;  %v903_v43 = vmul.f32 %v4666_v50, %v5534_v56  ;;  %v904_v42 = vmul.f32 %v4667_v13, %v5516_v25  ;;  %v4673_v41 = vld [vmem:[%s4925_s25 + $0x78] sm:$0xff]  ;;  %v4674_v4 = vld [vmem:[%s4925_s25 + $0x80] sm:$0xff]  ;;  %v4675_v27 = vld [vmem:[%s4925_s25 + $0x88] sm:$0xff] }
  0xca   : > { %7382 = vst [vmem:[#allocation56_spill] sm:$0xff] %v5541_v22  ;;  %v5555_v30 = vadd.f32 %v875_v52, %v874_v39  ;;  %v905_v51 = vmul.f32 %v4668_v55, %v5534_v56  ;;  %v906_v58 = vmul.f32 %v4669_v31, %v5516_v25  ;;  %v907_v20 = vmul.f32 %v4670_v19, %v5534_v56  ;;  %v4676_v49 = vld [vmem:[%s4925_s25 + $0x90] sm:$0xff]  ;;  %v4677_v50 = vld [vmem:[%s4925_s25 + $0x98] sm:$0xff]  ;;  %v4678_v55 = vld [vmem:[%s4925_s25 + $0xa0] sm:$0xff] }
  0xcb   : > { %v908_v32 = vmul.f32 %v4671_v9, %v5516_v25  ;;  %v909_v39 = vmul.f32 %v4672_v46, %v5534_v56  ;;  %v910_v52 = vmul.f32 %v4673_v41, %v5516_v25  ;;  %v5571_v61 = vmul.f32 %v4674_v4, %v5534_v56  ;;  %v4680_v19 = vld [vmem:[%s4925_s25 + $0xb0] sm:$0xff]  ;;  %v7385_v46 = vld [vmem:[#allocation13_spill] sm:$0xff] }
  0xcc   : > { %7383 = vst [vmem:[#allocation57_spill] sm:$0xff] %v5555_v30  ;;  %v5573_v40 = vadd.f32 %v884_v10, %v883_v37  ;;  %v893_v5 = vrot.slane %v5543_v6, 1  ;;  %v5578_v23 = vmul.f32 %v4675_v27, %v5516_v25  ;;  %v5582_v24 = vmul.f32 %v4676_v49, %v5534_v56  ;;  %v4679_v37 = vld [vmem:[%s4925_s25 + $0xa8] sm:$0xff] }
  0xcd   : > { %v5586_v13 = vmul.f32 %v4677_v50, %v5516_v25  ;;  %v5590_v31 = vmul.f32 %v4678_v55, %v5534_v56  ;;  %v5594_v10 = vmul.f32 %v4679_v37, %v5516_v25  ;;  %v5598_v9 = vmul.f32 %v4680_v19, %v5534_v56 }
  0xce   : > { %7384 = vst [vmem:[#allocation58_spill] sm:$0xff] %v5573_v40  ;;  %v927_v41 = vsel %vm398_vm0, %v7385_v46, 0.0  ;;  %v928_v4 = vsel %vm398_vm0, %v896_v2, 0.0  ;;  %v936_v27 = vsel %vm398_vm0, %v897_v33, 0.0  ;;  %v937_v49 = vsel %vm398_vm0, %v898_v17, 0.0 }
  0xcf   : > { %v929_v50 = vadd.f32 %v928_v4, %v927_v41  ;;  %v938_v55 = vadd.f32 %v937_v49, %v936_v27  ;;  %v945_v40 = vsel %vm398_vm0, %v899_v36, 0.0  ;;  %v946_v37 = vsel %vm398_vm0, %v900_v12, 0.0 }
  0xd0   : > { %v947_v30 = vadd.f32 %v946_v37, %v945_v40  ;;  %v954_v22 = vsel %vm398_vm0, %v901_v1, 0.0  ;;  %v955_v19 = vsel %vm398_vm0, %v902_v34, 0.0  ;;  %v963_v11 = vsel %vm398_vm0, %v903_v43, 0.0 }
  0xd1   : > { %v930_v46 = vrot.slane %v929_v50, 4  ;;  %v939_v18 = vrot.slane %v938_v55, 4  ;;  %v956_v2 = vadd.f32 %v955_v19, %v954_v22  ;;  %v964_v33 = vsel %vm398_vm0, %v904_v42, 0.0  ;;  %v4681_v19 = vld [vmem:[%s4925_s25 + $0xb8] sm:$0xff] }
  0xd2   : > { %v948_v60 = vrot.slane %v947_v30, 4  ;;  %v965_v17 = vadd.f32 %v964_v33, %v963_v11  ;;  %v972_v41 = vsel %vm398_vm0, %v905_v51, 0.0  ;;  %v973_v36 = vsel %vm398_vm0, %v906_v58, 0.0 }
  0xd3   : > { %v931_v12 = vadd.f32 %v930_v46, %v929_v50  ;;  %v940_v40 = vadd.f32 %v939_v18, %v938_v55  ;;  %v957_v4 = vrot.slane %v956_v2, 4  ;;  %v974_v1 = vadd.f32 %v973_v36, %v972_v41  ;;  %v4682_v46 = vld [vmem:[%s4925_s25 + $0xc0] sm:$0xff]  ;;  %v4683_v36 = vld [vmem:[%s4925_s25 + $0xc8] sm:$0xff] }
  0xd4   : > { %v949_v27 = vadd.f32 %v948_v60, %v947_v30  ;;  %v966_v34 = vrot.slane %v965_v17, 4  ;;  %v981_v43 = vsel %vm398_vm0, %v907_v20, 0.0  ;;  %v982_v22 = vsel %vm398_vm0, %v908_v32, 0.0 }
  0xd5   : > { %v932_v49 = vrot.slane %v931_v12, 2  ;;  %v941_v42 = vrot.slane %v940_v40, 2  ;;  %v958_v37 = vadd.f32 %v957_v4, %v956_v2  ;;  %v975_v11 = vrot.slane %v974_v1, 4 }
  0xd6   : > { %v918_v51 = vmul.f32 %v4681_v19, %v5516_v25  ;;  %v950_v58 = vrot.slane %v949_v27, 2  ;;  %v967_v18 = vadd.f32 %v966_v34, %v965_v17  ;;  %v983_v50 = vadd.f32 %v982_v22, %v981_v43  ;;  %v4685_v22 = vld [vmem:[%s4925_s25 + $0xd8] sm:$0xff] }
  0xd7   : > { %v933_v55 = vadd.f32 %v932_v49, %v931_v12  ;;  %v942_v60 = vadd.f32 %v941_v42, %v940_v40  ;;  %v959_v30 = vrot.slane %v958_v37, 2  ;;  %v990_v20 = vsel %vm398_vm0, %v909_v39, 0.0  ;;  %v4684_v12 = vld [vmem:[%s4925_s25 + $0xd0] sm:$0xff]  ;;  %v4686_v49 = vld [vmem:[%s4925_s25 + $0xe0] sm:$0xff]  ;;  %v4687_v42 = vld [vmem:[%s4925_s25 + $0xe8] sm:$0xff] }
  0xd8   : > { %v5619_v32 = vadd.f32 %v893_v5, %v5543_v6  ;;  %v919_v2 = vmul.f32 %v4682_v46, %v5534_v56  ;;  %v976_v33 = vadd.f32 %v975_v11, %v974_v1  ;;  %v991_v41 = vsel %vm398_vm0, %v910_v52, 0.0  ;;  %v4688_v46 = vld [vmem:[%s4925_s25 + $0xf0] sm:$0xff] }
  0xd9   : > { %v920_v17 = vmul.f32 %v4683_v36, %v5516_v25  ;;  %v921_v40 = vmul.f32 %v4684_v12, %v5534_v56  ;;  %v951_v39 = vadd.f32 %v950_v58, %v949_v27  ;;  %v968_v4 = vrot.slane %v967_v18, 2  ;;  %v4689_v27 = vld [vmem:[%s4925_s25 + $0xf8] sm:$0xff]  ;;  %s5913_s25 = sld [smem:[#allocation2 + $0x83]] }
  0xda   : > { %7386 = vst [vmem:[#allocation13_spill] sm:$0xff] %v5619_v32  ;;  %v934_v6 = vrot.slane %v933_v55, 1  ;;  %v943_v5 = vrot.slane %v942_v60, 1  ;;  %v984_v34 = vrot.slane %v983_v50, 4  ;;  %v992_v43 = vadd.f32 %v991_v41, %v990_v20 }
  0xdb   : > { %v922_v1 = vmul.f32 %v4685_v22, %v5516_v25  ;;  %v923_v52 = vmul.f32 %v4686_v49, %v5534_v56  ;;  %v924_v11 = vmul.f32 %v4687_v42, %v5516_v25  ;;  %v5634_v19 = vadd.f32 %v959_v30, %v958_v37 }
  0xdc   : > { %v925_v36 = vmul.f32 %v4688_v46, %v5534_v56  ;;  %v5640_v58 = vmul.f32 %v4689_v27, %v5516_v25  ;;  %v977_v12 = vrot.slane %v976_v33, 2  ;;  %v993_v20 = vrot.slane %v992_v43, 4 }
  0xdd   : > { %v952_v41 = vrot.slane %v951_v39, 1  ;;  %v5642_v32 = vadd.f32 %v968_v4, %v967_v18  ;;  %v999_v22 = vsel %vm398_vm0, %v5571_v61, 0.0  ;;  %v1000_v49 = vsel %vm398_vm0, %v5578_v23, 0.0 }
  0xde   : > { %v5648_v37 = vadd.f32 %v934_v6, %v933_v55  ;;  %v5650_v30 = vadd.f32 %v943_v5, %v942_v60  ;;  %v985_v42 = vadd.f32 %v984_v34, %v983_v50  ;;  %v1001_v46 = vadd.f32 %v1000_v49, %v999_v22 }
  0xdf   : > { %v961_v27 = vrot.slane %v5634_v19, 1  ;;  %v994_v25 = vadd.f32 %v993_v20, %v992_v43  ;;  %v1008_v56 = vsel %vm398_vm0, %v5582_v24, 0.0  ;;  %v1009_v18 = vsel %vm398_vm0, %v5586_v13, 0.0 }
  0xe0   : > { %7387 = vst [vmem:[#allocation59_spill] sm:$0xff] %v5648_v37  ;;  %7388 = vst [vmem:[#allocation60_spill] sm:$0xff] %v5650_v30  ;;  %v5657_v4 = vadd.f32 %v977_v12, %v976_v33  ;;  %v1002_v61 = vrot.slane %v1001_v46, 4  ;;  %v1010_v38 = vadd.f32 %v1009_v18, %v1008_v56  ;;  %v1017_v23 = vsel %vm398_vm0, %v5590_v31, 0.0 }
  0xe1   : > { %v1018_v50 = vsel %vm398_vm0, %v5594_v10, 0.0  ;;  %v1026_v55 = vsel %vm398_vm0, %v5598_v9, 0.0  ;;  %v1027_v60 = vsel %vm398_vm0, %v918_v51, 0.0  ;;  %v1035_v24 = vsel %vm398_vm0, %v919_v2, 0.0 }
  0xe2   : > { %v5667_v6 = vadd.f32 %v952_v41, %v951_v39  ;;  %v986_v13 = vrot.slane %v985_v42, 2  ;;  %v1003_v33 = vadd.f32 %v1002_v61, %v1001_v46  ;;  %v1011_v5 = vrot.slane %v1010_v38, 4 }
  0xe3   : > { %v995_v34 = vrot.slane %v994_v25, 2  ;;  %v1019_v56 = vadd.f32 %v1018_v50, %v1017_v23  ;;  %v1028_v43 = vadd.f32 %v1027_v60, %v1026_v55  ;;  %v1036_v31 = vsel %vm398_vm0, %v920_v17, 0.0 }
  0xe4   : > { %7389 = vst [vmem:[#allocation61_spill] sm:$0xff] %v5667_v6  ;;  %v1004_v12 = vrot.slane %v1003_v33, 2  ;;  %v1012_v20 = vadd.f32 %v1011_v5, %v1010_v38  ;;  %v1037_v10 = vadd.f32 %v1036_v31, %v1035_v24  ;;  %v1044_v22 = vsel %vm398_vm0, %v921_v40, 0.0 }
  0xe5   : > { %v1020_v9 = vrot.slane %v1019_v56, 4  ;;  %v1029_v49 = vrot.slane %v1028_v43, 4  ;;  %v1045_v51 = vsel %vm398_vm0, %v922_v1, 0.0  ;;  %v1053_v2 = vsel %vm398_vm0, %v923_v52, 0.0 }
  0xe6   : > { %v970_v39 = vrot.slane %v5642_v32, 1  ;;  %v987_v41 = vadd.f32 %v986_v13, %v985_v42  ;;  %v1013_v46 = vrot.slane %v1012_v20, 2  ;;  %v1038_v18 = vrot.slane %v1037_v10, 4 }
  0xe7   : > { %v1021_v61 = vadd.f32 %v1020_v9, %v1019_v56  ;;  %v1030_v23 = vadd.f32 %v1029_v49, %v1028_v43  ;;  %v1046_v50 = vadd.f32 %v1045_v51, %v1044_v22  ;;  %v1054_v17 = vsel %vm398_vm0, %v924_v11, 0.0 }
  0xe8   : > { %v996_v38 = vadd.f32 %v995_v34, %v994_v25  ;;  %v1005_v55 = vadd.f32 %v1004_v12, %v1003_v33  ;;  %v1039_v60 = vadd.f32 %v1038_v18, %v1037_v10  ;;  %v1055_v40 = vadd.f32 %v1054_v17, %v1053_v2 }
  0xe9   : > { %v1022_v24 = vrot.slane %v1021_v61, 2  ;;  %v1031_v5 = vrot.slane %v1030_v23, 2  ;;  %v1047_v31 = vrot.slane %v1046_v50, 4  ;;  %v1062_v1 = vsel %vm398_vm0, %v925_v36, 0.0 }
  0xea   : > { %v979_v52 = vrot.slane %v5657_v4, 1  ;;  %v1014_v42 = vadd.f32 %v1013_v46, %v1012_v20  ;;  %v1040_v13 = vrot.slane %v1039_v60, 2  ;;  %v1056_v56 = vrot.slane %v1055_v40, 4 }
  0xeb   : > { %v1023_v43 = vadd.f32 %v1022_v24, %v1021_v61  ;;  %v1032_v11 = vadd.f32 %v1031_v5, %v1030_v23  ;;  %v1048_v25 = vadd.f32 %v1047_v31, %v1046_v50  ;;  %v1063_v33 = vsel %vm398_vm0, %v5640_v58, 0.0 }
  0xec   : > { %v988_v34 = vrot.slane %v987_v41, 1  ;;  %v1041_v12 = vadd.f32 %v1040_v13, %v1039_v60  ;;  %v1057_v10 = vadd.f32 %v1056_v56, %v1055_v40  ;;  %v1064_v22 = vadd.f32 %v1063_v33, %v1062_v1  ;;  %v7400_v56 = vld [vmem:[#allocation27_spill] sm:$0xff] }
  0xed   : > { %v5684_v36 = vadd.f32 %v961_v27, %v5634_v19  ;;  %v997_v9 = vrot.slane %v996_v38, 1  ;;  %v1006_v49 = vrot.slane %v1005_v55, 1  ;;  %v1049_v20 = vrot.slane %v1048_v25, 2 }
  0xee   : > { %v1015_v51 = vrot.slane %v1014_v42, 1  ;;  %v1024_v2 = vrot.slane %v1023_v43, 1  ;;  %v1058_v46 = vrot.slane %v1057_v10, 2  ;;  %v1065_v18 = vrot.slane %v1064_v22, 4 }
  0xef   : > { %7390 = vst [vmem:[#allocation62_spill] sm:$0xff] %v5684_v36  ;;  %v5687_v61 = vadd.f32 %v970_v39, %v5642_v32  ;;  %v1033_v58 = vrot.slane %v1032_v11, 1  ;;  %v1042_v23 = vrot.slane %v1041_v12, 1  ;;  %v1050_v50 = vadd.f32 %v1049_v20, %v1048_v25  ;;  %v7401_v25 = vld [vmem:[#allocation28_spill] sm:$0xff] }
  0xf0   : > { %v5690_v17 = vadd.f32 %v979_v52, %v5657_v4  ;;  %v5692_v19 = vadd.f32 %v988_v34, %v987_v41  ;;  %v1059_v27 = vadd.f32 %v1058_v46, %v1057_v10  ;;  %v1066_v60 = vadd.f32 %v1065_v18, %v1064_v22  ;;  %v7408_v46 = vld [vmem:[#allocation34_spill] sm:$0xff] }
  0xf1   : > { %7391 = vst [vmem:[#allocation63_spill] sm:$0xff] %v5687_v61  ;;  %v5694_v40 = vadd.f32 %v997_v9, %v996_v38  ;;  %v5696_v24 = vadd.f32 %v1006_v49, %v1005_v55  ;;  %v1051_v5 = vrot.slane %v1050_v50, 1  ;;  %v1074_v31 = vstv %s5676_s29  ;;  %v7405_v9 = vld [vmem:[#allocation31_spill] sm:$0xff]  ;;  %s5967_s29 = sld [smem:[#allocation4 + $0x83]] }
  0xf2   : > { %7392 = vst [vmem:[#allocation64_spill] sm:$0xff] %v5690_v17  ;;  %7393 = vst [vmem:[#allocation65_spill] sm:$0xff] %v5692_v19  ;;  %v5699_v1 = vadd.f32 %v1015_v51, %v1014_v42  ;;  %v5701_v32 = vadd.f32 %v1024_v2, %v1023_v43  ;;  %v1067_v39 = vrot.slane %v1066_v60, 2  ;;  %v1072_v13 = vstv %s5679_s30  ;;  %v7402_v42 = vld [vmem:[#allocation29_spill] sm:$0xff]  ;;  %v7403_v43 = vld [vmem:[#allocation30_spill] sm:$0xff]  ;;  %s5969_s30 = sld [smem:[#allocation6 + $0x2]] }
  0xf3   : > { %7394 = vst [vmem:[#allocation66_spill] sm:$0xff] %v5694_v40  ;;  %7395 = vst [vmem:[#allocation67_spill] sm:$0xff] %v5696_v24  ;;  %v5706_v4 = vadd.f32 %v1033_v58, %v1032_v11  ;;  %v5708_v41 = vadd.f32 %v1042_v23, %v1041_v12  ;;  %v1060_v52 = vrot.slane %v1059_v27, 1  ;;  %v1075_v38 = vmul.f32 %v1074_v31, %v7400_v56  ;;  %v7406_v11 = vld [vmem:[#allocation32_spill] sm:$0xff]  ;;  %v7407_v12 = vld [vmem:[#allocation33_spill] sm:$0xff] }
  0xf4   : > { %7396 = vst [vmem:[#allocation68_spill] sm:$0xff] %v5699_v1  ;;  %7397 = vst [vmem:[#allocation69_spill] sm:$0xff] %v5701_v32  ;;  %v1068_v55 = vadd.f32 %v1067_v39, %v1066_v60  ;;  %v1076_v33 = vmul.f32 %v1074_v31, %v7401_v25  ;;  %v1077_v34 = vmul.f32 %v1074_v31, %v7402_v42  ;;  %v7409_v58 = vld [vmem:[#allocation35_spill] sm:$0xff]  ;;  %v7410_v60 = vld [vmem:[#allocation36_spill] sm:$0xff] }
  0xf5   : > { %7398 = vst [vmem:[#allocation70_spill] sm:$0xff] %v5706_v4  ;;  %7399 = vst [vmem:[#allocation71_spill] sm:$0xff] %v5708_v41  ;;  %v1078_v10 = vmul.f32 %v1074_v31, %v7403_v43  ;;  %v5716_v22 = vadd.f32 %v1051_v5, %v1050_v50  ;;  %v1079_v49 = vmul.f32 %v1074_v31, %v7405_v9  ;;  %v7412_v42 = vld [vmem:[#allocation37_spill] sm:$0xff]  ;;  %v7413_v50 = vld [vmem:[#allocation38_spill] sm:$0xff] }
  0xf6   : > { %v1080_v20 = vmul.f32 %v1074_v31, %v7406_v11  ;;  %v1081_v51 = vmul.f32 %v1074_v31, %v7407_v12  ;;  %v1069_v2 = vrot.slane %v1068_v55, 1  ;;  %v1082_v18 = vmul.f32 %v1074_v31, %v7408_v46  ;;  %v7414_v56 = vld [vmem:[#allocation39_spill] sm:$0xff]  ;;  %v7415_v11 = vld [vmem:[#allocation40_spill] sm:$0xff]  ;;  %v7416_v12 = vld [vmem:[#allocation41_spill] sm:$0xff] }
  0xf7   : > { %7404 = vst [vmem:[#allocation72_spill] sm:$0xff] %v5716_v22  ;;  %v1083_v23 = vmul.f32 %v1074_v31, %v7409_v58  ;;  %v1084_v39 = vmul.f32 %v1074_v31, %v7410_v60  ;;  %v5724_v25 = vadd.f32 %v1060_v52, %v1059_v27  ;;  %v1085_v43 = vmul.f32 %v1074_v31, %v7412_v42  ;;  %v7417_v46 = vld [vmem:[#allocation15_spill] sm:$0xff]  ;;  %v5736_v40 = vld [vmem:[%s4920_s24] sm:$0xff] }
  0xf8   : > { %v1086_v5 = vmul.f32 %v1074_v31, %v7413_v50  ;;  %v1087_v9 = vmul.f32 %v1074_v31, %v7414_v56  ;;  %v1088_v22 = vmul.f32 %v1074_v31, %v7415_v11  ;;  %v1089_v41 = vmul.f32 %v1074_v31, %v7416_v12  ;;  %7419 = vst [vmem:[#allocation75_spill] sm:$0xff] %v5736_v40 }
  0xf9   : > { %7411 = vst [vmem:[#allocation73_spill] sm:$0xff] %v5724_v25  ;;  %v1090_v4 = vmul.f32 %v1074_v31, %v7417_v46  ;;  %v1091_v58 = vadd.f32 %v1075_v38, %v1072_v13  ;;  %v1092_v32 = vadd.f32 %v1076_v33, %v1072_v13  ;;  %v1093_v60 = vadd.f32 %v1077_v34, %v1072_v13 }
  0xfa   : > { %v1094_v1 = vadd.f32 %v1078_v10, %v1072_v13  ;;  %v1095_v27 = vadd.f32 %v1079_v49, %v1072_v13  ;;  %v5732_v52 = vadd.f32 %v1069_v2, %v1068_v55  ;;  %v1096_v42 = vadd.f32 %v1080_v20, %v1072_v13  ;;  %v5741_v55 = vld [vmem:[%s4920_s24 + $0x8] sm:$0xff] }
  0xfb   : > { %v1097_v50 = vadd.f32 %v1081_v51, %v1072_v13  ;;  %v1108_v25 = vstv %s5704_s6  ;;  %v1098_v24 = vadd.f32 %v1082_v18, %v1072_v13  ;;  %v1099_v56 = vadd.f32 %v1083_v23, %v1072_v13  ;;  %7420 = vst [vmem:[#allocation76_spill] sm:$0xff] %v5741_v55  ;;  %v7421_v51 = vld [vmem:[#allocation16_spill] sm:$0xff]  ;;  %v7422_v18 = vld [vmem:[#allocation11_spill] sm:$0xff]  ;;  %s5971_s6 = sld [smem:[#allocation2 + $0x100]] }
  0xfc   : > { %7418 = vst [vmem:[#allocation74_spill] sm:$0xff] %v5732_v52  ;;  %v1109_v11 = vmul.f32 %v5736_v40, %v1108_v25  ;;  %v1160_v12 = vstv %s5711_s7  ;;  %v1100_v19 = vadd.f32 %v1084_v39, %v1072_v13  ;;  %v1101_v31 = vadd.f32 %v1085_v43, %v1072_v13  ;;  %s5973_s7 = sld [smem:[#allocation4 + $0x100]] }
  0xfd   : > { %v1102_v38 = vadd.f32 %v1086_v5, %v1072_v13  ;;  %v1103_v33 = vadd.f32 %v1087_v9, %v1072_v13  ;;  %v1104_v34 = vadd.f32 %v1088_v22, %v1072_v13  ;;  %v1105_v10 = vadd.f32 %v1089_v41, %v1072_v13 }
  0xfe   : > { %v1106_v49 = vadd.f32 %v1090_v4, %v1072_v13  ;;  %v1110_v20 = vmul.f32 %v5741_v55, %v1108_v25  ;;  %v1161_v2 = vmul.f32 %v1160_v12, %v7421_v51  ;;  %v1162_v23 = vmul.f32 %v1160_v12, %v7422_v18 }
  0xff   : > { %v1163_v46 = vmul.f32 %v1160_v12, %v5335_v8  ;;  %v1164_v40 = vmul.f32 %v1160_v12, %v5338_v63  ;;  %v1113_v52 = vrot.slane %v1109_v11, 1  ;;  %v1114_v39 = vrot.slane %v1109_v11, 2 }
 0x100   : > { %v1115_v43 = vrot.slane %v1109_v11, 3  ;;  %v1165_v9 = vmul.f32 %v1160_v12, %v5341_v59  ;;  %v1116_v22 = vrot.slane %v1109_v11, 4  ;;  %v1117_v41 = vrot.slane %v1109_v11, 5 }
 0x101   : > { %v1118_v13 = vrot.slane %v1109_v11, 6  ;;  %v1119_v4 = vrot.slane %v1109_v11, 7  ;;  %v1120_v5 = vrot.slane %v1110_v20, 1  ;;  %v1121_v17 = vrot.slane %v1110_v20, 2 }
 0x102   : > { %v1122_v25 = vrot.slane %v1110_v20, 3  ;;  %v1166_v51 = vmul.f32 %v1160_v12, %v5344_v44  ;;  %v1123_v55 = vrot.slane %v1110_v20, 4  ;;  %v1124_v18 = vrot.slane %v1110_v20, 5 }
 0x103   : > { %v1125_v61 = vrot.slane %v1110_v20, 6  ;;  %v1126_v8 = vrot.slane %v1110_v20, 7  ;;  %v1143_v36 = vadd.f32 %v1109_v11, %v1091_v58  ;;  %v1144_v63 = vadd.f32 %v1113_v52, %v1092_v32  ;;  %v7423_v11 = vld [vmem:[#allocation17_spill] sm:$0xff] }
 0x104   : > { %v1145_v6 = vadd.f32 %v1114_v39, %v1093_v60  ;;  %v1146_v30 = vadd.f32 %v1115_v43, %v1094_v1  ;;  %v1147_v59 = vadd.f32 %v1116_v22, %v1095_v27  ;;  %v1148_v37 = vadd.f32 %v1117_v41, %v1096_v42 }
 0x105   : > { %v1149_v3 = vadd.f32 %v1118_v13, %v1097_v50  ;;  %v1150_v14 = vadd.f32 %v1119_v4, %v1098_v24  ;;  %v1151_v45 = vadd.f32 %v1110_v20, %v1099_v56  ;;  %v1152_v48 = vadd.f32 %v1120_v5, %v1100_v19 }
 0x106   : > { %v1153_v29 = vadd.f32 %v1121_v17, %v1101_v31  ;;  %v1154_v44 = vadd.f32 %v1122_v25, %v1102_v38  ;;  %v1155_v62 = vadd.f32 %v1123_v55, %v1103_v33  ;;  %v1156_v21 = vadd.f32 %v1124_v18, %v1104_v34  ;;  %v5770_v18 = vld [vmem:[%s4920_s24 + $0x10] sm:$0xff] }
 0x107   : > { %v1157_v53 = vadd.f32 %v1125_v61, %v1105_v10  ;;  %v1158_v28 = vadd.f32 %v1126_v8, %v1106_v49  ;;  %v1167_v1 = vmul.f32 %v1160_v12, %v5346_v57  ;;  %v1168_v32 = vmul.f32 %v1160_v12, %v5351_v47  ;;  %7424 = vst [vmem:[#allocation77_spill] sm:$0xff] %v5770_v18 }
 0x108   : > { %v1169_v24 = vmul.f32 %v1160_v12, %v5353_v26  ;;  %v1170_v42 = vmul.f32 %v1160_v12, %v5355_v54  ;;  %v1171_v17 = vmul.f32 %v1160_v12, %v5357_v0  ;;  %v1172_v19 = vmul.f32 %v1160_v12, %v5361_v35  ;;  %v7433_v35 = vld [vmem:[#allocation50_spill] sm:$0xff] }
 0x109   : > { %v1173_v61 = vmul.f32 %v1160_v12, %v5365_v15  ;;  %v1174_v8 = vmul.f32 %v1160_v12, %v5381_v16  ;;  %v1175_v56 = vmul.f32 %v1160_v12, %v5389_v7  ;;  %v1176_v58 = vmul.f32 %v1160_v12, %v7423_v11  ;;  %v7432_v16 = vld [vmem:[#allocation49_spill] sm:$0xff] }
 0x10a   : > { %v1177_v60 = vadd.f32 %v1161_v2, %v1143_v36  ;;  %v1178_v50 = vadd.f32 %v1162_v23, %v1144_v63  ;;  %v1179_v27 = vadd.f32 %v1163_v46, %v1145_v6  ;;  %v1180_v52 = vadd.f32 %v1164_v40, %v1146_v30  ;;  %v5775_v40 = vld [vmem:[%s4920_s24 + $0x18] sm:$0xff]  ;;  %v7429_v23 = vld [vmem:[#allocation22_spill] sm:$0xff] }
 0x10b   : > { %v1181_v31 = vadd.f32 %v1165_v9, %v1147_v59  ;;  %v1182_v38 = vadd.f32 %v1166_v51, %v1148_v37  ;;  %v1183_v33 = vadd.f32 %v1167_v1, %v1149_v3  ;;  %v1184_v34 = vadd.f32 %v1168_v32, %v1150_v14  ;;  %7425 = vst [vmem:[#allocation78_spill] sm:$0xff] %v5775_v40  ;;  %v7428_v51 = vld [vmem:[#allocation21_spill] sm:$0xff] }
 0x10c   : > { %v1185_v10 = vadd.f32 %v1169_v24, %v1151_v45  ;;  %v1194_v49 = vstv %s5750_s8  ;;  %v1186_v55 = vadd.f32 %v1170_v42, %v1152_v48  ;;  %v1187_v20 = vadd.f32 %v1171_v17, %v1153_v29  ;;  %v7426_v45 = vld [vmem:[#allocation18_spill] sm:$0xff]  ;;  %v7427_v29 = vld [vmem:[#allocation12_spill] sm:$0xff]  ;;  %v7431_v1 = vld [vmem:[#allocation25_spill] sm:$0xff]  ;;  %s6031_s8 = sld [smem:[#allocation2 + $0x101]] }
 0x10d   : > { %v1195_v39 = vmul.f32 %v5770_v18, %v1194_v49  ;;  %v1246_v12 = vstv %s5752_s9  ;;  %v1188_v36 = vadd.f32 %v1172_v19, %v1154_v44  ;;  %v1189_v63 = vadd.f32 %v1173_v61, %v1155_v62  ;;  %s6045_s9 = sld [smem:[#allocation4 + $0x101]] }
 0x10e   : > { %v1190_v6 = vadd.f32 %v1174_v8, %v1156_v21  ;;  %v1191_v30 = vadd.f32 %v1175_v56, %v1157_v53  ;;  %v1192_v59 = vadd.f32 %v1176_v58, %v1158_v28  ;;  %v1196_v3 = vmul.f32 %v5775_v40, %v1194_v49  ;;  %v7430_v53 = vld [vmem:[#allocation24_spill] sm:$0xff] }
 0x10f   : > { %v5780_v37 = vstv %s5756_s11  ;;  %v1247_v48 = vmul.f32 %v1246_v12, %v7426_v45  ;;  %v1248_v46 = vmul.f32 %v1246_v12, %v7427_v29  ;;  %v1249_v2 = vmul.f32 %v1246_v12, %v7428_v51  ;;  %s6107_s11 = sld [smem:[#allocation4 + $0x102]] }
 0x110   : > { %v1250_v43 = vmul.f32 %v1246_v12, %v7429_v23  ;;  %v1199_v44 = vrot.slane %v1195_v39, 1  ;;  %v1200_v62 = vrot.slane %v1195_v39, 2  ;;  %v1201_v21 = vrot.slane %v1195_v39, 3 }
 0x111   : > { %v1251_v28 = vmul.f32 %v1246_v12, %v7430_v53  ;;  %v1202_v9 = vrot.slane %v1195_v39, 4  ;;  %v1203_v22 = vrot.slane %v1195_v39, 5  ;;  %v1204_v41 = vrot.slane %v1195_v39, 6 }
 0x112   : > { %v1205_v13 = vrot.slane %v1195_v39, 7  ;;  %v1206_v4 = vrot.slane %v1196_v3, 1  ;;  %v1207_v5 = vrot.slane %v1196_v3, 2  ;;  %v1208_v25 = vrot.slane %v1196_v3, 3 }
 0x113   : > { %v1252_v32 = vmul.f32 %v1246_v12, %v7431_v1  ;;  %v1209_v24 = vrot.slane %v1196_v3, 4  ;;  %v1210_v42 = vrot.slane %v1196_v3, 5  ;;  %v1211_v17 = vrot.slane %v1196_v3, 6 }
 0x114   : > { %v1212_v19 = vrot.slane %v1196_v3, 7  ;;  %v1229_v61 = vadd.f32 %v1195_v39, %v1177_v60  ;;  %v1230_v8 = vadd.f32 %v1199_v44, %v1178_v50  ;;  %v1231_v56 = vadd.f32 %v1200_v62, %v1179_v27  ;;  %v7434_v60 = vld [vmem:[#allocation51_spill] sm:$0xff]  ;;  %v7435_v27 = vld [vmem:[#allocation52_spill] sm:$0xff] }
 0x115   : > { %v1232_v58 = vadd.f32 %v1201_v21, %v1180_v52  ;;  %v1233_v49 = vadd.f32 %v1202_v9, %v1181_v31  ;;  %v1234_v14 = vadd.f32 %v1203_v22, %v1182_v38  ;;  %v1235_v53 = vadd.f32 %v1204_v41, %v1183_v33  ;;  %v7436_v31 = vld [vmem:[#allocation53_spill] sm:$0xff]  ;;  %v7437_v33 = vld [vmem:[#allocation54_spill] sm:$0xff] }
 0x116   : > { %v1236_v23 = vadd.f32 %v1205_v13, %v1184_v34  ;;  %v1237_v51 = vadd.f32 %v1196_v3, %v1185_v10  ;;  %v1238_v29 = vadd.f32 %v1206_v4, %v1186_v55  ;;  %v1239_v45 = vadd.f32 %v1207_v5, %v1187_v20  ;;  %v7438_v10 = vld [vmem:[#allocation56_spill] sm:$0xff]  ;;  %v7439_v20 = vld [vmem:[#allocation57_spill] sm:$0xff] }
 0x117   : > { %v1240_v40 = vadd.f32 %v1208_v25, %v1188_v36  ;;  %v1241_v18 = vadd.f32 %v1209_v24, %v1189_v63  ;;  %v1242_v11 = vadd.f32 %v1210_v42, %v1190_v6  ;;  %v1243_v7 = vadd.f32 %v1211_v17, %v1191_v30  ;;  %v7440_v36 = vld [vmem:[#allocation58_spill] sm:$0xff]  ;;  %v7441_v6 = vld [vmem:[#allocation13_spill] sm:$0xff] }
 0x118   : > { %v1244_v1 = vadd.f32 %v1212_v19, %v1192_v59  ;;  %v1253_v15 = vmul.f32 %v1246_v12, %v7432_v16  ;;  %v1254_v0 = vmul.f32 %v1246_v12, %v7433_v35  ;;  %v1255_v50 = vmul.f32 %v1246_v12, %v7434_v60  ;;  %v5799_v4 = vld [vmem:[%s4920_s24 + $0x20] sm:$0xff]  ;;  %v5805_v19 = vld [vmem:[%s4920_s24 + $0x28] sm:$0xff] }
 0x119   : > { %v1256_v52 = vmul.f32 %v1246_v12, %v7435_v27  ;;  %v1257_v38 = vmul.f32 %v1246_v12, %v7436_v31  ;;  %v1258_v34 = vmul.f32 %v1246_v12, %v7437_v33  ;;  %v1259_v55 = vmul.f32 %v1246_v12, %v7438_v10  ;;  %7442 = vst [vmem:[#allocation79_spill] sm:$0xff] %v5799_v4  ;;  %v7452_v31 = vld [vmem:[#allocation65_spill] sm:$0xff] }
 0x11a   : > { %v1260_v39 = vmul.f32 %v1246_v12, %v7439_v20  ;;  %v1261_v63 = vmul.f32 %v1246_v12, %v7440_v36  ;;  %v1262_v30 = vmul.f32 %v1246_v12, %v7441_v6  ;;  %v1263_v59 = vadd.f32 %v1247_v48, %v1229_v61  ;;  %7444 = vst [vmem:[#allocation80_spill] sm:$0xff] %v5805_v19 }
 0x11b   : > { %v1264_v3 = vadd.f32 %v1248_v46, %v1230_v8  ;;  %v1265_v44 = vadd.f32 %v1249_v2, %v1231_v56  ;;  %v1266_v62 = vadd.f32 %v1250_v43, %v1232_v58  ;;  %v1267_v21 = vadd.f32 %v1251_v28, %v1233_v49  ;;  %v7450_v28 = vld [vmem:[#allocation63_spill] sm:$0xff] }
 0x11c   : > { %v1268_v9 = vadd.f32 %v1252_v32, %v1234_v14  ;;  %v1269_v22 = vadd.f32 %v1253_v15, %v1235_v53  ;;  %v1270_v41 = vadd.f32 %v1254_v0, %v1236_v23  ;;  %v1271_v13 = vadd.f32 %v1255_v50, %v1237_v51  ;;  %v7446_v15 = vld [vmem:[#allocation59_spill] sm:$0xff]  ;;  %v7447_v51 = vld [vmem:[#allocation60_spill] sm:$0xff]  ;;  %v7448_v53 = vld [vmem:[#allocation61_spill] sm:$0xff] }
 0x11d   : > { %v7443_v5 = vstv %s5754_s10  ;;  %v1272_v24 = vadd.f32 %v1256_v52, %v1238_v29  ;;  %v1273_v42 = vadd.f32 %v1257_v38, %v1239_v45  ;;  %v1274_v17 = vadd.f32 %v1258_v34, %v1240_v40  ;;  %v7449_v45 = vld [vmem:[#allocation62_spill] sm:$0xff]  ;;  %v7451_v52 = vld [vmem:[#allocation64_spill] sm:$0xff]  ;;  %s6105_s10 = sld [smem:[#allocation2 + $0x102]] }
 0x11e   : > { %v1281_v25 = vmul.f32 %v5799_v4, %v7443_v5  ;;  %v1275_v12 = vadd.f32 %v1259_v55, %v1241_v18  ;;  %v1276_v48 = vadd.f32 %v1260_v39, %v1242_v11  ;;  %v1277_v46 = vadd.f32 %v1261_v63, %v1243_v7 }
 0x11f   : > { %v1278_v2 = vadd.f32 %v1262_v30, %v1244_v1  ;;  %v7445_v43 = vmov %v7443_v5  ;;  %v1333_v0 = vmul.f32 %v5780_v37, %v7446_v15  ;;  %v1334_v23 = vmul.f32 %v5780_v37, %v7447_v51 }
 0x120   : > { %v1282_v14 = vmul.f32 %v5805_v19, %v7445_v43  ;;  %v1335_v29 = vmul.f32 %v5780_v37, %v7448_v53  ;;  %v1336_v18 = vmul.f32 %v5780_v37, %v7449_v45  ;;  %v1285_v11 = vrot.slane %v1281_v25, 1 }
 0x121   : > { %v1286_v7 = vrot.slane %v1281_v25, 2  ;;  %v1287_v40 = vrot.slane %v1281_v25, 3  ;;  %v1337_v1 = vmul.f32 %v5780_v37, %v7450_v28  ;;  %v1288_v32 = vrot.slane %v1281_v25, 4 }
 0x122   : > { %v1289_v61 = vrot.slane %v1281_v25, 5  ;;  %v1290_v8 = vrot.slane %v1281_v25, 6  ;;  %v1291_v56 = vrot.slane %v1281_v25, 7  ;;  %v1292_v58 = vrot.slane %v1282_v14, 1 }
 0x123   : > { %v1293_v49 = vrot.slane %v1282_v14, 2  ;;  %v1294_v50 = vrot.slane %v1282_v14, 3  ;;  %v1338_v38 = vmul.f32 %v5780_v37, %v7451_v52  ;;  %v1295_v34 = vrot.slane %v1282_v14, 4 }
 0x124   : > { %v1296_v55 = vrot.slane %v1282_v14, 5  ;;  %v1297_v39 = vrot.slane %v1282_v14, 6  ;;  %v1298_v63 = vrot.slane %v1282_v14, 7  ;;  %v1315_v30 = vadd.f32 %v1281_v25, %v1263_v59  ;;  %v7457_v25 = vld [vmem:[#allocation70_spill] sm:$0xff] }
 0x125   : > { %v1316_v5 = vadd.f32 %v1285_v11, %v1264_v3  ;;  %v1317_v43 = vadd.f32 %v1286_v7, %v1265_v44  ;;  %v1318_v45 = vadd.f32 %v1287_v40, %v1266_v62  ;;  %v1319_v28 = vadd.f32 %v1288_v32, %v1267_v21  ;;  %v7453_v3 = vld [vmem:[#allocation66_spill] sm:$0xff]  ;;  %v7454_v62 = vld [vmem:[#allocation67_spill] sm:$0xff] }
 0x126   : > { %v1320_v53 = vadd.f32 %v1289_v61, %v1268_v9  ;;  %v1321_v51 = vadd.f32 %v1290_v8, %v1269_v22  ;;  %v1322_v15 = vadd.f32 %v1291_v56, %v1270_v41  ;;  %v1323_v19 = vadd.f32 %v1282_v14, %v1271_v13  ;;  %v7455_v9 = vld [vmem:[#allocation68_spill] sm:$0xff]  ;;  %v7456_v41 = vld [vmem:[#allocation69_spill] sm:$0xff]  ;;  %v7461_v14 = vld [vmem:[#allocation74_spill] sm:$0xff] }
 0x127   : > { %v1324_v4 = vadd.f32 %v1292_v58, %v1272_v24  ;;  %v1325_v6 = vadd.f32 %v1293_v49, %v1273_v42  ;;  %v1326_v36 = vadd.f32 %v1294_v50, %v1274_v17  ;;  %v1327_v20 = vadd.f32 %v1295_v34, %v1275_v12  ;;  %v7458_v42 = vld [vmem:[#allocation71_spill] sm:$0xff]  ;;  %v7459_v12 = vld [vmem:[#allocation72_spill] sm:$0xff] }
 0x128   : > { %v1328_v52 = vadd.f32 %v1296_v55, %v1276_v48  ;;  %v1329_v10 = vadd.f32 %v1297_v39, %v1277_v46  ;;  %v1330_v33 = vadd.f32 %v1298_v63, %v1278_v2  ;;  %v1339_v59 = vmul.f32 %v5780_v37, %v7452_v31  ;;  %v7460_v46 = vld [vmem:[#allocation73_spill] sm:$0xff]  ;;  %v7462_v63 = vld [vmem:[#allocation55_spill] sm:$0xff] }
 0x129   : > { %v1340_v44 = vmul.f32 %v5780_v37, %v7453_v3  ;;  %v1341_v21 = vmul.f32 %v5780_v37, %v7454_v62  ;;  %v1342_v22 = vmul.f32 %v5780_v37, %v7455_v9  ;;  %v1343_v13 = vmul.f32 %v5780_v37, %v7456_v41 }
 0x12a   : > { %v1344_v24 = vmul.f32 %v5780_v37, %v7457_v25  ;;  %v1345_v17 = vmul.f32 %v5780_v37, %v7458_v42  ;;  %v1346_v48 = vmul.f32 %v5780_v37, %v7459_v12  ;;  %v1347_v2 = vmul.f32 %v5780_v37, %v7460_v46  ;;  %v7463_v42 = vld [vmem:[#allocation26_spill] sm:$0xff] }
 0x12b   : > { %v1348_v11 = vmul.f32 %v5780_v37, %v7461_v14  ;;  %v1349_v7 = vadd.f32 %v1333_v0, %v1315_v30  ;;  %v1350_v40 = vadd.f32 %v1334_v23, %v1316_v5  ;;  %v1351_v32 = vadd.f32 %v1335_v29, %v1317_v43 }
 0x12c   : > { %v1352_v61 = vadd.f32 %v1336_v18, %v1318_v45  ;;  %v1353_v8 = vadd.f32 %v1337_v1, %v1319_v28  ;;  %v1354_v56 = vadd.f32 %v1338_v38, %v1320_v53  ;;  %v1355_v58 = vadd.f32 %v1339_v59, %v1321_v51 }
 0x12d   : > { %v1356_v49 = vadd.f32 %v1340_v44, %v1322_v15  ;;  %v1357_v50 = vadd.f32 %v1341_v21, %v1323_v19  ;;  %v1366_v34 = vstv %s5822_s12  ;;  %v1358_v55 = vadd.f32 %v1342_v22, %v1324_v4  ;;  %s6113_s12 = sld [smem:[#allocation2 + $0x103]] }
 0x12e   : > { %v1359_v39 = vadd.f32 %v1343_v13, %v1325_v6  ;;  %v1367_v12 = vmul.f32 %v7462_v63, %v1366_v34  ;;  %v1368_v25 = vmul.f32 %v1366_v34, %v7463_v42  ;;  %v1360_v46 = vadd.f32 %v1344_v24, %v1326_v36 }
 0x12f   : > { %v1361_v41 = vadd.f32 %v1345_v17, %v1327_v20  ;;  %v1362_v9 = vadd.f32 %v1346_v48, %v1328_v52  ;;  %v1363_v37 = vadd.f32 %v1347_v2, %v1329_v10  ;;  %v1364_v18 = vadd.f32 %v1348_v11, %v1330_v33 }
 0x130   : > { %v1371_v0 = vrot.slane %v1367_v12, 1  ;;  %v1372_v23 = vrot.slane %v1367_v12, 2  ;;  %v1373_v29 = vrot.slane %v1367_v12, 3  ;;  %v1374_v45 = vrot.slane %v1367_v12, 4 }
 0x131   : > { %v1375_v53 = vrot.slane %v1367_v12, 5  ;;  %v1376_v51 = vrot.slane %v1367_v12, 6  ;;  %v1378_v15 = vrot.slane %v1368_v25, 1  ;;  %v1377_v19 = vrot.slane %v1367_v12, 7 }
 0x132   : > { %v1379_v28 = vrot.slane %v1368_v25, 2  ;;  %v1380_v4 = vrot.slane %v1368_v25, 3  ;;  %v1381_v6 = vrot.slane %v1368_v25, 4  ;;  %v1382_v1 = vrot.slane %v1368_v25, 5 }
 0x133   : > { %v1383_v38 = vrot.slane %v1368_v25, 6  ;;  %v1402_v30 = vadd.f32 %v1371_v0, %v1350_v40  ;;  %v1384_v20 = vrot.slane %v1368_v25, 7  ;;  %v1403_v36 = vadd.f32 %v1372_v23, %v1351_v32 }
 0x134   : > { %v1404_v10 = vadd.f32 %v1373_v29, %v1352_v61  ;;  %v1405_v52 = vadd.f32 %v1374_v45, %v1353_v8  ;;  %v1401_v5 = vadd.f32 %v1367_v12, %v1349_v7  ;;  %v1406_v43 = vadd.f32 %v1375_v53, %v1354_v56 }
 0x135   : > { %v1407_v33 = vadd.f32 %v1376_v51, %v1355_v58  ;;  %v1410_v59 = vadd.f32 %v1378_v15, %v1358_v55  ;;  %v1408_v44 = vadd.f32 %v1377_v19, %v1356_v49  ;;  %v1411_v21 = vadd.f32 %v1379_v28, %v1359_v39 }
 0x136   : > { %v1412_v22 = vadd.f32 %v1380_v4, %v1360_v46  ;;  %v1413_v13 = vadd.f32 %v1381_v6, %v1361_v41  ;;  %v1409_v24 = vadd.f32 %v1368_v25, %v1357_v50  ;;  %v1414_v42 = vadd.f32 %v1382_v1, %v1362_v9 }
 0x137   : > { %v1415_v17 = vadd.f32 %v1383_v38, %v1363_v37  ;;  %v1418_v48 = vmax.f32 %v1402_v30, 0.0  ;;  %v1416_v2 = vadd.f32 %v1384_v20, %v1364_v18  ;;  %v1419_v11 = vmax.f32 %v1403_v36, 0.0 }
 0x138   : > { %v1420_v40 = vmax.f32 %v1404_v10, 0.0  ;;  %v1421_v32 = vmax.f32 %v1405_v52, 0.0  ;;  %v1417_v12 = vmax.f32 %v1401_v5, 0.0  ;;  %v1422_v7 = vmax.f32 %v1406_v43, 0.0 }
 0x139   : > { %v1423_v61 = vmax.f32 %v1407_v33, 0.0  ;;  %v1426_v8 = vmax.f32 %v1410_v59, 0.0  ;;  %v1424_v56 = vmax.f32 %v1408_v44, 0.0  ;;  %v1427_v46 = vmax.f32 %v1411_v21, 0.0  ;;  %v7464_v44 = vld [vmem:[#allocation27_spill] sm:$0xff] }
 0x13a   : > { %v1428_v41 = vmax.f32 %v1412_v22, 0.0  ;;  %v1429_v25 = vmax.f32 %v1413_v13, 0.0  ;;  %v1425_v9 = vmax.f32 %v1409_v24, 0.0  ;;  %v1430_v58 = vmax.f32 %v1414_v42, 0.0  ;;  %v7465_v22 = vld [vmem:[#allocation28_spill] sm:$0xff]  ;;  %v7466_v42 = vld [vmem:[#allocation29_spill] sm:$0xff] }
 0x13b   : > { %v1449_v49 = vrot.slane %v1418_v48, 7  ;;  %v1452_v50 = vrot.slane %v1419_v11, 6  ;;  %v1431_v34 = vmax.f32 %v1415_v17, 0.0  ;;  %v1432_v55 = vmax.f32 %v1416_v2, 0.0  ;;  %v7467_v48 = vld [vmem:[#allocation30_spill] sm:$0xff]  ;;  %v7468_v11 = vld [vmem:[#allocation31_spill] sm:$0xff] }
 0x13c   : > { %v1455_v39 = vrot.slane %v1420_v40, 5  ;;  %v1458_v63 = vrot.slane %v1421_v32, 4  ;;  %v1461_v0 = vrot.slane %v1422_v7, 3  ;;  %v1470_v23 = vrot.slane %v1426_v8, 7 }
 0x13d   : > { %v1451_v37 = vsel %vm1450_vm1, %v1449_v49, %v1417_v12  ;;  %v1472_v29 = vrot.slane %v1427_v46, 6  ;;  %v1464_v18 = vrot.slane %v1423_v61, 2  ;;  %v1474_v53 = vrot.slane %v1428_v41, 5  ;;  %v7469_v12 = vld [vmem:[#allocation32_spill] sm:$0xff]  ;;  %v7470_v61 = vld [vmem:[#allocation33_spill] sm:$0xff]  ;;  %v7472_v41 = vld [vmem:[#allocation35_spill] sm:$0xff] }
 0x13e   : > { %v1454_v45 = vsel %vm1453_vm2, %v1452_v50, %v1451_v37  ;;  %v1476_v51 = vrot.slane %v1429_v25, 4  ;;  %v1467_v19 = vrot.slane %v1424_v56, 1  ;;  %v1471_v28 = vsel %vm1450_vm1, %v1470_v23, %v1425_v9  ;;  %v7471_v56 = vld [vmem:[#allocation34_spill] sm:$0xff]  ;;  %v7473_v9 = vld [vmem:[#allocation36_spill] sm:$0xff]  ;;  %v7474_v49 = vld [vmem:[#allocation37_spill] sm:$0xff] }
 0x13f   : > { %v1457_v15 = vsel %vm1456_vm3, %v1455_v39, %v1454_v45  ;;  %v1478_v4 = vrot.slane %v1430_v58, 3  ;;  %v1473_v1 = vsel %vm1453_vm2, %v1472_v29, %v1471_v28  ;;  %v1480_v38 = vrot.slane %v1431_v34, 2  ;;  %v7475_v34 = vld [vmem:[#allocation38_spill] sm:$0xff]  ;;  %v7476_v39 = vld [vmem:[#allocation39_spill] sm:$0xff]  ;;  %v7477_v37 = vld [vmem:[#allocation40_spill] sm:$0xff] }
 0x140   : > { %v1460_v6 = vsel %vm1459_vm4, %v1458_v63, %v1457_v15  ;;  %v1491_v30 = vstv %s5847_s13  ;;  %v1475_v36 = vsel %vm1456_vm3, %v1474_v53, %v1473_v1  ;;  %v1482_v10 = vrot.slane %v1432_v55, 1  ;;  %v7478_v23 = vld [vmem:[#allocation41_spill] sm:$0xff]  ;;  %v7479_v45 = vld [vmem:[#allocation15_spill] sm:$0xff]  ;;  %s6123_s13 = sld [smem:[#allocation4 + $0x103]] }
 0x141   : > { %v1463_v20 = vsel %vm1462_vm5, %v1461_v0, %v1460_v6  ;;  %v1477_v5 = vsel %vm1459_vm4, %v1476_v51, %v1475_v36  ;;  %v1489_v43 = vstv %s5849_s14  ;;  %v1492_v21 = vmul.f32 %v1491_v30, %v7464_v44  ;;  %s6209_s14 = sld [smem:[#allocation6 + $0x3]] }
 0x142   : > { %v1466_v52 = vsel %vm1465_vm6, %v1464_v18, %v1463_v20  ;;  %v1479_v59 = vsel %vm1462_vm5, %v1478_v4, %v1477_v5  ;;  %v1493_v13 = vmul.f32 %v1491_v30, %v7465_v22  ;;  %v1494_v17 = vmul.f32 %v1491_v30, %v7466_v42 }
 0x143   : > { %v1469_v33 = vsel %vm1468_vm7, %v1467_v19, %v1466_v52  ;;  %v1481_v24 = vsel %vm1465_vm6, %v1480_v38, %v1479_v59  ;;  %v1495_v2 = vmul.f32 %v1491_v30, %v7467_v48  ;;  %v1496_v40 = vmul.f32 %v1491_v30, %v7468_v11  ;;  %v7480_v59 = vld [vmem:[#allocation75_spill] sm:$0xff] }
 0x144   : > { %1486 = vst.msk [vmem:[%s5862_s17] sm:$0xff] %vm398_vm0, %v1469_v33  ;;  %v1483_v32 = vsel %vm1468_vm7, %v1482_v10, %v1481_v24  ;;  %v1497_v7 = vmul.f32 %v1491_v30, %v7469_v12  ;;  %v1498_v8 = vmul.f32 %v1491_v30, %v7470_v61  ;;  %v1499_v46 = vmul.f32 %v1491_v30, %v7471_v56 }
 0x145   : > { %1487 = vst.msk [vmem:[%s5862_s17 + $0x8] sm:$0xff] %vm398_vm0, %v1483_v32  ;;  %v1500_v25 = vmul.f32 %v1491_v30, %v7472_v41  ;;  %v1501_v58 = vmul.f32 %v1491_v30, %v7473_v9  ;;  %v1502_v50 = vmul.f32 %v1491_v30, %v7474_v49  ;;  %v1503_v55 = vmul.f32 %v1491_v30, %v7475_v34 }
 0x146   : > { %v1504_v63 = vmul.f32 %v1491_v30, %v7476_v39  ;;  %v1505_v0 = vmul.f32 %v1491_v30, %v7477_v37  ;;  %v1506_v29 = vmul.f32 %v1491_v30, %v7478_v23  ;;  %v1507_v18 = vmul.f32 %v1491_v30, %v7479_v45 }
 0x147   : > { %v1508_v53 = vadd.f32 %v1492_v21, %v1489_v43  ;;  %v1509_v51 = vadd.f32 %v1493_v13, %v1489_v43  ;;  %v1510_v15 = vadd.f32 %v1494_v17, %v1489_v43  ;;  %v1511_v19 = vadd.f32 %v1495_v2, %v1489_v43  ;;  %v7481_v21 = vld [vmem:[#allocation76_spill] sm:$0xff] }
 0x148   : > { %v1512_v28 = vadd.f32 %v1496_v40, %v1489_v43  ;;  %v1513_v4 = vadd.f32 %v1497_v7, %v1489_v43  ;;  %v1514_v6 = vadd.f32 %v1498_v8, %v1489_v43  ;;  %v1515_v1 = vadd.f32 %v1499_v46, %v1489_v43  ;;  %v7482_v17 = vld [vmem:[#allocation16_spill] sm:$0xff]  ;;  %v7483_v40 = vld [vmem:[#allocation11_spill] sm:$0xff]  ;;  %v7484_v8 = vld [vmem:[#allocation14_spill] sm:$0xff] }
 0x149   : > { %v1516_v38 = vadd.f32 %v1500_v25, %v1489_v43  ;;  %v1517_v20 = vadd.f32 %v1501_v58, %v1489_v43  ;;  %v1525_v36 = vstv %s5869_s21  ;;  %v1577_v10 = vstv %s5871_s22  ;;  %v7485_v25 = vld [vmem:[#allocation19_spill] sm:$0xff]  ;;  %s6267_s21 = sld [smem:[#allocation4 + $0x181]]  ;;  %s6269_s22 = sld [smem:[#allocation2 + $0x182]] }
 0x14a   : > { %v1518_v52 = vadd.f32 %v1502_v50, %v1489_v43  ;;  %v1519_v5 = vadd.f32 %v1503_v55, %v1489_v43  ;;  %v1520_v33 = vadd.f32 %v1504_v63, %v1489_v43  ;;  %v1526_v24 = vmul.f32 %v7480_v59, %v1525_v36  ;;  %v7486_v55 = vld [vmem:[#allocation20_spill] sm:$0xff] }
 0x14b   : > { %v1521_v32 = vadd.f32 %v1505_v0, %v1489_v43  ;;  %v1522_v23 = vadd.f32 %v1506_v29, %v1489_v43  ;;  %v1523_v30 = vadd.f32 %v1507_v18, %v1489_v43  ;;  %v1527_v13 = vmul.f32 %v7481_v21, %v1525_v36  ;;  %v7487_v21 = vld [vmem:[#allocation23_spill] sm:$0xff] }
 0x14c   : > { %v1578_v2 = vmul.f32 %v1577_v10, %v7482_v17  ;;  %v1579_v7 = vmul.f32 %v1577_v10, %v7483_v40  ;;  %v1580_v46 = vmul.f32 %v1577_v10, %v7484_v8  ;;  %v1581_v58 = vmul.f32 %v1577_v10, %v7485_v25 }
 0x14d   : > { %v1530_v45 = vrot.slane %v1526_v24, 1  ;;  %v1531_v37 = vrot.slane %v1526_v24, 2  ;;  %v1532_v50 = vrot.slane %v1526_v24, 3  ;;  %v1582_v63 = vmul.f32 %v1577_v10, %v7486_v55 }
 0x14e   : > { %v1533_v39 = vrot.slane %v1526_v24, 4  ;;  %v1534_v59 = vrot.slane %v1526_v24, 5  ;;  %v1535_v0 = vrot.slane %v1526_v24, 6  ;;  %v1536_v29 = vrot.slane %v1526_v24, 7 }
 0x14f   : > { %v1537_v43 = vrot.slane %v1527_v13, 1  ;;  %v1538_v18 = vrot.slane %v1527_v13, 2  ;;  %v1539_v36 = vrot.slane %v1527_v13, 3  ;;  %v1583_v17 = vmul.f32 %v1577_v10, %v7487_v21 }
 0x150   : > { %v1540_v34 = vrot.slane %v1527_v13, 4  ;;  %v1541_v40 = vrot.slane %v1527_v13, 5  ;;  %v1542_v49 = vrot.slane %v1527_v13, 6  ;;  %v1543_v8 = vrot.slane %v1527_v13, 7 }
 0x151   : > { %v1560_v9 = vadd.f32 %v1526_v24, %v1508_v53  ;;  %v1561_v25 = vadd.f32 %v1530_v45, %v1509_v51  ;;  %v1562_v41 = vadd.f32 %v1531_v37, %v1510_v15  ;;  %v1563_v56 = vadd.f32 %v1532_v50, %v1511_v19  ;;  %v7488_v51 = vld [vmem:[#allocation46_spill] sm:$0xff]  ;;  %v7489_v19 = vld [vmem:[#allocation9_spill] sm:$0xff] }
 0x152   : > { %v1564_v61 = vadd.f32 %v1533_v39, %v1512_v28  ;;  %v1565_v12 = vadd.f32 %v1534_v59, %v1513_v4  ;;  %v1566_v55 = vadd.f32 %v1535_v0, %v1514_v6  ;;  %v1567_v11 = vadd.f32 %v1536_v29, %v1515_v1  ;;  %v7492_v6 = vld [vmem:[#allocation48_spill] sm:$0xff] }
 0x153   : > { %v1568_v48 = vadd.f32 %v1527_v13, %v1516_v38  ;;  %v1569_v42 = vadd.f32 %v1537_v43, %v1517_v20  ;;  %v1570_v22 = vadd.f32 %v1538_v18, %v1518_v52  ;;  %v1571_v21 = vadd.f32 %v1539_v36, %v1519_v5  ;;  %v7493_v38 = vld [vmem:[#allocation17_spill] sm:$0xff] }
 0x154   : > { %v1572_v44 = vadd.f32 %v1540_v34, %v1520_v33  ;;  %v1573_v14 = vadd.f32 %v1541_v40, %v1521_v32  ;;  %v1574_v62 = vadd.f32 %v1542_v49, %v1522_v23  ;;  %v1575_v3 = vadd.f32 %v1543_v8, %v1523_v30  ;;  %v7490_v34 = vld [vmem:[#allocation10_spill] sm:$0xff]  ;;  %v7491_v49 = vld [vmem:[#allocation47_spill] sm:$0xff] }
 0x155   : > { %v1584_v39 = vmul.f32 %v1577_v10, %v5346_v57  ;;  %v1585_v37 = vmul.f32 %v1577_v10, %v5351_v47  ;;  %v1586_v45 = vmul.f32 %v1577_v10, %v5353_v26  ;;  %v1587_v53 = vmul.f32 %v1577_v10, %v5355_v54 }
 0x156   : > { %v1588_v15 = vmul.f32 %v1577_v10, %v7488_v51  ;;  %v1589_v28 = vmul.f32 %v1577_v10, %v7489_v19  ;;  %v1590_v4 = vmul.f32 %v1577_v10, %v7490_v34  ;;  %v1591_v23 = vmul.f32 %v1577_v10, %v7491_v49 }
 0x157   : > { %v1592_v1 = vmul.f32 %v1577_v10, %v7492_v6  ;;  %v1593_v20 = vmul.f32 %v1577_v10, %v7493_v38  ;;  %v1594_v52 = vadd.f32 %v1578_v2, %v1560_v9  ;;  %v1595_v5 = vadd.f32 %v1579_v7, %v1561_v25  ;;  %v7494_v10 = vld [vmem:[#allocation77_spill] sm:$0xff] }
 0x158   : > { %v1596_v33 = vadd.f32 %v1580_v46, %v1562_v41  ;;  %v1597_v24 = vadd.f32 %v1581_v58, %v1563_v56  ;;  %v1598_v32 = vadd.f32 %v1582_v63, %v1564_v61  ;;  %v1599_v30 = vadd.f32 %v1583_v17, %v1565_v12  ;;  %v7495_v41 = vld [vmem:[#allocation78_spill] sm:$0xff] }
 0x159   : > { %v1600_v13 = vadd.f32 %v1584_v39, %v1566_v55  ;;  %v1601_v40 = vadd.f32 %v1585_v37, %v1567_v11  ;;  %v1602_v8 = vadd.f32 %v1586_v45, %v1568_v48  ;;  %v1603_v50 = vadd.f32 %v1587_v53, %v1569_v42  ;;  %v7496_v12 = vld [vmem:[#allocation18_spill] sm:$0xff]  ;;  %v7497_v11 = vld [vmem:[#allocation12_spill] sm:$0xff]  ;;  %v7498_v42 = vld [vmem:[#allocation21_spill] sm:$0xff] }
 0x15a   : > { %v1604_v59 = vadd.f32 %v1588_v15, %v1570_v22  ;;  %v1605_v0 = vadd.f32 %v1589_v28, %v1571_v21  ;;  %v1611_v29 = vstv %s5907_s23  ;;  %v1663_v43 = vstv %s5909_s26  ;;  %v7499_v46 = vld [vmem:[#allocation22_spill] sm:$0xff]  ;;  %v7501_v15 = vld [vmem:[#allocation25_spill] sm:$0xff]  ;;  %s6305_s23 = sld [smem:[#allocation4 + $0x182]]  ;;  %s6307_s26 = sld [smem:[#allocation2 + $0x183]] }
 0x15b   : > { %v1606_v18 = vadd.f32 %v1590_v4, %v1572_v44  ;;  %v1607_v36 = vadd.f32 %v1591_v23, %v1573_v14  ;;  %v1608_v6 = vadd.f32 %v1592_v1, %v1574_v62  ;;  %v1612_v9 = vmul.f32 %v7494_v10, %v1611_v29  ;;  %v7500_v62 = vld [vmem:[#allocation24_spill] sm:$0xff] }
 0x15c   : > { %v1609_v2 = vadd.f32 %v1593_v20, %v1575_v3  ;;  %v1613_v56 = vmul.f32 %v7495_v41, %v1611_v29  ;;  %v5931_v7 = vstv %s5913_s25  ;;  %v1664_v17 = vmul.f32 %v1663_v43, %v7496_v12  ;;  %s6311_s25 = sld [smem:[#allocation6 + $0x4]] }
 0x15d   : > { %v1665_v48 = vmul.f32 %v1663_v43, %v7497_v11  ;;  %v1666_v22 = vmul.f32 %v1663_v43, %v7498_v42  ;;  %v1667_v25 = vmul.f32 %v1663_v43, %v7499_v46  ;;  %v1616_v58 = vrot.slane %v1612_v9, 1 }
 0x15e   : > { %v1617_v44 = vrot.slane %v1612_v9, 2  ;;  %v1618_v14 = vrot.slane %v1612_v9, 3  ;;  %v1668_v55 = vmul.f32 %v1663_v43, %v7500_v62  ;;  %v1619_v63 = vrot.slane %v1612_v9, 4 }
 0x15f   : > { %v1620_v3 = vrot.slane %v1612_v9, 5  ;;  %v1621_v21 = vrot.slane %v1612_v9, 6  ;;  %v1622_v39 = vrot.slane %v1612_v9, 7  ;;  %v1623_v37 = vrot.slane %v1613_v56, 1 }
 0x160   : > { %v1624_v45 = vrot.slane %v1613_v56, 2  ;;  %v1625_v53 = vrot.slane %v1613_v56, 3  ;;  %v1669_v28 = vmul.f32 %v1663_v43, %v7501_v15  ;;  %v1626_v4 = vrot.slane %v1613_v56, 4 }
 0x161   : > { %v1627_v23 = vrot.slane %v1613_v56, 5  ;;  %v1628_v1 = vrot.slane %v1613_v56, 6  ;;  %v1629_v20 = vrot.slane %v1613_v56, 7  ;;  %v1646_v29 = vadd.f32 %v1612_v9, %v1594_v52 }
 0x162   : > { %v1647_v10 = vadd.f32 %v1616_v58, %v1595_v5  ;;  %v1648_v41 = vadd.f32 %v1617_v44, %v1596_v33  ;;  %v1649_v61 = vadd.f32 %v1618_v14, %v1597_v24  ;;  %v1650_v46 = vadd.f32 %v1619_v63, %v1598_v32  ;;  %v7502_v33 = vld [vmem:[#allocation53_spill] sm:$0xff]  ;;  %v7503_v32 = vld [vmem:[#allocation54_spill] sm:$0xff] }
 0x163   : > { %v1651_v42 = vadd.f32 %v1620_v3, %v1599_v30  ;;  %v1652_v62 = vadd.f32 %v1621_v21, %v1600_v13  ;;  %v1653_v11 = vadd.f32 %v1622_v39, %v1601_v40  ;;  %v1654_v12 = vadd.f32 %v1613_v56, %v1602_v8  ;;  %v7504_v13 = vld [vmem:[#allocation56_spill] sm:$0xff]  ;;  %v7505_v8 = vld [vmem:[#allocation57_spill] sm:$0xff] }
 0x164   : > { %v1655_v38 = vadd.f32 %v1623_v37, %v1603_v50  ;;  %v1656_v49 = vadd.f32 %v1624_v45, %v1604_v59  ;;  %v1657_v34 = vadd.f32 %v1625_v53, %v1605_v0  ;;  %v1658_v19 = vadd.f32 %v1626_v4, %v1606_v18  ;;  %v7506_v59 = vld [vmem:[#allocation58_spill] sm:$0xff]  ;;  %v7507_v0 = vld [vmem:[#allocation13_spill] sm:$0xff]  ;;  %v7509_v4 = vld [vmem:[#allocation79_spill] sm:$0xff] }
 0x165   : > { %v1659_v51 = vadd.f32 %v1627_v23, %v1607_v36  ;;  %v1660_v54 = vadd.f32 %v1628_v1, %v1608_v6  ;;  %v1661_v15 = vadd.f32 %v1629_v20, %v1609_v2  ;;  %v1670_v26 = vmul.f32 %v1663_v43, %v7432_v16 }
 0x166   : > { %v1671_v47 = vmul.f32 %v1663_v43, %v7433_v35  ;;  %v1672_v52 = vmul.f32 %v1663_v43, %v7434_v60  ;;  %v1673_v5 = vmul.f32 %v1663_v43, %v7435_v27  ;;  %v1674_v24 = vmul.f32 %v1663_v43, %v7502_v33 }
 0x167   : > { %v1675_v30 = vmul.f32 %v1663_v43, %v7503_v32  ;;  %v1676_v40 = vmul.f32 %v1663_v43, %v7504_v13  ;;  %v1677_v50 = vmul.f32 %v1663_v43, %v7505_v8  ;;  %v1678_v6 = vmul.f32 %v1663_v43, %v7506_v59 }
 0x168   : > { %v1679_v18 = vmul.f32 %v1663_v43, %v7507_v0  ;;  %v1680_v36 = vadd.f32 %v1664_v17, %v1646_v29  ;;  %v1681_v9 = vadd.f32 %v1665_v48, %v1647_v10  ;;  %v1682_v2 = vadd.f32 %v1666_v22, %v1648_v41  ;;  %v7511_v48 = vld [vmem:[#allocation80_spill] sm:$0xff]  ;;  %v7512_v22 = vld [vmem:[#allocation59_spill] sm:$0xff] }
 0x169   : > { %v1683_v56 = vadd.f32 %v1667_v25, %v1649_v61  ;;  %v1684_v58 = vadd.f32 %v1668_v55, %v1650_v46  ;;  %v1685_v44 = vadd.f32 %v1669_v28, %v1651_v42  ;;  %v1686_v14 = vadd.f32 %v1670_v26, %v1652_v62  ;;  %v7513_v42 = vld [vmem:[#allocation60_spill] sm:$0xff]  ;;  %v7514_v26 = vld [vmem:[#allocation61_spill] sm:$0xff] }
 0x16a   : > { %v1687_v63 = vadd.f32 %v1671_v47, %v1653_v11  ;;  %v1688_v3 = vadd.f32 %v1672_v52, %v1654_v12  ;;  %v1689_v21 = vadd.f32 %v1673_v5, %v1655_v38  ;;  %v1690_v39 = vadd.f32 %v1674_v24, %v1656_v49  ;;  %v7517_v41 = vld [vmem:[#allocation64_spill] sm:$0xff] }
 0x16b   : > { %v1691_v37 = vadd.f32 %v1675_v30, %v1657_v34  ;;  %v1692_v45 = vadd.f32 %v1676_v40, %v1658_v19  ;;  %v7508_v53 = vstv %s5911_s28  ;;  %v1693_v1 = vadd.f32 %v1677_v50, %v1659_v51  ;;  %v7515_v34 = vld [vmem:[#allocation62_spill] sm:$0xff]  ;;  %s6309_s28 = sld [smem:[#allocation4 + $0x183]] }
 0x16c   : > { %v1698_v23 = vmul.f32 %v7509_v4, %v7508_v53  ;;  %v1694_v20 = vadd.f32 %v1678_v6, %v1660_v54  ;;  %v1695_v43 = vadd.f32 %v1679_v18, %v1661_v15  ;;  %v7510_v17 = vmov %v7508_v53  ;;  %v7516_v54 = vld [vmem:[#allocation63_spill] sm:$0xff] }
 0x16d   : > { %v1699_v29 = vmul.f32 %v7511_v48, %v7510_v17  ;;  %v1750_v61 = vmul.f32 %v5931_v7, %v7512_v22  ;;  %v1751_v47 = vmul.f32 %v5931_v7, %v7513_v42  ;;  %v1752_v49 = vmul.f32 %v5931_v7, %v7514_v26 }
 0x16e   : > { %v1753_v19 = vmul.f32 %v5931_v7, %v7515_v34  ;;  %v1702_v38 = vrot.slane %v1698_v23, 1  ;;  %v1703_v12 = vrot.slane %v1698_v23, 2  ;;  %v1704_v51 = vrot.slane %v1698_v23, 3 }
 0x16f   : > { %v1754_v11 = vmul.f32 %v5931_v7, %v7516_v54  ;;  %v1705_v46 = vrot.slane %v1698_v23, 4  ;;  %v1706_v25 = vrot.slane %v1698_v23, 5  ;;  %v1707_v62 = vrot.slane %v1698_v23, 6 }
 0x170   : > { %v1708_v55 = vrot.slane %v1698_v23, 7  ;;  %v1709_v15 = vrot.slane %v1699_v29, 1  ;;  %v1710_v28 = vrot.slane %v1699_v29, 2  ;;  %v1711_v10 = vrot.slane %v1699_v29, 3 }
 0x171   : > { %v1755_v52 = vmul.f32 %v5931_v7, %v7517_v41  ;;  %v1712_v5 = vrot.slane %v1699_v29, 4  ;;  %v1713_v24 = vrot.slane %v1699_v29, 5  ;;  %v1714_v30 = vrot.slane %v1699_v29, 6 }
 0x172   : > { %v1715_v40 = vrot.slane %v1699_v29, 7  ;;  %v1732_v50 = vadd.f32 %v1698_v23, %v1680_v36  ;;  %v1733_v6 = vadd.f32 %v1702_v38, %v1681_v9  ;;  %v1734_v18 = vadd.f32 %v1703_v12, %v1682_v2  ;;  %v7518_v9 = vld [vmem:[#allocation66_spill] sm:$0xff]  ;;  %v7524_v23 = vld [vmem:[#allocation72_spill] sm:$0xff] }
 0x173   : > { %v1735_v53 = vadd.f32 %v1704_v51, %v1683_v56  ;;  %v1736_v4 = vadd.f32 %v1705_v46, %v1684_v58  ;;  %v1737_v17 = vadd.f32 %v1706_v25, %v1685_v44  ;;  %v1738_v48 = vadd.f32 %v1707_v62, %v1686_v14  ;;  %v7519_v56 = vld [vmem:[#allocation67_spill] sm:$0xff]  ;;  %v7520_v44 = vld [vmem:[#allocation68_spill] sm:$0xff] }
 0x174   : > { %v1739_v54 = vadd.f32 %v1708_v55, %v1687_v63  ;;  %v1740_v34 = vadd.f32 %v1699_v29, %v1688_v3  ;;  %v1741_v26 = vadd.f32 %v1709_v15, %v1689_v21  ;;  %v1742_v42 = vadd.f32 %v1710_v28, %v1690_v39  ;;  %v7521_v63 = vld [vmem:[#allocation69_spill] sm:$0xff]  ;;  %v7522_v21 = vld [vmem:[#allocation70_spill] sm:$0xff] }
 0x175   : > { %v1743_v22 = vadd.f32 %v1711_v10, %v1691_v37  ;;  %v1744_v41 = vadd.f32 %v1712_v5, %v1692_v45  ;;  %v1745_v0 = vadd.f32 %v1713_v24, %v1693_v1  ;;  %v1746_v59 = vadd.f32 %v1714_v30, %v1694_v20  ;;  %v7523_v37 = vld [vmem:[#allocation71_spill] sm:$0xff]  ;;  %v7525_v20 = vld [vmem:[#allocation73_spill] sm:$0xff]  ;;  %v7526_v29 = vld [vmem:[#allocation74_spill] sm:$0xff] }
 0x176   : > { %v1747_v8 = vadd.f32 %v1715_v40, %v1695_v43  ;;  %v1756_v36 = vmul.f32 %v5931_v7, %v7452_v31  ;;  %v1757_v2 = vmul.f32 %v5931_v7, %v7518_v9  ;;  %v1758_v58 = vmul.f32 %v5931_v7, %v7519_v56 }
 0x177   : > { %v1759_v14 = vmul.f32 %v5931_v7, %v7520_v44  ;;  %v1760_v3 = vmul.f32 %v5931_v7, %v7521_v63  ;;  %v1761_v39 = vmul.f32 %v5931_v7, %v7522_v21  ;;  %v1762_v45 = vmul.f32 %v5931_v7, %v7523_v37 }
 0x178   : > { %v1763_v1 = vmul.f32 %v5931_v7, %v7524_v23  ;;  %v1764_v43 = vmul.f32 %v5931_v7, %v7525_v20  ;;  %v1765_v38 = vmul.f32 %v5931_v7, %v7526_v29  ;;  %v1766_v12 = vadd.f32 %v1750_v61, %v1732_v50  ;;  %v5997_v50 = vld [vmem:[%s4920_s24 + $0x30] sm:$0xff] }
 0x179   : > { %v1767_v51 = vadd.f32 %v1751_v47, %v1733_v6  ;;  %v1768_v46 = vadd.f32 %v1752_v49, %v1734_v18  ;;  %v1769_v25 = vadd.f32 %v1753_v19, %v1735_v53  ;;  %v1770_v62 = vadd.f32 %v1754_v11, %v1736_v4  ;;  %7527 = vst [vmem:[#allocation55_spill] sm:$0xff] %v5997_v50  ;;  %v6001_v49 = vld [vmem:[%s4920_s24 + $0x38] sm:$0xff]  ;;  %v7529_v18 = vld [vmem:[#allocation27_spill] sm:$0xff] }
 0x17a   : > { %v1771_v55 = vadd.f32 %v1755_v52, %v1737_v17  ;;  %v1772_v15 = vadd.f32 %v1756_v36, %v1738_v48  ;;  %v1773_v28 = vadd.f32 %v1757_v2, %v1739_v54  ;;  %v1774_v10 = vadd.f32 %v1758_v58, %v1740_v34  ;;  %7528 = vst [vmem:[#allocation26_spill] sm:$0xff] %v6001_v49 }
 0x17b   : > { %v1775_v5 = vadd.f32 %v1759_v14, %v1741_v26  ;;  %v1776_v24 = vadd.f32 %v1760_v3, %v1742_v42  ;;  %v1777_v30 = vadd.f32 %v1761_v39, %v1743_v22  ;;  %v1778_v40 = vadd.f32 %v1762_v45, %v1744_v41  ;;  %v7530_v14 = vld [vmem:[#allocation28_spill] sm:$0xff] }
 0x17c   : > { %v1783_v20 = vstv %s5967_s29  ;;  %v1779_v7 = vadd.f32 %v1763_v1, %v1745_v0  ;;  %v1780_v61 = vadd.f32 %v1764_v43, %v1746_v59  ;;  %v1781_v11 = vadd.f32 %v1765_v38, %v1747_v8  ;;  %s6341_s29 = sld [smem:[#allocation2 + $0x200]] }
 0x17d   : > { %v1784_v47 = vmul.f32 %v5997_v50, %v1783_v20  ;;  %v1785_v19 = vmul.f32 %v6001_v49, %v1783_v20  ;;  %v6005_v52 = vstv %s5969_s30  ;;  %v6008_v54 = vstv %s5971_s6  ;;  %s6349_s30 = sld [smem:[#allocation4 + $0x200]]  ;;  %s6391_s6 = sld [smem:[#allocation2 + $0x201]] }
 0x17e   : > { %v6013_v53 = vmul.f32 %v6008_v54, %v7529_v18  ;;  %v6017_v3 = vmul.f32 %v6008_v54, %v7530_v14 }
 0x17f   : > { %v1788_v42 = vrot.slane %v1784_v47, 1  ;;  %v1789_v22 = vrot.slane %v1784_v47, 2  ;;  %v1790_v34 = vrot.slane %v1784_v47, 3  ;;  %v1791_v41 = vrot.slane %v1784_v47, 4 }
 0x180   : > { %v1792_v0 = vrot.slane %v1784_v47, 5  ;;  %v1793_v59 = vrot.slane %v1784_v47, 6  ;;  %v1795_v6 = vrot.slane %v1785_v19, 1  ;;  %v1794_v4 = vrot.slane %v1784_v47, 7 }
 0x181   : > { %v1796_v17 = vrot.slane %v1785_v19, 2  ;;  %v1797_v48 = vrot.slane %v1785_v19, 3  ;;  %v1798_v8 = vrot.slane %v1785_v19, 4  ;;  %v1799_v36 = vrot.slane %v1785_v19, 5 }
 0x182   : > { %v1800_v2 = vrot.slane %v1785_v19, 6  ;;  %v1819_v58 = vadd.f32 %v1788_v42, %v1767_v51  ;;  %v1801_v39 = vrot.slane %v1785_v19, 7  ;;  %v1820_v45 = vadd.f32 %v1789_v22, %v1768_v46 }
 0x183   : > { %v1821_v1 = vadd.f32 %v1790_v34, %v1769_v25  ;;  %v1822_v20 = vadd.f32 %v1791_v41, %v1770_v62  ;;  %v1818_v43 = vadd.f32 %v1784_v47, %v1766_v12  ;;  %v1823_v38 = vadd.f32 %v1792_v0, %v1771_v55 }
 0x184   : > { %v1824_v26 = vadd.f32 %v1793_v59, %v1772_v15  ;;  %v1827_v18 = vadd.f32 %v1795_v6, %v1775_v5  ;;  %v1825_v49 = vadd.f32 %v1794_v4, %v1773_v28  ;;  %v1828_v50 = vadd.f32 %v1796_v17, %v1776_v24  ;;  %v7532_v4 = vld [vmem:[#allocation30_spill] sm:$0xff] }
 0x185   : > { %v1829_v29 = vadd.f32 %v1797_v48, %v1777_v30  ;;  %v1830_v23 = vadd.f32 %v1798_v8, %v1778_v40  ;;  %v1826_v37 = vadd.f32 %v1785_v19, %v1774_v10  ;;  %v1831_v21 = vadd.f32 %v1799_v36, %v1779_v7  ;;  %v7533_v36 = vld [vmem:[#allocation31_spill] sm:$0xff] }
 0x186   : > { %v1832_v63 = vadd.f32 %v1800_v2, %v1780_v61  ;;  %v1835_v51 = vmax.f32 %v1819_v58, 0.0  ;;  %v1833_v42 = vadd.f32 %v1801_v39, %v1781_v11  ;;  %v1836_v44 = vmax.f32 %v1820_v45, 0.0  ;;  %v7534_v58 = vld [vmem:[#allocation32_spill] sm:$0xff] }
 0x187   : > { %v1837_v14 = vmax.f32 %v1821_v1, 0.0  ;;  %v1838_v56 = vmax.f32 %v1822_v20, 0.0  ;;  %v1834_v9 = vmax.f32 %v1818_v43, 0.0  ;;  %v1839_v46 = vmax.f32 %v1823_v38, 0.0  ;;  %v7535_v1 = vld [vmem:[#allocation33_spill] sm:$0xff]  ;;  %v7536_v43 = vld [vmem:[#allocation34_spill] sm:$0xff] }
 0x188   : > { %v1840_v25 = vmax.f32 %v1824_v26, 0.0  ;;  %v1843_v62 = vmax.f32 %v1827_v18, 0.0  ;;  %v1841_v12 = vmax.f32 %v1825_v49, 0.0  ;;  %v1844_v55 = vmax.f32 %v1828_v50, 0.0 }
 0x189   : > { %v1845_v15 = vmax.f32 %v1829_v29, 0.0  ;;  %v1846_v5 = vmax.f32 %v1830_v23, 0.0  ;;  %v1842_v28 = vmax.f32 %v1826_v37, 0.0  ;;  %v1847_v24 = vmax.f32 %v1831_v21, 0.0 }
 0x18a   : > { %v1866_v30 = vrot.slane %v1835_v51, 7  ;;  %v1868_v40 = vrot.slane %v1836_v44, 6  ;;  %v1848_v10 = vmax.f32 %v1832_v63, 0.0  ;;  %v1849_v7 = vmax.f32 %v1833_v42, 0.0  ;;  %v7537_v42 = vld [vmem:[#allocation35_spill] sm:$0xff] }
 0x18b   : > { %v1870_v61 = vrot.slane %v1837_v14, 5  ;;  %v1872_v47 = vrot.slane %v1838_v56, 4  ;;  %v1874_v11 = vrot.slane %v1839_v46, 3  ;;  %v1880_v22 = vrot.slane %v1843_v62, 7 }
 0x18c   : > { %v1867_v19 = vsel %vm1450_vm1, %v1866_v30, %v1834_v9  ;;  %v1882_v34 = vrot.slane %v1844_v55, 6  ;;  %v1876_v41 = vrot.slane %v1840_v25, 2  ;;  %v1884_v49 = vrot.slane %v1845_v15, 5  ;;  %v7531_v9 = vld [vmem:[#allocation29_spill] sm:$0xff]  ;;  %v7538_v25 = vld [vmem:[#allocation36_spill] sm:$0xff] }
 0x18d   : > { %v1869_v26 = vsel %vm1453_vm2, %v1868_v40, %v1867_v19  ;;  %v1886_v50 = vrot.slane %v1846_v5, 4  ;;  %v1878_v37 = vrot.slane %v1841_v12, 1  ;;  %v1881_v21 = vsel %vm1450_vm1, %v1880_v22, %v1842_v28  ;;  %v7539_v12 = vld [vmem:[#allocation37_spill] sm:$0xff]  ;;  %v7540_v5 = vld [vmem:[#allocation38_spill] sm:$0xff]  ;;  %v7542_v40 = vld [vmem:[#allocation40_spill] sm:$0xff] }
 0x18e   : > { %v1871_v23 = vsel %vm1456_vm3, %v1870_v61, %v1869_v26  ;;  %v1888_v44 = vrot.slane %v1847_v24, 3  ;;  %v1883_v56 = vsel %vm1453_vm2, %v1882_v34, %v1881_v21  ;;  %v1890_v29 = vrot.slane %v1848_v10, 2  ;;  %v7541_v24 = vld [vmem:[#allocation39_spill] sm:$0xff]  ;;  %v6084_v21 = vld [vmem:[%s4920_s24] sm:$0xff] }
 0x18f   : > { %v1873_v63 = vsel %vm1459_vm4, %v1872_v47, %v1871_v23  ;;  %v1905_v0 = vmul.f32 %v6008_v54, %v7531_v9  ;;  %v1885_v6 = vsel %vm1456_vm3, %v1884_v49, %v1883_v56  ;;  %v1892_v18 = vrot.slane %v1849_v7, 1  ;;  %v7543_v7 = vld [vmem:[#allocation41_spill] sm:$0xff]  ;;  %v7544_v47 = vld [vmem:[#allocation15_spill] sm:$0xff]  ;;  %7545 = vst [vmem:[#allocation75_spill] sm:$0xff] %v6084_v21 }
 0x190   : > { %v1875_v59 = vsel %vm1462_vm5, %v1874_v11, %v1873_v63  ;;  %v1906_v17 = vmul.f32 %v6008_v54, %v7532_v4  ;;  %v1887_v8 = vsel %vm1459_vm4, %v1886_v50, %v1885_v6  ;;  %v1907_v2 = vmul.f32 %v6008_v54, %v7533_v36  ;;  %v6094_v6 = vld [vmem:[%s4920_s24 + $0x8] sm:$0xff] }
 0x191   : > { %v1877_v48 = vsel %vm1465_vm6, %v1876_v41, %v1875_v59  ;;  %v1908_v14 = vmul.f32 %v6008_v54, %v7534_v58  ;;  %v1889_v45 = vsel %vm1462_vm5, %v1888_v44, %v1887_v8  ;;  %v1909_v20 = vmul.f32 %v6008_v54, %v7535_v1  ;;  %7547 = vst [vmem:[#allocation76_spill] sm:$0xff] %v6094_v6  ;;  %v7549_v8 = vld [vmem:[#allocation16_spill] sm:$0xff] }
 0x192   : > { %v1879_v39 = vsel %vm1468_vm7, %v1878_v37, %v1877_v48  ;;  %v1910_v38 = vmul.f32 %v6008_v54, %v7536_v43  ;;  %v1891_v51 = vsel %vm1465_vm6, %v1890_v29, %v1889_v45  ;;  %v1911_v46 = vmul.f32 %v6008_v54, %v7537_v42 }
 0x193   : > { %4530 = vst.msk [vmem:[%s5862_s17 + $0x10] sm:$0xff] %vm398_vm0, %v1879_v39  ;;  %v1912_v62 = vmul.f32 %v6008_v54, %v7538_v25  ;;  %v1913_v55 = vmul.f32 %v6008_v54, %v7539_v12  ;;  %v1893_v15 = vsel %vm1468_vm7, %v1892_v18, %v1891_v51  ;;  %v1914_v28 = vmul.f32 %v6008_v54, %v7540_v5 }
 0x194   : > { %v1915_v30 = vmul.f32 %v6008_v54, %v7541_v24  ;;  %v1916_v10 = vmul.f32 %v6008_v54, %v7542_v40  ;;  %4531 = vst.msk [vmem:[%s5862_s17 + $0x18] sm:$0xff] %vm398_vm0, %v1893_v15  ;;  %v1917_v61 = vmul.f32 %v6008_v54, %v7543_v7  ;;  %v1918_v19 = vmul.f32 %v6008_v54, %v7544_v47 }
 0x195   : > { %v1919_v11 = vadd.f32 %v6013_v53, %v6005_v52  ;;  %v1920_v22 = vadd.f32 %v6017_v3, %v6005_v52  ;;  %v1921_v34 = vadd.f32 %v1905_v0, %v6005_v52  ;;  %v1922_v26 = vadd.f32 %v1906_v17, %v6005_v52 }
 0x196   : > { %v1923_v41 = vadd.f32 %v1907_v2, %v6005_v52  ;;  %v1924_v49 = vadd.f32 %v1908_v14, %v6005_v52  ;;  %v1925_v50 = vadd.f32 %v1909_v20, %v6005_v52  ;;  %v1926_v54 = vadd.f32 %v1910_v38, %v6005_v52  ;;  %v7550_v14 = vld [vmem:[#allocation11_spill] sm:$0xff] }
 0x197   : > { %v1927_v53 = vadd.f32 %v1911_v46, %v6005_v52  ;;  %v1928_v23 = vadd.f32 %v1912_v62, %v6005_v52  ;;  %v1929_v3 = vadd.f32 %v1913_v55, %v6005_v52  ;;  %v1930_v37 = vadd.f32 %v1914_v28, %v6005_v52  ;;  %v7551_v46 = vld [vmem:[#allocation14_spill] sm:$0xff] }
 0x198   : > { %v7546_v44 = vstv %s5973_s7  ;;  %v1988_v56 = vstv %s6031_s8  ;;  %v1931_v29 = vadd.f32 %v1915_v30, %v6005_v52  ;;  %v1932_v0 = vadd.f32 %v1916_v10, %v6005_v52  ;;  %s6393_s7 = sld [smem:[#allocation4 + $0x201]]  ;;  %s6404_s8 = sld [smem:[#allocation2 + $0x202]] }
 0x199   : > { %v1937_v63 = vmul.f32 %v6084_v21, %v7546_v44  ;;  %v1933_v59 = vadd.f32 %v1917_v61, %v6005_v52  ;;  %v7548_v18 = vmov %v7546_v44  ;;  %v1934_v48 = vadd.f32 %v1918_v19, %v6005_v52 }
 0x19a   : > { %v1938_v17 = vmul.f32 %v6094_v6, %v7548_v18  ;;  %v1989_v2 = vmul.f32 %v1988_v56, %v7549_v8  ;;  %v1990_v39 = vmul.f32 %v1988_v56, %v7550_v14  ;;  %v1991_v62 = vmul.f32 %v1988_v56, %v7551_v46  ;;  %v7552_v18 = vld [vmem:[#allocation19_spill] sm:$0xff] }
 0x19b   : > { %v1941_v20 = vrot.slane %v1937_v63, 1  ;;  %v1942_v38 = vrot.slane %v1937_v63, 2  ;;  %v1943_v51 = vrot.slane %v1937_v63, 3  ;;  %v1944_v55 = vrot.slane %v1937_v63, 4 }
 0x19c   : > { %v1945_v15 = vrot.slane %v1937_v63, 5  ;;  %v1946_v28 = vrot.slane %v1937_v63, 6  ;;  %v1947_v30 = vrot.slane %v1937_v63, 7  ;;  %v1948_v10 = vrot.slane %v1938_v17, 1 }
 0x19d   : > { %v1949_v61 = vrot.slane %v1938_v17, 2  ;;  %v1950_v44 = vrot.slane %v1938_v17, 3  ;;  %v1992_v6 = vmul.f32 %v1988_v56, %v7552_v18  ;;  %v1951_v52 = vrot.slane %v1938_v17, 4 }
 0x19e   : > { %v1952_v19 = vrot.slane %v1938_v17, 5  ;;  %v1953_v8 = vrot.slane %v1938_v17, 6  ;;  %v1954_v21 = vrot.slane %v1938_v17, 7  ;;  %v1971_v14 = vadd.f32 %v1937_v63, %v1919_v11  ;;  %v7553_v11 = vld [vmem:[#allocation20_spill] sm:$0xff]  ;;  %v7559_v63 = vld [vmem:[#allocation9_spill] sm:$0xff] }
 0x19f   : > { %v1972_v45 = vadd.f32 %v1941_v20, %v1920_v22  ;;  %v1973_v47 = vadd.f32 %v1942_v38, %v1921_v34  ;;  %v1974_v7 = vadd.f32 %v1943_v51, %v1922_v26  ;;  %v1975_v40 = vadd.f32 %v1944_v55, %v1923_v41  ;;  %v7554_v34 = vld [vmem:[#allocation23_spill] sm:$0xff]  ;;  %v7563_v38 = vld [vmem:[#allocation17_spill] sm:$0xff] }
 0x1a0   : > { %v1976_v24 = vadd.f32 %v1945_v15, %v1924_v49  ;;  %v1977_v46 = vadd.f32 %v1946_v28, %v1925_v50  ;;  %v1978_v5 = vadd.f32 %v1947_v30, %v1926_v54  ;;  %v1979_v12 = vadd.f32 %v1938_v17, %v1927_v53  ;;  %v7555_v49 = vld [vmem:[#allocation43_spill] sm:$0xff]  ;;  %v7556_v54 = vld [vmem:[#allocation44_spill] sm:$0xff] }
 0x1a1   : > { %v1980_v25 = vadd.f32 %v1948_v10, %v1928_v23  ;;  %v1981_v42 = vadd.f32 %v1949_v61, %v1929_v3  ;;  %v1982_v43 = vadd.f32 %v1950_v44, %v1930_v37  ;;  %v1983_v1 = vadd.f32 %v1951_v52, %v1931_v29  ;;  %v7557_v23 = vld [vmem:[#allocation45_spill] sm:$0xff]  ;;  %v7558_v37 = vld [vmem:[#allocation46_spill] sm:$0xff]  ;;  %v7561_v17 = vld [vmem:[#allocation47_spill] sm:$0xff] }
 0x1a2   : > { %v1984_v58 = vadd.f32 %v1952_v19, %v1932_v0  ;;  %v1985_v36 = vadd.f32 %v1953_v8, %v1933_v59  ;;  %v1986_v18 = vadd.f32 %v1954_v21, %v1934_v48  ;;  %v1993_v22 = vmul.f32 %v1988_v56, %v7553_v11  ;;  %v7560_v0 = vld [vmem:[#allocation10_spill] sm:$0xff]  ;;  %v7562_v8 = vld [vmem:[#allocation48_spill] sm:$0xff] }
 0x1a3   : > { %v1994_v26 = vmul.f32 %v1988_v56, %v7554_v34  ;;  %v1995_v41 = vmul.f32 %v1988_v56, %v5346_v57  ;;  %v1996_v50 = vmul.f32 %v1988_v56, %v7555_v49  ;;  %v1997_v53 = vmul.f32 %v1988_v56, %v7556_v54  ;;  %v7568_v49 = vld [vmem:[#allocation18_spill] sm:$0xff]  ;;  %v7569_v34 = vld [vmem:[#allocation12_spill] sm:$0xff] }
 0x1a4   : > { %v1998_v3 = vmul.f32 %v1988_v56, %v7557_v23  ;;  %v1999_v21 = vmul.f32 %v1988_v56, %v7558_v37  ;;  %v2000_v29 = vmul.f32 %v1988_v56, %v7559_v63  ;;  %v2001_v59 = vmul.f32 %v1988_v56, %v7560_v0  ;;  %v6126_v0 = vld [vmem:[%s4920_s24 + $0x10] sm:$0xff] }
 0x1a5   : > { %v2002_v48 = vmul.f32 %v1988_v56, %v7561_v17  ;;  %v2003_v20 = vmul.f32 %v1988_v56, %v7562_v8  ;;  %v2004_v51 = vmul.f32 %v1988_v56, %v7563_v38  ;;  %v2005_v55 = vadd.f32 %v1989_v2, %v1971_v14  ;;  %7564 = vst [vmem:[#allocation77_spill] sm:$0xff] %v6126_v0 }
 0x1a6   : > { %v2006_v15 = vadd.f32 %v1990_v39, %v1972_v45  ;;  %v2007_v28 = vadd.f32 %v1991_v62, %v1973_v47  ;;  %v2008_v30 = vadd.f32 %v1992_v6, %v1974_v7  ;;  %v2009_v10 = vadd.f32 %v1993_v22, %v1975_v40  ;;  %v6132_v47 = vld [vmem:[%s4920_s24 + $0x18] sm:$0xff] }
 0x1a7   : > { %v2010_v61 = vadd.f32 %v1994_v26, %v1976_v24  ;;  %v2011_v44 = vadd.f32 %v1995_v41, %v1977_v46  ;;  %v2012_v52 = vadd.f32 %v1996_v50, %v1978_v5  ;;  %v2013_v19 = vadd.f32 %v1997_v53, %v1979_v12  ;;  %7566 = vst [vmem:[#allocation78_spill] sm:$0xff] %v6132_v47 }
 0x1a8   : > { %v2014_v17 = vadd.f32 %v1998_v3, %v1980_v25  ;;  %v2015_v8 = vadd.f32 %v1999_v21, %v1981_v42  ;;  %v7565_v56 = vstv %s6045_s9  ;;  %v2016_v14 = vadd.f32 %v2000_v29, %v1982_v43  ;;  %s6423_s9 = sld [smem:[#allocation4 + $0x202]] }
 0x1a9   : > { %v2023_v2 = vmul.f32 %v6126_v0, %v7565_v56  ;;  %v2017_v39 = vadd.f32 %v2001_v59, %v1983_v1  ;;  %v2018_v45 = vadd.f32 %v2002_v48, %v1984_v58  ;;  %v7567_v40 = vmov %v7565_v56 }
 0x1aa   : > { %v2024_v24 = vmul.f32 %v6132_v47, %v7567_v40  ;;  %v2019_v7 = vadd.f32 %v2003_v20, %v1985_v36  ;;  %v2020_v5 = vadd.f32 %v2004_v51, %v1986_v18  ;;  %v2074_v12 = vstv %s6105_s10  ;;  %s6495_s10 = sld [smem:[#allocation2 + $0x203]] }
 0x1ab   : > { %v2027_v6 = vrot.slane %v2023_v2, 1  ;;  %v2028_v42 = vrot.slane %v2023_v2, 2  ;;  %v2029_v46 = vrot.slane %v2023_v2, 3  ;;  %v6140_v62 = vstv %s6113_s12  ;;  %s6507_s12 = sld [smem:[#allocation6 + $0x5]] }
 0x1ac   : > { %v2030_v22 = vrot.slane %v2023_v2, 4  ;;  %v2031_v26 = vrot.slane %v2023_v2, 5  ;;  %v2032_v43 = vrot.slane %v2023_v2, 6  ;;  %v2033_v1 = vrot.slane %v2023_v2, 7 }
 0x1ad   : > { %v2034_v58 = vrot.slane %v2024_v24, 1  ;;  %v2035_v41 = vrot.slane %v2024_v24, 2  ;;  %v2036_v50 = vrot.slane %v2024_v24, 3  ;;  %v2037_v3 = vrot.slane %v2024_v24, 4 }
 0x1ae   : > { %v2038_v21 = vrot.slane %v2024_v24, 5  ;;  %v2039_v29 = vrot.slane %v2024_v24, 6  ;;  %v2040_v36 = vrot.slane %v2024_v24, 7  ;;  %v2057_v18 = vadd.f32 %v2023_v2, %v2005_v55  ;;  %v7570_v55 = vld [vmem:[#allocation21_spill] sm:$0xff] }
 0x1af   : > { %v2058_v59 = vadd.f32 %v2027_v6, %v2006_v15  ;;  %v2059_v48 = vadd.f32 %v2028_v42, %v2007_v28  ;;  %v2060_v20 = vadd.f32 %v2029_v46, %v2008_v30  ;;  %v2061_v51 = vadd.f32 %v2030_v22, %v2009_v10  ;;  %v7571_v28 = vld [vmem:[#allocation22_spill] sm:$0xff]  ;;  %v7572_v10 = vld [vmem:[#allocation24_spill] sm:$0xff]  ;;  %v7576_v42 = vld [vmem:[#allocation13_spill] sm:$0xff] }
 0x1b0   : > { %v2062_v56 = vadd.f32 %v2031_v26, %v2010_v61  ;;  %v2063_v40 = vadd.f32 %v2032_v43, %v2011_v44  ;;  %v2064_v25 = vadd.f32 %v2033_v1, %v2012_v52  ;;  %v2065_v47 = vadd.f32 %v2024_v24, %v2013_v19  ;;  %v7573_v44 = vld [vmem:[#allocation25_spill] sm:$0xff] }
 0x1b1   : > { %v2066_v0 = vadd.f32 %v2034_v58, %v2014_v17  ;;  %v2067_v38 = vadd.f32 %v2035_v41, %v2015_v8  ;;  %v2068_v63 = vadd.f32 %v2036_v50, %v2016_v14  ;;  %v2069_v37 = vadd.f32 %v2037_v3, %v2017_v39  ;;  %v7574_v24 = vld [vmem:[#allocation57_spill] sm:$0xff] }
 0x1b2   : > { %v2070_v23 = vadd.f32 %v2038_v21, %v2018_v45  ;;  %v2071_v54 = vadd.f32 %v2039_v29, %v2019_v7  ;;  %v2072_v53 = vadd.f32 %v2040_v36, %v2020_v5  ;;  %v2075_v57 = vmul.f32 %v2074_v12, %v7568_v49  ;;  %v7575_v5 = vld [vmem:[#allocation58_spill] sm:$0xff] }
 0x1b3   : > { %v2076_v11 = vmul.f32 %v2074_v12, %v7569_v34  ;;  %v2077_v15 = vmul.f32 %v2074_v12, %v7570_v55  ;;  %v2078_v30 = vmul.f32 %v2074_v12, %v7571_v28  ;;  %v2079_v61 = vmul.f32 %v2074_v12, %v7572_v10 }
 0x1b4   : > { %v2080_v52 = vmul.f32 %v2074_v12, %v7573_v44  ;;  %v2081_v17 = vmul.f32 %v2074_v12, %v7432_v16  ;;  %v2082_v8 = vmul.f32 %v2074_v12, %v7433_v35  ;;  %v2083_v19 = vmul.f32 %v2074_v12, %v7434_v60  ;;  %v7585_v35 = vld [vmem:[#allocation63_spill] sm:$0xff]  ;;  %v7586_v44 = vld [vmem:[#allocation64_spill] sm:$0xff] }
 0x1b5   : > { %v2084_v2 = vmul.f32 %v2074_v12, %v7435_v27  ;;  %v2085_v14 = vmul.f32 %v2074_v12, %v7502_v33  ;;  %v2086_v39 = vmul.f32 %v2074_v12, %v7503_v32  ;;  %v2087_v45 = vmul.f32 %v2074_v12, %v7504_v13  ;;  %v6160_v13 = vld [vmem:[%s4920_s24 + $0x20] sm:$0xff] }
 0x1b6   : > { %v2088_v7 = vmul.f32 %v2074_v12, %v7574_v24  ;;  %v2089_v6 = vmul.f32 %v2074_v12, %v7575_v5  ;;  %v2090_v46 = vmul.f32 %v2074_v12, %v7576_v42  ;;  %v2091_v22 = vadd.f32 %v2075_v57, %v2057_v18  ;;  %7577 = vst [vmem:[#allocation79_spill] sm:$0xff] %v6160_v13  ;;  %v6166_v18 = vld [vmem:[%s4920_s24 + $0x28] sm:$0xff] }
 0x1b7   : > { %v2092_v26 = vadd.f32 %v2076_v11, %v2058_v59  ;;  %v2093_v43 = vadd.f32 %v2077_v15, %v2059_v48  ;;  %v2094_v1 = vadd.f32 %v2078_v30, %v2060_v20  ;;  %v2095_v58 = vadd.f32 %v2079_v61, %v2061_v51  ;;  %7579 = vst [vmem:[#allocation80_spill] sm:$0xff] %v6166_v18  ;;  %v7581_v51 = vld [vmem:[#allocation59_spill] sm:$0xff]  ;;  %v7583_v15 = vld [vmem:[#allocation61_spill] sm:$0xff] }
 0x1b8   : > { %v2096_v41 = vadd.f32 %v2080_v52, %v2062_v56  ;;  %v2097_v50 = vadd.f32 %v2081_v17, %v2063_v40  ;;  %v2098_v3 = vadd.f32 %v2082_v8, %v2064_v25  ;;  %v2099_v21 = vadd.f32 %v2083_v19, %v2065_v47 }
 0x1b9   : > { %v2100_v29 = vadd.f32 %v2084_v2, %v2066_v0  ;;  %v2101_v36 = vadd.f32 %v2085_v14, %v2067_v38  ;;  %v7578_v24 = vstv %s6107_s11  ;;  %v2102_v32 = vadd.f32 %v2086_v39, %v2068_v63  ;;  %v7582_v0 = vld [vmem:[#allocation60_spill] sm:$0xff]  ;;  %s6497_s11 = sld [smem:[#allocation4 + $0x203]] }
 0x1ba   : > { %v2109_v5 = vmul.f32 %v6160_v13, %v7578_v24  ;;  %v2103_v12 = vadd.f32 %v2087_v45, %v2069_v37  ;;  %v2104_v57 = vadd.f32 %v2088_v7, %v2070_v23  ;;  %v7580_v11 = vmov %v7578_v24 }
 0x1bb   : > { %v2110_v59 = vmul.f32 %v6166_v18, %v7580_v11  ;;  %v2105_v48 = vadd.f32 %v2089_v6, %v2071_v54  ;;  %v2106_v20 = vadd.f32 %v2090_v46, %v2072_v53  ;;  %v2161_v47 = vmul.f32 %v6140_v62, %v7581_v51  ;;  %v7584_v53 = vld [vmem:[#allocation62_spill] sm:$0xff] }
 0x1bc   : > { %v2162_v38 = vmul.f32 %v6140_v62, %v7582_v0  ;;  %v2113_v25 = vrot.slane %v2109_v5, 1  ;;  %v2114_v56 = vrot.slane %v2109_v5, 2  ;;  %v2115_v40 = vrot.slane %v2109_v5, 3 }
 0x1bd   : > { %v2163_v37 = vmul.f32 %v6140_v62, %v7583_v15  ;;  %v2116_v23 = vrot.slane %v2109_v5, 4  ;;  %v2117_v63 = vrot.slane %v2109_v5, 5  ;;  %v2118_v30 = vrot.slane %v2109_v5, 6 }
 0x1be   : > { %v2119_v61 = vrot.slane %v2109_v5, 7  ;;  %v2120_v52 = vrot.slane %v2110_v59, 1  ;;  %v2121_v17 = vrot.slane %v2110_v59, 2  ;;  %v2122_v54 = vrot.slane %v2110_v59, 3 }
 0x1bf   : > { %v2164_v8 = vmul.f32 %v6140_v62, %v7584_v53  ;;  %v2123_v19 = vrot.slane %v2110_v59, 4  ;;  %v2124_v2 = vrot.slane %v2110_v59, 5  ;;  %v2125_v14 = vrot.slane %v2110_v59, 6 }
 0x1c0   : > { %v2126_v39 = vrot.slane %v2110_v59, 7  ;;  %v2143_v45 = vadd.f32 %v2109_v5, %v2091_v22  ;;  %v2144_v24 = vadd.f32 %v2113_v25, %v2092_v26  ;;  %v2145_v7 = vadd.f32 %v2114_v56, %v2093_v43  ;;  %v7587_v26 = vld [vmem:[#allocation66_spill] sm:$0xff] }
 0x1c1   : > { %v2146_v6 = vadd.f32 %v2115_v40, %v2094_v1  ;;  %v2147_v46 = vadd.f32 %v2116_v23, %v2095_v58  ;;  %v2148_v11 = vadd.f32 %v2117_v63, %v2096_v41  ;;  %v2149_v15 = vadd.f32 %v2118_v30, %v2097_v50  ;;  %v7588_v1 = vld [vmem:[#allocation67_spill] sm:$0xff]  ;;  %v7590_v50 = vld [vmem:[#allocation69_spill] sm:$0xff]  ;;  %v7595_v25 = vld [vmem:[#allocation74_spill] sm:$0xff] }
 0x1c2   : > { %v2150_v0 = vadd.f32 %v2119_v61, %v2098_v3  ;;  %v2151_v51 = vadd.f32 %v2110_v59, %v2099_v21  ;;  %v2152_v18 = vadd.f32 %v2120_v52, %v2100_v29  ;;  %v2153_v13 = vadd.f32 %v2121_v17, %v2101_v36  ;;  %v7591_v21 = vld [vmem:[#allocation70_spill] sm:$0xff]  ;;  %v7592_v36 = vld [vmem:[#allocation71_spill] sm:$0xff] }
 0x1c3   : > { %v2154_v42 = vadd.f32 %v2122_v54, %v2102_v32  ;;  %v2155_v33 = vadd.f32 %v2123_v19, %v2103_v12  ;;  %v2156_v27 = vadd.f32 %v2124_v2, %v2104_v57  ;;  %v2157_v60 = vadd.f32 %v2125_v14, %v2105_v48  ;;  %v7589_v32 = vld [vmem:[#allocation68_spill] sm:$0xff]  ;;  %v7594_v48 = vld [vmem:[#allocation73_spill] sm:$0xff] }
 0x1c4   : > { %v2158_v53 = vadd.f32 %v2126_v39, %v2106_v20  ;;  %v2165_v16 = vmul.f32 %v6140_v62, %v7585_v35  ;;  %v2166_v5 = vmul.f32 %v6140_v62, %v7586_v44  ;;  %v2167_v22 = vmul.f32 %v6140_v62, %v7452_v31  ;;  %v7593_v57 = vld [vmem:[#allocation72_spill] sm:$0xff]  ;;  %v7597_v39 = vld [vmem:[#allocation55_spill] sm:$0xff] }
 0x1c5   : > { %v2168_v43 = vmul.f32 %v6140_v62, %v7587_v26  ;;  %v2169_v58 = vmul.f32 %v6140_v62, %v7588_v1  ;;  %v2170_v41 = vmul.f32 %v6140_v62, %v7589_v32  ;;  %v2171_v3 = vmul.f32 %v6140_v62, %v7590_v50 }
 0x1c6   : > { %v2172_v29 = vmul.f32 %v6140_v62, %v7591_v21  ;;  %v2173_v12 = vmul.f32 %v6140_v62, %v7592_v36  ;;  %v2174_v59 = vmul.f32 %v6140_v62, %v7593_v57  ;;  %v2175_v20 = vmul.f32 %v6140_v62, %v7594_v48  ;;  %v7599_v21 = vld [vmem:[#allocation26_spill] sm:$0xff] }
 0x1c7   : > { %v2176_v56 = vmul.f32 %v6140_v62, %v7595_v25  ;;  %v2177_v40 = vadd.f32 %v2161_v47, %v2143_v45  ;;  %v2178_v23 = vadd.f32 %v2162_v38, %v2144_v24  ;;  %v2179_v63 = vadd.f32 %v2163_v37, %v2145_v7 }
 0x1c8   : > { %v2180_v30 = vadd.f32 %v2164_v8, %v2146_v6  ;;  %v2181_v61 = vadd.f32 %v2165_v16, %v2147_v46  ;;  %v2182_v52 = vadd.f32 %v2166_v5, %v2148_v11  ;;  %v2183_v17 = vadd.f32 %v2167_v22, %v2149_v15 }
 0x1c9   : > { %v2184_v54 = vadd.f32 %v2168_v43, %v2150_v0  ;;  %v2185_v19 = vadd.f32 %v2169_v58, %v2151_v51  ;;  %v2186_v2 = vadd.f32 %v2170_v41, %v2152_v18  ;;  %v7596_v14 = vstv %s6123_s13  ;;  %s6525_s13 = sld [smem:[#allocation2 + $0x280]] }
 0x1ca   : > { %v2195_v36 = vmul.f32 %v7597_v39, %v7596_v14  ;;  %v7598_v57 = vmov %v7596_v14  ;;  %v2187_v48 = vadd.f32 %v2171_v3, %v2153_v13  ;;  %v2188_v32 = vadd.f32 %v2172_v29, %v2154_v42 }
 0x1cb   : > { %v2196_v50 = vmul.f32 %v7599_v21, %v7598_v57  ;;  %v2189_v1 = vadd.f32 %v2173_v12, %v2155_v33  ;;  %v2190_v62 = vadd.f32 %v2174_v59, %v2156_v27  ;;  %v2191_v16 = vadd.f32 %v2175_v20, %v2157_v60 }
 0x1cc   : > { %v2199_v47 = vrot.slane %v2195_v36, 1  ;;  %v2200_v38 = vrot.slane %v2195_v36, 2  ;;  %v2201_v37 = vrot.slane %v2195_v36, 3  ;;  %v2202_v8 = vrot.slane %v2195_v36, 4 }
 0x1cd   : > { %v2203_v45 = vrot.slane %v2195_v36, 5  ;;  %v2204_v15 = vrot.slane %v2195_v36, 6  ;;  %v2206_v0 = vrot.slane %v2196_v50, 1  ;;  %v2205_v51 = vrot.slane %v2195_v36, 7 }
 0x1ce   : > { %v2207_v18 = vrot.slane %v2196_v50, 2  ;;  %v2208_v24 = vrot.slane %v2196_v50, 3  ;;  %v2209_v7 = vrot.slane %v2196_v50, 4  ;;  %v2192_v6 = vadd.f32 %v2176_v56, %v2158_v53 }
 0x1cf   : > { %v2210_v46 = vrot.slane %v2196_v50, 5  ;;  %v2211_v11 = vrot.slane %v2196_v50, 6  ;;  %v2230_v5 = vadd.f32 %v2199_v47, %v2178_v23  ;;  %v2212_v13 = vrot.slane %v2196_v50, 7 }
 0x1d0   : > { %v2231_v42 = vadd.f32 %v2200_v38, %v2179_v63  ;;  %v2232_v33 = vadd.f32 %v2201_v37, %v2180_v30  ;;  %v2233_v27 = vadd.f32 %v2202_v8, %v2181_v61  ;;  %v2229_v22 = vadd.f32 %v2195_v36, %v2177_v40 }
 0x1d1   : > { %v2234_v43 = vadd.f32 %v2203_v45, %v2182_v52  ;;  %v2235_v58 = vadd.f32 %v2204_v15, %v2183_v17  ;;  %v2238_v41 = vadd.f32 %v2206_v0, %v2186_v2  ;;  %v2236_v60 = vadd.f32 %v2205_v51, %v2184_v54 }
 0x1d2   : > { %v2239_v3 = vadd.f32 %v2207_v18, %v2187_v48  ;;  %v2240_v21 = vadd.f32 %v2208_v24, %v2188_v32  ;;  %v2241_v29 = vadd.f32 %v2209_v7, %v2189_v1  ;;  %v2237_v12 = vadd.f32 %v2196_v50, %v2185_v19 }
 0x1d3   : > { %v2242_v57 = vadd.f32 %v2210_v46, %v2190_v62  ;;  %v2243_v59 = vadd.f32 %v2211_v11, %v2191_v16  ;;  %v2246_v20 = vmax.f32 %v2230_v5, 0.0  ;;  %v2244_v53 = vadd.f32 %v2212_v13, %v2192_v6 }
 0x1d4   : > { %v2247_v56 = vmax.f32 %v2231_v42, 0.0  ;;  %v2248_v23 = vmax.f32 %v2232_v33, 0.0  ;;  %v2249_v63 = vmax.f32 %v2233_v27, 0.0  ;;  %v2245_v36 = vmax.f32 %v2229_v22, 0.0 }
 0x1d5   : > { %v2250_v40 = vmax.f32 %v2234_v43, 0.0  ;;  %v2251_v30 = vmax.f32 %v2235_v58, 0.0  ;;  %v2254_v61 = vmax.f32 %v2238_v41, 0.0  ;;  %v2252_v32 = vmax.f32 %v2236_v60, 0.0 }
 0x1d6   : > { %v2255_v1 = vmax.f32 %v2239_v3, 0.0  ;;  %v2256_v50 = vmax.f32 %v2240_v21, 0.0  ;;  %v2257_v48 = vmax.f32 %v2241_v29, 0.0  ;;  %v2253_v52 = vmax.f32 %v2237_v12, 0.0  ;;  %v7600_v21 = vld [vmem:[#allocation27_spill] sm:$0xff]  ;;  %v7601_v12 = vld [vmem:[#allocation28_spill] sm:$0xff] }
 0x1d7   : > { %v2258_v17 = vmax.f32 %v2242_v57, 0.0  ;;  %v2277_v54 = vrot.slane %v2246_v20, 7  ;;  %v2279_v19 = vrot.slane %v2247_v56, 6  ;;  %v2259_v2 = vmax.f32 %v2243_v59, 0.0  ;;  %v7602_v56 = vld [vmem:[#allocation31_spill] sm:$0xff] }
 0x1d8   : > { %v2260_v14 = vmax.f32 %v2244_v53, 0.0  ;;  %v2281_v39 = vrot.slane %v2248_v23, 5  ;;  %v2283_v62 = vrot.slane %v2249_v63, 4  ;;  %v2285_v38 = vrot.slane %v2250_v40, 3 }
 0x1d9   : > { %v2278_v47 = vsel %vm1450_vm1, %v2277_v54, %v2245_v36  ;;  %v2291_v37 = vrot.slane %v2254_v61, 7  ;;  %v2293_v8 = vrot.slane %v2255_v1, 6  ;;  %v2287_v45 = vrot.slane %v2251_v30, 2  ;;  %v7603_v36 = vld [vmem:[#allocation32_spill] sm:$0xff]  ;;  %v7604_v30 = vld [vmem:[#allocation33_spill] sm:$0xff] }
 0x1da   : > { %v2280_v16 = vsel %vm1453_vm2, %v2279_v19, %v2278_v47  ;;  %v2295_v15 = vrot.slane %v2256_v50, 5  ;;  %v2297_v0 = vrot.slane %v2257_v48, 4  ;;  %v2289_v18 = vrot.slane %v2252_v32, 1  ;;  %v7605_v32 = vld [vmem:[#allocation34_spill] sm:$0xff]  ;;  %v7606_v50 = vld [vmem:[#allocation35_spill] sm:$0xff]  ;;  %v7608_v54 = vld [vmem:[#allocation37_spill] sm:$0xff] }
 0x1db   : > { %v2282_v51 = vsel %vm1456_vm3, %v2281_v39, %v2280_v16  ;;  %v2292_v24 = vsel %vm1450_vm1, %v2291_v37, %v2253_v52  ;;  %v2299_v7 = vrot.slane %v2258_v17, 3  ;;  %v2301_v11 = vrot.slane %v2259_v2, 2  ;;  %v7607_v52 = vld [vmem:[#allocation36_spill] sm:$0xff]  ;;  %v7609_v2 = vld [vmem:[#allocation38_spill] sm:$0xff]  ;;  %v7610_v39 = vld [vmem:[#allocation39_spill] sm:$0xff] }
 0x1dc   : > { %v2284_v6 = vsel %vm1459_vm4, %v2283_v62, %v2282_v51  ;;  %v2294_v46 = vsel %vm1453_vm2, %v2293_v8, %v2292_v24  ;;  %v2313_v5 = vstv %s6211_s15  ;;  %v2303_v33 = vrot.slane %v2260_v14, 1  ;;  %v7611_v47 = vld [vmem:[#allocation40_spill] sm:$0xff]  ;;  %v7612_v37 = vld [vmem:[#allocation41_spill] sm:$0xff]  ;;  %v7613_v16 = vld [vmem:[#allocation15_spill] sm:$0xff]  ;;  %s6579_s15 = sld [smem:[#allocation2 + $0x281]] }
 0x1dd   : > { %v2286_v13 = vsel %vm1462_vm5, %v2285_v38, %v2284_v6  ;;  %v2296_v42 = vsel %vm1456_vm3, %v2295_v15, %v2294_v46  ;;  %v2311_v27 = vstv %s6209_s14  ;;  %v2347_v58 = vstv %s6213_s16  ;;  %s6577_s14 = sld [smem:[#allocation4 + $0x280]]  ;;  %s6645_s16 = sld [smem:[#allocation4 + $0x281]] }
 0x1de   : > { %v2288_v22 = vsel %vm1465_vm6, %v2287_v45, %v2286_v13  ;;  %v2298_v43 = vsel %vm1459_vm4, %v2297_v0, %v2296_v42  ;;  %v6231_v41 = vstv %s6215_s18  ;;  %v2314_v29 = vmul.f32 %v2313_v5, %v7600_v21  ;;  %s6647_s18 = sld [smem:[#allocation2 + $0x282]] }
 0x1df   : > { %v2290_v60 = vsel %vm1468_vm7, %v2289_v18, %v2288_v22  ;;  %v2300_v3 = vsel %vm1462_vm5, %v2299_v7, %v2298_v43  ;;  %v2315_v57 = vmul.f32 %v2313_v5, %v7601_v12  ;;  %v2316_v20 = vmul.f32 %v2313_v5, %v7531_v9 }
 0x1e0   : > { %v2302_v59 = vsel %vm1465_vm6, %v2301_v11, %v2300_v3  ;;  %4541 = vst.msk [vmem:[%s5862_s17 + $0x20] sm:$0xff] %vm398_vm0, %v2290_v60  ;;  %v2317_v53 = vmul.f32 %v2313_v5, %v7532_v4  ;;  %v2318_v23 = vmul.f32 %v2313_v5, %v7602_v56  ;;  %v2319_v40 = vmul.f32 %v2313_v5, %v7603_v36 }
 0x1e1   : > { %v2304_v63 = vsel %vm1468_vm7, %v2303_v33, %v2302_v59  ;;  %v2320_v61 = vmul.f32 %v2313_v5, %v7604_v30  ;;  %v2321_v1 = vmul.f32 %v2313_v5, %v7605_v32  ;;  %v2322_v48 = vmul.f32 %v2313_v5, %v7606_v50  ;;  %v7614_v33 = vld [vmem:[#allocation75_spill] sm:$0xff]  ;;  %v7615_v59 = vld [vmem:[#allocation76_spill] sm:$0xff] }
 0x1e2   : > { %4542 = vst.msk [vmem:[%s5862_s17 + $0x28] sm:$0xff] %vm398_vm0, %v2304_v63  ;;  %v2323_v17 = vmul.f32 %v2313_v5, %v7607_v52  ;;  %v2324_v19 = vmul.f32 %v2313_v5, %v7608_v54  ;;  %v2325_v14 = vmul.f32 %v2313_v5, %v7609_v2  ;;  %v2326_v62 = vmul.f32 %v2313_v5, %v7610_v39 }
 0x1e3   : > { %v2327_v38 = vmul.f32 %v2313_v5, %v7611_v47  ;;  %v2328_v8 = vmul.f32 %v2313_v5, %v7612_v37  ;;  %v2329_v45 = vmul.f32 %v2313_v5, %v7613_v16  ;;  %v2330_v15 = vadd.f32 %v2314_v29, %v2311_v27  ;;  %v7616_v29 = vld [vmem:[#allocation16_spill] sm:$0xff] }
 0x1e4   : > { %v2331_v0 = vadd.f32 %v2315_v57, %v2311_v27  ;;  %v2332_v51 = vadd.f32 %v2316_v20, %v2311_v27  ;;  %v2333_v18 = vadd.f32 %v2317_v53, %v2311_v27  ;;  %v2334_v24 = vadd.f32 %v2318_v23, %v2311_v27  ;;  %v7617_v20 = vld [vmem:[#allocation11_spill] sm:$0xff] }
 0x1e5   : > { %v2335_v7 = vadd.f32 %v2319_v40, %v2311_v27  ;;  %v2336_v6 = vadd.f32 %v2320_v61, %v2311_v27  ;;  %v2337_v46 = vadd.f32 %v2321_v1, %v2311_v27  ;;  %v2338_v11 = vadd.f32 %v2322_v48, %v2311_v27  ;;  %v7618_v1 = vld [vmem:[#allocation14_spill] sm:$0xff] }
 0x1e6   : > { %v2339_v13 = vadd.f32 %v2323_v17, %v2311_v27  ;;  %v2340_v42 = vadd.f32 %v2324_v19, %v2311_v27  ;;  %v2348_v22 = vmul.f32 %v7614_v33, %v2347_v58  ;;  %v2341_v43 = vadd.f32 %v2325_v14, %v2311_v27 }
 0x1e7   : > { %v2342_v60 = vadd.f32 %v2326_v62, %v2311_v27  ;;  %v2343_v3 = vadd.f32 %v2327_v38, %v2311_v27  ;;  %v2349_v63 = vmul.f32 %v7615_v59, %v2347_v58  ;;  %v2344_v37 = vadd.f32 %v2328_v8, %v2311_v27 }
 0x1e8   : > { %v2345_v5 = vadd.f32 %v2329_v45, %v2311_v27  ;;  %v2400_v57 = vmul.f32 %v6231_v41, %v7616_v29  ;;  %v2401_v53 = vmul.f32 %v6231_v41, %v7617_v20  ;;  %v2352_v23 = vrot.slane %v2348_v22, 1  ;;  %v7619_v27 = vld [vmem:[#allocation19_spill] sm:$0xff] }
 0x1e9   : > { %v2353_v40 = vrot.slane %v2348_v22, 2  ;;  %v2354_v61 = vrot.slane %v2348_v22, 3  ;;  %v2402_v48 = vmul.f32 %v6231_v41, %v7618_v1  ;;  %v2355_v17 = vrot.slane %v2348_v22, 4 }
 0x1ea   : > { %v2356_v19 = vrot.slane %v2348_v22, 5  ;;  %v2357_v14 = vrot.slane %v2348_v22, 6  ;;  %v2358_v62 = vrot.slane %v2348_v22, 7  ;;  %v2359_v38 = vrot.slane %v2349_v63, 1 }
 0x1eb   : > { %v2360_v58 = vrot.slane %v2349_v63, 2  ;;  %v2361_v8 = vrot.slane %v2349_v63, 3  ;;  %v2403_v45 = vmul.f32 %v6231_v41, %v7619_v27  ;;  %v2362_v33 = vrot.slane %v2349_v63, 4 }
 0x1ec   : > { %v2363_v59 = vrot.slane %v2349_v63, 5  ;;  %v2364_v29 = vrot.slane %v2349_v63, 6  ;;  %v2365_v20 = vrot.slane %v2349_v63, 7  ;;  %v2382_v16 = vadd.f32 %v2348_v22, %v2330_v15  ;;  %v7620_v15 = vld [vmem:[#allocation20_spill] sm:$0xff] }
 0x1ed   : > { %v2383_v47 = vadd.f32 %v2352_v23, %v2331_v0  ;;  %v2384_v39 = vadd.f32 %v2353_v40, %v2332_v51  ;;  %v2385_v2 = vadd.f32 %v2354_v61, %v2333_v18  ;;  %v2386_v54 = vadd.f32 %v2355_v17, %v2334_v24  ;;  %v7621_v51 = vld [vmem:[#allocation23_spill] sm:$0xff]  ;;  %v7622_v24 = vld [vmem:[#allocation42_spill] sm:$0xff]  ;;  %v7630_v23 = vld [vmem:[#allocation48_spill] sm:$0xff] }
 0x1ee   : > { %v2387_v1 = vadd.f32 %v2356_v19, %v2335_v7  ;;  %v2388_v52 = vadd.f32 %v2357_v14, %v2336_v6  ;;  %v2389_v50 = vadd.f32 %v2358_v62, %v2337_v46  ;;  %v2390_v32 = vadd.f32 %v2349_v63, %v2338_v11  ;;  %v7623_v6 = vld [vmem:[#allocation43_spill] sm:$0xff]  ;;  %v7624_v11 = vld [vmem:[#allocation44_spill] sm:$0xff]  ;;  %v7628_v63 = vld [vmem:[#allocation10_spill] sm:$0xff] }
 0x1ef   : > { %v2391_v30 = vadd.f32 %v2359_v38, %v2339_v13  ;;  %v2392_v36 = vadd.f32 %v2360_v58, %v2340_v42  ;;  %v2393_v27 = vadd.f32 %v2361_v8, %v2341_v43  ;;  %v2394_v56 = vadd.f32 %v2362_v33, %v2342_v60  ;;  %v7625_v42 = vld [vmem:[#allocation45_spill] sm:$0xff] }
 0x1f0   : > { %v2395_v4 = vadd.f32 %v2363_v59, %v2343_v3  ;;  %v2396_v9 = vadd.f32 %v2364_v29, %v2344_v37  ;;  %v2397_v12 = vadd.f32 %v2365_v20, %v2345_v5  ;;  %v2404_v0 = vmul.f32 %v6231_v41, %v7620_v15  ;;  %v7626_v37 = vld [vmem:[#allocation46_spill] sm:$0xff]  ;;  %v7627_v60 = vld [vmem:[#allocation9_spill] sm:$0xff]  ;;  %v7629_v29 = vld [vmem:[#allocation47_spill] sm:$0xff] }
 0x1f1   : > { %v2405_v18 = vmul.f32 %v6231_v41, %v7621_v51  ;;  %v2406_v7 = vmul.f32 %v6231_v41, %v7622_v24  ;;  %v2407_v46 = vmul.f32 %v6231_v41, %v7623_v6  ;;  %v2408_v13 = vmul.f32 %v6231_v41, %v7624_v11  ;;  %v7631_v61 = vld [vmem:[#allocation17_spill] sm:$0xff] }
 0x1f2   : > { %v2409_v22 = vmul.f32 %v6231_v41, %v7625_v42  ;;  %v2410_v43 = vmul.f32 %v6231_v41, %v7626_v37  ;;  %v2411_v3 = vmul.f32 %v6231_v41, %v7627_v60  ;;  %v2412_v5 = vmul.f32 %v6231_v41, %v7628_v63  ;;  %v7632_v24 = vld [vmem:[#allocation77_spill] sm:$0xff] }
 0x1f3   : > { %v2413_v20 = vmul.f32 %v6231_v41, %v7629_v29  ;;  %v2414_v40 = vmul.f32 %v6231_v41, %v7630_v23  ;;  %v2415_v17 = vmul.f32 %v6231_v41, %v7631_v61  ;;  %v2416_v19 = vadd.f32 %v2400_v57, %v2382_v16  ;;  %v7633_v16 = vld [vmem:[#allocation78_spill] sm:$0xff] }
 0x1f4   : > { %v2417_v14 = vadd.f32 %v2401_v53, %v2383_v47  ;;  %v2418_v62 = vadd.f32 %v2402_v48, %v2384_v39  ;;  %v2419_v38 = vadd.f32 %v2403_v45, %v2385_v2  ;;  %v2420_v58 = vadd.f32 %v2404_v0, %v2386_v54  ;;  %v7634_v48 = vld [vmem:[#allocation25_spill] sm:$0xff] }
 0x1f5   : > { %v2421_v8 = vadd.f32 %v2405_v18, %v2387_v1  ;;  %v2422_v33 = vadd.f32 %v2406_v7, %v2388_v52  ;;  %v2423_v59 = vadd.f32 %v2407_v46, %v2389_v50  ;;  %v2424_v60 = vadd.f32 %v2408_v13, %v2390_v32 }
 0x1f6   : > { %v2425_v37 = vadd.f32 %v2409_v22, %v2391_v30  ;;  %v2433_v63 = vstv %s6267_s21  ;;  %v2485_v42 = vstv %s6269_s22  ;;  %v2426_v11 = vadd.f32 %v2410_v43, %v2392_v36  ;;  %s6649_s21 = sld [smem:[#allocation4 + $0x282]]  ;;  %s6651_s22 = sld [smem:[#allocation2 + $0x283]] }
 0x1f7   : > { %v2427_v29 = vadd.f32 %v2411_v3, %v2393_v27  ;;  %v2428_v6 = vadd.f32 %v2412_v5, %v2394_v56  ;;  %v2434_v23 = vmul.f32 %v7632_v24, %v2433_v63  ;;  %v2429_v51 = vadd.f32 %v2413_v20, %v2395_v4 }
 0x1f8   : > { %v2430_v15 = vadd.f32 %v2414_v40, %v2396_v9  ;;  %v2431_v41 = vadd.f32 %v2415_v17, %v2397_v12  ;;  %v2435_v47 = vmul.f32 %v7633_v16, %v2433_v63  ;;  %v2486_v2 = vmul.f32 %v2485_v42, %v7568_v49 }
 0x1f9   : > { %v2487_v54 = vmul.f32 %v2485_v42, %v7569_v34  ;;  %v2488_v50 = vmul.f32 %v2485_v42, %v7570_v55  ;;  %v2489_v30 = vmul.f32 %v2485_v42, %v7571_v28  ;;  %v2438_v32 = vrot.slane %v2434_v23, 1 }
 0x1fa   : > { %v2439_v52 = vrot.slane %v2434_v23, 2  ;;  %v2440_v36 = vrot.slane %v2434_v23, 3  ;;  %v2490_v56 = vmul.f32 %v2485_v42, %v7572_v10  ;;  %v2441_v39 = vrot.slane %v2434_v23, 4 }
 0x1fb   : > { %v2442_v57 = vrot.slane %v2434_v23, 5  ;;  %v2443_v4 = vrot.slane %v2434_v23, 6  ;;  %v2444_v9 = vrot.slane %v2434_v23, 7  ;;  %v2445_v12 = vrot.slane %v2435_v47, 1 }
 0x1fc   : > { %v2446_v53 = vrot.slane %v2435_v47, 2  ;;  %v2447_v1 = vrot.slane %v2435_v47, 3  ;;  %v2491_v27 = vmul.f32 %v2485_v42, %v7634_v48  ;;  %v2448_v45 = vrot.slane %v2435_v47, 4 }
 0x1fd   : > { %v2449_v0 = vrot.slane %v2435_v47, 5  ;;  %v2450_v18 = vrot.slane %v2435_v47, 6  ;;  %v2451_v24 = vrot.slane %v2435_v47, 7  ;;  %v2468_v7 = vadd.f32 %v2434_v23, %v2416_v19  ;;  %v7635_v23 = vld [vmem:[#allocation49_spill] sm:$0xff] }
 0x1fe   : > { %v2469_v46 = vadd.f32 %v2438_v32, %v2417_v14  ;;  %v2470_v13 = vadd.f32 %v2439_v52, %v2418_v62  ;;  %v2471_v22 = vadd.f32 %v2440_v36, %v2419_v38  ;;  %v2472_v43 = vadd.f32 %v2441_v39, %v2420_v58  ;;  %v7636_v14 = vld [vmem:[#allocation50_spill] sm:$0xff]  ;;  %v7637_v38 = vld [vmem:[#allocation51_spill] sm:$0xff]  ;;  %v7644_v32 = vld [vmem:[#allocation13_spill] sm:$0xff] }
 0x1ff   : > { %v2473_v3 = vadd.f32 %v2442_v57, %v2421_v8  ;;  %v2474_v63 = vadd.f32 %v2443_v4, %v2422_v33  ;;  %v2475_v5 = vadd.f32 %v2444_v9, %v2423_v59  ;;  %v2476_v20 = vadd.f32 %v2435_v47, %v2424_v60  ;;  %v7638_v8 = vld [vmem:[#allocation52_spill] sm:$0xff]  ;;  %v7639_v60 = vld [vmem:[#allocation53_spill] sm:$0xff] }
 0x200   : > { %v2477_v40 = vadd.f32 %v2445_v12, %v2425_v37  ;;  %v2478_v17 = vadd.f32 %v2446_v53, %v2426_v11  ;;  %v2479_v16 = vadd.f32 %v2447_v1, %v2427_v29  ;;  %v2480_v48 = vadd.f32 %v2448_v45, %v2428_v6  ;;  %v7640_v11 = vld [vmem:[#allocation54_spill] sm:$0xff]  ;;  %v7641_v6 = vld [vmem:[#allocation56_spill] sm:$0xff] }
 0x201   : > { %v2481_v10 = vadd.f32 %v2449_v0, %v2429_v51  ;;  %v2482_v28 = vadd.f32 %v2450_v18, %v2430_v15  ;;  %v2483_v55 = vadd.f32 %v2451_v24, %v2431_v41  ;;  %v2492_v19 = vmul.f32 %v2485_v42, %v7635_v23  ;;  %v7642_v15 = vld [vmem:[#allocation57_spill] sm:$0xff]  ;;  %v7643_v41 = vld [vmem:[#allocation58_spill] sm:$0xff] }
 0x202   : > { %v2493_v62 = vmul.f32 %v2485_v42, %v7636_v14  ;;  %v2494_v58 = vmul.f32 %v2485_v42, %v7637_v38  ;;  %v2495_v33 = vmul.f32 %v2485_v42, %v7638_v8  ;;  %v2496_v37 = vmul.f32 %v2485_v42, %v7639_v60 }
 0x203   : > { %v2497_v29 = vmul.f32 %v2485_v42, %v7640_v11  ;;  %v2498_v51 = vmul.f32 %v2485_v42, %v7641_v6  ;;  %v2499_v59 = vmul.f32 %v2485_v42, %v7642_v15  ;;  %v2500_v47 = vmul.f32 %v2485_v42, %v7643_v41 }
 0x204   : > { %v2501_v52 = vmul.f32 %v2485_v42, %v7644_v32  ;;  %v2502_v36 = vadd.f32 %v2486_v2, %v2468_v7  ;;  %v2503_v39 = vadd.f32 %v2487_v54, %v2469_v46  ;;  %v2504_v57 = vadd.f32 %v2488_v50, %v2470_v13  ;;  %v7645_v42 = vld [vmem:[#allocation79_spill] sm:$0xff]  ;;  %v7646_v50 = vld [vmem:[#allocation80_spill] sm:$0xff] }
 0x205   : > { %v2505_v4 = vadd.f32 %v2489_v30, %v2471_v22  ;;  %v2506_v9 = vadd.f32 %v2490_v56, %v2472_v43  ;;  %v2507_v12 = vadd.f32 %v2491_v27, %v2473_v3  ;;  %v2508_v53 = vadd.f32 %v2492_v19, %v2474_v63  ;;  %v7647_v27 = vld [vmem:[#allocation59_spill] sm:$0xff]  ;;  %v7648_v13 = vld [vmem:[#allocation60_spill] sm:$0xff]  ;;  %v7649_v43 = vld [vmem:[#allocation61_spill] sm:$0xff] }
 0x206   : > { %v2509_v1 = vadd.f32 %v2493_v62, %v2475_v5  ;;  %v2510_v45 = vadd.f32 %v2494_v58, %v2476_v20  ;;  %v2511_v0 = vadd.f32 %v2495_v33, %v2477_v40  ;;  %v2512_v18 = vadd.f32 %v2496_v37, %v2478_v17  ;;  %v7650_v63 = vld [vmem:[#allocation62_spill] sm:$0xff] }
 0x207   : > { %v2513_v24 = vadd.f32 %v2497_v29, %v2479_v16  ;;  %v2519_v15 = vstv %s6305_s23  ;;  %v2571_v6 = vstv %s6307_s26  ;;  %v2514_v11 = vadd.f32 %v2498_v51, %v2480_v48  ;;  %s6705_s23 = sld [smem:[#allocation4 + $0x283]]  ;;  %s6707_s26 = sld [smem:[#allocation6 + $0x6]] }
 0x208   : > { %v2515_v41 = vadd.f32 %v2499_v59, %v2481_v10  ;;  %v2516_v60 = vadd.f32 %v2500_v47, %v2482_v28  ;;  %v2520_v2 = vmul.f32 %v7645_v42, %v2519_v15  ;;  %v2517_v54 = vadd.f32 %v2501_v52, %v2483_v55 }
 0x209   : > { %v2521_v30 = vmul.f32 %v7646_v50, %v2519_v15  ;;  %v6329_v7 = vstv %s6311_s25  ;;  %v2572_v46 = vmul.f32 %v2571_v6, %v7647_v27  ;;  %v2573_v22 = vmul.f32 %v2571_v6, %v7648_v13  ;;  %s6711_s25 = sld [smem:[#allocation4 + $0x300]] }
 0x20a   : > { %v2574_v3 = vmul.f32 %v2571_v6, %v7649_v43  ;;  %v2575_v5 = vmul.f32 %v2571_v6, %v7650_v63  ;;  %v2524_v20 = vrot.slane %v2520_v2, 1  ;;  %v2525_v48 = vrot.slane %v2520_v2, 2 }
 0x20b   : > { %v2526_v10 = vrot.slane %v2520_v2, 3  ;;  %v2576_v28 = vmul.f32 %v2571_v6, %v7585_v35  ;;  %v2527_v40 = vrot.slane %v2520_v2, 4  ;;  %v2528_v55 = vrot.slane %v2520_v2, 5 }
 0x20c   : > { %v2529_v17 = vrot.slane %v2520_v2, 6  ;;  %v2530_v16 = vrot.slane %v2520_v2, 7  ;;  %v2531_v19 = vrot.slane %v2521_v30, 1  ;;  %v2532_v62 = vrot.slane %v2521_v30, 2 }
 0x20d   : > { %v2533_v58 = vrot.slane %v2521_v30, 3  ;;  %v2577_v33 = vmul.f32 %v2571_v6, %v7586_v44  ;;  %v2534_v37 = vrot.slane %v2521_v30, 4  ;;  %v2535_v29 = vrot.slane %v2521_v30, 5 }
 0x20e   : > { %v2536_v51 = vrot.slane %v2521_v30, 6  ;;  %v2537_v15 = vrot.slane %v2521_v30, 7  ;;  %v2554_v59 = vadd.f32 %v2520_v2, %v2502_v36  ;;  %v2555_v47 = vadd.f32 %v2524_v20, %v2503_v39  ;;  %v7651_v36 = vld [vmem:[#allocation67_spill] sm:$0xff] }
 0x20f   : > { %v2556_v52 = vadd.f32 %v2525_v48, %v2504_v57  ;;  %v2557_v42 = vadd.f32 %v2526_v10, %v2505_v4  ;;  %v2558_v50 = vadd.f32 %v2527_v40, %v2506_v9  ;;  %v2559_v56 = vadd.f32 %v2528_v55, %v2507_v12  ;;  %v7652_v57 = vld [vmem:[#allocation68_spill] sm:$0xff]  ;;  %v7653_v9 = vld [vmem:[#allocation69_spill] sm:$0xff] }
 0x210   : > { %v2560_v35 = vadd.f32 %v2529_v17, %v2508_v53  ;;  %v2561_v63 = vadd.f32 %v2530_v16, %v2509_v1  ;;  %v2562_v43 = vadd.f32 %v2521_v30, %v2510_v45  ;;  %v2563_v13 = vadd.f32 %v2531_v19, %v2511_v0  ;;  %v7654_v53 = vld [vmem:[#allocation70_spill] sm:$0xff]  ;;  %v7655_v45 = vld [vmem:[#allocation71_spill] sm:$0xff] }
 0x211   : > { %v2564_v27 = vadd.f32 %v2532_v62, %v2512_v18  ;;  %v2565_v32 = vadd.f32 %v2533_v58, %v2513_v24  ;;  %v2566_v8 = vadd.f32 %v2534_v37, %v2514_v11  ;;  %v2567_v38 = vadd.f32 %v2535_v29, %v2515_v41  ;;  %v7656_v11 = vld [vmem:[#allocation72_spill] sm:$0xff]  ;;  %v6352_v58 = vld [vmem:[%s4920_s24 + $0x30] sm:$0xff] }
 0x212   : > { %v2568_v14 = vadd.f32 %v2536_v51, %v2516_v60  ;;  %v2569_v44 = vadd.f32 %v2537_v15, %v2517_v54  ;;  %v2578_v23 = vmul.f32 %v2571_v6, %v7452_v31  ;;  %v2579_v34 = vmul.f32 %v2571_v6, %v7587_v26  ;;  %v7657_v60 = vld [vmem:[#allocation73_spill] sm:$0xff]  ;;  %7658 = vst [vmem:[#allocation55_spill] sm:$0xff] %v6352_v58  ;;  %v6358_v37 = vld [vmem:[%s4920_s24 + $0x38] sm:$0xff] }
 0x213   : > { %v2580_v39 = vmul.f32 %v2571_v6, %v7651_v36  ;;  %v2581_v4 = vmul.f32 %v2571_v6, %v7652_v57  ;;  %v2582_v12 = vmul.f32 %v2571_v6, %v7653_v9  ;;  %v2583_v1 = vmul.f32 %v2571_v6, %v7654_v53  ;;  %7660 = vst [vmem:[#allocation26_spill] sm:$0xff] %v6358_v37 }
 0x214   : > { %v2584_v0 = vmul.f32 %v2571_v6, %v7655_v45  ;;  %v2585_v41 = vmul.f32 %v2571_v6, %v7656_v11  ;;  %v2586_v18 = vmul.f32 %v2571_v6, %v7657_v60  ;;  %v2587_v24 = vmul.f32 %v2571_v6, %v7595_v25 }
 0x215   : > { %v2588_v2 = vadd.f32 %v2572_v46, %v2554_v59  ;;  %v2589_v54 = vadd.f32 %v2573_v22, %v2555_v47  ;;  %v2590_v30 = vadd.f32 %v2574_v3, %v2556_v52  ;;  %v2591_v20 = vadd.f32 %v2575_v5, %v2557_v42 }
 0x216   : > { %v2592_v48 = vadd.f32 %v2576_v28, %v2558_v50  ;;  %v2593_v10 = vadd.f32 %v2577_v33, %v2559_v56  ;;  %v2594_v40 = vadd.f32 %v2578_v23, %v2560_v35  ;;  %v2595_v55 = vadd.f32 %v2579_v34, %v2561_v63 }
 0x217   : > { %v2596_v17 = vadd.f32 %v2580_v39, %v2562_v43  ;;  %v2597_v16 = vadd.f32 %v2581_v4, %v2563_v13  ;;  %v2598_v19 = vadd.f32 %v2582_v12, %v2564_v27  ;;  %v2599_v62 = vadd.f32 %v2583_v1, %v2565_v32 }
 0x218   : > { %v7659_v6 = vstv %s6309_s28  ;;  %v2600_v5 = vadd.f32 %v2584_v0, %v2566_v8  ;;  %v2601_v28 = vadd.f32 %v2585_v41, %v2567_v38  ;;  %v2602_v56 = vadd.f32 %v2586_v18, %v2568_v14  ;;  %s6709_s28 = sld [smem:[#allocation2 + $0x300]] }
 0x219   : > { %v2606_v46 = vmul.f32 %v6352_v58, %v7659_v6  ;;  %v7661_v22 = vmov %v7659_v6  ;;  %v2603_v35 = vadd.f32 %v2587_v24, %v2569_v44  ;;  %v6364_v33 = vstv %s6341_s29  ;;  %s6769_s29 = sld [smem:[#allocation2 + $0x301]] }
 0x21a   : > { %v2607_v3 = vmul.f32 %v6358_v37, %v7661_v22 }
 0x21b   : > { %v2610_v34 = vrot.slane %v2606_v46, 1  ;;  %v2611_v23 = vrot.slane %v2606_v46, 2  ;;  %v2612_v27 = vrot.slane %v2606_v46, 3  ;;  %v2613_v32 = vrot.slane %v2606_v46, 4 }
 0x21c   : > { %v2614_v13 = vrot.slane %v2606_v46, 5  ;;  %v2615_v43 = vrot.slane %v2606_v46, 6  ;;  %v2617_v63 = vrot.slane %v2607_v3, 1  ;;  %v2616_v29 = vrot.slane %v2606_v46, 7 }
 0x21d   : > { %v2618_v51 = vrot.slane %v2607_v3, 2  ;;  %v2619_v15 = vrot.slane %v2607_v3, 3  ;;  %v2620_v59 = vrot.slane %v2607_v3, 4  ;;  %v2621_v47 = vrot.slane %v2607_v3, 5 }
 0x21e   : > { %v2622_v52 = vrot.slane %v2607_v3, 6  ;;  %v2641_v8 = vadd.f32 %v2610_v34, %v2589_v54  ;;  %v2623_v14 = vrot.slane %v2607_v3, 7  ;;  %v2642_v44 = vadd.f32 %v2611_v23, %v2590_v30 }
 0x21f   : > { %v2643_v42 = vadd.f32 %v2612_v27, %v2591_v20  ;;  %v2644_v50 = vadd.f32 %v2613_v32, %v2592_v48  ;;  %v2640_v39 = vadd.f32 %v2606_v46, %v2588_v2  ;;  %v2645_v4 = vadd.f32 %v2614_v13, %v2593_v10 }
 0x220   : > { %v2646_v12 = vadd.f32 %v2615_v43, %v2594_v40  ;;  %v2649_v1 = vadd.f32 %v2617_v63, %v2597_v16  ;;  %v2647_v0 = vadd.f32 %v2616_v29, %v2595_v55  ;;  %v2650_v41 = vadd.f32 %v2618_v51, %v2598_v19 }
 0x221   : > { %v2651_v18 = vadd.f32 %v2619_v15, %v2599_v62  ;;  %v2652_v24 = vadd.f32 %v2620_v59, %v2600_v5  ;;  %v2648_v6 = vadd.f32 %v2607_v3, %v2596_v17  ;;  %v2653_v22 = vadd.f32 %v2621_v47, %v2601_v28 }
 0x222   : > { %v2654_v37 = vadd.f32 %v2622_v52, %v2602_v56  ;;  %v2657_v58 = vmax.f32 %v2641_v8, 0.0  ;;  %v2655_v25 = vadd.f32 %v2623_v14, %v2603_v35  ;;  %v2658_v60 = vmax.f32 %v2642_v44, 0.0 }
 0x223   : > { %v2659_v54 = vmax.f32 %v2643_v42, 0.0  ;;  %v2660_v34 = vmax.f32 %v2644_v50, 0.0  ;;  %v2656_v38 = vmax.f32 %v2640_v39, 0.0  ;;  %v2661_v30 = vmax.f32 %v2645_v4, 0.0  ;;  %v7663_v50 = vld [vmem:[#allocation29_spill] sm:$0xff]  ;;  %v7664_v4 = vld [vmem:[#allocation30_spill] sm:$0xff] }
 0x224   : > { %v2662_v20 = vmax.f32 %v2646_v12, 0.0  ;;  %v2665_v48 = vmax.f32 %v2649_v1, 0.0  ;;  %v2663_v2 = vmax.f32 %v2647_v0, 0.0  ;;  %v2666_v10 = vmax.f32 %v2650_v41, 0.0  ;;  %v7665_v41 = vld [vmem:[#allocation31_spill] sm:$0xff] }
 0x225   : > { %v2667_v40 = vmax.f32 %v2651_v18, 0.0  ;;  %v2668_v16 = vmax.f32 %v2652_v24, 0.0  ;;  %v2664_v55 = vmax.f32 %v2648_v6, 0.0  ;;  %v2669_v19 = vmax.f32 %v2653_v22, 0.0  ;;  %v7666_v24 = vld [vmem:[#allocation32_spill] sm:$0xff] }
 0x226   : > { %v2688_v62 = vrot.slane %v2657_v58, 7  ;;  %v2690_v46 = vrot.slane %v2658_v60, 6  ;;  %v2670_v17 = vmax.f32 %v2654_v37, 0.0  ;;  %v2671_v3 = vmax.f32 %v2655_v25, 0.0 }
 0x227   : > { %v2692_v5 = vrot.slane %v2659_v54, 5  ;;  %v2694_v28 = vrot.slane %v2660_v34, 4  ;;  %v2696_v35 = vrot.slane %v2661_v30, 3  ;;  %v2702_v23 = vrot.slane %v2665_v48, 7  ;;  %v7667_v54 = vld [vmem:[#allocation33_spill] sm:$0xff]  ;;  %v7668_v30 = vld [vmem:[#allocation34_spill] sm:$0xff] }
 0x228   : > { %v2689_v56 = vsel %vm1450_vm1, %v2688_v62, %v2656_v38  ;;  %v2704_v27 = vrot.slane %v2666_v10, 6  ;;  %v2698_v13 = vrot.slane %v2662_v20, 2  ;;  %v2706_v43 = vrot.slane %v2667_v40, 5  ;;  %v7662_v38 = vld [vmem:[#allocation28_spill] sm:$0xff]  ;;  %v7669_v48 = vld [vmem:[#allocation35_spill] sm:$0xff]  ;;  %v7672_v62 = vld [vmem:[#allocation38_spill] sm:$0xff] }
 0x229   : > { %v2691_v32 = vsel %vm1453_vm2, %v2690_v46, %v2689_v56  ;;  %v2708_v63 = vrot.slane %v2668_v16, 4  ;;  %v2700_v51 = vrot.slane %v2663_v2, 1  ;;  %v2703_v58 = vsel %vm1450_vm1, %v2702_v23, %v2664_v55  ;;  %v7670_v40 = vld [vmem:[#allocation36_spill] sm:$0xff]  ;;  %v7671_v55 = vld [vmem:[#allocation37_spill] sm:$0xff]  ;;  %v7676_v23 = vld [vmem:[#allocation15_spill] sm:$0xff] }
 0x22a   : > { %v2693_v29 = vsel %vm1456_vm3, %v2692_v5, %v2691_v32  ;;  %v2710_v60 = vrot.slane %v2669_v19, 3  ;;  %v2705_v37 = vsel %vm1453_vm2, %v2704_v27, %v2703_v58  ;;  %v2712_v15 = vrot.slane %v2670_v17, 2  ;;  %v7673_v17 = vld [vmem:[#allocation39_spill] sm:$0xff]  ;;  %v7674_v5 = vld [vmem:[#allocation40_spill] sm:$0xff]  ;;  %v7675_v56 = vld [vmem:[#allocation41_spill] sm:$0xff] }
 0x22b   : > { %v2695_v25 = vsel %vm1459_vm4, %v2694_v28, %v2693_v29  ;;  %v2725_v59 = vmul.f32 %v6364_v33, %v7600_v21  ;;  %v2707_v52 = vsel %vm1456_vm3, %v2706_v43, %v2705_v37  ;;  %v2714_v8 = vrot.slane %v2671_v3, 1 }
 0x22c   : > { %v2697_v47 = vsel %vm1462_vm5, %v2696_v35, %v2695_v25  ;;  %v2726_v14 = vmul.f32 %v6364_v33, %v7662_v38  ;;  %v2709_v42 = vsel %vm1459_vm4, %v2708_v63, %v2707_v52  ;;  %v2727_v39 = vmul.f32 %v6364_v33, %v7663_v50  ;;  %v7682_v38 = vld [vmem:[#allocation11_spill] sm:$0xff] }
 0x22d   : > { %v2699_v44 = vsel %vm1465_vm6, %v2698_v13, %v2697_v47  ;;  %v2728_v12 = vmul.f32 %v6364_v33, %v7664_v4  ;;  %v2711_v0 = vsel %vm1462_vm5, %v2710_v60, %v2709_v42  ;;  %v2729_v18 = vmul.f32 %v6364_v33, %v7665_v41  ;;  %v7681_v4 = vld [vmem:[#allocation16_spill] sm:$0xff] }
 0x22e   : > { %v2701_v1 = vsel %vm1468_vm7, %v2700_v51, %v2699_v44  ;;  %v2730_v6 = vmul.f32 %v6364_v33, %v7666_v24  ;;  %v2713_v22 = vsel %vm1465_vm6, %v2712_v15, %v2711_v0  ;;  %v2731_v34 = vmul.f32 %v6364_v33, %v7667_v54  ;;  %v6437_v15 = vld [vmem:[%s4920_s24] sm:$0xff]  ;;  %v6446_v44 = vld [vmem:[%s4920_s24 + $0x8] sm:$0xff] }
 0x22f   : > { %4552 = vst.msk [vmem:[%s5862_s17 + $0x30] sm:$0xff] %vm398_vm0, %v2701_v1  ;;  %v2732_v20 = vmul.f32 %v6364_v33, %v7668_v30  ;;  %v2733_v2 = vmul.f32 %v6364_v33, %v7669_v48  ;;  %v2715_v10 = vsel %vm1468_vm7, %v2714_v8, %v2713_v22  ;;  %v2734_v16 = vmul.f32 %v6364_v33, %v7670_v40 }
 0x230   : > { %v2735_v19 = vmul.f32 %v6364_v33, %v7671_v55  ;;  %v2736_v46 = vmul.f32 %v6364_v33, %v7672_v62  ;;  %4553 = vst.msk [vmem:[%s5862_s17 + $0x38] sm:$0xff] %vm398_vm0, %v2715_v10  ;;  %v2737_v3 = vmul.f32 %v6364_v33, %v7673_v17  ;;  %v2738_v28 = vmul.f32 %v6364_v33, %v7674_v5 }
 0x231   : > { %v2739_v35 = vmul.f32 %v6364_v33, %v7675_v56  ;;  %v2740_v27 = vmul.f32 %v6364_v33, %v7676_v23  ;;  %v2741_v32 = vadd.f32 %v2725_v59, %v6329_v7  ;;  %v2742_v13 = vadd.f32 %v2726_v14, %v6329_v7  ;;  %7677 = vst [vmem:[#allocation75_spill] sm:$0xff] %v6437_v15 }
 0x232   : > { %v2743_v43 = vadd.f32 %v2727_v39, %v6329_v7  ;;  %v2744_v63 = vadd.f32 %v2728_v12, %v6329_v7  ;;  %v2745_v29 = vadd.f32 %v2729_v18, %v6329_v7  ;;  %v2746_v51 = vadd.f32 %v2730_v6, %v6329_v7  ;;  %7679 = vst [vmem:[#allocation76_spill] sm:$0xff] %v6446_v44 }
 0x233   : > { %v2747_v33 = vadd.f32 %v2731_v34, %v6329_v7  ;;  %v2748_v58 = vadd.f32 %v2732_v20, %v6329_v7  ;;  %v2749_v60 = vadd.f32 %v2733_v2, %v6329_v7  ;;  %v2750_v25 = vadd.f32 %v2734_v16, %v6329_v7 }
 0x234   : > { %v2751_v37 = vadd.f32 %v2735_v19, %v6329_v7  ;;  %v7678_v59 = vstv %s6349_s30  ;;  %v2752_v52 = vadd.f32 %v2736_v46, %v6329_v7  ;;  %v2753_v8 = vadd.f32 %v2737_v3, %v6329_v7  ;;  %s6783_s30 = sld [smem:[#allocation4 + $0x301]] }
 0x235   : > { %v2759_v47 = vmul.f32 %v6437_v15, %v7678_v59  ;;  %v2754_v14 = vadd.f32 %v2738_v28, %v6329_v7  ;;  %v7680_v42 = vmov %v7678_v59  ;;  %v2755_v12 = vadd.f32 %v2739_v35, %v6329_v7 }
 0x236   : > { %v2760_v39 = vmul.f32 %v6446_v44, %v7680_v42  ;;  %v2756_v1 = vadd.f32 %v2740_v27, %v6329_v7  ;;  %v2810_v0 = vstv %s6391_s6  ;;  %v6456_v20 = vstv %s6404_s8  ;;  %s6843_s6 = sld [smem:[#allocation2 + $0x302]]  ;;  %s6851_s8 = sld [smem:[#allocation2 + $0x303]] }
 0x237   : > { %v2763_v6 = vrot.slane %v2759_v47, 1  ;;  %v2764_v22 = vrot.slane %v2759_v47, 2  ;;  %v2765_v34 = vrot.slane %v2759_v47, 3  ;;  %v2766_v2 = vrot.slane %v2759_v47, 4 }
 0x238   : > { %v2767_v10 = vrot.slane %v2759_v47, 5  ;;  %v2768_v16 = vrot.slane %v2759_v47, 6  ;;  %v2769_v19 = vrot.slane %v2759_v47, 7  ;;  %v2770_v46 = vrot.slane %v2760_v39, 1 }
 0x239   : > { %v2771_v3 = vrot.slane %v2760_v39, 2  ;;  %v2772_v28 = vrot.slane %v2760_v39, 3  ;;  %v2773_v42 = vrot.slane %v2760_v39, 4  ;;  %v2774_v44 = vrot.slane %v2760_v39, 5 }
 0x23a   : > { %v2775_v35 = vrot.slane %v2760_v39, 6  ;;  %v2776_v15 = vrot.slane %v2760_v39, 7  ;;  %v2793_v7 = vadd.f32 %v2759_v47, %v2741_v32  ;;  %v2794_v27 = vadd.f32 %v2763_v6, %v2742_v13  ;;  %v7683_v32 = vld [vmem:[#allocation14_spill] sm:$0xff] }
 0x23b   : > { %v2795_v18 = vadd.f32 %v2764_v22, %v2743_v43  ;;  %v2796_v23 = vadd.f32 %v2765_v34, %v2744_v63  ;;  %v2797_v56 = vadd.f32 %v2766_v2, %v2745_v29  ;;  %v2798_v5 = vadd.f32 %v2767_v10, %v2746_v51  ;;  %v7684_v43 = vld [vmem:[#allocation19_spill] sm:$0xff]  ;;  %v7685_v29 = vld [vmem:[#allocation20_spill] sm:$0xff]  ;;  %v7693_v6 = vld [vmem:[#allocation10_spill] sm:$0xff] }
 0x23c   : > { %v2799_v17 = vadd.f32 %v2768_v16, %v2747_v33  ;;  %v2800_v62 = vadd.f32 %v2769_v19, %v2748_v58  ;;  %v2801_v55 = vadd.f32 %v2760_v39, %v2749_v60  ;;  %v2802_v40 = vadd.f32 %v2770_v46, %v2750_v25  ;;  %v7686_v33 = vld [vmem:[#allocation23_spill] sm:$0xff]  ;;  %v7687_v60 = vld [vmem:[#allocation42_spill] sm:$0xff]  ;;  %v7695_v10 = vld [vmem:[#allocation48_spill] sm:$0xff] }
 0x23d   : > { %v2803_v48 = vadd.f32 %v2771_v3, %v2751_v37  ;;  %v2804_v30 = vadd.f32 %v2772_v28, %v2752_v52  ;;  %v2805_v54 = vadd.f32 %v2773_v42, %v2753_v8  ;;  %v2806_v24 = vadd.f32 %v2774_v44, %v2754_v14  ;;  %v7688_v37 = vld [vmem:[#allocation43_spill] sm:$0xff]  ;;  %v7689_v52 = vld [vmem:[#allocation44_spill] sm:$0xff]  ;;  %v7690_v14 = vld [vmem:[#allocation45_spill] sm:$0xff] }
 0x23e   : > { %v2807_v41 = vadd.f32 %v2775_v35, %v2755_v12  ;;  %v2808_v59 = vadd.f32 %v2776_v15, %v2756_v1  ;;  %v2811_v50 = vmul.f32 %v2810_v0, %v7681_v4  ;;  %v2812_v21 = vmul.f32 %v2810_v0, %v7682_v38  ;;  %v7691_v44 = vld [vmem:[#allocation46_spill] sm:$0xff]  ;;  %v7692_v12 = vld [vmem:[#allocation9_spill] sm:$0xff]  ;;  %v7694_v34 = vld [vmem:[#allocation47_spill] sm:$0xff] }
 0x23f   : > { %v2813_v13 = vmul.f32 %v2810_v0, %v7683_v32  ;;  %v2814_v63 = vmul.f32 %v2810_v0, %v7684_v43  ;;  %v2815_v51 = vmul.f32 %v2810_v0, %v7685_v29  ;;  %v2816_v58 = vmul.f32 %v2810_v0, %v7686_v33  ;;  %v7720_v38 = vld [vmem:[#allocation60_spill] sm:$0xff] }
 0x240   : > { %v2817_v25 = vmul.f32 %v2810_v0, %v7687_v60  ;;  %v2818_v47 = vmul.f32 %v2810_v0, %v7688_v37  ;;  %v2819_v8 = vmul.f32 %v2810_v0, %v7689_v52  ;;  %v2820_v15 = vmul.f32 %v2810_v0, %v7690_v14  ;;  %v6476_v60 = vld [vmem:[%s4920_s24 + $0x10] sm:$0xff] }
 0x241   : > { %v2821_v39 = vmul.f32 %v2810_v0, %v7691_v44  ;;  %v2822_v1 = vmul.f32 %v2810_v0, %v7692_v12  ;;  %v2823_v22 = vmul.f32 %v2810_v0, %v7693_v6  ;;  %v2824_v2 = vmul.f32 %v2810_v0, %v7694_v34  ;;  %7696 = vst [vmem:[#allocation77_spill] sm:$0xff] %v6476_v60 }
 0x242   : > { %v2825_v16 = vmul.f32 %v2810_v0, %v7695_v10  ;;  %v2826_v19 = vmul.f32 %v2810_v0, %v7631_v61  ;;  %v2827_v46 = vadd.f32 %v2811_v50, %v2793_v7  ;;  %v2828_v3 = vadd.f32 %v2812_v21, %v2794_v27  ;;  %v6482_v7 = vld [vmem:[%s4920_s24 + $0x18] sm:$0xff]  ;;  %v7701_v27 = vld [vmem:[#allocation21_spill] sm:$0xff] }
 0x243   : > { %v2829_v28 = vadd.f32 %v2813_v13, %v2795_v18  ;;  %v2830_v42 = vadd.f32 %v2814_v63, %v2796_v23  ;;  %v2831_v35 = vadd.f32 %v2815_v51, %v2797_v56  ;;  %v2832_v44 = vadd.f32 %v2816_v58, %v2798_v5  ;;  %7698 = vst [vmem:[#allocation78_spill] sm:$0xff] %v6482_v7 }
 0x244   : > { %v2833_v14 = vadd.f32 %v2817_v25, %v2799_v17  ;;  %v2834_v12 = vadd.f32 %v2818_v47, %v2800_v62  ;;  %v2835_v52 = vadd.f32 %v2819_v8, %v2801_v55  ;;  %v2836_v37 = vadd.f32 %v2820_v15, %v2802_v40  ;;  %v7700_v40 = vld [vmem:[#allocation12_spill] sm:$0xff] }
 0x245   : > { %v2837_v6 = vadd.f32 %v2821_v39, %v2803_v48  ;;  %v7697_v34 = vstv %s6393_s7  ;;  %v2838_v33 = vadd.f32 %v2822_v1, %v2804_v30  ;;  %v2839_v0 = vadd.f32 %v2823_v22, %v2805_v54  ;;  %s6845_s7 = sld [smem:[#allocation4 + $0x302]] }
 0x246   : > { %v2845_v10 = vmul.f32 %v6476_v60, %v7697_v34  ;;  %v2840_v50 = vadd.f32 %v2824_v2, %v2806_v24  ;;  %v7699_v21 = vmov %v7697_v34  ;;  %v2841_v56 = vadd.f32 %v2825_v16, %v2807_v41 }
 0x247   : > { %v2846_v23 = vmul.f32 %v6482_v7, %v7699_v21  ;;  %v2842_v5 = vadd.f32 %v2826_v19, %v2808_v59  ;;  %v2897_v55 = vmul.f32 %v6456_v20, %v7568_v49  ;;  %v2898_v48 = vmul.f32 %v6456_v20, %v7700_v40  ;;  %v7702_v59 = vld [vmem:[#allocation22_spill] sm:$0xff] }
 0x248   : > { %v2849_v62 = vrot.slane %v2845_v10, 1  ;;  %v2850_v17 = vrot.slane %v2845_v10, 2  ;;  %v2851_v18 = vrot.slane %v2845_v10, 3  ;;  %v2899_v54 = vmul.f32 %v6456_v20, %v7701_v27 }
 0x249   : > { %v2852_v24 = vrot.slane %v2845_v10, 4  ;;  %v2853_v30 = vrot.slane %v2845_v10, 5  ;;  %v2854_v13 = vrot.slane %v2845_v10, 6  ;;  %v2855_v63 = vrot.slane %v2845_v10, 7 }
 0x24a   : > { %v2856_v51 = vrot.slane %v2846_v23, 1  ;;  %v2857_v58 = vrot.slane %v2846_v23, 2  ;;  %v2858_v41 = vrot.slane %v2846_v23, 3  ;;  %v2900_v25 = vmul.f32 %v6456_v20, %v7702_v59 }
 0x24b   : > { %v2859_v47 = vrot.slane %v2846_v23, 4  ;;  %v2860_v8 = vrot.slane %v2846_v23, 5  ;;  %v2861_v15 = vrot.slane %v2846_v23, 6  ;;  %v2862_v39 = vrot.slane %v2846_v23, 7 }
 0x24c   : > { %v2879_v1 = vadd.f32 %v2845_v10, %v2827_v46  ;;  %v2880_v22 = vadd.f32 %v2849_v62, %v2828_v3  ;;  %v2881_v34 = vadd.f32 %v2850_v17, %v2829_v28  ;;  %v2882_v2 = vadd.f32 %v2851_v18, %v2830_v42  ;;  %v7703_v10 = vld [vmem:[#allocation24_spill] sm:$0xff]  ;;  %v7704_v3 = vld [vmem:[#allocation25_spill] sm:$0xff]  ;;  %v7713_v18 = vld [vmem:[#allocation58_spill] sm:$0xff] }
 0x24d   : > { %v2883_v16 = vadd.f32 %v2852_v24, %v2831_v35  ;;  %v2884_v19 = vadd.f32 %v2853_v30, %v2832_v44  ;;  %v2885_v21 = vadd.f32 %v2854_v13, %v2833_v14  ;;  %v2886_v27 = vadd.f32 %v2855_v63, %v2834_v12  ;;  %v7705_v14 = vld [vmem:[#allocation49_spill] sm:$0xff]  ;;  %v7707_v12 = vld [vmem:[#allocation51_spill] sm:$0xff]  ;;  %v7708_v28 = vld [vmem:[#allocation52_spill] sm:$0xff] }
 0x24e   : > { %v2887_v40 = vadd.f32 %v2846_v23, %v2835_v52  ;;  %v2888_v49 = vadd.f32 %v2856_v51, %v2836_v37  ;;  %v2889_v7 = vadd.f32 %v2857_v58, %v2837_v6  ;;  %v2890_v60 = vadd.f32 %v2858_v41, %v2838_v33  ;;  %v7706_v37 = vld [vmem:[#allocation50_spill] sm:$0xff]  ;;  %v7709_v35 = vld [vmem:[#allocation53_spill] sm:$0xff] }
 0x24f   : > { %v2891_v61 = vadd.f32 %v2859_v47, %v2839_v0  ;;  %v2892_v29 = vadd.f32 %v2860_v8, %v2840_v50  ;;  %v2893_v43 = vadd.f32 %v2861_v15, %v2841_v56  ;;  %v2894_v59 = vadd.f32 %v2862_v39, %v2842_v5  ;;  %v7710_v50 = vld [vmem:[#allocation54_spill] sm:$0xff]  ;;  %v7711_v56 = vld [vmem:[#allocation56_spill] sm:$0xff]  ;;  %v7712_v62 = vld [vmem:[#allocation57_spill] sm:$0xff] }
 0x250   : > { %v2901_v46 = vmul.f32 %v6456_v20, %v7703_v10  ;;  %v2902_v44 = vmul.f32 %v6456_v20, %v7704_v3  ;;  %v2903_v52 = vmul.f32 %v6456_v20, %v7705_v14  ;;  %v2904_v33 = vmul.f32 %v6456_v20, %v7706_v37  ;;  %v7714_v30 = vld [vmem:[#allocation13_spill] sm:$0xff]  ;;  %v7719_v10 = vld [vmem:[#allocation59_spill] sm:$0xff] }
 0x251   : > { %v2905_v6 = vmul.f32 %v6456_v20, %v7707_v12  ;;  %v2906_v42 = vmul.f32 %v6456_v20, %v7708_v28  ;;  %v2907_v0 = vmul.f32 %v6456_v20, %v7709_v35  ;;  %v2908_v23 = vmul.f32 %v6456_v20, %v7710_v50  ;;  %v6528_v50 = vld [vmem:[%s4920_s24 + $0x20] sm:$0xff] }
 0x252   : > { %v2909_v5 = vmul.f32 %v6456_v20, %v7711_v56  ;;  %v2910_v17 = vmul.f32 %v6456_v20, %v7712_v62  ;;  %v2911_v24 = vmul.f32 %v6456_v20, %v7713_v18  ;;  %v2912_v13 = vmul.f32 %v6456_v20, %v7714_v30  ;;  %7715 = vst [vmem:[#allocation79_spill] sm:$0xff] %v6528_v50 }
 0x253   : > { %v2913_v63 = vadd.f32 %v2897_v55, %v2879_v1  ;;  %v2914_v51 = vadd.f32 %v2898_v48, %v2880_v22  ;;  %v2915_v58 = vadd.f32 %v2899_v54, %v2881_v34  ;;  %v2916_v41 = vadd.f32 %v2900_v25, %v2882_v2  ;;  %v6534_v54 = vld [vmem:[%s4920_s24 + $0x28] sm:$0xff] }
 0x254   : > { %v2917_v47 = vadd.f32 %v2901_v46, %v2883_v16  ;;  %v2918_v8 = vadd.f32 %v2902_v44, %v2884_v19  ;;  %v2919_v15 = vadd.f32 %v2903_v52, %v2885_v21  ;;  %v2920_v39 = vadd.f32 %v2904_v33, %v2886_v27  ;;  %7717 = vst [vmem:[#allocation80_spill] sm:$0xff] %v6534_v54 }
 0x255   : > { %v2921_v62 = vadd.f32 %v2905_v6, %v2887_v40  ;;  %v2922_v56 = vadd.f32 %v2906_v42, %v2888_v49  ;;  %v2923_v18 = vadd.f32 %v2907_v0, %v2889_v7  ;;  %v7716_v20 = vstv %s6423_s9  ;;  %s6861_s9 = sld [smem:[#allocation4 + $0x303]] }
 0x256   : > { %v2931_v55 = vmul.f32 %v6528_v50, %v7716_v20  ;;  %v2924_v1 = vadd.f32 %v2908_v23, %v2890_v60  ;;  %v2925_v48 = vadd.f32 %v2909_v5, %v2891_v61  ;;  %v2926_v22 = vadd.f32 %v2910_v17, %v2892_v29 }
 0x257   : > { %v7718_v25 = vmov %v7716_v20  ;;  %v2927_v2 = vadd.f32 %v2911_v24, %v2893_v43  ;;  %v2928_v27 = vadd.f32 %v2912_v13, %v2894_v59  ;;  %v2982_v40 = vstv %s6495_s10  ;;  %s6947_s10 = sld [smem:[#allocation2 + $0x380]] }
 0x258   : > { %v2932_v34 = vmul.f32 %v6534_v54, %v7718_v25  ;;  %v3016_v49 = vstv %s6497_s11  ;;  %v2935_v16 = vrot.slane %v2931_v55, 1  ;;  %v2936_v7 = vrot.slane %v2931_v55, 2  ;;  %s6949_s11 = sld [smem:[#allocation6 + $0x7]] }
 0x259   : > { %v2937_v19 = vrot.slane %v2931_v55, 3  ;;  %v6542_v21 = vstv %s6507_s12  ;;  %v2938_v46 = vrot.slane %v2931_v55, 4  ;;  %v2939_v44 = vrot.slane %v2931_v55, 5  ;;  %s6951_s12 = sld [smem:[#allocation4 + $0x380]] }
 0x25a   : > { %v2940_v60 = vrot.slane %v2931_v55, 6  ;;  %v2941_v61 = vrot.slane %v2931_v55, 7  ;;  %v2942_v29 = vrot.slane %v2932_v34, 1  ;;  %v2943_v52 = vrot.slane %v2932_v34, 2 }
 0x25b   : > { %v2944_v33 = vrot.slane %v2932_v34, 3  ;;  %v6545_v6 = vstv %s6525_s13  ;;  %v2945_v42 = vrot.slane %v2932_v34, 4  ;;  %v2946_v0 = vrot.slane %v2932_v34, 5  ;;  %s4590_s13 = sld [smem:[#allocation2 + $0x381]] }
 0x25c   : > { %v2947_v43 = vrot.slane %v2932_v34, 6  ;;  %v2948_v59 = vrot.slane %v2932_v34, 7  ;;  %v2965_v23 = vadd.f32 %v2931_v55, %v2913_v63  ;;  %v2966_v5 = vadd.f32 %v2935_v16, %v2914_v51  ;;  %v7721_v63 = vld [vmem:[#allocation61_spill] sm:$0xff]  ;;  %v7726_v16 = vld [vmem:[#allocation74_spill] sm:$0xff] }
 0x25d   : > { %v2967_v17 = vadd.f32 %v2936_v7, %v2915_v58  ;;  %v2968_v24 = vadd.f32 %v2937_v19, %v2916_v41  ;;  %v2969_v13 = vadd.f32 %v2938_v46, %v2917_v47  ;;  %v2970_v20 = vadd.f32 %v2939_v44, %v2918_v8  ;;  %v7722_v58 = vld [vmem:[#allocation62_spill] sm:$0xff]  ;;  %v7723_v47 = vld [vmem:[#allocation63_spill] sm:$0xff] }
 0x25e   : > { %v2971_v25 = vadd.f32 %v2940_v60, %v2919_v15  ;;  %v2972_v54 = vadd.f32 %v2941_v61, %v2920_v39  ;;  %v2973_v50 = vadd.f32 %v2932_v34, %v2921_v62  ;;  %v2974_v30 = vadd.f32 %v2942_v29, %v2922_v56  ;;  %v7724_v15 = vld [vmem:[#allocation64_spill] sm:$0xff] }
 0x25f   : > { %v2975_v35 = vadd.f32 %v2943_v52, %v2923_v18  ;;  %v2976_v28 = vadd.f32 %v2944_v33, %v2924_v1  ;;  %v2977_v12 = vadd.f32 %v2945_v42, %v2925_v48  ;;  %v2978_v37 = vadd.f32 %v2946_v0, %v2926_v22 }
 0x260   : > { %v2979_v14 = vadd.f32 %v2947_v43, %v2927_v2  ;;  %v2980_v3 = vadd.f32 %v2948_v59, %v2928_v27  ;;  %v2983_v32 = vmul.f32 %v2982_v40, %v7719_v10  ;;  %v2984_v4 = vmul.f32 %v2982_v40, %v7720_v38  ;;  %v7725_v2 = vld [vmem:[#allocation73_spill] sm:$0xff]  ;;  %v7727_v43 = vld [vmem:[#allocation55_spill] sm:$0xff] }
 0x261   : > { %v2985_v51 = vmul.f32 %v2982_v40, %v7721_v63  ;;  %v2986_v41 = vmul.f32 %v2982_v40, %v7722_v58  ;;  %v2987_v8 = vmul.f32 %v2982_v40, %v7723_v47  ;;  %v2988_v39 = vmul.f32 %v2982_v40, %v7724_v15  ;;  %v7772_v15 = vld [vmem:[#allocation50_spill] sm:$0xff] }
 0x262   : > { %v2989_v56 = vmul.f32 %v2982_v40, %v7452_v31  ;;  %v2990_v62 = vmul.f32 %v2982_v40, %v7587_v26  ;;  %v2991_v18 = vmul.f32 %v2982_v40, %v7651_v36  ;;  %v2992_v55 = vmul.f32 %v2982_v40, %v7652_v57  ;;  %v7771_v26 = vld [vmem:[#allocation49_spill] sm:$0xff] }
 0x263   : > { %v2993_v1 = vmul.f32 %v2982_v40, %v7653_v9  ;;  %v2994_v48 = vmul.f32 %v2982_v40, %v7654_v53  ;;  %v2995_v22 = vmul.f32 %v2982_v40, %v7655_v45  ;;  %v2996_v34 = vmul.f32 %v2982_v40, %v7656_v11  ;;  %v7728_v53 = vld [vmem:[#allocation26_spill] sm:$0xff] }
 0x264   : > { %v2997_v27 = vmul.f32 %v2982_v40, %v7725_v2  ;;  %v2998_v7 = vmul.f32 %v2982_v40, %v7726_v16  ;;  %v2999_v19 = vadd.f32 %v2983_v32, %v2965_v23  ;;  %v3000_v46 = vadd.f32 %v2984_v4, %v2966_v5 }
 0x265   : > { %v3001_v44 = vadd.f32 %v2985_v51, %v2967_v17  ;;  %v3002_v60 = vadd.f32 %v2986_v41, %v2968_v24  ;;  %v3003_v61 = vadd.f32 %v2987_v8, %v2969_v13  ;;  %v3004_v29 = vadd.f32 %v2988_v39, %v2970_v20 }
 0x266   : > { %v3005_v52 = vadd.f32 %v2989_v56, %v2971_v25  ;;  %v3006_v33 = vadd.f32 %v2990_v62, %v2972_v54  ;;  %v3007_v42 = vadd.f32 %v2991_v18, %v2973_v50  ;;  %v3008_v0 = vadd.f32 %v2992_v55, %v2974_v30 }
 0x267   : > { %v3017_v59 = vmul.f32 %v7727_v43, %v3016_v49  ;;  %v3018_v45 = vmul.f32 %v7728_v53, %v3016_v49  ;;  %v3009_v9 = vadd.f32 %v2993_v1, %v2975_v35  ;;  %v3010_v11 = vadd.f32 %v2994_v48, %v2976_v28 }
 0x268   : > { %v3011_v57 = vadd.f32 %v2995_v22, %v2977_v12  ;;  %v3012_v2 = vadd.f32 %v2996_v34, %v2978_v37  ;;  %v3013_v23 = vadd.f32 %v2997_v27, %v2979_v14  ;;  %v3014_v20 = vadd.f32 %v2998_v7, %v2980_v3 }
 0x269   : > { %v3021_v36 = vrot.slane %v3017_v59, 1  ;;  %v3022_v40 = vrot.slane %v3017_v59, 2  ;;  %v3023_v32 = vrot.slane %v3017_v59, 3  ;;  %v3024_v4 = vrot.slane %v3017_v59, 4 }
 0x26a   : > { %v3025_v5 = vrot.slane %v3017_v59, 5  ;;  %v3026_v17 = vrot.slane %v3017_v59, 6  ;;  %v3028_v24 = vrot.slane %v3018_v45, 1  ;;  %v3027_v13 = vrot.slane %v3017_v59, 7 }
 0x26b   : > { %v3029_v54 = vrot.slane %v3018_v45, 2  ;;  %v3030_v50 = vrot.slane %v3018_v45, 3  ;;  %v3031_v30 = vrot.slane %v3018_v45, 4  ;;  %v3032_v25 = vrot.slane %v3018_v45, 5 }
 0x26c   : > { %v3033_v51 = vrot.slane %v3018_v45, 6  ;;  %v3052_v53 = vadd.f32 %v3021_v36, %v3000_v46  ;;  %v3034_v35 = vrot.slane %v3018_v45, 7  ;;  %v3053_v28 = vadd.f32 %v3022_v40, %v3001_v44 }
 0x26d   : > { %v3054_v12 = vadd.f32 %v3023_v32, %v3002_v60  ;;  %v3055_v37 = vadd.f32 %v3024_v4, %v3003_v61  ;;  %v3051_v49 = vadd.f32 %v3017_v59, %v2999_v19  ;;  %v3056_v41 = vadd.f32 %v3025_v5, %v3004_v29 }
 0x26e   : > { %v3057_v8 = vadd.f32 %v3026_v17, %v3005_v52  ;;  %v3060_v39 = vadd.f32 %v3028_v24, %v3008_v0  ;;  %v3058_v14 = vadd.f32 %v3027_v13, %v3006_v33  ;;  %v3061_v56 = vadd.f32 %v3029_v54, %v3009_v9 }
 0x26f   : > { %v3062_v62 = vadd.f32 %v3030_v50, %v3010_v11  ;;  %v3063_v18 = vadd.f32 %v3031_v30, %v3011_v57  ;;  %v3059_v55 = vadd.f32 %v3018_v45, %v3007_v42  ;;  %v3064_v1 = vadd.f32 %v3032_v25, %v3012_v2 }
 0x270   : > { %v3065_v48 = vadd.f32 %v3033_v51, %v3013_v23  ;;  %v3068_v22 = vmax.f32 %v3052_v53, 0.0  ;;  %v3066_v3 = vadd.f32 %v3034_v35, %v3014_v20  ;;  %v3069_v34 = vmax.f32 %v3053_v28, 0.0  ;;  %v7729_v51 = vld [vmem:[#allocation27_spill] sm:$0xff] }
 0x271   : > { %v3070_v27 = vmax.f32 %v3054_v12, 0.0  ;;  %v3071_v36 = vmax.f32 %v3055_v37, 0.0  ;;  %v3067_v7 = vmax.f32 %v3051_v49, 0.0  ;;  %v3072_v46 = vmax.f32 %v3056_v41, 0.0  ;;  %v7730_v37 = vld [vmem:[#allocation28_spill] sm:$0xff] }
 0x272   : > { %v3073_v44 = vmax.f32 %v3057_v8, 0.0  ;;  %v3076_v60 = vmax.f32 %v3060_v39, 0.0  ;;  %v3074_v19 = vmax.f32 %v3058_v14, 0.0  ;;  %v3077_v61 = vmax.f32 %v3061_v56, 0.0  ;;  %v7731_v39 = vld [vmem:[#allocation29_spill] sm:$0xff]  ;;  %v7732_v56 = vld [vmem:[#allocation30_spill] sm:$0xff] }
 0x273   : > { %v3078_v29 = vmax.f32 %v3062_v62, 0.0  ;;  %v3079_v52 = vmax.f32 %v3063_v18, 0.0  ;;  %v3075_v33 = vmax.f32 %v3059_v55, 0.0  ;;  %v3080_v9 = vmax.f32 %v3064_v1, 0.0  ;;  %v7733_v1 = vld [vmem:[#allocation31_spill] sm:$0xff] }
 0x274   : > { %v3099_v11 = vrot.slane %v3068_v22, 7  ;;  %v3101_v57 = vrot.slane %v3069_v34, 6  ;;  %v3081_v45 = vmax.f32 %v3065_v48, 0.0  ;;  %v3082_v2 = vmax.f32 %v3066_v3, 0.0  ;;  %v7734_v22 = vld [vmem:[#allocation32_spill] sm:$0xff] }
 0x275   : > { %v3103_v42 = vrot.slane %v3070_v27, 5  ;;  %v3105_v0 = vrot.slane %v3071_v36, 4  ;;  %v3107_v59 = vrot.slane %v3072_v46, 3  ;;  %v3113_v40 = vrot.slane %v3076_v60, 7  ;;  %v7735_v27 = vld [vmem:[#allocation33_spill] sm:$0xff] }
 0x276   : > { %v3100_v43 = vsel %vm1450_vm1, %v3099_v11, %v3067_v7  ;;  %v3115_v32 = vrot.slane %v3077_v61, 6  ;;  %v3109_v23 = vrot.slane %v3073_v44, 2  ;;  %v3117_v5 = vrot.slane %v3078_v29, 5  ;;  %v7736_v7 = vld [vmem:[#allocation34_spill] sm:$0xff]  ;;  %v7737_v44 = vld [vmem:[#allocation35_spill] sm:$0xff]  ;;  %v7738_v61 = vld [vmem:[#allocation36_spill] sm:$0xff] }
 0x277   : > { %v3102_v4 = vsel %vm1453_vm2, %v3101_v57, %v3100_v43  ;;  %v3119_v17 = vrot.slane %v3079_v52, 4  ;;  %v3111_v13 = vrot.slane %v3074_v19, 1  ;;  %v3114_v54 = vsel %vm1450_vm1, %v3113_v40, %v3075_v33  ;;  %v7739_v52 = vld [vmem:[#allocation37_spill] sm:$0xff]  ;;  %v7741_v57 = vld [vmem:[#allocation39_spill] sm:$0xff] }
 0x278   : > { %v3104_v24 = vsel %vm1456_vm3, %v3103_v42, %v3102_v4  ;;  %v3121_v50 = vrot.slane %v3080_v9, 3  ;;  %v3116_v20 = vsel %vm1453_vm2, %v3115_v32, %v3114_v54  ;;  %v3123_v25 = vrot.slane %v3081_v45, 2  ;;  %v7740_v9 = vld [vmem:[#allocation38_spill] sm:$0xff] }
 0x279   : > { %v3106_v30 = vsel %vm1459_vm4, %v3105_v0, %v3104_v24  ;;  %v3136_v53 = vmul.f32 %v6545_v6, %v7729_v51  ;;  %v3118_v28 = vsel %vm1456_vm3, %v3117_v5, %v3116_v20  ;;  %v3125_v12 = vrot.slane %v3082_v2, 1  ;;  %v7742_v2 = vld [vmem:[#allocation40_spill] sm:$0xff]  ;;  %v7743_v0 = vld [vmem:[#allocation41_spill] sm:$0xff] }
 0x27a   : > { %v3108_v35 = vsel %vm1462_vm5, %v3107_v59, %v3106_v30  ;;  %v3137_v49 = vmul.f32 %v6545_v6, %v7730_v37  ;;  %v3120_v8 = vsel %vm1459_vm4, %v3119_v17, %v3118_v28  ;;  %v3138_v14 = vmul.f32 %v6545_v6, %v7731_v39  ;;  %v7744_v59 = vld [vmem:[#allocation15_spill] sm:$0xff] }
 0x27b   : > { %v3110_v41 = vsel %vm1465_vm6, %v3109_v23, %v3108_v35  ;;  %v3139_v62 = vmul.f32 %v6545_v6, %v7732_v56  ;;  %v3122_v55 = vsel %vm1462_vm5, %v3121_v50, %v3120_v8  ;;  %v3140_v48 = vmul.f32 %v6545_v6, %v7733_v1  ;;  %v7745_v28 = vld [vmem:[#allocation75_spill] sm:$0xff] }
 0x27c   : > { %v3112_v18 = vsel %vm1468_vm7, %v3111_v13, %v3110_v41  ;;  %v3141_v3 = vmul.f32 %v6545_v6, %v7734_v22  ;;  %v3124_v34 = vsel %vm1465_vm6, %v3123_v25, %v3122_v55  ;;  %v3142_v36 = vmul.f32 %v6545_v6, %v7735_v27 }
 0x27d   : > { %4563 = vst.msk [vmem:[%s5862_s17 + $0x40] sm:$0xff] %vm398_vm0, %v3112_v18  ;;  %v3143_v46 = vmul.f32 %v6545_v6, %v7736_v7  ;;  %v3144_v60 = vmul.f32 %v6545_v6, %v7737_v44  ;;  %v3126_v19 = vsel %vm1468_vm7, %v3125_v12, %v3124_v34  ;;  %v3145_v29 = vmul.f32 %v6545_v6, %v7738_v61  ;;  %v7747_v18 = vld [vmem:[#allocation16_spill] sm:$0xff]  ;;  %v7749_v34 = vld [vmem:[#allocation14_spill] sm:$0xff] }
 0x27e   : > { %v3146_v33 = vmul.f32 %v6545_v6, %v7739_v52  ;;  %v3147_v11 = vmul.f32 %v6545_v6, %v7740_v9  ;;  %4564 = vst.msk [vmem:[%s5862_s17 + $0x48] sm:$0xff] %vm398_vm0, %v3126_v19  ;;  %v3148_v45 = vmul.f32 %v6545_v6, %v7741_v57  ;;  %v3149_v42 = vmul.f32 %v6545_v6, %v7742_v2 }
 0x27f   : > { %v3150_v43 = vmul.f32 %v6545_v6, %v7743_v0  ;;  %v3151_v40 = vmul.f32 %v6545_v6, %v7744_v59  ;;  %v3152_v32 = vadd.f32 %v3136_v53, %v6542_v21  ;;  %v3153_v4 = vadd.f32 %v3137_v49, %v6542_v21 }
 0x280   : > { %v3154_v23 = vadd.f32 %v3138_v14, %v6542_v21  ;;  %v3155_v5 = vadd.f32 %v3139_v62, %v6542_v21  ;;  %v3156_v17 = vadd.f32 %v3140_v48, %v6542_v21  ;;  %v3157_v24 = vadd.f32 %v3141_v3, %v6542_v21  ;;  %v7746_v14 = vld [vmem:[#allocation76_spill] sm:$0xff]  ;;  %v7748_v48 = vld [vmem:[#allocation11_spill] sm:$0xff] }
 0x281   : > { %v3158_v13 = vadd.f32 %v3142_v36, %v6542_v21  ;;  %v3159_v54 = vadd.f32 %v3143_v46, %v6542_v21  ;;  %v3160_v50 = vadd.f32 %v3144_v60, %v6542_v21  ;;  %v3161_v6 = vadd.f32 %v3145_v29, %v6542_v21  ;;  %v7750_v46 = vld [vmem:[#allocation19_spill] sm:$0xff] }
 0x282   : > { %v3169_v30 = vstv %s6577_s14  ;;  %v3221_v20 = vstv %s6579_s15  ;;  %v3162_v25 = vadd.f32 %v3146_v33, %v6542_v21  ;;  %v3163_v53 = vadd.f32 %v3147_v11, %v6542_v21  ;;  %v7751_v11 = vld [vmem:[#allocation20_spill] sm:$0xff]  ;;  %s7002_s14 = sld [smem:[#allocation4 + $0x381]]  ;;  %s7004_s15 = sld [smem:[#allocation2 + $0x382]] }
 0x283   : > { %v3164_v35 = vadd.f32 %v3148_v45, %v6542_v21  ;;  %v3170_v12 = vmul.f32 %v7745_v28, %v3169_v30  ;;  %v3165_v49 = vadd.f32 %v3149_v42, %v6542_v21  ;;  %v3166_v41 = vadd.f32 %v3150_v43, %v6542_v21 }
 0x284   : > { %v3167_v8 = vadd.f32 %v3151_v40, %v6542_v21  ;;  %v3171_v62 = vmul.f32 %v7746_v14, %v3169_v30  ;;  %v3222_v55 = vmul.f32 %v3221_v20, %v7747_v18  ;;  %v3223_v3 = vmul.f32 %v3221_v20, %v7748_v48  ;;  %v7752_v14 = vld [vmem:[#allocation23_spill] sm:$0xff] }
 0x285   : > { %v3224_v36 = vmul.f32 %v3221_v20, %v7749_v34  ;;  %v3225_v60 = vmul.f32 %v3221_v20, %v7750_v46  ;;  %v3174_v19 = vrot.slane %v3170_v12, 1  ;;  %v3175_v29 = vrot.slane %v3170_v12, 2 }
 0x286   : > { %v3176_v33 = vrot.slane %v3170_v12, 3  ;;  %v3226_v45 = vmul.f32 %v3221_v20, %v7751_v11  ;;  %v3177_v42 = vrot.slane %v3170_v12, 4  ;;  %v3178_v28 = vrot.slane %v3170_v12, 5 }
 0x287   : > { %v3179_v43 = vrot.slane %v3170_v12, 6  ;;  %v3180_v59 = vrot.slane %v3170_v12, 7  ;;  %v3181_v21 = vrot.slane %v3171_v62, 1  ;;  %v3182_v40 = vrot.slane %v3171_v62, 2 }
 0x288   : > { %v3183_v30 = vrot.slane %v3171_v62, 3  ;;  %v3227_v18 = vmul.f32 %v3221_v20, %v7752_v14  ;;  %v3184_v0 = vrot.slane %v3171_v62, 4  ;;  %v3185_v48 = vrot.slane %v3171_v62, 5 }
 0x289   : > { %v3186_v2 = vrot.slane %v3171_v62, 6  ;;  %v3187_v34 = vrot.slane %v3171_v62, 7  ;;  %v3204_v57 = vadd.f32 %v3170_v12, %v3152_v32  ;;  %v3205_v46 = vadd.f32 %v3174_v19, %v3153_v4  ;;  %v7753_v32 = vld [vmem:[#allocation42_spill] sm:$0xff]  ;;  %v7761_v12 = vld [vmem:[#allocation48_spill] sm:$0xff] }
 0x28a   : > { %v3206_v9 = vadd.f32 %v3175_v29, %v3154_v23  ;;  %v3207_v52 = vadd.f32 %v3176_v33, %v3155_v5  ;;  %v3208_v61 = vadd.f32 %v3177_v42, %v3156_v17  ;;  %v3209_v44 = vadd.f32 %v3178_v28, %v3157_v24  ;;  %v7754_v23 = vld [vmem:[#allocation43_spill] sm:$0xff]  ;;  %v7755_v5 = vld [vmem:[#allocation44_spill] sm:$0xff]  ;;  %v7756_v24 = vld [vmem:[#allocation45_spill] sm:$0xff] }
 0x28b   : > { %v3210_v11 = vadd.f32 %v3179_v43, %v3158_v13  ;;  %v3211_v7 = vadd.f32 %v3180_v59, %v3159_v54  ;;  %v3212_v27 = vadd.f32 %v3171_v62, %v3160_v50  ;;  %v3213_v22 = vadd.f32 %v3181_v21, %v3161_v6  ;;  %v7757_v54 = vld [vmem:[#allocation46_spill] sm:$0xff]  ;;  %v7758_v6 = vld [vmem:[#allocation9_spill] sm:$0xff] }
 0x28c   : > { %v3214_v1 = vadd.f32 %v3182_v40, %v3162_v25  ;;  %v3215_v14 = vadd.f32 %v3183_v30, %v3163_v53  ;;  %v3216_v56 = vadd.f32 %v3184_v0, %v3164_v35  ;;  %v3217_v39 = vadd.f32 %v3185_v48, %v3165_v49  ;;  %v7759_v0 = vld [vmem:[#allocation10_spill] sm:$0xff] }
 0x28d   : > { %v3218_v37 = vadd.f32 %v3186_v2, %v3166_v41  ;;  %v3219_v51 = vadd.f32 %v3187_v34, %v3167_v8  ;;  %v3228_v4 = vmul.f32 %v3221_v20, %v7753_v32  ;;  %v3229_v59 = vmul.f32 %v3221_v20, %v7754_v23  ;;  %v7760_v2 = vld [vmem:[#allocation47_spill] sm:$0xff]  ;;  %v7762_v41 = vld [vmem:[#allocation17_spill] sm:$0xff] }
 0x28e   : > { %v3230_v17 = vmul.f32 %v3221_v20, %v7755_v5  ;;  %v3231_v13 = vmul.f32 %v3221_v20, %v7756_v24  ;;  %v3232_v50 = vmul.f32 %v3221_v20, %v7757_v54  ;;  %v3233_v25 = vmul.f32 %v3221_v20, %v7758_v6 }
 0x28f   : > { %v3234_v53 = vmul.f32 %v3221_v20, %v7759_v0  ;;  %v3235_v35 = vmul.f32 %v3221_v20, %v7760_v2  ;;  %v3236_v49 = vmul.f32 %v3221_v20, %v7761_v12  ;;  %v3237_v8 = vmul.f32 %v3221_v20, %v7762_v41  ;;  %v7763_v20 = vld [vmem:[#allocation77_spill] sm:$0xff] }
 0x290   : > { %v3238_v62 = vadd.f32 %v3222_v55, %v3204_v57  ;;  %v3239_v48 = vadd.f32 %v3223_v3, %v3205_v46  ;;  %v3240_v34 = vadd.f32 %v3224_v36, %v3206_v9  ;;  %v3241_v19 = vadd.f32 %v3225_v60, %v3207_v52  ;;  %v7764_v9 = vld [vmem:[#allocation78_spill] sm:$0xff] }
 0x291   : > { %v3242_v29 = vadd.f32 %v3226_v45, %v3208_v61  ;;  %v3243_v33 = vadd.f32 %v3227_v18, %v3209_v44  ;;  %v3244_v42 = vadd.f32 %v3228_v4, %v3210_v11  ;;  %v3245_v28 = vadd.f32 %v3229_v59, %v3211_v7  ;;  %v7765_v44 = vld [vmem:[#allocation18_spill] sm:$0xff]  ;;  %v7766_v7 = vld [vmem:[#allocation12_spill] sm:$0xff] }
 0x292   : > { %v3246_v43 = vadd.f32 %v3230_v17, %v3212_v27  ;;  %v3247_v21 = vadd.f32 %v3231_v13, %v3213_v22  ;;  %v3248_v40 = vadd.f32 %v3232_v50, %v3214_v1  ;;  %v3249_v30 = vadd.f32 %v3233_v25, %v3215_v14  ;;  %v7767_v22 = vld [vmem:[#allocation21_spill] sm:$0xff]  ;;  %v7768_v36 = vld [vmem:[#allocation22_spill] sm:$0xff] }
 0x293   : > { %v3255_v2 = vstv %s6645_s16  ;;  %v3307_v0 = vstv %s6647_s18  ;;  %v3250_v6 = vadd.f32 %v3234_v53, %v3216_v56  ;;  %v3251_v12 = vadd.f32 %v3235_v35, %v3217_v39  ;;  %v7770_v50 = vld [vmem:[#allocation25_spill] sm:$0xff]  ;;  %s7040_s16 = sld [smem:[#allocation4 + $0x382]]  ;;  %s7042_s18 = sld [smem:[#allocation2 + $0x383]] }
 0x294   : > { %v3252_v54 = vadd.f32 %v3236_v49, %v3218_v37  ;;  %v3256_v57 = vmul.f32 %v7763_v20, %v3255_v2  ;;  %v3253_v55 = vadd.f32 %v3237_v8, %v3219_v51  ;;  %v3257_v52 = vmul.f32 %v7764_v9, %v3255_v2  ;;  %v7769_v37 = vld [vmem:[#allocation24_spill] sm:$0xff] }
 0x295   : > { %v6669_v3 = vstv %s6651_s22  ;;  %v3308_v18 = vmul.f32 %v3307_v0, %v7765_v44  ;;  %v3309_v27 = vmul.f32 %v3307_v0, %v7766_v7  ;;  %v3310_v1 = vmul.f32 %v3307_v0, %v7767_v22 }
 0x296   : > { %v3311_v46 = vmul.f32 %v3307_v0, %v7768_v36  ;;  %v3260_v60 = vrot.slane %v3256_v57, 1  ;;  %v3261_v56 = vrot.slane %v3256_v57, 2  ;;  %v3262_v39 = vrot.slane %v3256_v57, 3 }
 0x297   : > { %v3312_v11 = vmul.f32 %v3307_v0, %v7769_v37  ;;  %v3263_v45 = vrot.slane %v3256_v57, 4  ;;  %v3264_v51 = vrot.slane %v3256_v57, 5  ;;  %v3265_v14 = vrot.slane %v3256_v57, 6 }
 0x298   : > { %v3266_v4 = vrot.slane %v3256_v57, 7  ;;  %v3267_v59 = vrot.slane %v3257_v52, 1  ;;  %v3268_v17 = vrot.slane %v3257_v52, 2  ;;  %v3269_v13 = vrot.slane %v3257_v52, 3 }
 0x299   : > { %v3313_v25 = vmul.f32 %v3307_v0, %v7770_v50  ;;  %v3270_v53 = vrot.slane %v3257_v52, 4  ;;  %v3271_v2 = vrot.slane %v3257_v52, 5  ;;  %v3272_v35 = vrot.slane %v3257_v52, 6 }
 0x29a   : > { %v3273_v49 = vrot.slane %v3257_v52, 7  ;;  %v3290_v8 = vadd.f32 %v3256_v57, %v3238_v62  ;;  %v3291_v20 = vadd.f32 %v3260_v60, %v3239_v48  ;;  %v3292_v9 = vadd.f32 %v3261_v56, %v3240_v34  ;;  %v7773_v62 = vld [vmem:[#allocation51_spill] sm:$0xff]  ;;  %v7774_v34 = vld [vmem:[#allocation52_spill] sm:$0xff] }
 0x29b   : > { %v3293_v61 = vadd.f32 %v3262_v39, %v3241_v19  ;;  %v3294_v36 = vadd.f32 %v3263_v45, %v3242_v29  ;;  %v3295_v22 = vadd.f32 %v3264_v51, %v3243_v33  ;;  %v3296_v37 = vadd.f32 %v3265_v14, %v3244_v42  ;;  %v7775_v29 = vld [vmem:[#allocation53_spill] sm:$0xff]  ;;  %v7776_v42 = vld [vmem:[#allocation54_spill] sm:$0xff] }
 0x29c   : > { %v3297_v7 = vadd.f32 %v3266_v4, %v3245_v28  ;;  %v3298_v44 = vadd.f32 %v3257_v52, %v3246_v43  ;;  %v3299_v41 = vadd.f32 %v3267_v59, %v3247_v21  ;;  %v3300_v24 = vadd.f32 %v3268_v17, %v3248_v40  ;;  %v7777_v43 = vld [vmem:[#allocation56_spill] sm:$0xff]  ;;  %v7778_v40 = vld [vmem:[#allocation57_spill] sm:$0xff] }
 0x29d   : > { %v3301_v5 = vadd.f32 %v3269_v13, %v3249_v30  ;;  %v3302_v23 = vadd.f32 %v3270_v53, %v3250_v6  ;;  %v3303_v32 = vadd.f32 %v3271_v2, %v3251_v12  ;;  %v3304_v16 = vadd.f32 %v3272_v35, %v3252_v54  ;;  %v7779_v6 = vld [vmem:[#allocation58_spill] sm:$0xff]  ;;  %v7780_v12 = vld [vmem:[#allocation13_spill] sm:$0xff]  ;;  %v7782_v35 = vld [vmem:[#allocation79_spill] sm:$0xff] }
 0x29e   : > { %v3305_v50 = vadd.f32 %v3273_v49, %v3253_v55  ;;  %v3314_v31 = vmul.f32 %v3307_v0, %v7771_v26  ;;  %v3315_v47 = vmul.f32 %v3307_v0, %v7772_v15  ;;  %v3316_v48 = vmul.f32 %v3307_v0, %v7773_v62 }
 0x29f   : > { %v3317_v19 = vmul.f32 %v3307_v0, %v7774_v34  ;;  %v3318_v33 = vmul.f32 %v3307_v0, %v7775_v29  ;;  %v3319_v28 = vmul.f32 %v3307_v0, %v7776_v42  ;;  %v3320_v21 = vmul.f32 %v3307_v0, %v7777_v43 }
 0x2a0   : > { %v3321_v30 = vmul.f32 %v3307_v0, %v7778_v40  ;;  %v3322_v54 = vmul.f32 %v3307_v0, %v7779_v6  ;;  %v3323_v57 = vmul.f32 %v3307_v0, %v7780_v12  ;;  %v3324_v55 = vadd.f32 %v3308_v18, %v3290_v8 }
 0x2a1   : > { %v3325_v52 = vadd.f32 %v3309_v27, %v3291_v20  ;;  %v3326_v60 = vadd.f32 %v3310_v1, %v3292_v9  ;;  %v3327_v56 = vadd.f32 %v3311_v46, %v3293_v61  ;;  %v3328_v39 = vadd.f32 %v3312_v11, %v3294_v36  ;;  %v7784_v27 = vld [vmem:[#allocation80_spill] sm:$0xff] }
 0x2a2   : > { %v3329_v45 = vadd.f32 %v3313_v25, %v3295_v22  ;;  %v3330_v51 = vadd.f32 %v3314_v31, %v3296_v37  ;;  %v3331_v14 = vadd.f32 %v3315_v47, %v3297_v7  ;;  %v3332_v4 = vadd.f32 %v3316_v48, %v3298_v44  ;;  %v7786_v11 = vld [vmem:[#allocation64_spill] sm:$0xff] }
 0x2a3   : > { %v3333_v59 = vadd.f32 %v3317_v19, %v3299_v41  ;;  %v3334_v17 = vadd.f32 %v3318_v33, %v3300_v24  ;;  %v3335_v13 = vadd.f32 %v3319_v28, %v3301_v5  ;;  %v3336_v53 = vadd.f32 %v3320_v21, %v3302_v23 }
 0x2a4   : > { %v7781_v2 = vstv %s6649_s21  ;;  %v3337_v6 = vadd.f32 %v3321_v30, %v3303_v32  ;;  %v3338_v40 = vadd.f32 %v3322_v54, %v3304_v16  ;;  %v3339_v0 = vadd.f32 %v3323_v57, %v3305_v50  ;;  %v7785_v16 = vld [vmem:[#allocation63_spill] sm:$0xff]  ;;  %s7045_s21 = sld [smem:[#allocation4 + $0x383]] }
 0x2a5   : > { %v3342_v49 = vmul.f32 %v7782_v35, %v7781_v2  ;;  %v7783_v18 = vmov %v7781_v2  ;;  %v3394_v61 = vmul.f32 %v6669_v3, %v7719_v10  ;;  %v3395_v31 = vmul.f32 %v6669_v3, %v7720_v38 }
 0x2a6   : > { %v3343_v8 = vmul.f32 %v7784_v27, %v7783_v18  ;;  %v3396_v47 = vmul.f32 %v6669_v3, %v7721_v63  ;;  %v3397_v23 = vmul.f32 %v6669_v3, %v7722_v58  ;;  %v3398_v41 = vmul.f32 %v6669_v3, %v7785_v16 }
 0x2a7   : > { %v3346_v5 = vrot.slane %v3342_v49, 1  ;;  %v3347_v24 = vrot.slane %v3342_v49, 2  ;;  %v3348_v32 = vrot.slane %v3342_v49, 3  ;;  %v3349_v44 = vrot.slane %v3342_v49, 4 }
 0x2a8   : > { %v3350_v7 = vrot.slane %v3342_v49, 5  ;;  %v3351_v22 = vrot.slane %v3342_v49, 6  ;;  %v3352_v1 = vrot.slane %v3342_v49, 7  ;;  %v3353_v36 = vrot.slane %v3343_v8, 1 }
 0x2a9   : > { %v3354_v46 = vrot.slane %v3343_v8, 2  ;;  %v3355_v37 = vrot.slane %v3343_v8, 3  ;;  %v3399_v50 = vmul.f32 %v6669_v3, %v7786_v11  ;;  %v3356_v25 = vrot.slane %v3343_v8, 4 }
 0x2aa   : > { %v3357_v20 = vrot.slane %v3343_v8, 5  ;;  %v3358_v9 = vrot.slane %v3343_v8, 6  ;;  %v3359_v48 = vrot.slane %v3343_v8, 7  ;;  %v3376_v19 = vadd.f32 %v3342_v49, %v3324_v55  ;;  %v7787_v55 = vld [vmem:[#allocation65_spill] sm:$0xff] }
 0x2ab   : > { %v3377_v33 = vadd.f32 %v3346_v5, %v3325_v52  ;;  %v3378_v28 = vadd.f32 %v3347_v24, %v3326_v60  ;;  %v3379_v21 = vadd.f32 %v3348_v32, %v3327_v56  ;;  %v3380_v30 = vadd.f32 %v3349_v44, %v3328_v39  ;;  %v7788_v60 = vld [vmem:[#allocation66_spill] sm:$0xff]  ;;  %v7789_v39 = vld [vmem:[#allocation67_spill] sm:$0xff] }
 0x2ac   : > { %v3381_v54 = vadd.f32 %v3350_v7, %v3329_v45  ;;  %v3382_v57 = vadd.f32 %v3351_v22, %v3330_v51  ;;  %v3383_v2 = vadd.f32 %v3352_v1, %v3331_v14  ;;  %v3384_v35 = vadd.f32 %v3343_v8, %v3332_v4  ;;  %v7790_v51 = vld [vmem:[#allocation68_spill] sm:$0xff]  ;;  %v7791_v4 = vld [vmem:[#allocation69_spill] sm:$0xff]  ;;  %v7796_v5 = vld [vmem:[#allocation74_spill] sm:$0xff] }
 0x2ad   : > { %v3385_v18 = vadd.f32 %v3353_v36, %v3333_v59  ;;  %v3386_v27 = vadd.f32 %v3354_v46, %v3334_v17  ;;  %v3387_v16 = vadd.f32 %v3355_v37, %v3335_v13  ;;  %v3388_v11 = vadd.f32 %v3356_v25, %v3336_v53  ;;  %v7793_v17 = vld [vmem:[#allocation71_spill] sm:$0xff]  ;;  %v7794_v53 = vld [vmem:[#allocation72_spill] sm:$0xff] }
 0x2ae   : > { %v3389_v58 = vadd.f32 %v3357_v20, %v3337_v6  ;;  %v3390_v63 = vadd.f32 %v3358_v9, %v3338_v40  ;;  %v3391_v38 = vadd.f32 %v3359_v48, %v3339_v0  ;;  %v3400_v52 = vmul.f32 %v6669_v3, %v7787_v55  ;;  %v7792_v6 = vld [vmem:[#allocation70_spill] sm:$0xff]  ;;  %v7795_v0 = vld [vmem:[#allocation73_spill] sm:$0xff] }
 0x2af   : > { %v3401_v56 = vmul.f32 %v6669_v3, %v7788_v60  ;;  %v3402_v45 = vmul.f32 %v6669_v3, %v7789_v39  ;;  %v3403_v14 = vmul.f32 %v6669_v3, %v7790_v51  ;;  %v3404_v40 = vmul.f32 %v6669_v3, %v7791_v4 }
 0x2b0   : > { %v3405_v59 = vmul.f32 %v6669_v3, %v7792_v6  ;;  %v3406_v13 = vmul.f32 %v6669_v3, %v7793_v17  ;;  %v3407_v49 = vmul.f32 %v6669_v3, %v7794_v53  ;;  %v3408_v8 = vmul.f32 %v6669_v3, %v7795_v0 }
 0x2b1   : > { %v3409_v24 = vmul.f32 %v6669_v3, %v7796_v5  ;;  %v3410_v32 = vadd.f32 %v3394_v61, %v3376_v19  ;;  %v3411_v44 = vadd.f32 %v3395_v31, %v3377_v33  ;;  %v3412_v7 = vadd.f32 %v3396_v47, %v3378_v28  ;;  %v6735_v19 = vld [vmem:[%s4920_s24 + $0x30] sm:$0xff]  ;;  %v6739_v47 = vld [vmem:[%s4920_s24 + $0x38] sm:$0xff] }
 0x2b2   : > { %v3413_v22 = vadd.f32 %v3397_v23, %v3379_v21  ;;  %v3414_v1 = vadd.f32 %v3398_v41, %v3380_v30  ;;  %v3415_v36 = vadd.f32 %v3399_v50, %v3381_v54  ;;  %v3416_v46 = vadd.f32 %v3400_v52, %v3382_v57  ;;  %7797 = vst [vmem:[#allocation55_spill] sm:$0xff] %v6735_v19  ;;  %v7799_v57 = vld [vmem:[#allocation27_spill] sm:$0xff] }
 0x2b3   : > { %v3417_v37 = vadd.f32 %v3401_v56, %v3383_v2  ;;  %v3418_v25 = vadd.f32 %v3402_v45, %v3384_v35  ;;  %v3419_v20 = vadd.f32 %v3403_v14, %v3385_v18  ;;  %v3420_v9 = vadd.f32 %v3404_v40, %v3386_v27  ;;  %7798 = vst [vmem:[#allocation26_spill] sm:$0xff] %v6739_v47  ;;  %v7800_v14 = vld [vmem:[#allocation28_spill] sm:$0xff] }
 0x2b4   : > { %v3421_v48 = vadd.f32 %v3405_v59, %v3387_v16  ;;  %v3422_v0 = vadd.f32 %v3406_v13, %v3388_v11  ;;  %v3427_v53 = vstv %s6705_s23  ;;  %v3423_v3 = vadd.f32 %v3407_v49, %v3389_v58 }
 0x2b5   : > { %v3424_v61 = vadd.f32 %v3408_v8, %v3390_v63  ;;  %v3428_v31 = vmul.f32 %v6735_v19, %v3427_v53  ;;  %v3429_v23 = vmul.f32 %v6739_v47, %v3427_v53  ;;  %v3425_v41 = vadd.f32 %v3409_v24, %v3391_v38 }
 0x2b6   : > { %v6743_v50 = vstv %s6707_s26  ;;  %v6746_v33 = vstv %s6709_s28 }
 0x2b7   : > { %v3432_v21 = vrot.slane %v3428_v31, 1  ;;  %v3433_v16 = vrot.slane %v3428_v31, 2  ;;  %v3434_v11 = vrot.slane %v3428_v31, 3  ;;  %v3435_v30 = vrot.slane %v3428_v31, 4 }
 0x2b8   : > { %v3436_v58 = vrot.slane %v3428_v31, 5  ;;  %v3437_v63 = vrot.slane %v3428_v31, 6  ;;  %v3439_v54 = vrot.slane %v3429_v23, 1  ;;  %v6751_v2 = vmul.f32 %v6746_v33, %v7799_v57 }
 0x2b9   : > { %v3438_v35 = vrot.slane %v3428_v31, 7  ;;  %v3440_v18 = vrot.slane %v3429_v23, 2  ;;  %v3441_v27 = vrot.slane %v3429_v23, 3  ;;  %v3442_v38 = vrot.slane %v3429_v23, 4 }
 0x2ba   : > { %v3443_v52 = vrot.slane %v3429_v23, 5  ;;  %v3444_v56 = vrot.slane %v3429_v23, 6  ;;  %v3463_v45 = vadd.f32 %v3432_v21, %v3411_v44  ;;  %v6755_v40 = vmul.f32 %v6746_v33, %v7800_v14 }
 0x2bb   : > { %v3445_v59 = vrot.slane %v3429_v23, 7  ;;  %v3464_v13 = vadd.f32 %v3433_v16, %v3412_v7  ;;  %v3465_v53 = vadd.f32 %v3434_v11, %v3413_v22  ;;  %v3466_v49 = vadd.f32 %v3435_v30, %v3414_v1 }
 0x2bc   : > { %v3462_v8 = vadd.f32 %v3428_v31, %v3410_v32  ;;  %v3467_v24 = vadd.f32 %v3436_v58, %v3415_v36  ;;  %v3468_v28 = vadd.f32 %v3437_v63, %v3416_v46  ;;  %v3471_v57 = vadd.f32 %v3439_v54, %v3419_v20 }
 0x2bd   : > { %v3469_v47 = vadd.f32 %v3438_v35, %v3417_v37  ;;  %v3472_v19 = vadd.f32 %v3440_v18, %v3420_v9  ;;  %v3473_v5 = vadd.f32 %v3441_v27, %v3421_v48  ;;  %v3474_v17 = vadd.f32 %v3442_v38, %v3422_v0  ;;  %v7802_v35 = vld [vmem:[#allocation30_spill] sm:$0xff] }
 0x2be   : > { %v3470_v6 = vadd.f32 %v3429_v23, %v3418_v25  ;;  %v3475_v4 = vadd.f32 %v3443_v52, %v3423_v3  ;;  %v3476_v51 = vadd.f32 %v3444_v56, %v3424_v61  ;;  %v3479_v44 = vmax.f32 %v3463_v45, 0.0  ;;  %v7803_v52 = vld [vmem:[#allocation31_spill] sm:$0xff]  ;;  %v7804_v45 = vld [vmem:[#allocation32_spill] sm:$0xff] }
 0x2bf   : > { %v3477_v21 = vadd.f32 %v3445_v59, %v3425_v41  ;;  %v3480_v39 = vmax.f32 %v3464_v13, 0.0  ;;  %v3481_v14 = vmax.f32 %v3465_v53, 0.0  ;;  %v3482_v60 = vmax.f32 %v3466_v49, 0.0  ;;  %v7805_v53 = vld [vmem:[#allocation33_spill] sm:$0xff] }
 0x2c0   : > { %v3478_v55 = vmax.f32 %v3462_v8, 0.0  ;;  %v3483_v7 = vmax.f32 %v3467_v24, 0.0  ;;  %v3484_v22 = vmax.f32 %v3468_v28, 0.0  ;;  %v3487_v1 = vmax.f32 %v3471_v57, 0.0  ;;  %v7806_v8 = vld [vmem:[#allocation34_spill] sm:$0xff] }
 0x2c1   : > { %v3485_v32 = vmax.f32 %v3469_v47, 0.0  ;;  %v3488_v36 = vmax.f32 %v3472_v19, 0.0  ;;  %v3489_v46 = vmax.f32 %v3473_v5, 0.0  ;;  %v3490_v20 = vmax.f32 %v3474_v17, 0.0 }
 0x2c2   : > { %v3486_v37 = vmax.f32 %v3470_v6, 0.0  ;;  %v3491_v9 = vmax.f32 %v3475_v4, 0.0  ;;  %v3510_v48 = vrot.slane %v3479_v44, 7  ;;  %v3512_v0 = vrot.slane %v3480_v39, 6 }
 0x2c3   : > { %v3492_v25 = vmax.f32 %v3476_v51, 0.0  ;;  %v3493_v3 = vmax.f32 %v3477_v21, 0.0  ;;  %v3514_v61 = vrot.slane %v3481_v14, 5  ;;  %v3516_v31 = vrot.slane %v3482_v60, 4  ;;  %v7807_v21 = vld [vmem:[#allocation35_spill] sm:$0xff] }
 0x2c4   : > { %v3511_v23 = vsel %vm1450_vm1, %v3510_v48, %v3478_v55  ;;  %v3518_v41 = vrot.slane %v3483_v7, 3  ;;  %v3524_v16 = vrot.slane %v3487_v1, 7  ;;  %v3526_v11 = vrot.slane %v3488_v36, 6  ;;  %v7801_v55 = vld [vmem:[#allocation29_spill] sm:$0xff] }
 0x2c5   : > { %v3513_v28 = vsel %vm1453_vm2, %v3512_v0, %v3511_v23  ;;  %v3520_v30 = vrot.slane %v3484_v22, 2  ;;  %v3528_v47 = vrot.slane %v3489_v46, 5  ;;  %v3530_v19 = vrot.slane %v3490_v20, 4  ;;  %v7808_v22 = vld [vmem:[#allocation36_spill] sm:$0xff]  ;;  %v7810_v20 = vld [vmem:[#allocation38_spill] sm:$0xff] }
 0x2c6   : > { %v3515_v17 = vsel %vm1456_vm3, %v3514_v61, %v3513_v28  ;;  %v3522_v6 = vrot.slane %v3485_v32, 1  ;;  %v3525_v4 = vsel %vm1450_vm1, %v3524_v16, %v3486_v37  ;;  %v3532_v39 = vrot.slane %v3491_v9, 3  ;;  %v7809_v32 = vld [vmem:[#allocation37_spill] sm:$0xff]  ;;  %v7811_v9 = vld [vmem:[#allocation39_spill] sm:$0xff]  ;;  %v7812_v0 = vld [vmem:[#allocation40_spill] sm:$0xff] }
 0x2c7   : > { %v3517_v51 = vsel %vm1459_vm4, %v3516_v31, %v3515_v17  ;;  %v3527_v60 = vsel %vm1453_vm2, %v3526_v11, %v3525_v4  ;;  %v3534_v5 = vrot.slane %v3492_v25, 2  ;;  %v3549_v58 = vmul.f32 %v6746_v33, %v7801_v55  ;;  %v7814_v31 = vld [vmem:[#allocation15_spill] sm:$0xff]  ;;  %v6822_v4 = vld [vmem:[%s4920_s24] sm:$0xff] }
 0x2c8   : > { %v3519_v63 = vsel %vm1462_vm5, %v3518_v41, %v3517_v51  ;;  %v3529_v54 = vsel %vm1456_vm3, %v3528_v47, %v3527_v60  ;;  %v3536_v57 = vrot.slane %v3493_v3, 1  ;;  %v3550_v18 = vmul.f32 %v6746_v33, %v7802_v35  ;;  %v7813_v3 = vld [vmem:[#allocation41_spill] sm:$0xff]  ;;  %7815 = vst [vmem:[#allocation75_spill] sm:$0xff] %v6822_v4 }
 0x2c9   : > { %v3521_v27 = vsel %vm1465_vm6, %v3520_v30, %v3519_v63  ;;  %v3531_v38 = vsel %vm1459_vm4, %v3530_v19, %v3529_v54  ;;  %v3551_v56 = vmul.f32 %v6746_v33, %v7803_v52  ;;  %v3552_v14 = vmul.f32 %v6746_v33, %v7804_v45  ;;  %v6832_v54 = vld [vmem:[%s4920_s24 + $0x8] sm:$0xff] }
 0x2ca   : > { %v3523_v59 = vsel %vm1468_vm7, %v3522_v6, %v3521_v27  ;;  %v3533_v13 = vsel %vm1462_vm5, %v3532_v39, %v3531_v38  ;;  %v3553_v49 = vmul.f32 %v6746_v33, %v7805_v53  ;;  %v3554_v24 = vmul.f32 %v6746_v33, %v7806_v8  ;;  %7817 = vst [vmem:[#allocation76_spill] sm:$0xff] %v6832_v54  ;;  %v7819_v38 = vld [vmem:[#allocation16_spill] sm:$0xff] }
 0x2cb   : > { %v3535_v44 = vsel %vm1465_vm6, %v3534_v5, %v3533_v13  ;;  %4574 = vst.msk [vmem:[%s5862_s17 + $0x50] sm:$0xff] %vm398_vm0, %v3523_v59  ;;  %v3555_v7 = vmul.f32 %v6746_v33, %v7807_v21  ;;  %v3556_v1 = vmul.f32 %v6746_v33, %v7808_v22  ;;  %v3557_v36 = vmul.f32 %v6746_v33, %v7809_v32 }
 0x2cc   : > { %v3537_v46 = vsel %vm1468_vm7, %v3536_v57, %v3535_v44  ;;  %v3558_v37 = vmul.f32 %v6746_v33, %v7810_v20  ;;  %v3559_v48 = vmul.f32 %v6746_v33, %v7811_v9  ;;  %v3560_v25 = vmul.f32 %v6746_v33, %v7812_v0 }
 0x2cd   : > { %4575 = vst.msk [vmem:[%s5862_s17 + $0x58] sm:$0xff] %vm398_vm0, %v3537_v46  ;;  %v3561_v61 = vmul.f32 %v6746_v33, %v7813_v3  ;;  %v3562_v23 = vmul.f32 %v6746_v33, %v7814_v31  ;;  %v3563_v41 = vadd.f32 %v6751_v2, %v6743_v50  ;;  %v3564_v16 = vadd.f32 %v6755_v40, %v6743_v50 }
 0x2ce   : > { %v3565_v11 = vadd.f32 %v3549_v58, %v6743_v50  ;;  %v3566_v28 = vadd.f32 %v3550_v18, %v6743_v50  ;;  %v3567_v30 = vadd.f32 %v3551_v56, %v6743_v50  ;;  %v3568_v47 = vadd.f32 %v3552_v14, %v6743_v50  ;;  %v7820_v14 = vld [vmem:[#allocation11_spill] sm:$0xff] }
 0x2cf   : > { %v3569_v19 = vadd.f32 %v3553_v49, %v6743_v50  ;;  %v3570_v33 = vadd.f32 %v3554_v24, %v6743_v50  ;;  %v3571_v2 = vadd.f32 %v3555_v7, %v6743_v50  ;;  %v3572_v17 = vadd.f32 %v3556_v1, %v6743_v50  ;;  %v7821_v7 = vld [vmem:[#allocation14_spill] sm:$0xff] }
 0x2d0   : > { %v3573_v40 = vadd.f32 %v3557_v36, %v6743_v50  ;;  %v3574_v6 = vadd.f32 %v3558_v37, %v6743_v50  ;;  %v7816_v39 = vstv %s6711_s25  ;;  %v3632_v60 = vstv %s6769_s29 }
 0x2d1   : > { %v3581_v51 = vmul.f32 %v6822_v4, %v7816_v39  ;;  %v3575_v5 = vadd.f32 %v3559_v48, %v6743_v50  ;;  %v3576_v58 = vadd.f32 %v3560_v25, %v6743_v50  ;;  %v3577_v63 = vadd.f32 %v3561_v61, %v6743_v50 }
 0x2d2   : > { %v7818_v57 = vmov %v7816_v39  ;;  %v3578_v27 = vadd.f32 %v3562_v23, %v6743_v50  ;;  %v3633_v56 = vmul.f32 %v3632_v60, %v7819_v38  ;;  %v3634_v59 = vmul.f32 %v3632_v60, %v7820_v14 }
 0x2d3   : > { %v3582_v18 = vmul.f32 %v6832_v54, %v7818_v57  ;;  %v3585_v49 = vrot.slane %v3581_v51, 1  ;;  %v3586_v24 = vrot.slane %v3581_v51, 2  ;;  %v3587_v44 = vrot.slane %v3581_v51, 3  ;;  %v7822_v57 = vld [vmem:[#allocation19_spill] sm:$0xff] }
 0x2d4   : > { %v3635_v1 = vmul.f32 %v3632_v60, %v7821_v7  ;;  %v3588_v36 = vrot.slane %v3581_v51, 4  ;;  %v3589_v46 = vrot.slane %v3581_v51, 5  ;;  %v3590_v37 = vrot.slane %v3581_v51, 6 }
 0x2d5   : > { %v3591_v48 = vrot.slane %v3581_v51, 7  ;;  %v3592_v25 = vrot.slane %v3582_v18, 1  ;;  %v3593_v61 = vrot.slane %v3582_v18, 2  ;;  %v3594_v39 = vrot.slane %v3582_v18, 3 }
 0x2d6   : > { %v3636_v54 = vmul.f32 %v3632_v60, %v7822_v57  ;;  %v3595_v50 = vrot.slane %v3582_v18, 4  ;;  %v3596_v23 = vrot.slane %v3582_v18, 5  ;;  %v3597_v38 = vrot.slane %v3582_v18, 6 }
 0x2d7   : > { %v3598_v4 = vrot.slane %v3582_v18, 7  ;;  %v3615_v14 = vadd.f32 %v3581_v51, %v3563_v41  ;;  %v3616_v13 = vadd.f32 %v3585_v49, %v3564_v16  ;;  %v3617_v31 = vadd.f32 %v3586_v24, %v3565_v11  ;;  %v7823_v41 = vld [vmem:[#allocation20_spill] sm:$0xff]  ;;  %v7824_v11 = vld [vmem:[#allocation23_spill] sm:$0xff]  ;;  %v7829_v51 = vld [vmem:[#allocation46_spill] sm:$0xff] }
 0x2d8   : > { %v3618_v3 = vadd.f32 %v3587_v44, %v3566_v28  ;;  %v3619_v0 = vadd.f32 %v3588_v36, %v3567_v30  ;;  %v3620_v9 = vadd.f32 %v3589_v46, %v3568_v47  ;;  %v3621_v7 = vadd.f32 %v3590_v37, %v3569_v19  ;;  %v7825_v30 = vld [vmem:[#allocation42_spill] sm:$0xff]  ;;  %v7826_v19 = vld [vmem:[#allocation43_spill] sm:$0xff]  ;;  %v7833_v49 = vld [vmem:[#allocation48_spill] sm:$0xff] }
 0x2d9   : > { %v3622_v20 = vadd.f32 %v3591_v48, %v3570_v33  ;;  %v3623_v32 = vadd.f32 %v3582_v18, %v3571_v2  ;;  %v3624_v22 = vadd.f32 %v3592_v25, %v3572_v17  ;;  %v3625_v21 = vadd.f32 %v3593_v61, %v3573_v40  ;;  %v7827_v2 = vld [vmem:[#allocation44_spill] sm:$0xff]  ;;  %v7828_v40 = vld [vmem:[#allocation45_spill] sm:$0xff] }
 0x2da   : > { %v3626_v8 = vadd.f32 %v3594_v39, %v3574_v6  ;;  %v3627_v53 = vadd.f32 %v3595_v50, %v3575_v5  ;;  %v3628_v45 = vadd.f32 %v3596_v23, %v3576_v58  ;;  %v3629_v52 = vadd.f32 %v3597_v38, %v3577_v63  ;;  %v7830_v5 = vld [vmem:[#allocation9_spill] sm:$0xff]  ;;  %v7831_v63 = vld [vmem:[#allocation10_spill] sm:$0xff] }
 0x2db   : > { %v3630_v57 = vadd.f32 %v3598_v4, %v3578_v27  ;;  %v3637_v16 = vmul.f32 %v3632_v60, %v7823_v41  ;;  %v3638_v28 = vmul.f32 %v3632_v60, %v7824_v11  ;;  %v3639_v47 = vmul.f32 %v3632_v60, %v7825_v30  ;;  %v7832_v27 = vld [vmem:[#allocation47_spill] sm:$0xff]  ;;  %v7834_v44 = vld [vmem:[#allocation17_spill] sm:$0xff]  ;;  %v7839_v30 = vld [vmem:[#allocation18_spill] sm:$0xff] }
 0x2dc   : > { %v3640_v33 = vmul.f32 %v3632_v60, %v7826_v19  ;;  %v3641_v17 = vmul.f32 %v3632_v60, %v7827_v2  ;;  %v3642_v6 = vmul.f32 %v3632_v60, %v7828_v40  ;;  %v3643_v4 = vmul.f32 %v3632_v60, %v7829_v51  ;;  %v7840_v41 = vld [vmem:[#allocation12_spill] sm:$0xff] }
 0x2dd   : > { %v3644_v58 = vmul.f32 %v3632_v60, %v7830_v5  ;;  %v3645_v18 = vmul.f32 %v3632_v60, %v7831_v63  ;;  %v3646_v38 = vmul.f32 %v3632_v60, %v7832_v27  ;;  %v3647_v24 = vmul.f32 %v3632_v60, %v7833_v49  ;;  %v6864_v5 = vld [vmem:[%s4920_s24 + $0x10] sm:$0xff] }
 0x2de   : > { %v3648_v36 = vmul.f32 %v3632_v60, %v7834_v44  ;;  %v3649_v46 = vadd.f32 %v3633_v56, %v3615_v14  ;;  %v3650_v37 = vadd.f32 %v3634_v59, %v3616_v13  ;;  %v3651_v48 = vadd.f32 %v3635_v1, %v3617_v31  ;;  %7835 = vst [vmem:[#allocation77_spill] sm:$0xff] %v6864_v5  ;;  %v6870_v31 = vld [vmem:[%s4920_s24 + $0x18] sm:$0xff] }
 0x2df   : > { %v3652_v25 = vadd.f32 %v3636_v54, %v3618_v3  ;;  %v3653_v61 = vadd.f32 %v3637_v16, %v3619_v0  ;;  %v3654_v39 = vadd.f32 %v3638_v28, %v3620_v9  ;;  %v3655_v50 = vadd.f32 %v3639_v47, %v3621_v7  ;;  %7837 = vst [vmem:[#allocation78_spill] sm:$0xff] %v6870_v31 }
 0x2e0   : > { %v3656_v23 = vadd.f32 %v3640_v33, %v3622_v20  ;;  %v3657_v27 = vadd.f32 %v3641_v17, %v3623_v32  ;;  %v3658_v63 = vadd.f32 %v3642_v6, %v3624_v22  ;;  %v3659_v49 = vadd.f32 %v3643_v4, %v3625_v21 }
 0x2e1   : > { %v7836_v60 = vstv %s6783_s30  ;;  %v3660_v14 = vadd.f32 %v3644_v58, %v3626_v8  ;;  %v3661_v59 = vadd.f32 %v3645_v18, %v3627_v53  ;;  %v3662_v13 = vadd.f32 %v3646_v38, %v3628_v45 }
 0x2e2   : > { %v3667_v56 = vmul.f32 %v6864_v5, %v7836_v60  ;;  %v7838_v0 = vmov %v7836_v60  ;;  %v3663_v3 = vadd.f32 %v3647_v24, %v3629_v52  ;;  %v3664_v20 = vadd.f32 %v3648_v36, %v3630_v57 }
 0x2e3   : > { %v3668_v9 = vmul.f32 %v6870_v31, %v7838_v0  ;;  %v3718_v32 = vstv %s6843_s6  ;;  %v6878_v1 = vstv %s6851_s8 }
 0x2e4   : > { %v3671_v54 = vrot.slane %v3667_v56, 1  ;;  %v3672_v21 = vrot.slane %v3667_v56, 2  ;;  %v3673_v7 = vrot.slane %v3667_v56, 3  ;;  %v3674_v16 = vrot.slane %v3667_v56, 4 }
 0x2e5   : > { %v3675_v28 = vrot.slane %v3667_v56, 5  ;;  %v3676_v8 = vrot.slane %v3667_v56, 6  ;;  %v3677_v53 = vrot.slane %v3667_v56, 7  ;;  %v3678_v45 = vrot.slane %v3668_v9, 1 }
 0x2e6   : > { %v3679_v47 = vrot.slane %v3668_v9, 2  ;;  %v3680_v33 = vrot.slane %v3668_v9, 3  ;;  %v3681_v6 = vrot.slane %v3668_v9, 4  ;;  %v3682_v4 = vrot.slane %v3668_v9, 5 }
 0x2e7   : > { %v3683_v58 = vrot.slane %v3668_v9, 6  ;;  %v3684_v52 = vrot.slane %v3668_v9, 7  ;;  %v3701_v57 = vadd.f32 %v3667_v56, %v3649_v46  ;;  %v3702_v18 = vadd.f32 %v3671_v54, %v3650_v37  ;;  %v7841_v46 = vld [vmem:[#allocation21_spill] sm:$0xff] }
 0x2e8   : > { %v3703_v38 = vadd.f32 %v3672_v21, %v3651_v48  ;;  %v3704_v24 = vadd.f32 %v3673_v7, %v3652_v25  ;;  %v3705_v36 = vadd.f32 %v3674_v16, %v3653_v61  ;;  %v3706_v60 = vadd.f32 %v3675_v28, %v3654_v39  ;;  %v7842_v48 = vld [vmem:[#allocation22_spill] sm:$0xff]  ;;  %v7843_v61 = vld [vmem:[#allocation24_spill] sm:$0xff] }
 0x2e9   : > { %v3707_v0 = vadd.f32 %v3676_v8, %v3655_v50  ;;  %v3708_v22 = vadd.f32 %v3677_v53, %v3656_v23  ;;  %v3709_v31 = vadd.f32 %v3668_v9, %v3657_v27  ;;  %v3710_v5 = vadd.f32 %v3678_v45, %v3658_v63  ;;  %v7844_v50 = vld [vmem:[#allocation25_spill] sm:$0xff] }
 0x2ea   : > { %v3711_v44 = vadd.f32 %v3679_v47, %v3659_v49  ;;  %v3712_v51 = vadd.f32 %v3680_v33, %v3660_v14  ;;  %v3713_v40 = vadd.f32 %v3681_v6, %v3661_v59  ;;  %v3714_v2 = vadd.f32 %v3682_v4, %v3662_v13  ;;  %v7845_v9 = vld [vmem:[#allocation57_spill] sm:$0xff] }
 0x2eb   : > { %v3715_v19 = vadd.f32 %v3683_v58, %v3663_v3  ;;  %v3716_v17 = vadd.f32 %v3684_v52, %v3664_v20  ;;  %v3719_v11 = vmul.f32 %v3718_v32, %v7839_v30  ;;  %v3720_v35 = vmul.f32 %v3718_v32, %v7840_v41  ;;  %v7846_v20 = vld [vmem:[#allocation58_spill] sm:$0xff]  ;;  %v6898_v52 = vld [vmem:[%s4920_s24 + $0x20] sm:$0xff] }
 0x2ec   : > { %v3721_v37 = vmul.f32 %v3718_v32, %v7841_v46  ;;  %v3722_v25 = vmul.f32 %v3718_v32, %v7842_v48  ;;  %v3723_v39 = vmul.f32 %v3718_v32, %v7843_v61  ;;  %v3724_v23 = vmul.f32 %v3718_v32, %v7844_v50  ;;  %7847 = vst [vmem:[#allocation49_spill] sm:$0xff] %v6898_v52 }
 0x2ed   : > { %v3725_v63 = vmul.f32 %v3718_v32, %v7771_v26  ;;  %v3726_v27 = vmul.f32 %v3718_v32, %v7772_v15  ;;  %v3727_v49 = vmul.f32 %v3718_v32, %v7773_v62  ;;  %v3728_v56 = vmul.f32 %v3718_v32, %v7774_v34  ;;  %v7854_v34 = vld [vmem:[#allocation63_spill] sm:$0xff]  ;;  %v7855_v15 = vld [vmem:[#allocation64_spill] sm:$0xff] }
 0x2ee   : > { %v3729_v14 = vmul.f32 %v3718_v32, %v7775_v29  ;;  %v3730_v59 = vmul.f32 %v3718_v32, %v7776_v42  ;;  %v3731_v13 = vmul.f32 %v3718_v32, %v7777_v43  ;;  %v3732_v3 = vmul.f32 %v3718_v32, %v7845_v9 }
 0x2ef   : > { %v3733_v54 = vmul.f32 %v3718_v32, %v7846_v20  ;;  %v3734_v21 = vmul.f32 %v3718_v32, %v7780_v12  ;;  %v3735_v7 = vadd.f32 %v3719_v11, %v3701_v57  ;;  %v3736_v16 = vadd.f32 %v3720_v35, %v3702_v18  ;;  %v6904_v57 = vld [vmem:[%s4920_s24 + $0x28] sm:$0xff] }
 0x2f0   : > { %v3737_v28 = vadd.f32 %v3721_v37, %v3703_v38  ;;  %v3738_v8 = vadd.f32 %v3722_v25, %v3704_v24  ;;  %v3739_v53 = vadd.f32 %v3723_v39, %v3705_v36  ;;  %v3740_v45 = vadd.f32 %v3724_v23, %v3706_v60  ;;  %7849 = vst [vmem:[#allocation79_spill] sm:$0xff] %v6904_v57 }
 0x2f1   : > { %v3741_v47 = vadd.f32 %v3725_v63, %v3707_v0  ;;  %v3742_v33 = vadd.f32 %v3726_v27, %v3708_v22  ;;  %v3743_v6 = vadd.f32 %v3727_v49, %v3709_v31  ;;  %v3744_v4 = vadd.f32 %v3728_v56, %v3710_v5  ;;  %v7851_v5 = vld [vmem:[#allocation60_spill] sm:$0xff]  ;;  %v7852_v0 = vld [vmem:[#allocation61_spill] sm:$0xff] }
 0x2f2   : > { %v3745_v58 = vadd.f32 %v3729_v14, %v3711_v44  ;;  %v7848_v9 = vstv %s6845_s7  ;;  %v3746_v43 = vadd.f32 %v3730_v59, %v3712_v51  ;;  %v3747_v32 = vadd.f32 %v3731_v13, %v3713_v40 }
 0x2f3   : > { %v3753_v20 = vmul.f32 %v6898_v52, %v7848_v9  ;;  %v3748_v11 = vadd.f32 %v3732_v3, %v3714_v2  ;;  %v7850_v35 = vmov %v7848_v9  ;;  %v3749_v38 = vadd.f32 %v3733_v54, %v3715_v19 }
 0x2f4   : > { %v3754_v18 = vmul.f32 %v6904_v57, %v7850_v35  ;;  %v3750_v24 = vadd.f32 %v3734_v21, %v3716_v17  ;;  %v3805_v31 = vmul.f32 %v6878_v1, %v7719_v10  ;;  %v3806_v44 = vmul.f32 %v6878_v1, %v7851_v5  ;;  %v7853_v17 = vld [vmem:[#allocation62_spill] sm:$0xff] }
 0x2f5   : > { %v3757_v22 = vrot.slane %v3753_v20, 1  ;;  %v3758_v36 = vrot.slane %v3753_v20, 2  ;;  %v3759_v60 = vrot.slane %v3753_v20, 3  ;;  %v3807_v40 = vmul.f32 %v6878_v1, %v7852_v0 }
 0x2f6   : > { %v3760_v2 = vrot.slane %v3753_v20, 4  ;;  %v3761_v51 = vrot.slane %v3753_v20, 5  ;;  %v3762_v37 = vrot.slane %v3753_v20, 6  ;;  %v3763_v25 = vrot.slane %v3753_v20, 7 }
 0x2f7   : > { %v3764_v39 = vrot.slane %v3754_v18, 1  ;;  %v3765_v23 = vrot.slane %v3754_v18, 2  ;;  %v3766_v19 = vrot.slane %v3754_v18, 3  ;;  %v3808_v63 = vmul.f32 %v6878_v1, %v7853_v17 }
 0x2f8   : > { %v3767_v27 = vrot.slane %v3754_v18, 4  ;;  %v3768_v49 = vrot.slane %v3754_v18, 5  ;;  %v3769_v56 = vrot.slane %v3754_v18, 6  ;;  %v3770_v14 = vrot.slane %v3754_v18, 7 }
 0x2f9   : > { %v3787_v59 = vadd.f32 %v3753_v20, %v3735_v7  ;;  %v3788_v13 = vadd.f32 %v3757_v22, %v3736_v16  ;;  %v3789_v9 = vadd.f32 %v3758_v36, %v3737_v28  ;;  %v3790_v3 = vadd.f32 %v3759_v60, %v3738_v8  ;;  %v7856_v7 = vld [vmem:[#allocation65_spill] sm:$0xff]  ;;  %v7857_v28 = vld [vmem:[#allocation66_spill] sm:$0xff] }
 0x2fa   : > { %v3791_v54 = vadd.f32 %v3760_v2, %v3739_v53  ;;  %v3792_v21 = vadd.f32 %v3761_v51, %v3740_v45  ;;  %v3793_v35 = vadd.f32 %v3762_v37, %v3741_v47  ;;  %v3794_v0 = vadd.f32 %v3763_v25, %v3742_v33  ;;  %v7858_v53 = vld [vmem:[#allocation67_spill] sm:$0xff]  ;;  %v7860_v33 = vld [vmem:[#allocation69_spill] sm:$0xff]  ;;  %v7865_v36 = vld [vmem:[#allocation74_spill] sm:$0xff] }
 0x2fb   : > { %v3795_v5 = vadd.f32 %v3754_v18, %v3743_v6  ;;  %v3796_v10 = vadd.f32 %v3764_v39, %v3744_v4  ;;  %v3797_v57 = vadd.f32 %v3765_v23, %v3745_v58  ;;  %v3798_v52 = vadd.f32 %v3766_v19, %v3746_v43  ;;  %v7859_v43 = vld [vmem:[#allocation68_spill] sm:$0xff]  ;;  %v7861_v4 = vld [vmem:[#allocation70_spill] sm:$0xff] }
 0x2fc   : > { %v3799_v12 = vadd.f32 %v3767_v27, %v3747_v32  ;;  %v3800_v42 = vadd.f32 %v3768_v49, %v3748_v11  ;;  %v3801_v29 = vadd.f32 %v3769_v56, %v3749_v38  ;;  %v3802_v17 = vadd.f32 %v3770_v14, %v3750_v24  ;;  %v7862_v32 = vld [vmem:[#allocation71_spill] sm:$0xff]  ;;  %v7863_v18 = vld [vmem:[#allocation72_spill] sm:$0xff]  ;;  %v7864_v24 = vld [vmem:[#allocation73_spill] sm:$0xff] }
 0x2fd   : > { %v3809_v62 = vmul.f32 %v6878_v1, %v7854_v34  ;;  %v3810_v20 = vmul.f32 %v6878_v1, %v7855_v15  ;;  %v3811_v16 = vmul.f32 %v6878_v1, %v7856_v7  ;;  %v3812_v8 = vmul.f32 %v6878_v1, %v7857_v28 }
 0x2fe   : > { %v3813_v45 = vmul.f32 %v6878_v1, %v7858_v53  ;;  %v3814_v47 = vmul.f32 %v6878_v1, %v7859_v43  ;;  %v3815_v6 = vmul.f32 %v6878_v1, %v7860_v33  ;;  %v3816_v58 = vmul.f32 %v6878_v1, %v7861_v4  ;;  %v7869_v33 = vld [vmem:[#allocation26_spill] sm:$0xff] }
 0x2ff   : > { %v3817_v11 = vmul.f32 %v6878_v1, %v7862_v32  ;;  %v3818_v38 = vmul.f32 %v6878_v1, %v7863_v18  ;;  %v3819_v22 = vmul.f32 %v6878_v1, %v7864_v24  ;;  %v3820_v60 = vmul.f32 %v6878_v1, %v7865_v36  ;;  %v7867_v32 = vld [vmem:[#allocation55_spill] sm:$0xff] }
 0x300   : > { %v3821_v2 = vadd.f32 %v3805_v31, %v3787_v59  ;;  %v3822_v51 = vadd.f32 %v3806_v44, %v3788_v13  ;;  %v3823_v37 = vadd.f32 %v3807_v40, %v3789_v9  ;;  %v3824_v25 = vadd.f32 %v3808_v63, %v3790_v3 }
 0x301   : > { %v3825_v39 = vadd.f32 %v3809_v62, %v3791_v54  ;;  %v3826_v23 = vadd.f32 %v3810_v20, %v3792_v21  ;;  %v3827_v19 = vadd.f32 %v3811_v16, %v3793_v35  ;;  %v3828_v27 = vadd.f32 %v3812_v8, %v3794_v0 }
 0x302   : > { %v3829_v49 = vadd.f32 %v3813_v45, %v3795_v5  ;;  %v3830_v56 = vadd.f32 %v3814_v47, %v3796_v10  ;;  %v7866_v14 = vstv %s6861_s9  ;;  %v3831_v24 = vadd.f32 %v3815_v6, %v3797_v57 }
 0x303   : > { %v3839_v4 = vmul.f32 %v7867_v32, %v7866_v14  ;;  %v7868_v18 = vmov %v7866_v14  ;;  %v3832_v53 = vadd.f32 %v3816_v58, %v3798_v52  ;;  %v3833_v28 = vadd.f32 %v3817_v11, %v3799_v12 }
 0x304   : > { %v3840_v43 = vmul.f32 %v7869_v33, %v7868_v18  ;;  %v3834_v1 = vadd.f32 %v3818_v38, %v3800_v42  ;;  %v3835_v62 = vadd.f32 %v3819_v22, %v3801_v29  ;;  %v3836_v54 = vadd.f32 %v3820_v60, %v3802_v17 }
 0x305   : > { %v3843_v31 = vrot.slane %v3839_v4, 1  ;;  %v3844_v44 = vrot.slane %v3839_v4, 2  ;;  %v3845_v40 = vrot.slane %v3839_v4, 3  ;;  %v3846_v63 = vrot.slane %v3839_v4, 4 }
 0x306   : > { %v3847_v59 = vrot.slane %v3839_v4, 5  ;;  %v3848_v13 = vrot.slane %v3839_v4, 6  ;;  %v3850_v0 = vrot.slane %v3840_v43, 1  ;;  %v3849_v5 = vrot.slane %v3839_v4, 7 }
 0x307   : > { %v3851_v10 = vrot.slane %v3840_v43, 2  ;;  %v3852_v9 = vrot.slane %v3840_v43, 3  ;;  %v3853_v3 = vrot.slane %v3840_v43, 4  ;;  %v3854_v21 = vrot.slane %v3840_v43, 5 }
 0x308   : > { %v3855_v35 = vrot.slane %v3840_v43, 6  ;;  %v3874_v20 = vadd.f32 %v3843_v31, %v3822_v51  ;;  %v3856_v57 = vrot.slane %v3840_v43, 7  ;;  %v3875_v52 = vadd.f32 %v3844_v44, %v3823_v37 }
 0x309   : > { %v3876_v12 = vadd.f32 %v3845_v40, %v3824_v25  ;;  %v3877_v42 = vadd.f32 %v3846_v63, %v3825_v39  ;;  %v3873_v16 = vadd.f32 %v3839_v4, %v3821_v2  ;;  %v3878_v8 = vadd.f32 %v3847_v59, %v3826_v23 }
 0x30a   : > { %v3879_v45 = vadd.f32 %v3848_v13, %v3827_v19  ;;  %v3882_v47 = vadd.f32 %v3850_v0, %v3830_v56  ;;  %v3880_v29 = vadd.f32 %v3849_v5, %v3828_v27  ;;  %v3883_v33 = vadd.f32 %v3851_v10, %v3831_v24 }
 0x30b   : > { %v3884_v6 = vadd.f32 %v3852_v9, %v3832_v53  ;;  %v3885_v58 = vadd.f32 %v3853_v3, %v3833_v28  ;;  %v3881_v32 = vadd.f32 %v3840_v43, %v3829_v49  ;;  %v3886_v11 = vadd.f32 %v3854_v21, %v3834_v1 }
 0x30c   : > { %v3887_v18 = vadd.f32 %v3855_v35, %v3835_v62  ;;  %v3890_v38 = vmax.f32 %v3874_v20, 0.0  ;;  %v3888_v17 = vadd.f32 %v3856_v57, %v3836_v54  ;;  %v3891_v22 = vmax.f32 %v3875_v52, 0.0 }
 0x30d   : > { %v3892_v60 = vmax.f32 %v3876_v12, 0.0  ;;  %v3893_v51 = vmax.f32 %v3877_v42, 0.0  ;;  %v3889_v14 = vmax.f32 %v3873_v16, 0.0  ;;  %v3894_v37 = vmax.f32 %v3878_v8, 0.0 }
 0x30e   : > { %v3895_v25 = vmax.f32 %v3879_v45, 0.0  ;;  %v3898_v39 = vmax.f32 %v3882_v47, 0.0  ;;  %v3896_v4 = vmax.f32 %v3880_v29, 0.0  ;;  %v3899_v2 = vmax.f32 %v3883_v33, 0.0 }
 0x30f   : > { %v3900_v23 = vmax.f32 %v3884_v6, 0.0  ;;  %v3901_v24 = vmax.f32 %v3885_v58, 0.0  ;;  %v3897_v28 = vmax.f32 %v3881_v32, 0.0  ;;  %v3902_v53 = vmax.f32 %v3886_v11, 0.0  ;;  %v7870_v6 = vld [vmem:[#allocation27_spill] sm:$0xff]  ;;  %v7871_v32 = vld [vmem:[#allocation28_spill] sm:$0xff] }
 0x310   : > { %v3921_v43 = vrot.slane %v3890_v38, 7  ;;  %v3923_v19 = vrot.slane %v3891_v22, 6  ;;  %v3903_v27 = vmax.f32 %v3887_v18, 0.0  ;;  %v3904_v49 = vmax.f32 %v3888_v17, 0.0  ;;  %v7872_v22 = vld [vmem:[#allocation30_spill] sm:$0xff] }
 0x311   : > { %v3925_v56 = vrot.slane %v3892_v60, 5  ;;  %v3927_v1 = vrot.slane %v3893_v51, 4  ;;  %v3929_v44 = vrot.slane %v3894_v37, 3  ;;  %v3935_v40 = vrot.slane %v3898_v39, 7  ;;  %v7873_v51 = vld [vmem:[#allocation31_spill] sm:$0xff]  ;;  %v7874_v37 = vld [vmem:[#allocation32_spill] sm:$0xff] }
 0x312   : > { %v3922_v31 = vsel %vm1450_vm1, %v3921_v43, %v3889_v14  ;;  %v3937_v63 = vrot.slane %v3899_v2, 6  ;;  %v3931_v59 = vrot.slane %v3895_v25, 2  ;;  %v3939_v13 = vrot.slane %v3900_v23, 5  ;;  %v7875_v39 = vld [vmem:[#allocation33_spill] sm:$0xff]  ;;  %v7876_v2 = vld [vmem:[#allocation34_spill] sm:$0xff] }
 0x313   : > { %v3924_v62 = vsel %vm1453_vm2, %v3923_v19, %v3922_v31  ;;  %v3941_v0 = vrot.slane %v3901_v24, 4  ;;  %v3933_v10 = vrot.slane %v3896_v4, 1  ;;  %v3936_v9 = vsel %vm1450_vm1, %v3935_v40, %v3897_v28  ;;  %v7877_v24 = vld [vmem:[#allocation35_spill] sm:$0xff]  ;;  %v7879_v19 = vld [vmem:[#allocation37_spill] sm:$0xff]  ;;  %v7882_v31 = vld [vmem:[#allocation40_spill] sm:$0xff] }
 0x314   : > { %v3926_v5 = vsel %vm1456_vm3, %v3925_v56, %v3924_v62  ;;  %v3943_v3 = vrot.slane %v3902_v53, 3  ;;  %v3938_v21 = vsel %vm1453_vm2, %v3937_v63, %v3936_v9  ;;  %v3945_v35 = vrot.slane %v3903_v27, 2  ;;  %v7878_v53 = vld [vmem:[#allocation36_spill] sm:$0xff]  ;;  %v7881_v56 = vld [vmem:[#allocation39_spill] sm:$0xff]  ;;  %v7883_v40 = vld [vmem:[#allocation41_spill] sm:$0xff] }
 0x315   : > { %v3928_v54 = vsel %vm1459_vm4, %v3927_v1, %v3926_v5  ;;  %v3940_v57 = vsel %vm1456_vm3, %v3939_v13, %v3938_v21  ;;  %v3947_v52 = vrot.slane %v3904_v49, 1  ;;  %v3957_v12 = vstv %s6947_s10  ;;  %v7880_v49 = vld [vmem:[#allocation38_spill] sm:$0xff]  ;;  %v7884_v62 = vld [vmem:[#allocation15_spill] sm:$0xff] }
 0x316   : > { %v3930_v20 = vsel %vm1462_vm5, %v3929_v44, %v3928_v54  ;;  %v3942_v16 = vsel %vm1459_vm4, %v3941_v0, %v3940_v57  ;;  %v3955_v47 = vstv %s6949_s11  ;;  %v3991_v29 = vstv %s6951_s12 }
 0x317   : > { %v3932_v42 = vsel %vm1465_vm6, %v3931_v59, %v3930_v20  ;;  %v3944_v45 = vsel %vm1462_vm5, %v3943_v3, %v3942_v16  ;;  %v3958_v58 = vmul.f32 %v3957_v12, %v7870_v6  ;;  %v3959_v11 = vmul.f32 %v3957_v12, %v7871_v32  ;;  %v7886_v6 = vld [vmem:[#allocation76_spill] sm:$0xff] }
 0x318   : > { %v3934_v8 = vsel %vm1468_vm7, %v3933_v10, %v3932_v42  ;;  %v3946_v33 = vsel %vm1465_vm6, %v3945_v35, %v3944_v45  ;;  %v6973_v18 = vstv %s4590_s13  ;;  %v3960_v17 = vmul.f32 %v3957_v12, %v7801_v55  ;;  %v7885_v35 = vld [vmem:[#allocation75_spill] sm:$0xff] }
 0x319   : > { %4585 = vst.msk [vmem:[%s5862_s17 + $0x60] sm:$0xff] %vm398_vm0, %v3934_v8  ;;  %v3948_v38 = vsel %vm1468_vm7, %v3947_v52, %v3946_v33  ;;  %v3961_v60 = vmul.f32 %v3957_v12, %v7872_v22  ;;  %v3962_v14 = vmul.f32 %v3957_v12, %v7873_v51  ;;  %v3963_v25 = vmul.f32 %v3957_v12, %v7874_v37  ;;  %v7889_v22 = vld [vmem:[#allocation14_spill] sm:$0xff] }
 0x31a   : > { %4586 = vst.msk [vmem:[%s5862_s17 + $0x68] sm:$0xff] %vm398_vm0, %v3948_v38  ;;  %v3964_v4 = vmul.f32 %v3957_v12, %v7875_v39  ;;  %v3965_v23 = vmul.f32 %v3957_v12, %v7876_v2  ;;  %v3966_v28 = vmul.f32 %v3957_v12, %v7877_v24  ;;  %v3967_v43 = vmul.f32 %v3957_v12, %v7878_v53  ;;  %v7888_v38 = vld [vmem:[#allocation11_spill] sm:$0xff] }
 0x31b   : > { %v3968_v27 = vmul.f32 %v3957_v12, %v7879_v19  ;;  %v3969_v55 = vmul.f32 %v3957_v12, %v7880_v49  ;;  %v3970_v1 = vmul.f32 %v3957_v12, %v7881_v56  ;;  %v3971_v44 = vmul.f32 %v3957_v12, %v7882_v31 }
 0x31c   : > { %v3972_v63 = vmul.f32 %v3957_v12, %v7883_v40  ;;  %v3973_v59 = vmul.f32 %v3957_v12, %v7884_v62  ;;  %v3974_v13 = vadd.f32 %v3958_v58, %v3955_v47  ;;  %v3975_v0 = vadd.f32 %v3959_v11, %v3955_v47  ;;  %v7887_v58 = vld [vmem:[#allocation16_spill] sm:$0xff] }
 0x31d   : > { %v3976_v5 = vadd.f32 %v3960_v17, %v3955_v47  ;;  %v3977_v10 = vadd.f32 %v3961_v60, %v3955_v47  ;;  %v3978_v9 = vadd.f32 %v3962_v14, %v3955_v47  ;;  %v3979_v3 = vadd.f32 %v3963_v25, %v3955_v47 }
 0x31e   : > { %v3980_v54 = vadd.f32 %v3964_v4, %v3955_v47  ;;  %v3981_v21 = vadd.f32 %v3965_v23, %v3955_v47  ;;  %v3992_v20 = vmul.f32 %v7885_v35, %v3991_v29  ;;  %v3982_v57 = vadd.f32 %v3966_v28, %v3955_v47  ;;  %v7890_v23 = vld [vmem:[#allocation19_spill] sm:$0xff] }
 0x31f   : > { %v3983_v52 = vadd.f32 %v3967_v43, %v3955_v47  ;;  %v3984_v42 = vadd.f32 %v3968_v27, %v3955_v47  ;;  %v3985_v16 = vadd.f32 %v3969_v55, %v3955_v47  ;;  %v3986_v8 = vadd.f32 %v3970_v1, %v3955_v47 }
 0x320   : > { %v3987_v45 = vadd.f32 %v3971_v44, %v3955_v47  ;;  %v3988_v33 = vadd.f32 %v3972_v63, %v3955_v47  ;;  %v3993_v32 = vmul.f32 %v7886_v6, %v3991_v29  ;;  %v3989_v12 = vadd.f32 %v3973_v59, %v3955_v47 }
 0x321   : > { %v4044_v11 = vmul.f32 %v6973_v18, %v7887_v58  ;;  %v4045_v17 = vmul.f32 %v6973_v18, %v7888_v38  ;;  %v4046_v60 = vmul.f32 %v6973_v18, %v7889_v22  ;;  %v3996_v51 = vrot.slane %v3992_v20, 1 }
 0x322   : > { %v3997_v14 = vrot.slane %v3992_v20, 2  ;;  %v3998_v37 = vrot.slane %v3992_v20, 3  ;;  %v3999_v25 = vrot.slane %v3992_v20, 4  ;;  %v4000_v39 = vrot.slane %v3992_v20, 5 }
 0x323   : > { %v4001_v4 = vrot.slane %v3992_v20, 6  ;;  %v4002_v2 = vrot.slane %v3992_v20, 7  ;;  %v4047_v29 = vmul.f32 %v6973_v18, %v7890_v23  ;;  %v4003_v47 = vrot.slane %v3993_v32, 1 }
 0x324   : > { %v4004_v24 = vrot.slane %v3993_v32, 2  ;;  %v4005_v28 = vrot.slane %v3993_v32, 3  ;;  %v4006_v53 = vrot.slane %v3993_v32, 4  ;;  %v4007_v43 = vrot.slane %v3993_v32, 5 }
 0x325   : > { %v4008_v19 = vrot.slane %v3993_v32, 6  ;;  %v4009_v27 = vrot.slane %v3993_v32, 7  ;;  %v4026_v49 = vadd.f32 %v3992_v20, %v3974_v13  ;;  %v4027_v55 = vadd.f32 %v3996_v51, %v3975_v0  ;;  %v7891_v13 = vld [vmem:[#allocation20_spill] sm:$0xff]  ;;  %v7900_v51 = vld [vmem:[#allocation47_spill] sm:$0xff] }
 0x326   : > { %v4028_v56 = vadd.f32 %v3997_v14, %v3976_v5  ;;  %v4029_v1 = vadd.f32 %v3998_v37, %v3977_v10  ;;  %v4030_v31 = vadd.f32 %v3999_v25, %v3978_v9  ;;  %v4031_v44 = vadd.f32 %v4000_v39, %v3979_v3  ;;  %v7892_v5 = vld [vmem:[#allocation23_spill] sm:$0xff]  ;;  %v7893_v9 = vld [vmem:[#allocation42_spill] sm:$0xff]  ;;  %v7895_v20 = vld [vmem:[#allocation44_spill] sm:$0xff] }
 0x327   : > { %v4032_v40 = vadd.f32 %v4001_v4, %v3980_v54  ;;  %v4033_v63 = vadd.f32 %v4002_v2, %v3981_v21  ;;  %v4034_v62 = vadd.f32 %v3993_v32, %v3982_v57  ;;  %v4035_v59 = vadd.f32 %v4003_v47, %v3983_v52  ;;  %v7894_v54 = vld [vmem:[#allocation43_spill] sm:$0xff]  ;;  %v7896_v52 = vld [vmem:[#allocation45_spill] sm:$0xff]  ;;  %v7899_v32 = vld [vmem:[#allocation10_spill] sm:$0xff] }
 0x328   : > { %v4036_v35 = vadd.f32 %v4004_v24, %v3984_v42  ;;  %v4037_v6 = vadd.f32 %v4005_v28, %v3985_v16  ;;  %v4038_v58 = vadd.f32 %v4006_v53, %v3986_v8  ;;  %v4039_v38 = vadd.f32 %v4007_v43, %v3987_v45  ;;  %v7897_v16 = vld [vmem:[#allocation46_spill] sm:$0xff]  ;;  %v7898_v45 = vld [vmem:[#allocation9_spill] sm:$0xff]  ;;  %v7901_v37 = vld [vmem:[#allocation48_spill] sm:$0xff] }
 0x329   : > { %v4040_v22 = vadd.f32 %v4008_v19, %v3988_v33  ;;  %v4041_v23 = vadd.f32 %v4009_v27, %v3989_v12  ;;  %v4048_v0 = vmul.f32 %v6973_v18, %v7891_v13  ;;  %v4049_v10 = vmul.f32 %v6973_v18, %v7892_v5  ;;  %v7902_v39 = vld [vmem:[#allocation17_spill] sm:$0xff] }
 0x32a   : > { %v4050_v3 = vmul.f32 %v6973_v18, %v7893_v9  ;;  %v4051_v21 = vmul.f32 %v6973_v18, %v7894_v54  ;;  %v4052_v57 = vmul.f32 %v6973_v18, %v7895_v20  ;;  %v4053_v42 = vmul.f32 %v6973_v18, %v7896_v52  ;;  %v7903_v54 = vld [vmem:[#allocation77_spill] sm:$0xff] }
 0x32b   : > { %v4054_v8 = vmul.f32 %v6973_v18, %v7897_v16  ;;  %v4055_v33 = vmul.f32 %v6973_v18, %v7898_v45  ;;  %v4056_v12 = vmul.f32 %v6973_v18, %v7899_v32  ;;  %v4057_v14 = vmul.f32 %v6973_v18, %v7900_v51 }
 0x32c   : > { %v4058_v25 = vmul.f32 %v6973_v18, %v7901_v37  ;;  %v4059_v4 = vmul.f32 %v6973_v18, %v7902_v39  ;;  %v4060_v2 = vadd.f32 %v4044_v11, %v4026_v49  ;;  %v4061_v47 = vadd.f32 %v4045_v17, %v4027_v55  ;;  %v7904_v11 = vld [vmem:[#allocation78_spill] sm:$0xff] }
 0x32d   : > { %v4062_v24 = vadd.f32 %v4046_v60, %v4028_v56  ;;  %v4063_v28 = vadd.f32 %v4047_v29, %v4029_v1  ;;  %v4064_v53 = vadd.f32 %v4048_v0, %v4030_v31  ;;  %v4065_v43 = vadd.f32 %v4049_v10, %v4031_v44 }
 0x32e   : > { %v4066_v19 = vadd.f32 %v4050_v3, %v4032_v40  ;;  %v4067_v27 = vadd.f32 %v4051_v21, %v4033_v63  ;;  %v4077_v13 = vstv %s7002_s14  ;;  %v4068_v5 = vadd.f32 %v4052_v57, %v4034_v62 }
 0x32f   : > { %v4069_v9 = vadd.f32 %v4053_v42, %v4035_v59  ;;  %v4078_v20 = vmul.f32 %v7903_v54, %v4077_v13  ;;  %v4129_v52 = vstv %s7004_s15  ;;  %v4070_v16 = vadd.f32 %v4054_v8, %v4036_v35 }
 0x330   : > { %v4071_v45 = vadd.f32 %v4055_v33, %v4037_v6  ;;  %v4072_v32 = vadd.f32 %v4056_v12, %v4038_v58  ;;  %v4073_v51 = vadd.f32 %v4057_v14, %v4039_v38  ;;  %v4074_v37 = vadd.f32 %v4058_v25, %v4040_v22 }
 0x331   : > { %v4075_v18 = vadd.f32 %v4059_v4, %v4041_v23  ;;  %v4079_v17 = vmul.f32 %v7904_v11, %v4077_v13  ;;  %v4130_v60 = vmul.f32 %v4129_v52, %v7839_v30  ;;  %v4131_v29 = vmul.f32 %v4129_v52, %v7840_v41  ;;  %v7909_v13 = vld [vmem:[#allocation54_spill] sm:$0xff] }
 0x332   : > { %v4132_v49 = vmul.f32 %v4129_v52, %v7841_v46  ;;  %v4133_v55 = vmul.f32 %v4129_v52, %v7842_v48  ;;  %v4134_v56 = vmul.f32 %v4129_v52, %v7843_v61  ;;  %v4082_v1 = vrot.slane %v4078_v20, 1 }
 0x333   : > { %v4083_v31 = vrot.slane %v4078_v20, 2  ;;  %v4084_v44 = vrot.slane %v4078_v20, 3  ;;  %v4085_v40 = vrot.slane %v4078_v20, 4  ;;  %v4086_v63 = vrot.slane %v4078_v20, 5 }
 0x334   : > { %v4087_v62 = vrot.slane %v4078_v20, 6  ;;  %v4088_v59 = vrot.slane %v4078_v20, 7  ;;  %v4135_v35 = vmul.f32 %v4129_v52, %v7844_v50  ;;  %v4089_v6 = vrot.slane %v4079_v17, 1 }
 0x335   : > { %v4090_v58 = vrot.slane %v4079_v17, 2  ;;  %v4091_v30 = vrot.slane %v4079_v17, 3  ;;  %v4092_v38 = vrot.slane %v4079_v17, 4  ;;  %v4093_v41 = vrot.slane %v4079_v17, 5 }
 0x336   : > { %v4094_v22 = vrot.slane %v4079_v17, 6  ;;  %v4095_v46 = vrot.slane %v4079_v17, 7  ;;  %v4112_v23 = vadd.f32 %v4078_v20, %v4060_v2  ;;  %v4113_v48 = vadd.f32 %v4082_v1, %v4061_v47  ;;  %v7905_v2 = vld [vmem:[#allocation50_spill] sm:$0xff]  ;;  %v7911_v20 = vld [vmem:[#allocation57_spill] sm:$0xff] }
 0x337   : > { %v4114_v0 = vadd.f32 %v4083_v31, %v4062_v24  ;;  %v4115_v61 = vadd.f32 %v4084_v44, %v4063_v28  ;;  %v4116_v10 = vadd.f32 %v4085_v40, %v4064_v53  ;;  %v4117_v3 = vadd.f32 %v4086_v63, %v4065_v43  ;;  %v7906_v24 = vld [vmem:[#allocation51_spill] sm:$0xff]  ;;  %v7907_v53 = vld [vmem:[#allocation52_spill] sm:$0xff] }
 0x338   : > { %v4118_v21 = vadd.f32 %v4087_v62, %v4066_v19  ;;  %v4119_v57 = vadd.f32 %v4088_v59, %v4067_v27  ;;  %v4120_v50 = vadd.f32 %v4079_v17, %v4068_v5  ;;  %v4121_v42 = vadd.f32 %v4089_v6, %v4069_v9  ;;  %v7908_v19 = vld [vmem:[#allocation53_spill] sm:$0xff]  ;;  %v7910_v9 = vld [vmem:[#allocation56_spill] sm:$0xff] }
 0x339   : > { %v4122_v8 = vadd.f32 %v4090_v58, %v4070_v16  ;;  %v4123_v33 = vadd.f32 %v4091_v30, %v4071_v45  ;;  %v4124_v12 = vadd.f32 %v4092_v38, %v4072_v32  ;;  %v4125_v14 = vadd.f32 %v4093_v41, %v4073_v51  ;;  %v7912_v45 = vld [vmem:[#allocation58_spill] sm:$0xff]  ;;  %v7913_v32 = vld [vmem:[#allocation13_spill] sm:$0xff] }
 0x33a   : > { %v4126_v25 = vadd.f32 %v4094_v22, %v4074_v37  ;;  %v4127_v39 = vadd.f32 %v4095_v46, %v4075_v18  ;;  %v4136_v4 = vmul.f32 %v4129_v52, %v7771_v26  ;;  %v4137_v47 = vmul.f32 %v4129_v52, %v7905_v2  ;;  %v7914_v38 = vld [vmem:[#allocation49_spill] sm:$0xff] }
 0x33b   : > { %v4138_v28 = vmul.f32 %v4129_v52, %v7906_v24  ;;  %v4139_v43 = vmul.f32 %v4129_v52, %v7907_v53  ;;  %v4140_v27 = vmul.f32 %v4129_v52, %v7908_v19  ;;  %v4141_v5 = vmul.f32 %v4129_v52, %v7909_v13 }
 0x33c   : > { %v4142_v54 = vmul.f32 %v4129_v52, %v7910_v9  ;;  %v4143_v16 = vmul.f32 %v4129_v52, %v7911_v20  ;;  %v4144_v26 = vmul.f32 %v4129_v52, %v7912_v45  ;;  %v4145_v51 = vmul.f32 %v4129_v52, %v7913_v32 }
 0x33d   : > { %v4146_v37 = vadd.f32 %v4130_v60, %v4112_v23  ;;  %v4147_v18 = vadd.f32 %v4131_v29, %v4113_v48  ;;  %v4148_v11 = vadd.f32 %v4132_v49, %v4114_v0  ;;  %v4149_v17 = vadd.f32 %v4133_v55, %v4115_v61  ;;  %v7915_v60 = vld [vmem:[#allocation79_spill] sm:$0xff]  ;;  %v7918_v61 = vld [vmem:[#allocation61_spill] sm:$0xff] }
 0x33e   : > { %v4150_v1 = vadd.f32 %v4134_v56, %v4116_v10  ;;  %v4151_v31 = vadd.f32 %v4135_v35, %v4117_v3  ;;  %v4152_v44 = vadd.f32 %v4136_v4, %v4118_v21  ;;  %v4153_v40 = vadd.f32 %v4137_v47, %v4119_v57  ;;  %v7916_v55 = vld [vmem:[#allocation59_spill] sm:$0xff]  ;;  %v7917_v35 = vld [vmem:[#allocation60_spill] sm:$0xff]  ;;  %v7919_v3 = vld [vmem:[#allocation62_spill] sm:$0xff] }
 0x33f   : > { %v4154_v63 = vadd.f32 %v4138_v28, %v4120_v50  ;;  %v4163_v62 = vstv %s7040_s16  ;;  %v4215_v59 = vstv %s7042_s18  ;;  %v4155_v6 = vadd.f32 %v4139_v43, %v4121_v42 }
 0x340   : > { %v4156_v58 = vadd.f32 %v4140_v27, %v4122_v8  ;;  %v4157_v30 = vadd.f32 %v4141_v5, %v4123_v33  ;;  %v4164_v41 = vmul.f32 %v7914_v38, %v4163_v62  ;;  %v4158_v22 = vadd.f32 %v4142_v54, %v4124_v12 }
 0x341   : > { %v4159_v46 = vadd.f32 %v4143_v16, %v4125_v14  ;;  %v4160_v52 = vadd.f32 %v4144_v26, %v4126_v25  ;;  %v4165_v29 = vmul.f32 %v7915_v60, %v4163_v62  ;;  %v4161_v49 = vadd.f32 %v4145_v51, %v4127_v39  ;;  %v7920_v60 = vld [vmem:[#allocation66_spill] sm:$0xff] }
 0x342   : > { %v4216_v56 = vmul.f32 %v4215_v59, %v7916_v55  ;;  %v4217_v23 = vmul.f32 %v4215_v59, %v7917_v35  ;;  %v4249_v48 = vstv %s7045_s21  ;;  %v4168_v0 = vrot.slane %v4164_v41, 1 }
 0x343   : > { %v4218_v10 = vmul.f32 %v4215_v59, %v7918_v61  ;;  %v4219_v21 = vmul.f32 %v4215_v59, %v7919_v3  ;;  %v4220_v57 = vmul.f32 %v4215_v59, %v7854_v34  ;;  %v4169_v50 = vrot.slane %v4164_v41, 2 }
 0x344   : > { %v4170_v42 = vrot.slane %v4164_v41, 3  ;;  %v4171_v8 = vrot.slane %v4164_v41, 4  ;;  %v4172_v33 = vrot.slane %v4164_v41, 5  ;;  %v4173_v12 = vrot.slane %v4164_v41, 6 }
 0x345   : > { %v4174_v14 = vrot.slane %v4164_v41, 7  ;;  %v4175_v25 = vrot.slane %v4165_v29, 1  ;;  %v4221_v39 = vmul.f32 %v4215_v59, %v7855_v15  ;;  %v4176_v4 = vrot.slane %v4165_v29, 2 }
 0x346   : > { %v4177_v2 = vrot.slane %v4165_v29, 3  ;;  %v4178_v47 = vrot.slane %v4165_v29, 4  ;;  %v4179_v24 = vrot.slane %v4165_v29, 5  ;;  %v4180_v28 = vrot.slane %v4165_v29, 6 }
 0x347   : > { %v4181_v53 = vrot.slane %v4165_v29, 7  ;;  %v4198_v43 = vadd.f32 %v4164_v41, %v4146_v37  ;;  %v4199_v19 = vadd.f32 %v4168_v0, %v4147_v18  ;;  %v4200_v27 = vadd.f32 %v4169_v50, %v4148_v11  ;;  %v7921_v37 = vld [vmem:[#allocation67_spill] sm:$0xff]  ;;  %v7922_v11 = vld [vmem:[#allocation68_spill] sm:$0xff]  ;;  %v7927_v41 = vld [vmem:[#allocation73_spill] sm:$0xff] }
 0x348   : > { %v4201_v13 = vadd.f32 %v4170_v42, %v4149_v17  ;;  %v4202_v34 = vadd.f32 %v4171_v8, %v4150_v1  ;;  %v4203_v5 = vadd.f32 %v4172_v33, %v4151_v31  ;;  %v4204_v9 = vadd.f32 %v4173_v12, %v4152_v44  ;;  %v7923_v1 = vld [vmem:[#allocation69_spill] sm:$0xff]  ;;  %v7924_v44 = vld [vmem:[#allocation70_spill] sm:$0xff]  ;;  %v4720_v8 = vld [vmem:[%s4920_s24 + $0x30] sm:$0xff] }
 0x349   : > { %v4205_v54 = vadd.f32 %v4174_v14, %v4153_v40  ;;  %v4206_v20 = vadd.f32 %v4165_v29, %v4154_v63  ;;  %v4207_v16 = vadd.f32 %v4175_v25, %v4155_v6  ;;  %v4208_v45 = vadd.f32 %v4176_v4, %v4156_v58  ;;  %v7925_v63 = vld [vmem:[#allocation71_spill] sm:$0xff]  ;;  %v7926_v58 = vld [vmem:[#allocation72_spill] sm:$0xff] }
 0x34a   : > { %v4209_v26 = vadd.f32 %v4177_v2, %v4157_v30  ;;  %v4210_v32 = vadd.f32 %v4178_v47, %v4158_v22  ;;  %v4211_v15 = vadd.f32 %v4179_v24, %v4159_v46  ;;  %v4212_v51 = vadd.f32 %v4180_v28, %v4160_v52  ;;  %v4721_v12 = vld [vmem:[%s4920_s24 + $0x38] sm:$0xff] }
 0x34b   : > { %v4213_v62 = vadd.f32 %v4181_v53, %v4161_v49  ;;  %v4222_v38 = vmul.f32 %v4215_v59, %v7856_v7  ;;  %v4223_v55 = vmul.f32 %v4215_v59, %v7920_v60  ;;  %v4224_v18 = vmul.f32 %v4215_v59, %v7921_v37 }
 0x34c   : > { %v4225_v17 = vmul.f32 %v4215_v59, %v7922_v11  ;;  %v4226_v31 = vmul.f32 %v4215_v59, %v7923_v1  ;;  %v4227_v40 = vmul.f32 %v4215_v59, %v7924_v44  ;;  %v4228_v6 = vmul.f32 %v4215_v59, %v7925_v63 }
 0x34d   : > { %v4229_v30 = vmul.f32 %v4215_v59, %v7926_v58  ;;  %v4230_v22 = vmul.f32 %v4215_v59, %v7927_v41  ;;  %v4231_v7 = vmul.f32 %v4215_v59, %v7865_v36  ;;  %v4232_v46 = vadd.f32 %v4216_v56, %v4198_v43 }
 0x34e   : > { %v4233_v52 = vadd.f32 %v4217_v23, %v4199_v19  ;;  %v4234_v29 = vadd.f32 %v4218_v10, %v4200_v27  ;;  %v4235_v49 = vadd.f32 %v4219_v21, %v4201_v13  ;;  %v4236_v35 = vadd.f32 %v4220_v57, %v4202_v34 }
 0x34f   : > { %v4237_v0 = vadd.f32 %v4221_v39, %v4203_v5  ;;  %v4238_v61 = vadd.f32 %v4222_v38, %v4204_v9  ;;  %v4239_v3 = vadd.f32 %v4223_v55, %v4205_v54  ;;  %v4240_v50 = vadd.f32 %v4224_v18, %v4206_v20 }
 0x350   : > { %v4241_v42 = vadd.f32 %v4225_v17, %v4207_v16  ;;  %v4250_v33 = vmul.f32 %v4720_v8, %v4249_v48  ;;  %v4251_v14 = vmul.f32 %v4721_v12, %v4249_v48  ;;  %v4242_v25 = vadd.f32 %v4226_v31, %v4208_v45 }
 0x351   : > { %v4243_v4 = vadd.f32 %v4227_v40, %v4209_v26  ;;  %v4244_v2 = vadd.f32 %v4228_v6, %v4210_v32  ;;  %v4245_v47 = vadd.f32 %v4229_v30, %v4211_v15  ;;  %v4246_v23 = vadd.f32 %v4230_v22, %v4212_v51 }
 0x352   : > { %v4254_v24 = vrot.slane %v4250_v33, 1  ;;  %v4255_v36 = vrot.slane %v4250_v33, 2  ;;  %v4256_v59 = vrot.slane %v4250_v33, 3  ;;  %v4257_v56 = vrot.slane %v4250_v33, 4 }
 0x353   : > { %v4258_v10 = vrot.slane %v4250_v33, 5  ;;  %v4259_v21 = vrot.slane %v4250_v33, 6  ;;  %v4261_v57 = vrot.slane %v4251_v14, 1  ;;  %v4260_v39 = vrot.slane %v4250_v33, 7 }
 0x354   : > { %v4262_v28 = vrot.slane %v4251_v14, 2  ;;  %v4263_v53 = vrot.slane %v4251_v14, 3  ;;  %v4264_v43 = vrot.slane %v4251_v14, 4  ;;  %v4247_v19 = vadd.f32 %v4231_v7, %v4213_v62 }
 0x355   : > { %v4265_v27 = vrot.slane %v4251_v14, 5  ;;  %v4266_v13 = vrot.slane %v4251_v14, 6  ;;  %v4285_v48 = vadd.f32 %v4254_v24, %v4233_v52  ;;  %v4267_v34 = vrot.slane %v4251_v14, 7 }
 0x356   : > { %v4286_v5 = vadd.f32 %v4255_v36, %v4234_v29  ;;  %v4287_v9 = vadd.f32 %v4256_v59, %v4235_v49  ;;  %v4288_v54 = vadd.f32 %v4257_v56, %v4236_v35  ;;  %v4284_v20 = vadd.f32 %v4250_v33, %v4232_v46 }
 0x357   : > { %v4289_v16 = vadd.f32 %v4258_v10, %v4237_v0  ;;  %v4290_v45 = vadd.f32 %v4259_v21, %v4238_v61  ;;  %v4293_v26 = vadd.f32 %v4261_v57, %v4241_v42  ;;  %v4291_v32 = vadd.f32 %v4260_v39, %v4239_v3 }
 0x358   : > { %v4294_v15 = vadd.f32 %v4262_v28, %v4242_v25  ;;  %v4295_v51 = vadd.f32 %v4263_v53, %v4243_v4  ;;  %v4296_v38 = vadd.f32 %v4264_v43, %v4244_v2  ;;  %v4292_v60 = vadd.f32 %v4251_v14, %v4240_v50 }
 0x359   : > { %v4297_v55 = vadd.f32 %v4265_v27, %v4245_v47  ;;  %v4298_v37 = vadd.f32 %v4266_v13, %v4246_v23  ;;  %v4301_v18 = vmax.f32 %v4285_v48, 0.0  ;;  %v4299_v62 = vadd.f32 %v4267_v34, %v4247_v19 }
 0x35a   : > { %v4302_v11 = vmax.f32 %v4286_v5, 0.0  ;;  %v4303_v17 = vmax.f32 %v4287_v9, 0.0  ;;  %v4304_v1 = vmax.f32 %v4288_v54, 0.0  ;;  %v4300_v31 = vmax.f32 %v4284_v20, 0.0 }
 0x35b   : > { %v4305_v44 = vmax.f32 %v4289_v16, 0.0  ;;  %v4306_v40 = vmax.f32 %v4290_v45, 0.0  ;;  %v4309_v63 = vmax.f32 %v4293_v26, 0.0  ;;  %v4307_v6 = vmax.f32 %v4291_v32, 0.0 }
 0x35c   : > { %v4310_v58 = vmax.f32 %v4294_v15, 0.0  ;;  %v4311_v30 = vmax.f32 %v4295_v51, 0.0  ;;  %v4312_v41 = vmax.f32 %v4296_v38, 0.0  ;;  %v4308_v22 = vmax.f32 %v4292_v60, 0.0 }
 0x35d   : > { %v4313_v7 = vmax.f32 %v4297_v55, 0.0  ;;  %v4332_v46 = vrot.slane %v4301_v18, 7  ;;  %v4334_v52 = vrot.slane %v4302_v11, 6  ;;  %v4314_v29 = vmax.f32 %v4298_v37, 0.0 }
 0x35e   : > { %v4315_v49 = vmax.f32 %v4299_v62, 0.0  ;;  %v4336_v35 = vrot.slane %v4303_v17, 5  ;;  %v4338_v0 = vrot.slane %v4304_v1, 4  ;;  %v4340_v3 = vrot.slane %v4305_v44, 3 }
 0x35f   : > { %v4333_v61 = vsel %vm1450_vm1, %v4332_v46, %v4300_v31  ;;  %v4346_v50 = vrot.slane %v4309_v63, 7  ;;  %v4348_v42 = vrot.slane %v4310_v58, 6  ;;  %v4342_v33 = vrot.slane %v4306_v40, 2 }
 0x360   : > { %v4335_v8 = vsel %vm1453_vm2, %v4334_v52, %v4333_v61  ;;  %v4350_v12 = vrot.slane %v4311_v30, 5  ;;  %v4352_v14 = vrot.slane %v4312_v41, 4  ;;  %v4344_v4 = vrot.slane %v4307_v6, 1 }
 0x361   : > { %v4337_v25 = vsel %vm1456_vm3, %v4336_v35, %v4335_v8  ;;  %v4347_v2 = vsel %vm1450_vm1, %v4346_v50, %v4308_v22  ;;  %v4354_v47 = vrot.slane %v4313_v7, 3  ;;  %v4356_v59 = vrot.slane %v4314_v29, 2 }
 0x362   : > { %v4339_v24 = vsel %vm1459_vm4, %v4338_v0, %v4337_v25  ;;  %v4349_v36 = vsel %vm1453_vm2, %v4348_v42, %v4347_v2  ;;  %v4358_v10 = vrot.slane %v4315_v49, 1 }
 0x363   : > { %v4341_v56 = vsel %vm1462_vm5, %v4340_v3, %v4339_v24  ;;  %v4351_v23 = vsel %vm1456_vm3, %v4350_v12, %v4349_v36 }
 0x364   : > { %v4343_v21 = vsel %vm1465_vm6, %v4342_v33, %v4341_v56  ;;  %v4353_v57 = vsel %vm1459_vm4, %v4352_v14, %v4351_v23 }
 0x365   : > { %v4345_v39 = vsel %vm1468_vm7, %v4344_v4, %v4343_v21  ;;  %v4355_v28 = vsel %vm1462_vm5, %v4354_v47, %v4353_v57 }
 0x366   : > { %v4357_v53 = vsel %vm1465_vm6, %v4356_v59, %v4355_v28  ;;  %4596 = vst.msk [vmem:[%s5862_s17 + $0x70] sm:$0xff] %vm398_vm0, %v4345_v39 }
 0x367   : > { %v4359_v43 = vsel %vm1468_vm7, %v4358_v10, %v4357_v53 }
 0x368   : > { %4597 = vst.msk [vmem:[%s5862_s17 + $0x78] sm:$0xff] %vm398_vm0, %v4359_v43 }
 0x369 PF: > { %s17_s20 = sadd.s32 1, %s4797_s20   ;;  %s7928_s18 = smov %s4793_s19 }
 0x36a   : > { %p14_p5 = scmp.ge.s32.totalorder %s17_s20, 4   ;;  %s7929_s19 = smov %s7931_s27 }
 0x36c   :  { %16 = sbr.rel (!%p14_p5) target bundleno = 3 (0x3), region = 93 }
 0x373   :  { %4392 = vsyncpa [#allocation3], 1 }
 0x374   :  { %4394 = vsyncpa [#allocation3 + $0x1], 1 }
 0x375   :  { %4395 = vsyncpa [#allocation5], 1 }

</bundles_post_ra>
